<compile_context>
chip_gen: v6e
topology: v6e:2x2x1
jax: 0.10.0
libtpu: 0.0.40
codegen_flags: <defaults>
</compile_context>

<pallas_src>
import jax
import jax.numpy as jnp
from jax.experimental import pallas as pl
from jax.experimental.pallas import tpu as pltpu

# ----- hyper-parameters (small, consistent with the module's __init__) -----
B = 2                 # batch
N = 16                # nodes per graph
F_IN = 32             # patch_feats_dim
E = 32                # embed_dim
K = 8                 # num_node_cluster
MLP_RATIO = 2.0
H = int(E * MLP_RATIO)        # 64
NUM_CLASSES = 3
NUM_TASKS = 2
DEPTH = 2
NUM_HEADS = 4
DH = E // NUM_HEADS
S = K + 1                     # cls token + pooled clusters
LN_EPS = 1e-5
EPS = 1e-15                   # torch_geometric dense_mincut_pool EPS (unused: out_adj is dead)
ATT_SCALE = 1.0 / (DH ** 0.5)
INV_SQRT_K = 1.0 / (K ** 0.5)


# ----------------------------- kernel helpers -------------------------------
def _layernorm(x, g, b):
    mu = jnp.mean(x, axis=-1, keepdims=True)
    xc = x - mu
    var = jnp.mean(xc * xc, axis=-1, keepdims=True)
    return xc * jax.lax.rsqrt(var + LN_EPS) * g + b


def _gelu(x):
    # TODO(synk): PyTorch nn.GELU defaults to exact erf; tanh approximation used here.
    return jax.nn.gelu(x, approximate=True)


def _softmax_last(x):
    m = jnp.max(x, axis=-1, keepdims=True)
    e = jnp.exp(x - m)
    return e * pl.reciprocal(jnp.sum(e, axis=-1, keepdims=True), approx=True)


def _mm(a, b):
    return jnp.dot(a, b, preferred_element_type=jnp.float32)


def _dotT(a, b):
    # a: (N, P), b: (N, Q) -> a.T @ b = (P, Q); MXU consumes the transposed LHS.
    return jax.lax.dot_general(a, b, dimension_numbers=(((0,), (0,)), ((), ())),
                               preferred_element_type=jnp.float32)


# ----------------------------- fused forward kernel -------------------------
def fused_forward_kernel(
        nf_ref, adj_ref, mask_ref,
        wg_ref, bg_ref, wp_ref, bp_ref, cls_ref,
        ln1g_ref, ln1b_ref,
        wq_ref, bq_ref, wk_ref, bk_ref, wv_ref, bv_ref,
        wpj_ref, bpj_ref,
        ln2g_ref, ln2b_ref, w1_ref, b1_ref, w2_ref, b2_ref,
        normg_ref, normb_ref,
        hw1_ref, hb1_ref, hw2_ref, hb2_ref,
        logits_ref, loss_ref,
        tok_ref):
    # cluster-identity matrix (hoisted once)
    row = jax.lax.broadcasted_iota(jnp.int32, (K, K), 0)
    col = jax.lax.broadcasted_iota(jnp.int32, (K, K), 1)
    eye_k = (row == col).astype(jnp.float32)

    mc_sum = jnp.zeros((1, 1), jnp.float32)
    or_sum = jnp.zeros((1, 1), jnp.float32)

    for b in range(B):            # static unroll over batch: no per-grid-step overhead
        nf = nf_ref[b]            # (N, F_IN)
        adj = adj_ref[b]          # (N, N)
        mask = mask_ref[b]        # (N, 1)

        # ---- GCN block:  X = mask * node_feat ; relu(adj @ X @ Wg + bg) ----
        # TODO(synk): GCNBlock source not given; assumed y = relu(adj @ x @ W + b)
        #             (add_self / batchnorm / embedding-normalize flags assumed off).
        x = nf * mask
        y = _mm(adj, x)
        y = jnp.maximum(_mm(y, wg_ref[...]) + bg_ref[...], 0.0)          # (N, E)

        # ---- pool1 + dense_mincut_pool ----
        s = _softmax_last(_mm(y, wp_ref[...]) + bp_ref[...])             # (N, K)
        xm = y * mask
        sm = s * mask
        out_x = _dotT(sm, xm)                                            # (K, E)  s^T @ x
        sa = _dotT(sm, adj)                                              # (K, N)  s^T @ adj
        out_adj = _mm(sa, sm)                                            # (K, K)

        mincut_num = jnp.sum(out_adj * eye_k, keepdims=True)             # (1, 1) trace
        d_flat = jnp.sum(adj, axis=-1, keepdims=True)                    # (N, 1) degrees
        mincut_den = jnp.sum(d_flat * sm * sm, keepdims=True)            # trace(S^T D S)
        mc_sum = mc_sum - mincut_num / mincut_den

        ss = _dotT(sm, sm)                                               # (K, K)
        ss_norm = jnp.sqrt(jnp.sum(ss * ss, keepdims=True))              # Frobenius norm
        diff = ss / ss_norm - eye_k * INV_SQRT_K
        or_sum = or_sum + jnp.sqrt(jnp.sum(diff * diff, keepdims=True))
        # NOTE: coarsened adjacency returned by dense_mincut_pool is unused by the
        #       PyTorch forward -> its zero-diag + degree normalization is skipped.

        # ---- prepend cls token (VMEM scratch write, no concatenate relayout) ----
        tok_ref[0:1, :] = cls_ref[0]
        tok_ref[1:S, :] = out_x
        xt = tok_ref[...]                                                # (S, E)

        # ---- ViT blocks (preLN MHSA + preLN MLP), statically unrolled ----
        # TODO(synk): VisionTransformer internals not given; assumed preLN blocks +
        #             final LayerNorm and cls-token readout (embedding = norm(x)[:, 0]).
        for d in range(DEPTH):
            h = _layernorm(xt, ln1g_ref[d], ln1b_ref[d])
            attn = jnp.zeros((S, E), jnp.float32)
            for hd in range(NUM_HEADS):
                qh = _mm(h, wq_ref[d, hd]) + bq_ref[d, hd]               # (S, DH)
                kh = _mm(h, wk_ref[d, hd]) + bk_ref[d, hd]
                vh = _mm(h, wv_ref[d, hd]) + bv_ref[d, hd]
                att = jax.lax.dot_general(
                    qh, kh, dimension_numbers=(((1,), (1,)), ((), ())),
                    preferred_element_type=jnp.float32) * ATT_SCALE      # (S, S)
                att = _softmax_last(att)
                oh = _mm(att, vh)                                        # (S, DH)
                # concat(heads) @ Wproj == sum_h head_h @ Wproj[h*DH:(h+1)*DH, :]
                attn = attn + _mm(oh, wpj_ref[d, hd])                    # (S, E)
            xt = xt + attn + bpj_ref[d]
            h2 = _layernorm(xt, ln2g_ref[d], ln2b_ref[d])
            m = _gelu(_mm(h2, w1_ref[d]) + b1_ref[d])
            xt = xt + _mm(m, w2_ref[d]) + b2_ref[d]

        # ---- final LayerNorm on cls token + per-task MLP heads ----
        c = _layernorm(xt[0:1, :], normg_ref[...], normb_ref[...])       # (1, E)
        for t in range(NUM_TASKS):
            hh = _gelu(_mm(c, hw1_ref[t]) + hb1_ref[t])                  # (1, H)
            logit = _mm(hh, hw2_ref[t]) + hb2_ref[t]                     # (1, C)
            r = t * B + b
            logits_ref[r:r + 1, :] = logit

    # batch-mean losses, reduced in-kernel (no extra XLA dispatches)
    loss_ref[0:1, :] = mc_sum * (1.0 / B)
    loss_ref[1:2, :] = or_sum * (1.0 / B)


# ----------------------------- wrapper ---------------------------------------
def _graph_transformer_forward(node_feat, adj, mask, p):
    mask3 = mask[:, :, None].astype(jnp.float32)                          # (B, N, 1)
    inputs = (node_feat, adj, mask3,
              p['wg'], p['bg'], p['wp'], p['bp'], p['cls'],
              p['ln1g'], p['ln1b'],
              p['wq'], p['bq'], p['wk'], p['bk'], p['wv'], p['bv'],
              p['wpj'], p['bpj'],
              p['ln2g'], p['ln2b'], p['w1'], p['b1'], p['w2'], p['b2'],
              p['normg'], p['normb'],
              p['hw1'], p['hb1'], p['hw2'], p['hb2'])
    vspec = pl.BlockSpec(memory_space=pltpu.MemorySpace.VMEM)
    logits2d, losses = pl.pallas_call(
        fused_forward_kernel,
        out_shape=(jax.ShapeDtypeStruct((NUM_TASKS * B, NUM_CLASSES), jnp.float32),
                   jax.ShapeDtypeStruct((2, 1), jnp.float32)),
        in_specs=[vspec] * len(inputs),
        out_specs=(vspec, vspec),
        scratch_shapes=[pltpu.VMEM((S, E), jnp.float32)],
    )(*inputs)
    head_outs = [logits2d[t * B:(t + 1) * B, :] for t in range(NUM_TASKS)]  # fusion != 'late'
    return head_outs, losses[0, 0], losses[1, 0]


graph_transformer_forward = jax.jit(_graph_transformer_forward)


# ----------------------------- main ------------------------------------------
if __name__ == "__main__":
    root = jax.random.PRNGKey(0)
    keys = iter(jax.random.split(root, 64))

    def nrm(shape, scale=0.02):
        return (scale * jax.random.normal(next(keys), shape)).astype(jnp.float32)

    # per-block weights in the PyTorch layout (fused qkv Linear), then re-packed
    # into the per-head split layout the kernel consumes.
    blocks = [dict(
        ln1g=jnp.ones((1, E), jnp.float32), ln1b=jnp.zeros((1, E), jnp.float32),
        wqkv=nrm((E, 3 * E)), bqkv=jnp.zeros((3 * E,), jnp.float32),
        wproj=nrm((E, E)), bproj=jnp.zeros((1, E), jnp.float32),
        ln2g=jnp.ones((1, E), jnp.float32), ln2b=jnp.zeros((1, E), jnp.float32),
        w1=nrm((E, H)), b1=jnp.zeros((1, H), jnp.float32),
        w2=nrm((H, E)), b2=jnp.zeros((1, E), jnp.float32),
    ) for _ in range(DEPTH)]

    def split_heads(blk):
        def part(i):
            w = blk['wqkv'][:, i * E:(i + 1) * E]                    # (E, E)
            b = blk['bqkv'][i * E:(i + 1) * E]                       # (E,)
            w = w.reshape(E, NUM_HEADS, DH).transpose(1, 0, 2)       # (NH, E, DH)
            b = b.reshape(NUM_HEADS, 1, DH)
            return w, b
        wq, bq = part(0)
        wk, bk = part(1)
        wv, bv = part(2)
        wpj = blk['wproj'].reshape(NUM_HEADS, DH, E)                 # (NH, DH, E)
        return wq, bq, wk, bk, wv, bv, wpj

    split = [split_heads(blk) for blk in blocks]

    def stack(name):
        return jnp.stack([blk[name] for blk in blocks], axis=0)

    params = {
        'wg': nrm((F_IN, E)), 'bg': jnp.zeros((1, E), jnp.float32),
        'wp': nrm((E, K)), 'bp': jnp.zeros((1, K), jnp.float32),
        'cls': nrm((1, 1, E)),
        'ln1g': stack('ln1g'), 'ln1b': stack('ln1b'),
        'wq': jnp.stack([s[0] for s in split]), 'bq': jnp.stack([s[1] for s in split]),
        'wk': jnp.stack([s[2] for s in split]), 'bk': jnp.stack([s[3] for s in split]),
        'wv': jnp.stack([s[4] for s in split]), 'bv': jnp.stack([s[5] for s in split]),
        'wpj': jnp.stack([s[6] for s in split]),
        'bpj': stack('bproj'),
        'ln2g': stack('ln2g'), 'ln2b': stack('ln2b'),
        'w1': stack('w1'), 'b1': stack('b1'),
        'w2': stack('w2'), 'b2': stack('b2'),
        'normg': jnp.ones((1, E), jnp.float32), 'normb': jnp.zeros((1, E), jnp.float32),
        'hw1': nrm((NUM_TASKS, E, H)), 'hb1': jnp.zeros((NUM_TASKS, 1, H), jnp.float32),
        'hw2': nrm((NUM_TASKS, H, NUM_CLASSES)),
        'hb2': jnp.zeros((NUM_TASKS, 1, NUM_CLASSES), jnp.float32),
    }

    node_feat = jax.random.normal(next(keys), (B, N, F_IN), jnp.float32)
    a = jax.random.uniform(next(keys), (B, N, N), jnp.float32)
    adj = 0.5 * (a + jnp.transpose(a, (0, 2, 1)))                    # symmetric dense adjacency
    lengths = jnp.array([12, 16])
    mask = (jnp.arange(N)[None, :] < lengths[:, None]).astype(jnp.float32)   # (B, N)

    head_outs, mc_loss, ortho_loss = graph_transformer_forward(node_feat, adj, mask, params)
    for o in head_outs:
        jax.block_until_ready(o)
    jax.block_until_ready(mc_loss)
    jax.block_until_ready(ortho_loss)
    assert head_outs[0].shape == (B, NUM_CLASSES) and len(head_outs) == NUM_TASKS
    assert jnp.isfinite(mc_loss) and jnp.isfinite(ortho_loss)
    print("KERNEL_OK")
</pallas_src>

<mosaic_0001>
module attributes {stable_mosaic.version = 11 : i64} {
  func.func @fused_forward_kernel(%arg0: memref<2x16x32xf32, #tpu.memory_space<vmem>>, %arg1: memref<2x16x16xf32, #tpu.memory_space<vmem>>, %arg2: memref<2x16x1xf32, #tpu.memory_space<vmem>>, %arg3: memref<32x32xf32, #tpu.memory_space<vmem>>, %arg4: memref<1x32xf32, #tpu.memory_space<vmem>>, %arg5: memref<32x8xf32, #tpu.memory_space<vmem>>, %arg6: memref<1x8xf32, #tpu.memory_space<vmem>>, %arg7: memref<1x1x32xf32, #tpu.memory_space<vmem>>, %arg8: memref<2x1x32xf32, #tpu.memory_space<vmem>>, %arg9: memref<2x1x32xf32, #tpu.memory_space<vmem>>, %arg10: memref<2x4x32x8xf32, #tpu.memory_space<vmem>>, %arg11: memref<2x4x1x8xf32, #tpu.memory_space<vmem>>, %arg12: memref<2x4x32x8xf32, #tpu.memory_space<vmem>>, %arg13: memref<2x4x1x8xf32, #tpu.memory_space<vmem>>, %arg14: memref<2x4x32x8xf32, #tpu.memory_space<vmem>>, %arg15: memref<2x4x1x8xf32, #tpu.memory_space<vmem>>, %arg16: memref<2x4x8x32xf32, #tpu.memory_space<vmem>>, %arg17: memref<2x1x32xf32, #tpu.memory_space<vmem>>, %arg18: memref<2x1x32xf32, #tpu.memory_space<vmem>>, %arg19: memref<2x1x32xf32, #tpu.memory_space<vmem>>, %arg20: memref<2x32x64xf32, #tpu.memory_space<vmem>>, %arg21: memref<2x1x64xf32, #tpu.memory_space<vmem>>, %arg22: memref<2x64x32xf32, #tpu.memory_space<vmem>>, %arg23: memref<2x1x32xf32, #tpu.memory_space<vmem>>, %arg24: memref<1x32xf32, #tpu.memory_space<vmem>>, %arg25: memref<1x32xf32, #tpu.memory_space<vmem>>, %arg26: memref<2x32x64xf32, #tpu.memory_space<vmem>>, %arg27: memref<2x1x64xf32, #tpu.memory_space<vmem>>, %arg28: memref<2x64x3xf32, #tpu.memory_space<vmem>>, %arg29: memref<2x1x3xf32, #tpu.memory_space<vmem>>, %arg30: memref<4x3xf32, #tpu.memory_space<vmem>>, %arg31: memref<2x1xf32, #tpu.memory_space<vmem>>, %arg32: memref<9x32xf32, #tpu.memory_space<vmem>>) attributes {dimension_semantics = [], scalar_prefetch = 0 : i64, scratch_operands = 1 : i64, tpu.core_type = #tpu.core_type<tc>} {
    %0 = tpu.iota {dimensions = array<i32: 0>} : vector<8x8xi32>
    %1 = tpu.iota {dimensions = array<i32: 1>} : vector<8x8xi32>
    %2 = arith.cmpi eq, %0, %1 : vector<8x8xi32>
    %3 = arith.extui %2 : vector<8x8xi1> to vector<8x8xi32>
    %4 = arith.sitofp %3 : vector<8x8xi32> to vector<8x8xf32>
    %cst = arith.constant 0.000000e+00 : f32
    %5 = vector.broadcast %cst : f32 to vector<1x1xf32>
    %cst_0 = arith.constant 0.000000e+00 : f32
    %6 = vector.broadcast %cst_0 : f32 to vector<1x1xf32>
    %c0 = arith.constant 0 : index
    %c0_1 = arith.constant 0 : index
    %c0_2 = arith.constant 0 : index
    %7 = vector.load %arg0[%c0, %c0_1, %c0_2] : memref<2x16x32xf32, #tpu.memory_space<vmem>>, vector<1x16x32xf32>
    %8 = vector.shape_cast %7 : vector<1x16x32xf32> to vector<16x32xf32>
    %c0_3 = arith.constant 0 : index
    %c0_4 = arith.constant 0 : index
    %c0_5 = arith.constant 0 : index
    %9 = vector.load %arg1[%c0_3, %c0_4, %c0_5] : memref<2x16x16xf32, #tpu.memory_space<vmem>>, vector<1x16x16xf32>
    %10 = vector.shape_cast %9 : vector<1x16x16xf32> to vector<16x16xf32>
    %c0_6 = arith.constant 0 : index
    %c0_7 = arith.constant 0 : index
    %c0_8 = arith.constant 0 : index
    %11 = vector.load %arg2[%c0_6, %c0_7, %c0_8] : memref<2x16x1xf32, #tpu.memory_space<vmem>>, vector<1x16x1xf32>
    %12 = vector.shape_cast %11 : vector<1x16x1xf32> to vector<16x1xf32>
    %13 = vector.broadcast %12 : vector<16x1xf32> to vector<16x32xf32>
    %14 = arith.mulf %8, %13 : vector<16x32xf32>
    %cst_9 = arith.constant dense<0.000000e+00> : vector<16x32xf32>
    %15 = tpu.matmul %10, %14, %cst_9 {dimension_numbers = #tpu.dot_dimension_numbers<[1], [0], [0], [1], [0, 0, 1, 1], [], []>} : vector<16x16xf32>, vector<16x32xf32>, vector<16x32xf32> -> vector<16x32xf32>
    %c0_10 = arith.constant 0 : index
    %c0_11 = arith.constant 0 : index
    %16 = vector.load %arg3[%c0_10, %c0_11] : memref<32x32xf32, #tpu.memory_space<vmem>>, vector<32x32xf32>
    %cst_12 = arith.constant dense<0.000000e+00> : vector<16x32xf32>
    %17 = tpu.matmul %15, %16, %cst_12 {dimension_numbers = #tpu.dot_dimension_numbers<[1], [0], [0], [1], [0, 0, 1, 1], [], []>} : vector<16x32xf32>, vector<32x32xf32>, vector<16x32xf32> -> vector<16x32xf32>
    %c0_13 = arith.constant 0 : index
    %c0_14 = arith.constant 0 : index
    %18 = vector.load %arg4[%c0_13, %c0_14] : memref<1x32xf32, #tpu.memory_space<vmem>>, vector<1x32xf32>
    %19 = vector.broadcast %18 : vector<1x32xf32> to vector<16x32xf32>
    %20 = arith.addf %17, %19 : vector<16x32xf32>
    %cst_15 = arith.constant 0.000000e+00 : f32
    %21 = vector.broadcast %cst_15 : f32 to vector<16x32xf32>
    %22 = arith.maximumf %20, %21 : vector<16x32xf32>
    %c0_16 = arith.constant 0 : index
    %c0_17 = arith.constant 0 : index
    %23 = vector.load %arg5[%c0_16, %c0_17] : memref<32x8xf32, #tpu.memory_space<vmem>>, vector<32x8xf32>
    %cst_18 = arith.constant dense<0.000000e+00> : vector<16x8xf32>
    %24 = tpu.matmul %22, %23, %cst_18 {dimension_numbers = #tpu.dot_dimension_numbers<[1], [0], [0], [1], [0, 0, 1, 1], [], []>} : vector<16x32xf32>, vector<32x8xf32>, vector<16x8xf32> -> vector<16x8xf32>
    %c0_19 = arith.constant 0 : index
    %c0_20 = arith.constant 0 : index
    %25 = vector.load %arg6[%c0_19, %c0_20] : memref<1x8xf32, #tpu.memory_space<vmem>>, vector<1x8xf32>
    %26 = vector.broadcast %25 : vector<1x8xf32> to vector<16x8xf32>
    %27 = arith.addf %24, %26 : vector<16x8xf32>
    %cst_21 = arith.constant dense<0xFF800000> : vector<16xf32>
    %28 = vector.multi_reduction <maximumf>, %27, %cst_21 [1] : vector<16x8xf32> to vector<16xf32>
    %29 = vector.shape_cast %28 : vector<16xf32> to vector<16x1xf32>
    %30 = vector.broadcast %29 : vector<16x1xf32> to vector<16x8xf32>
    %31 = arith.subf %27, %30 : vector<16x8xf32>
    %32 = math.exp %31 : vector<16x8xf32>
    %cst_22 = arith.constant dense<0.000000e+00> : vector<16xf32>
    %33 = vector.multi_reduction <add>, %32, %cst_22 [1] : vector<16x8xf32> to vector<16xf32>
    %34 = vector.shape_cast %33 : vector<16xf32> to vector<16x1xf32>
    %35 = tpu.reciprocal %34 {approx = true} : vector<16x1xf32> -> vector<16x1xf32>
    %36 = vector.broadcast %35 : vector<16x1xf32> to vector<16x8xf32>
    %37 = arith.mulf %32, %36 : vector<16x8xf32>
    %38 = vector.broadcast %12 : vector<16x1xf32> to vector<16x32xf32>
    %39 = arith.mulf %22, %38 : vector<16x32xf32>
    %40 = vector.broadcast %12 : vector<16x1xf32> to vector<16x8xf32>
    %41 = arith.mulf %37, %40 : vector<16x8xf32>
    %cst_23 = arith.constant dense<0.000000e+00> : vector<8x32xf32>
    %42 = tpu.matmul %41, %39, %cst_23 {dimension_numbers = #tpu.dot_dimension_numbers<[0], [0], [1], [1], [0, 1, 1, 1], [], []>} : vector<16x8xf32>, vector<16x32xf32>, vector<8x32xf32> -> vector<8x32xf32>
    %cst_24 = arith.constant dense<0.000000e+00> : vector<8x16xf32>
    %43 = tpu.matmul %41, %10, %cst_24 {dimension_numbers = #tpu.dot_dimension_numbers<[0], [0], [1], [1], [0, 1, 1, 1], [], []>} : vector<16x8xf32>, vector<16x16xf32>, vector<8x16xf32> -> vector<8x16xf32>
    %cst_25 = arith.constant dense<0.000000e+00> : vector<8x8xf32>
    %44 = tpu.matmul %43, %41, %cst_25 {dimension_numbers = #tpu.dot_dimension_numbers<[1], [0], [0], [1], [0, 0, 1, 1], [], []>} : vector<8x16xf32>, vector<16x8xf32>, vector<8x8xf32> -> vector<8x8xf32>
    %45 = arith.mulf %44, %4 : vector<8x8xf32>
    %46 = vector.shape_cast %45 : vector<8x8xf32> to vector<1x8x8xf32>
    %cst_26 = arith.constant dense<0.000000e+00> : vector<1xf32>
    %47 = vector.multi_reduction <add>, %46, %cst_26 [1, 2] : vector<1x8x8xf32> to vector<1xf32>
    %48 = vector.shape_cast %47 : vector<1xf32> to vector<1x1x1xf32>
    %49 = vector.extract %48[0, 0, 0] : f32 from vector<1x1x1xf32>
    %50 = vector.broadcast %49 : f32 to vector<1x1xf32>
    %cst_27 = arith.constant dense<0.000000e+00> : vector<16xf32>
    %51 = vector.multi_reduction <add>, %10, %cst_27 [1] : vector<16x16xf32> to vector<16xf32>
    %52 = vector.shape_cast %51 : vector<16xf32> to vector<16x1xf32>
    %53 = vector.broadcast %52 : vector<16x1xf32> to vector<16x8xf32>
    %54 = arith.mulf %53, %41 : vector<16x8xf32>
    %55 = arith.mulf %54, %41 : vector<16x8xf32>
    %56 = vector.shape_cast %55 : vector<16x8xf32> to vector<1x16x8xf32>
    %cst_28 = arith.constant dense<0.000000e+00> : vector<1xf32>
    %57 = vector.multi_reduction <add>, %56, %cst_28 [1, 2] : vector<1x16x8xf32> to vector<1xf32>
    %58 = vector.shape_cast %57 : vector<1xf32> to vector<1x1x1xf32>
    %59 = vector.extract %58[0, 0, 0] : f32 from vector<1x1x1xf32>
    %60 = vector.broadcast %59 : f32 to vector<1x1xf32>
    %61 = arith.divf %50, %60 : vector<1x1xf32>
    %62 = arith.subf %5, %61 : vector<1x1xf32>
    %cst_29 = arith.constant dense<0.000000e+00> : vector<8x8xf32>
    %63 = tpu.matmul %41, %41, %cst_29 {dimension_numbers = #tpu.dot_dimension_numbers<[0], [0], [1], [1], [0, 1, 1, 1], [], []>} : vector<16x8xf32>, vector<16x8xf32>, vector<8x8xf32> -> vector<8x8xf32>
    %64 = arith.mulf %63, %63 : vector<8x8xf32>
    %65 = vector.shape_cast %64 : vector<8x8xf32> to vector<1x8x8xf32>
    %cst_30 = arith.constant dense<0.000000e+00> : vector<1xf32>
    %66 = vector.multi_reduction <add>, %65, %cst_30 [1, 2] : vector<1x8x8xf32> to vector<1xf32>
    %67 = vector.shape_cast %66 : vector<1xf32> to vector<1x1x1xf32>
    %68 = vector.extract %67[0, 0, 0] : f32 from vector<1x1x1xf32>
    %69 = vector.broadcast %68 : f32 to vector<1x1xf32>
    %70 = math.sqrt %69 : vector<1x1xf32>
    %71 = vector.broadcast %70 : vector<1x1xf32> to vector<8x8xf32>
    %72 = arith.divf %63, %71 : vector<8x8xf32>
    %cst_31 = arith.constant 0.353553385 : f32
    %73 = vector.broadcast %cst_31 : f32 to vector<8x8xf32>
    %74 = arith.mulf %4, %73 : vector<8x8xf32>
    %75 = arith.subf %72, %74 : vector<8x8xf32>
    %76 = arith.mulf %75, %75 : vector<8x8xf32>
    %77 = vector.shape_cast %76 : vector<8x8xf32> to vector<1x8x8xf32>
    %cst_32 = arith.constant dense<0.000000e+00> : vector<1xf32>
    %78 = vector.multi_reduction <add>, %77, %cst_32 [1, 2] : vector<1x8x8xf32> to vector<1xf32>
    %79 = vector.shape_cast %78 : vector<1xf32> to vector<1x1x1xf32>
    %80 = vector.extract %79[0, 0, 0] : f32 from vector<1x1x1xf32>
    %81 = vector.broadcast %80 : f32 to vector<1x1xf32>
    %82 = math.sqrt %81 : vector<1x1xf32>
    %83 = arith.addf %6, %82 : vector<1x1xf32>
    %c0_33 = arith.constant 0 : index
    %c0_34 = arith.constant 0 : index
    %c0_35 = arith.constant 0 : index
    %84 = vector.load %arg7[%c0_33, %c0_34, %c0_35] : memref<1x1x32xf32, #tpu.memory_space<vmem>>, vector<1x1x32xf32>
    %85 = vector.shape_cast %84 : vector<1x1x32xf32> to vector<1x32xf32>
    %c0_36 = arith.constant 0 : index
    %c0_37 = arith.constant 0 : index
    %86 = vector.load %arg32[%c0_36, %c0_37] : memref<9x32xf32, #tpu.memory_space<vmem>>, vector<1x32xf32>
    tpu.vector_store %arg32[%c0_36, %c0_37], %85 {strides = array<i32>} : memref<9x32xf32, #tpu.memory_space<vmem>>, vector<1x32xf32>,
    %c1 = arith.constant 1 : index
    %c0_38 = arith.constant 0 : index
    %87 = vector.load %arg32[%c1, %c0_38] : memref<9x32xf32, #tpu.memory_space<vmem>>, vector<8x32xf32>
    tpu.vector_store %arg32[%c1, %c0_38], %42 {strides = array<i32>} : memref<9x32xf32, #tpu.memory_space<vmem>>, vector<8x32xf32>,
    %c0_39 = arith.constant 0 : index
    %c0_40 = arith.constant 0 : index
    %88 = vector.load %arg32[%c0_39, %c0_40] : memref<9x32xf32, #tpu.memory_space<vmem>>, vector<9x32xf32>
    %c0_41 = arith.constant 0 : index
    %c0_42 = arith.constant 0 : index
    %c0_43 = arith.constant 0 : index
    %89 = vector.load %arg8[%c0_41, %c0_42, %c0_43] : memref<2x1x32xf32, #tpu.memory_space<vmem>>, vector<1x1x32xf32>
    %90 = vector.shape_cast %89 : vector<1x1x32xf32> to vector<1x32xf32>
    %c0_44 = arith.constant 0 : index
    %c0_45 = arith.constant 0 : index
    %c0_46 = arith.constant 0 : index
    %91 = vector.load %arg9[%c0_44, %c0_45, %c0_46] : memref<2x1x32xf32, #tpu.memory_space<vmem>>, vector<1x1x32xf32>
    %92 = vector.shape_cast %91 : vector<1x1x32xf32> to vector<1x32xf32>
    %cst_47 = arith.constant dense<0.000000e+00> : vector<9xf32>
    %93 = vector.multi_reduction <add>, %88, %cst_47 [1] : vector<9x32xf32> to vector<9xf32>
    %94 = vector.shape_cast %93 : vector<9xf32> to vector<9x1xf32>
    %cst_48 = arith.constant 3.200000e+01 : f32
    %95 = vector.broadcast %cst_48 : f32 to vector<9x1xf32>
    %96 = arith.divf %94, %95 : vector<9x1xf32>
    %97 = vector.broadcast %96 : vector<9x1xf32> to vector<9x32xf32>
    %98 = arith.subf %88, %97 : vector<9x32xf32>
    %99 = arith.mulf %98, %98 : vector<9x32xf32>
    %cst_49 = arith.constant dense<0.000000e+00> : vector<9xf32>
    %100 = vector.multi_reduction <add>, %99, %cst_49 [1] : vector<9x32xf32> to vector<9xf32>
    %101 = vector.shape_cast %100 : vector<9xf32> to vector<9x1xf32>
    %cst_50 = arith.constant 3.200000e+01 : f32
    %102 = vector.broadcast %cst_50 : f32 to vector<9x1xf32>
    %103 = arith.divf %101, %102 : vector<9x1xf32>
    %cst_51 = arith.constant 9.99999974E-6 : f32
    %104 = vector.broadcast %cst_51 : f32 to vector<9x1xf32>
    %105 = arith.addf %103, %104 : vector<9x1xf32>
    %106 = math.rsqrt %105 : vector<9x1xf32>
    %107 = vector.broadcast %106 : vector<9x1xf32> to vector<9x32xf32>
    %108 = arith.mulf %98, %107 : vector<9x32xf32>
    %109 = vector.broadcast %90 : vector<1x32xf32> to vector<9x32xf32>
    %110 = arith.mulf %108, %109 : vector<9x32xf32>
    %111 = vector.broadcast %92 : vector<1x32xf32> to vector<9x32xf32>
    %112 = arith.addf %110, %111 : vector<9x32xf32>
    %cst_52 = arith.constant 0.000000e+00 : f32
    %113 = vector.broadcast %cst_52 : f32 to vector<9x32xf32>
    %c0_53 = arith.constant 0 : index
    %c0_54 = arith.constant 0 : index
    %c0_55 = arith.constant 0 : index
    %c0_56 = arith.constant 0 : index
    %114 = vector.load %arg10[%c0_53, %c0_54, %c0_55, %c0_56] : memref<2x4x32x8xf32, #tpu.memory_space<vmem>>, vector<1x1x32x8xf32>
    %115 = vector.shape_cast %114 : vector<1x1x32x8xf32> to vector<32x8xf32>
    %cst_57 = arith.constant dense<0.000000e+00> : vector<9x8xf32>
    %116 = tpu.matmul %112, %115, %cst_57 {dimension_numbers = #tpu.dot_dimension_numbers<[1], [0], [0], [1], [0, 0, 1, 1], [], []>} : vector<9x32xf32>, vector<32x8xf32>, vector<9x8xf32> -> vector<9x8xf32>
    %c0_58 = arith.constant 0 : index
    %c0_59 = arith.constant 0 : index
    %c0_60 = arith.constant 0 : index
    %c0_61 = arith.constant 0 : index
    %117 = vector.load %arg11[%c0_58, %c0_59, %c0_60, %c0_61] : memref<2x4x1x8xf32, #tpu.memory_space<vmem>>, vector<1x1x1x8xf32>
    %118 = vector.shape_cast %117 : vector<1x1x1x8xf32> to vector<1x8xf32>
    %119 = vector.broadcast %118 : vector<1x8xf32> to vector<9x8xf32>
    %120 = arith.addf %116, %119 : vector<9x8xf32>
    %c0_62 = arith.constant 0 : index
    %c0_63 = arith.constant 0 : index
    %c0_64 = arith.constant 0 : index
    %c0_65 = arith.constant 0 : index
    %121 = vector.load %arg12[%c0_62, %c0_63, %c0_64, %c0_65] : memref<2x4x32x8xf32, #tpu.memory_space<vmem>>, vector<1x1x32x8xf32>
    %122 = vector.shape_cast %121 : vector<1x1x32x8xf32> to vector<32x8xf32>
    %cst_66 = arith.constant dense<0.000000e+00> : vector<9x8xf32>
    %123 = tpu.matmul %112, %122, %cst_66 {dimension_numbers = #tpu.dot_dimension_numbers<[1], [0], [0], [1], [0, 0, 1, 1], [], []>} : vector<9x32xf32>, vector<32x8xf32>, vector<9x8xf32> -> vector<9x8xf32>
    %c0_67 = arith.constant 0 : index
    %c0_68 = arith.constant 0 : index
    %c0_69 = arith.constant 0 : index
    %c0_70 = arith.constant 0 : index
    %124 = vector.load %arg13[%c0_67, %c0_68, %c0_69, %c0_70] : memref<2x4x1x8xf32, #tpu.memory_space<vmem>>, vector<1x1x1x8xf32>
    %125 = vector.shape_cast %124 : vector<1x1x1x8xf32> to vector<1x8xf32>
    %126 = vector.broadcast %125 : vector<1x8xf32> to vector<9x8xf32>
    %127 = arith.addf %123, %126 : vector<9x8xf32>
    %c0_71 = arith.constant 0 : index
    %c0_72 = arith.constant 0 : index
    %c0_73 = arith.constant 0 : index
    %c0_74 = arith.constant 0 : index
    %128 = vector.load %arg14[%c0_71, %c0_72, %c0_73, %c0_74] : memref<2x4x32x8xf32, #tpu.memory_space<vmem>>, vector<1x1x32x8xf32>
    %129 = vector.shape_cast %128 : vector<1x1x32x8xf32> to vector<32x8xf32>
    %cst_75 = arith.constant dense<0.000000e+00> : vector<9x8xf32>
    %130 = tpu.matmul %112, %129, %cst_75 {dimension_numbers = #tpu.dot_dimension_numbers<[1], [0], [0], [1], [0, 0, 1, 1], [], []>} : vector<9x32xf32>, vector<32x8xf32>, vector<9x8xf32> -> vector<9x8xf32>
    %c0_76 = arith.constant 0 : index
    %c0_77 = arith.constant 0 : index
    %c0_78 = arith.constant 0 : index
    %c0_79 = arith.constant 0 : index
    %131 = vector.load %arg15[%c0_76, %c0_77, %c0_78, %c0_79] : memref<2x4x1x8xf32, #tpu.memory_space<vmem>>, vector<1x1x1x8xf32>
    %132 = vector.shape_cast %131 : vector<1x1x1x8xf32> to vector<1x8xf32>
    %133 = vector.broadcast %132 : vector<1x8xf32> to vector<9x8xf32>
    %134 = arith.addf %130, %133 : vector<9x8xf32>
    %cst_80 = arith.constant dense<0.000000e+00> : vector<9x9xf32>
    %135 = tpu.matmul %120, %127, %cst_80 {dimension_numbers = #tpu.dot_dimension_numbers<[1], [1], [0], [0], [0, 0, 1, 0], [], []>} : vector<9x8xf32>, vector<9x8xf32>, vector<9x9xf32> -> vector<9x9xf32>
    %cst_81 = arith.constant 0.353553385 : f32
    %136 = vector.broadcast %cst_81 : f32 to vector<9x9xf32>
    %137 = arith.mulf %135, %136 : vector<9x9xf32>
    %cst_82 = arith.constant dense<0xFF800000> : vector<9xf32>
    %138 = vector.multi_reduction <maximumf>, %137, %cst_82 [1] : vector<9x9xf32> to vector<9xf32>
    %139 = vector.shape_cast %138 : vector<9xf32> to vector<9x1xf32>
    %140 = vector.broadcast %139 : vector<9x1xf32> to vector<9x9xf32>
    %141 = arith.subf %137, %140 : vector<9x9xf32>
    %142 = math.exp %141 : vector<9x9xf32>
    %cst_83 = arith.constant dense<0.000000e+00> : vector<9xf32>
    %143 = vector.multi_reduction <add>, %142, %cst_83 [1] : vector<9x9xf32> to vector<9xf32>
    %144 = vector.shape_cast %143 : vector<9xf32> to vector<9x1xf32>
    %145 = tpu.reciprocal %144 {approx = true} : vector<9x1xf32> -> vector<9x1xf32>
    %146 = vector.broadcast %145 : vector<9x1xf32> to vector<9x9xf32>
    %147 = arith.mulf %142, %146 : vector<9x9xf32>
    %cst_84 = arith.constant dense<0.000000e+00> : vector<9x8xf32>
    %148 = tpu.matmul %147, %134, %cst_84 {dimension_numbers = #tpu.dot_dimension_numbers<[1], [0], [0], [1], [0, 0, 1, 1], [], []>} : vector<9x9xf32>, vector<9x8xf32>, vector<9x8xf32> -> vector<9x8xf32>
    %c0_85 = arith.constant 0 : index
    %c0_86 = arith.constant 0 : index
    %c0_87 = arith.constant 0 : index
    %c0_88 = arith.constant 0 : index
    %149 = vector.load %arg16[%c0_85, %c0_86, %c0_87, %c0_88] : memref<2x4x8x32xf32, #tpu.memory_space<vmem>>, vector<1x1x8x32xf32>
    %150 = vector.shape_cast %149 : vector<1x1x8x32xf32> to vector<8x32xf32>
    %cst_89 = arith.constant dense<0.000000e+00> : vector<9x32xf32>
    %151 = tpu.matmul %148, %150, %cst_89 {dimension_numbers = #tpu.dot_dimension_numbers<[1], [0], [0], [1], [0, 0, 1, 1], [], []>} : vector<9x8xf32>, vector<8x32xf32>, vector<9x32xf32> -> vector<9x32xf32>
    %152 = arith.addf %113, %151 : vector<9x32xf32>
    %c0_90 = arith.constant 0 : index
    %c1_91 = arith.constant 1 : index
    %c0_92 = arith.constant 0 : index
    %c0_93 = arith.constant 0 : index
    %153 = vector.load %arg10[%c0_90, %c1_91, %c0_92, %c0_93] : memref<2x4x32x8xf32, #tpu.memory_space<vmem>>, vector<1x1x32x8xf32>
    %154 = vector.shape_cast %153 : vector<1x1x32x8xf32> to vector<32x8xf32>
    %cst_94 = arith.constant dense<0.000000e+00> : vector<9x8xf32>
    %155 = tpu.matmul %112, %154, %cst_94 {dimension_numbers = #tpu.dot_dimension_numbers<[1], [0], [0], [1], [0, 0, 1, 1], [], []>} : vector<9x32xf32>, vector<32x8xf32>, vector<9x8xf32> -> vector<9x8xf32>
    %c0_95 = arith.constant 0 : index
    %c1_96 = arith.constant 1 : index
    %c0_97 = arith.constant 0 : index
    %c0_98 = arith.constant 0 : index
    %156 = vector.load %arg11[%c0_95, %c1_96, %c0_97, %c0_98] : memref<2x4x1x8xf32, #tpu.memory_space<vmem>>, vector<1x1x1x8xf32>
    %157 = vector.shape_cast %156 : vector<1x1x1x8xf32> to vector<1x8xf32>
    %158 = vector.broadcast %157 : vector<1x8xf32> to vector<9x8xf32>
    %159 = arith.addf %155, %158 : vector<9x8xf32>
    %c0_99 = arith.constant 0 : index
    %c1_100 = arith.constant 1 : index
    %c0_101 = arith.constant 0 : index
    %c0_102 = arith.constant 0 : index
    %160 = vector.load %arg12[%c0_99, %c1_100, %c0_101, %c0_102] : memref<2x4x32x8xf32, #tpu.memory_space<vmem>>, vector<1x1x32x8xf32>
    %161 = vector.shape_cast %160 : vector<1x1x32x8xf32> to vector<32x8xf32>
    %cst_103 = arith.constant dense<0.000000e+00> : vector<9x8xf32>
    %162 = tpu.matmul %112, %161, %cst_103 {dimension_numbers = #tpu.dot_dimension_numbers<[1], [0], [0], [1], [0, 0, 1, 1], [], []>} : vector<9x32xf32>, vector<32x8xf32>, vector<9x8xf32> -> vector<9x8xf32>
    %c0_104 = arith.constant 0 : index
    %c1_105 = arith.constant 1 : index
    %c0_106 = arith.constant 0 : index
    %c0_107 = arith.constant 0 : index
    %163 = vector.load %arg13[%c0_104, %c1_105, %c0_106, %c0_107] : memref<2x4x1x8xf32, #tpu.memory_space<vmem>>, vector<1x1x1x8xf32>
    %164 = vector.shape_cast %163 : vector<1x1x1x8xf32> to vector<1x8xf32>
    %165 = vector.broadcast %164 : vector<1x8xf32> to vector<9x8xf32>
    %166 = arith.addf %162, %165 : vector<9x8xf32>
    %c0_108 = arith.constant 0 : index
    %c1_109 = arith.constant 1 : index
    %c0_110 = arith.constant 0 : index
    %c0_111 = arith.constant 0 : index
    %167 = vector.load %arg14[%c0_108, %c1_109, %c0_110, %c0_111] : memref<2x4x32x8xf32, #tpu.memory_space<vmem>>, vector<1x1x32x8xf32>
    %168 = vector.shape_cast %167 : vector<1x1x32x8xf32> to vector<32x8xf32>
    %cst_112 = arith.constant dense<0.000000e+00> : vector<9x8xf32>
    %169 = tpu.matmul %112, %168, %cst_112 {dimension_numbers = #tpu.dot_dimension_numbers<[1], [0], [0], [1], [0, 0, 1, 1], [], []>} : vector<9x32xf32>, vector<32x8xf32>, vector<9x8xf32> -> vector<9x8xf32>
    %c0_113 = arith.constant 0 : index
    %c1_114 = arith.constant 1 : index
    %c0_115 = arith.constant 0 : index
    %c0_116 = arith.constant 0 : index
    %170 = vector.load %arg15[%c0_113, %c1_114, %c0_115, %c0_116] : memref<2x4x1x8xf32, #tpu.memory_space<vmem>>, vector<1x1x1x8xf32>
    %171 = vector.shape_cast %170 : vector<1x1x1x8xf32> to vector<1x8xf32>
    %172 = vector.broadcast %171 : vector<1x8xf32> to vector<9x8xf32>
    %173 = arith.addf %169, %172 : vector<9x8xf32>
    %cst_117 = arith.constant dense<0.000000e+00> : vector<9x9xf32>
    %174 = tpu.matmul %159, %166, %cst_117 {dimension_numbers = #tpu.dot_dimension_numbers<[1], [1], [0], [0], [0, 0, 1, 0], [], []>} : vector<9x8xf32>, vector<9x8xf32>, vector<9x9xf32> -> vector<9x9xf32>
    %cst_118 = arith.constant 0.353553385 : f32
    %175 = vector.broadcast %cst_118 : f32 to vector<9x9xf32>
    %176 = arith.mulf %174, %175 : vector<9x9xf32>
    %cst_119 = arith.constant dense<0xFF800000> : vector<9xf32>
    %177 = vector.multi_reduction <maximumf>, %176, %cst_119 [1] : vector<9x9xf32> to vector<9xf32>
    %178 = vector.shape_cast %177 : vector<9xf32> to vector<9x1xf32>
    %179 = vector.broadcast %178 : vector<9x1xf32> to vector<9x9xf32>
    %180 = arith.subf %176, %179 : vector<9x9xf32>
    %181 = math.exp %180 : vector<9x9xf32>
    %cst_120 = arith.constant dense<0.000000e+00> : vector<9xf32>
    %182 = vector.multi_reduction <add>, %181, %cst_120 [1] : vector<9x9xf32> to vector<9xf32>
    %183 = vector.shape_cast %182 : vector<9xf32> to vector<9x1xf32>
    %184 = tpu.reciprocal %183 {approx = true} : vector<9x1xf32> -> vector<9x1xf32>
    %185 = vector.broadcast %184 : vector<9x1xf32> to vector<9x9xf32>
    %186 = arith.mulf %181, %185 : vector<9x9xf32>
    %cst_121 = arith.constant dense<0.000000e+00> : vector<9x8xf32>
    %187 = tpu.matmul %186, %173, %cst_121 {dimension_numbers = #tpu.dot_dimension_numbers<[1], [0], [0], [1], [0, 0, 1, 1], [], []>} : vector<9x9xf32>, vector<9x8xf32>, vector<9x8xf32> -> vector<9x8xf32>
    %c0_122 = arith.constant 0 : index
    %c1_123 = arith.constant 1 : index
    %c0_124 = arith.constant 0 : index
    %c0_125 = arith.constant 0 : index
    %188 = vector.load %arg16[%c0_122, %c1_123, %c0_124, %c0_125] : memref<2x4x8x32xf32, #tpu.memory_space<vmem>>, vector<1x1x8x32xf32>
    %189 = vector.shape_cast %188 : vector<1x1x8x32xf32> to vector<8x32xf32>
    %cst_126 = arith.constant dense<0.000000e+00> : vector<9x32xf32>
    %190 = tpu.matmul %187, %189, %cst_126 {dimension_numbers = #tpu.dot_dimension_numbers<[1], [0], [0], [1], [0, 0, 1, 1], [], []>} : vector<9x8xf32>, vector<8x32xf32>, vector<9x32xf32> -> vector<9x32xf32>
    %191 = arith.addf %152, %190 : vector<9x32xf32>
    %c0_127 = arith.constant 0 : index
    %c2 = arith.constant 2 : index
    %c0_128 = arith.constant 0 : index
    %c0_129 = arith.constant 0 : index
    %192 = vector.load %arg10[%c0_127, %c2, %c0_128, %c0_129] : memref<2x4x32x8xf32, #tpu.memory_space<vmem>>, vector<1x1x32x8xf32>
    %193 = vector.shape_cast %192 : vector<1x1x32x8xf32> to vector<32x8xf32>
    %cst_130 = arith.constant dense<0.000000e+00> : vector<9x8xf32>
    %194 = tpu.matmul %112, %193, %cst_130 {dimension_numbers = #tpu.dot_dimension_numbers<[1], [0], [0], [1], [0, 0, 1, 1], [], []>} : vector<9x32xf32>, vector<32x8xf32>, vector<9x8xf32> -> vector<9x8xf32>
    %c0_131 = arith.constant 0 : index
    %c2_132 = arith.constant 2 : index
    %c0_133 = arith.constant 0 : index
    %c0_134 = arith.constant 0 : index
    %195 = vector.load %arg11[%c0_131, %c2_132, %c0_133, %c0_134] : memref<2x4x1x8xf32, #tpu.memory_space<vmem>>, vector<1x1x1x8xf32>
    %196 = vector.shape_cast %195 : vector<1x1x1x8xf32> to vector<1x8xf32>
    %197 = vector.broadcast %196 : vector<1x8xf32> to vector<9x8xf32>
    %198 = arith.addf %194, %197 : vector<9x8xf32>
    %c0_135 = arith.constant 0 : index
    %c2_136 = arith.constant 2 : index
    %c0_137 = arith.constant 0 : index
    %c0_138 = arith.constant 0 : index
    %199 = vector.load %arg12[%c0_135, %c2_136, %c0_137, %c0_138] : memref<2x4x32x8xf32, #tpu.memory_space<vmem>>, vector<1x1x32x8xf32>
    %200 = vector.shape_cast %199 : vector<1x1x32x8xf32> to vector<32x8xf32>
    %cst_139 = arith.constant dense<0.000000e+00> : vector<9x8xf32>
    %201 = tpu.matmul %112, %200, %cst_139 {dimension_numbers = #tpu.dot_dimension_numbers<[1], [0], [0], [1], [0, 0, 1, 1], [], []>} : vector<9x32xf32>, vector<32x8xf32>, vector<9x8xf32> -> vector<9x8xf32>
    %c0_140 = arith.constant 0 : index
    %c2_141 = arith.constant 2 : index
    %c0_142 = arith.constant 0 : index
    %c0_143 = arith.constant 0 : index
    %202 = vector.load %arg13[%c0_140, %c2_141, %c0_142, %c0_143] : memref<2x4x1x8xf32, #tpu.memory_space<vmem>>, vector<1x1x1x8xf32>
    %203 = vector.shape_cast %202 : vector<1x1x1x8xf32> to vector<1x8xf32>
    %204 = vector.broadcast %203 : vector<1x8xf32> to vector<9x8xf32>
    %205 = arith.addf %201, %204 : vector<9x8xf32>
    %c0_144 = arith.constant 0 : index
    %c2_145 = arith.constant 2 : index
    %c0_146 = arith.constant 0 : index
    %c0_147 = arith.constant 0 : index
    %206 = vector.load %arg14[%c0_144, %c2_145, %c0_146, %c0_147] : memref<2x4x32x8xf32, #tpu.memory_space<vmem>>, vector<1x1x32x8xf32>
    %207 = vector.shape_cast %206 : vector<1x1x32x8xf32> to vector<32x8xf32>
    %cst_148 = arith.constant dense<0.000000e+00> : vector<9x8xf32>
    %208 = tpu.matmul %112, %207, %cst_148 {dimension_numbers = #tpu.dot_dimension_numbers<[1], [0], [0], [1], [0, 0, 1, 1], [], []>} : vector<9x32xf32>, vector<32x8xf32>, vector<9x8xf32> -> vector<9x8xf32>
    %c0_149 = arith.constant 0 : index
    %c2_150 = arith.constant 2 : index
    %c0_151 = arith.constant 0 : index
    %c0_152 = arith.constant 0 : index
    %209 = vector.load %arg15[%c0_149, %c2_150, %c0_151, %c0_152] : memref<2x4x1x8xf32, #tpu.memory_space<vmem>>, vector<1x1x1x8xf32>
    %210 = vector.shape_cast %209 : vector<1x1x1x8xf32> to vector<1x8xf32>
    %211 = vector.broadcast %210 : vector<1x8xf32> to vector<9x8xf32>
    %212 = arith.addf %208, %211 : vector<9x8xf32>
    %cst_153 = arith.constant dense<0.000000e+00> : vector<9x9xf32>
    %213 = tpu.matmul %198, %205, %cst_153 {dimension_numbers = #tpu.dot_dimension_numbers<[1], [1], [0], [0], [0, 0, 1, 0], [], []>} : vector<9x8xf32>, vector<9x8xf32>, vector<9x9xf32> -> vector<9x9xf32>
    %cst_154 = arith.constant 0.353553385 : f32
    %214 = vector.broadcast %cst_154 : f32 to vector<9x9xf32>
    %215 = arith.mulf %213, %214 : vector<9x9xf32>
    %cst_155 = arith.constant dense<0xFF800000> : vector<9xf32>
    %216 = vector.multi_reduction <maximumf>, %215, %cst_155 [1] : vector<9x9xf32> to vector<9xf32>
    %217 = vector.shape_cast %216 : vector<9xf32> to vector<9x1xf32>
    %218 = vector.broadcast %217 : vector<9x1xf32> to vector<9x9xf32>
    %219 = arith.subf %215, %218 : vector<9x9xf32>
    %220 = math.exp %219 : vector<9x9xf32>
    %cst_156 = arith.constant dense<0.000000e+00> : vector<9xf32>
    %221 = vector.multi_reduction <add>, %220, %cst_156 [1] : vector<9x9xf32> to vector<9xf32>
    %222 = vector.shape_cast %221 : vector<9xf32> to vector<9x1xf32>
    %223 = tpu.reciprocal %222 {approx = true} : vector<9x1xf32> -> vector<9x1xf32>
    %224 = vector.broadcast %223 : vector<9x1xf32> to vector<9x9xf32>
    %225 = arith.mulf %220, %224 : vector<9x9xf32>
    %cst_157 = arith.constant dense<0.000000e+00> : vector<9x8xf32>
    %226 = tpu.matmul %225, %212, %cst_157 {dimension_numbers = #tpu.dot_dimension_numbers<[1], [0], [0], [1], [0, 0, 1, 1], [], []>} : vector<9x9xf32>, vector<9x8xf32>, vector<9x8xf32> -> vector<9x8xf32>
    %c0_158 = arith.constant 0 : index
    %c2_159 = arith.constant 2 : index
    %c0_160 = arith.constant 0 : index
    %c0_161 = arith.constant 0 : index
    %227 = vector.load %arg16[%c0_158, %c2_159, %c0_160, %c0_161] : memref<2x4x8x32xf32, #tpu.memory_space<vmem>>, vector<1x1x8x32xf32>
    %228 = vector.shape_cast %227 : vector<1x1x8x32xf32> to vector<8x32xf32>
    %cst_162 = arith.constant dense<0.000000e+00> : vector<9x32xf32>
    %229 = tpu.matmul %226, %228, %cst_162 {dimension_numbers = #tpu.dot_dimension_numbers<[1], [0], [0], [1], [0, 0, 1, 1], [], []>} : vector<9x8xf32>, vector<8x32xf32>, vector<9x32xf32> -> vector<9x32xf32>
    %230 = arith.addf %191, %229 : vector<9x32xf32>
    %c0_163 = arith.constant 0 : index
    %c3 = arith.constant 3 : index
    %c0_164 = arith.constant 0 : index
    %c0_165 = arith.constant 0 : index
    %231 = vector.load %arg10[%c0_163, %c3, %c0_164, %c0_165] : memref<2x4x32x8xf32, #tpu.memory_space<vmem>>, vector<1x1x32x8xf32>
    %232 = vector.shape_cast %231 : vector<1x1x32x8xf32> to vector<32x8xf32>
    %cst_166 = arith.constant dense<0.000000e+00> : vector<9x8xf32>
    %233 = tpu.matmul %112, %232, %cst_166 {dimension_numbers = #tpu.dot_dimension_numbers<[1], [0], [0], [1], [0, 0, 1, 1], [], []>} : vector<9x32xf32>, vector<32x8xf32>, vector<9x8xf32> -> vector<9x8xf32>
    %c0_167 = arith.constant 0 : index
    %c3_168 = arith.constant 3 : index
    %c0_169 = arith.constant 0 : index
    %c0_170 = arith.constant 0 : index
    %234 = vector.load %arg11[%c0_167, %c3_168, %c0_169, %c0_170] : memref<2x4x1x8xf32, #tpu.memory_space<vmem>>, vector<1x1x1x8xf32>
    %235 = vector.shape_cast %234 : vector<1x1x1x8xf32> to vector<1x8xf32>
    %236 = vector.broadcast %235 : vector<1x8xf32> to vector<9x8xf32>
    %237 = arith.addf %233, %236 : vector<9x8xf32>
    %c0_171 = arith.constant 0 : index
    %c3_172 = arith.constant 3 : index
    %c0_173 = arith.constant 0 : index
    %c0_174 = arith.constant 0 : index
    %238 = vector.load %arg12[%c0_171, %c3_172, %c0_173, %c0_174] : memref<2x4x32x8xf32, #tpu.memory_space<vmem>>, vector<1x1x32x8xf32>
    %239 = vector.shape_cast %238 : vector<1x1x32x8xf32> to vector<32x8xf32>
    %cst_175 = arith.constant dense<0.000000e+00> : vector<9x8xf32>
    %240 = tpu.matmul %112, %239, %cst_175 {dimension_numbers = #tpu.dot_dimension_numbers<[1], [0], [0], [1], [0, 0, 1, 1], [], []>} : vector<9x32xf32>, vector<32x8xf32>, vector<9x8xf32> -> vector<9x8xf32>
    %c0_176 = arith.constant 0 : index
    %c3_177 = arith.constant 3 : index
    %c0_178 = arith.constant 0 : index
    %c0_179 = arith.constant 0 : index
    %241 = vector.load %arg13[%c0_176, %c3_177, %c0_178, %c0_179] : memref<2x4x1x8xf32, #tpu.memory_space<vmem>>, vector<1x1x1x8xf32>
    %242 = vector.shape_cast %241 : vector<1x1x1x8xf32> to vector<1x8xf32>
    %243 = vector.broadcast %242 : vector<1x8xf32> to vector<9x8xf32>
    %244 = arith.addf %240, %243 : vector<9x8xf32>
    %c0_180 = arith.constant 0 : index
    %c3_181 = arith.constant 3 : index
    %c0_182 = arith.constant 0 : index
    %c0_183 = arith.constant 0 : index
    %245 = vector.load %arg14[%c0_180, %c3_181, %c0_182, %c0_183] : memref<2x4x32x8xf32, #tpu.memory_space<vmem>>, vector<1x1x32x8xf32>
    %246 = vector.shape_cast %245 : vector<1x1x32x8xf32> to vector<32x8xf32>
    %cst_184 = arith.constant dense<0.000000e+00> : vector<9x8xf32>
    %247 = tpu.matmul %112, %246, %cst_184 {dimension_numbers = #tpu.dot_dimension_numbers<[1], [0], [0], [1], [0, 0, 1, 1], [], []>} : vector<9x32xf32>, vector<32x8xf32>, vector<9x8xf32> -> vector<9x8xf32>
    %c0_185 = arith.constant 0 : index
    %c3_186 = arith.constant 3 : index
    %c0_187 = arith.constant 0 : index
    %c0_188 = arith.constant 0 : index
    %248 = vector.load %arg15[%c0_185, %c3_186, %c0_187, %c0_188] : memref<2x4x1x8xf32, #tpu.memory_space<vmem>>, vector<1x1x1x8xf32>
    %249 = vector.shape_cast %248 : vector<1x1x1x8xf32> to vector<1x8xf32>
    %250 = vector.broadcast %249 : vector<1x8xf32> to vector<9x8xf32>
    %251 = arith.addf %247, %250 : vector<9x8xf32>
    %cst_189 = arith.constant dense<0.000000e+00> : vector<9x9xf32>
    %252 = tpu.matmul %237, %244, %cst_189 {dimension_numbers = #tpu.dot_dimension_numbers<[1], [1], [0], [0], [0, 0, 1, 0], [], []>} : vector<9x8xf32>, vector<9x8xf32>, vector<9x9xf32> -> vector<9x9xf32>
    %cst_190 = arith.constant 0.353553385 : f32
    %253 = vector.broadcast %cst_190 : f32 to vector<9x9xf32>
    %254 = arith.mulf %252, %253 : vector<9x9xf32>
    %cst_191 = arith.constant dense<0xFF800000> : vector<9xf32>
    %255 = vector.multi_reduction <maximumf>, %254, %cst_191 [1] : vector<9x9xf32> to vector<9xf32>
    %256 = vector.shape_cast %255 : vector<9xf32> to vector<9x1xf32>
    %257 = vector.broadcast %256 : vector<9x1xf32> to vector<9x9xf32>
    %258 = arith.subf %254, %257 : vector<9x9xf32>
    %259 = math.exp %258 : vector<9x9xf32>
    %cst_192 = arith.constant dense<0.000000e+00> : vector<9xf32>
    %260 = vector.multi_reduction <add>, %259, %cst_192 [1] : vector<9x9xf32> to vector<9xf32>
    %261 = vector.shape_cast %260 : vector<9xf32> to vector<9x1xf32>
    %262 = tpu.reciprocal %261 {approx = true} : vector<9x1xf32> -> vector<9x1xf32>
    %263 = vector.broadcast %262 : vector<9x1xf32> to vector<9x9xf32>
    %264 = arith.mulf %259, %263 : vector<9x9xf32>
    %cst_193 = arith.constant dense<0.000000e+00> : vector<9x8xf32>
    %265 = tpu.matmul %264, %251, %cst_193 {dimension_numbers = #tpu.dot_dimension_numbers<[1], [0], [0], [1], [0, 0, 1, 1], [], []>} : vector<9x9xf32>, vector<9x8xf32>, vector<9x8xf32> -> vector<9x8xf32>
    %c0_194 = arith.constant 0 : index
    %c3_195 = arith.constant 3 : index
    %c0_196 = arith.constant 0 : index
    %c0_197 = arith.constant 0 : index
    %266 = vector.load %arg16[%c0_194, %c3_195, %c0_196, %c0_197] : memref<2x4x8x32xf32, #tpu.memory_space<vmem>>, vector<1x1x8x32xf32>
    %267 = vector.shape_cast %266 : vector<1x1x8x32xf32> to vector<8x32xf32>
    %cst_198 = arith.constant dense<0.000000e+00> : vector<9x32xf32>
    %268 = tpu.matmul %265, %267, %cst_198 {dimension_numbers = #tpu.dot_dimension_numbers<[1], [0], [0], [1], [0, 0, 1, 1], [], []>} : vector<9x8xf32>, vector<8x32xf32>, vector<9x32xf32> -> vector<9x32xf32>
    %269 = arith.addf %230, %268 : vector<9x32xf32>
    %270 = arith.addf %88, %269 : vector<9x32xf32>
    %c0_199 = arith.constant 0 : index
    %c0_200 = arith.constant 0 : index
    %c0_201 = arith.constant 0 : index
    %271 = vector.load %arg17[%c0_199, %c0_200, %c0_201] : memref<2x1x32xf32, #tpu.memory_space<vmem>>, vector<1x1x32xf32>
    %272 = vector.shape_cast %271 : vector<1x1x32xf32> to vector<1x32xf32>
    %273 = vector.broadcast %272 : vector<1x32xf32> to vector<9x32xf32>
    %274 = arith.addf %270, %273 : vector<9x32xf32>
    %c0_202 = arith.constant 0 : index
    %c0_203 = arith.constant 0 : index
    %c0_204 = arith.constant 0 : index
    %275 = vector.load %arg18[%c0_202, %c0_203, %c0_204] : memref<2x1x32xf32, #tpu.memory_space<vmem>>, vector<1x1x32xf32>
    %276 = vector.shape_cast %275 : vector<1x1x32xf32> to vector<1x32xf32>
    %c0_205 = arith.constant 0 : index
    %c0_206 = arith.constant 0 : index
    %c0_207 = arith.constant 0 : index
    %277 = vector.load %arg19[%c0_205, %c0_206, %c0_207] : memref<2x1x32xf32, #tpu.memory_space<vmem>>, vector<1x1x32xf32>
    %278 = vector.shape_cast %277 : vector<1x1x32xf32> to vector<1x32xf32>
    %cst_208 = arith.constant dense<0.000000e+00> : vector<9xf32>
    %279 = vector.multi_reduction <add>, %274, %cst_208 [1] : vector<9x32xf32> to vector<9xf32>
    %280 = vector.shape_cast %279 : vector<9xf32> to vector<9x1xf32>
    %cst_209 = arith.constant 3.200000e+01 : f32
    %281 = vector.broadcast %cst_209 : f32 to vector<9x1xf32>
    %282 = arith.divf %280, %281 : vector<9x1xf32>
    %283 = vector.broadcast %282 : vector<9x1xf32> to vector<9x32xf32>
    %284 = arith.subf %274, %283 : vector<9x32xf32>
    %285 = arith.mulf %284, %284 : vector<9x32xf32>
    %cst_210 = arith.constant dense<0.000000e+00> : vector<9xf32>
    %286 = vector.multi_reduction <add>, %285, %cst_210 [1] : vector<9x32xf32> to vector<9xf32>
    %287 = vector.shape_cast %286 : vector<9xf32> to vector<9x1xf32>
    %cst_211 = arith.constant 3.200000e+01 : f32
    %288 = vector.broadcast %cst_211 : f32 to vector<9x1xf32>
    %289 = arith.divf %287, %288 : vector<9x1xf32>
    %cst_212 = arith.constant 9.99999974E-6 : f32
    %290 = vector.broadcast %cst_212 : f32 to vector<9x1xf32>
    %291 = arith.addf %289, %290 : vector<9x1xf32>
    %292 = math.rsqrt %291 : vector<9x1xf32>
    %293 = vector.broadcast %292 : vector<9x1xf32> to vector<9x32xf32>
    %294 = arith.mulf %284, %293 : vector<9x32xf32>
    %295 = vector.broadcast %276 : vector<1x32xf32> to vector<9x32xf32>
    %296 = arith.mulf %294, %295 : vector<9x32xf32>
    %297 = vector.broadcast %278 : vector<1x32xf32> to vector<9x32xf32>
    %298 = arith.addf %296, %297 : vector<9x32xf32>
    %c0_213 = arith.constant 0 : index
    %c0_214 = arith.constant 0 : index
    %c0_215 = arith.constant 0 : index
    %299 = vector.load %arg20[%c0_213, %c0_214, %c0_215] : memref<2x32x64xf32, #tpu.memory_space<vmem>>, vector<1x32x64xf32>
    %300 = vector.shape_cast %299 : vector<1x32x64xf32> to vector<32x64xf32>
    %cst_216 = arith.constant dense<0.000000e+00> : vector<9x64xf32>
    %301 = tpu.matmul %298, %300, %cst_216 {dimension_numbers = #tpu.dot_dimension_numbers<[1], [0], [0], [1], [0, 0, 1, 1], [], []>} : vector<9x32xf32>, vector<32x64xf32>, vector<9x64xf32> -> vector<9x64xf32>
    %c0_217 = arith.constant 0 : index
    %c0_218 = arith.constant 0 : index
    %c0_219 = arith.constant 0 : index
    %302 = vector.load %arg21[%c0_217, %c0_218, %c0_219] : memref<2x1x64xf32, #tpu.memory_space<vmem>>, vector<1x1x64xf32>
    %303 = vector.shape_cast %302 : vector<1x1x64xf32> to vector<1x64xf32>
    %304 = vector.broadcast %303 : vector<1x64xf32> to vector<9x64xf32>
    %305 = arith.addf %301, %304 : vector<9x64xf32>
    %306 = arith.mulf %305, %305 : vector<9x64xf32>
    %307 = arith.mulf %305, %306 : vector<9x64xf32>
    %cst_220 = arith.constant 4.471500e-02 : f32
    %308 = vector.broadcast %cst_220 : f32 to vector<9x64xf32>
    %309 = arith.mulf %308, %307 : vector<9x64xf32>
    %310 = arith.addf %305, %309 : vector<9x64xf32>
    %cst_221 = arith.constant 0.797884583 : f32
    %311 = vector.broadcast %cst_221 : f32 to vector<9x64xf32>
    %312 = arith.mulf %311, %310 : vector<9x64xf32>
    %313 = math.tanh %312 : vector<9x64xf32>
    %cst_222 = arith.constant 1.000000e+00 : f32
    %314 = vector.broadcast %cst_222 : f32 to vector<9x64xf32>
    %315 = arith.addf %314, %313 : vector<9x64xf32>
    %cst_223 = arith.constant 5.000000e-01 : f32
    %316 = vector.broadcast %cst_223 : f32 to vector<9x64xf32>
    %317 = arith.mulf %316, %315 : vector<9x64xf32>
    %318 = arith.mulf %305, %317 : vector<9x64xf32>
    %c0_224 = arith.constant 0 : index
    %c0_225 = arith.constant 0 : index
    %c0_226 = arith.constant 0 : index
    %319 = vector.load %arg22[%c0_224, %c0_225, %c0_226] : memref<2x64x32xf32, #tpu.memory_space<vmem>>, vector<1x64x32xf32>
    %320 = vector.shape_cast %319 : vector<1x64x32xf32> to vector<64x32xf32>
    %cst_227 = arith.constant dense<0.000000e+00> : vector<9x32xf32>
    %321 = tpu.matmul %318, %320, %cst_227 {dimension_numbers = #tpu.dot_dimension_numbers<[1], [0], [0], [1], [0, 0, 1, 1], [], []>} : vector<9x64xf32>, vector<64x32xf32>, vector<9x32xf32> -> vector<9x32xf32>
    %322 = arith.addf %274, %321 : vector<9x32xf32>
    %c0_228 = arith.constant 0 : index
    %c0_229 = arith.constant 0 : index
    %c0_230 = arith.constant 0 : index
    %323 = vector.load %arg23[%c0_228, %c0_229, %c0_230] : memref<2x1x32xf32, #tpu.memory_space<vmem>>, vector<1x1x32xf32>
    %324 = vector.shape_cast %323 : vector<1x1x32xf32> to vector<1x32xf32>
    %325 = vector.broadcast %324 : vector<1x32xf32> to vector<9x32xf32>
    %326 = arith.addf %322, %325 : vector<9x32xf32>
    %c1_231 = arith.constant 1 : index
    %c0_232 = arith.constant 0 : index
    %c0_233 = arith.constant 0 : index
    %327 = vector.load %arg8[%c1_231, %c0_232, %c0_233] : memref<2x1x32xf32, #tpu.memory_space<vmem>>, vector<1x1x32xf32>
    %328 = vector.shape_cast %327 : vector<1x1x32xf32> to vector<1x32xf32>
    %c1_234 = arith.constant 1 : index
    %c0_235 = arith.constant 0 : index
    %c0_236 = arith.constant 0 : index
    %329 = vector.load %arg9[%c1_234, %c0_235, %c0_236] : memref<2x1x32xf32, #tpu.memory_space<vmem>>, vector<1x1x32xf32>
    %330 = vector.shape_cast %329 : vector<1x1x32xf32> to vector<1x32xf32>
    %cst_237 = arith.constant dense<0.000000e+00> : vector<9xf32>
    %331 = vector.multi_reduction <add>, %326, %cst_237 [1] : vector<9x32xf32> to vector<9xf32>
    %332 = vector.shape_cast %331 : vector<9xf32> to vector<9x1xf32>
    %cst_238 = arith.constant 3.200000e+01 : f32
    %333 = vector.broadcast %cst_238 : f32 to vector<9x1xf32>
    %334 = arith.divf %332, %333 : vector<9x1xf32>
    %335 = vector.broadcast %334 : vector<9x1xf32> to vector<9x32xf32>
    %336 = arith.subf %326, %335 : vector<9x32xf32>
    %337 = arith.mulf %336, %336 : vector<9x32xf32>
    %cst_239 = arith.constant dense<0.000000e+00> : vector<9xf32>
    %338 = vector.multi_reduction <add>, %337, %cst_239 [1] : vector<9x32xf32> to vector<9xf32>
    %339 = vector.shape_cast %338 : vector<9xf32> to vector<9x1xf32>
    %cst_240 = arith.constant 3.200000e+01 : f32
    %340 = vector.broadcast %cst_240 : f32 to vector<9x1xf32>
    %341 = arith.divf %339, %340 : vector<9x1xf32>
    %cst_241 = arith.constant 9.99999974E-6 : f32
    %342 = vector.broadcast %cst_241 : f32 to vector<9x1xf32>
    %343 = arith.addf %341, %342 : vector<9x1xf32>
    %344 = math.rsqrt %343 : vector<9x1xf32>
    %345 = vector.broadcast %344 : vector<9x1xf32> to vector<9x32xf32>
    %346 = arith.mulf %336, %345 : vector<9x32xf32>
    %347 = vector.broadcast %328 : vector<1x32xf32> to vector<9x32xf32>
    %348 = arith.mulf %346, %347 : vector<9x32xf32>
    %349 = vector.broadcast %330 : vector<1x32xf32> to vector<9x32xf32>
    %350 = arith.addf %348, %349 : vector<9x32xf32>
    %cst_242 = arith.constant 0.000000e+00 : f32
    %351 = vector.broadcast %cst_242 : f32 to vector<9x32xf32>
    %c1_243 = arith.constant 1 : index
    %c0_244 = arith.constant 0 : index
    %c0_245 = arith.constant 0 : index
    %c0_246 = arith.constant 0 : index
    %352 = vector.load %arg10[%c1_243, %c0_244, %c0_245, %c0_246] : memref<2x4x32x8xf32, #tpu.memory_space<vmem>>, vector<1x1x32x8xf32>
    %353 = vector.shape_cast %352 : vector<1x1x32x8xf32> to vector<32x8xf32>
    %cst_247 = arith.constant dense<0.000000e+00> : vector<9x8xf32>
    %354 = tpu.matmul %350, %353, %cst_247 {dimension_numbers = #tpu.dot_dimension_numbers<[1], [0], [0], [1], [0, 0, 1, 1], [], []>} : vector<9x32xf32>, vector<32x8xf32>, vector<9x8xf32> -> vector<9x8xf32>
    %c1_248 = arith.constant 1 : index
    %c0_249 = arith.constant 0 : index
    %c0_250 = arith.constant 0 : index
    %c0_251 = arith.constant 0 : index
    %355 = vector.load %arg11[%c1_248, %c0_249, %c0_250, %c0_251] : memref<2x4x1x8xf32, #tpu.memory_space<vmem>>, vector<1x1x1x8xf32>
    %356 = vector.shape_cast %355 : vector<1x1x1x8xf32> to vector<1x8xf32>
    %357 = vector.broadcast %356 : vector<1x8xf32> to vector<9x8xf32>
    %358 = arith.addf %354, %357 : vector<9x8xf32>
    %c1_252 = arith.constant 1 : index
    %c0_253 = arith.constant 0 : index
    %c0_254 = arith.constant 0 : index
    %c0_255 = arith.constant 0 : index
    %359 = vector.load %arg12[%c1_252, %c0_253, %c0_254, %c0_255] : memref<2x4x32x8xf32, #tpu.memory_space<vmem>>, vector<1x1x32x8xf32>
    %360 = vector.shape_cast %359 : vector<1x1x32x8xf32> to vector<32x8xf32>
    %cst_256 = arith.constant dense<0.000000e+00> : vector<9x8xf32>
    %361 = tpu.matmul %350, %360, %cst_256 {dimension_numbers = #tpu.dot_dimension_numbers<[1], [0], [0], [1], [0, 0, 1, 1], [], []>} : vector<9x32xf32>, vector<32x8xf32>, vector<9x8xf32> -> vector<9x8xf32>
    %c1_257 = arith.constant 1 : index
    %c0_258 = arith.constant 0 : index
    %c0_259 = arith.constant 0 : index
    %c0_260 = arith.constant 0 : index
    %362 = vector.load %arg13[%c1_257, %c0_258, %c0_259, %c0_260] : memref<2x4x1x8xf32, #tpu.memory_space<vmem>>, vector<1x1x1x8xf32>
    %363 = vector.shape_cast %362 : vector<1x1x1x8xf32> to vector<1x8xf32>
    %364 = vector.broadcast %363 : vector<1x8xf32> to vector<9x8xf32>
    %365 = arith.addf %361, %364 : vector<9x8xf32>
    %c1_261 = arith.constant 1 : index
    %c0_262 = arith.constant 0 : index
    %c0_263 = arith.constant 0 : index
    %c0_264 = arith.constant 0 : index
    %366 = vector.load %arg14[%c1_261, %c0_262, %c0_263, %c0_264] : memref<2x4x32x8xf32, #tpu.memory_space<vmem>>, vector<1x1x32x8xf32>
    %367 = vector.shape_cast %366 : vector<1x1x32x8xf32> to vector<32x8xf32>
    %cst_265 = arith.constant dense<0.000000e+00> : vector<9x8xf32>
    %368 = tpu.matmul %350, %367, %cst_265 {dimension_numbers = #tpu.dot_dimension_numbers<[1], [0], [0], [1], [0, 0, 1, 1], [], []>} : vector<9x32xf32>, vector<32x8xf32>, vector<9x8xf32> -> vector<9x8xf32>
    %c1_266 = arith.constant 1 : index
    %c0_267 = arith.constant 0 : index
    %c0_268 = arith.constant 0 : index
    %c0_269 = arith.constant 0 : index
    %369 = vector.load %arg15[%c1_266, %c0_267, %c0_268, %c0_269] : memref<2x4x1x8xf32, #tpu.memory_space<vmem>>, vector<1x1x1x8xf32>
    %370 = vector.shape_cast %369 : vector<1x1x1x8xf32> to vector<1x8xf32>
    %371 = vector.broadcast %370 : vector<1x8xf32> to vector<9x8xf32>
    %372 = arith.addf %368, %371 : vector<9x8xf32>
    %cst_270 = arith.constant dense<0.000000e+00> : vector<9x9xf32>
    %373 = tpu.matmul %358, %365, %cst_270 {dimension_numbers = #tpu.dot_dimension_numbers<[1], [1], [0], [0], [0, 0, 1, 0], [], []>} : vector<9x8xf32>, vector<9x8xf32>, vector<9x9xf32> -> vector<9x9xf32>
    %cst_271 = arith.constant 0.353553385 : f32
    %374 = vector.broadcast %cst_271 : f32 to vector<9x9xf32>
    %375 = arith.mulf %373, %374 : vector<9x9xf32>
    %cst_272 = arith.constant dense<0xFF800000> : vector<9xf32>
    %376 = vector.multi_reduction <maximumf>, %375, %cst_272 [1] : vector<9x9xf32> to vector<9xf32>
    %377 = vector.shape_cast %376 : vector<9xf32> to vector<9x1xf32>
    %378 = vector.broadcast %377 : vector<9x1xf32> to vector<9x9xf32>
    %379 = arith.subf %375, %378 : vector<9x9xf32>
    %380 = math.exp %379 : vector<9x9xf32>
    %cst_273 = arith.constant dense<0.000000e+00> : vector<9xf32>
    %381 = vector.multi_reduction <add>, %380, %cst_273 [1] : vector<9x9xf32> to vector<9xf32>
    %382 = vector.shape_cast %381 : vector<9xf32> to vector<9x1xf32>
    %383 = tpu.reciprocal %382 {approx = true} : vector<9x1xf32> -> vector<9x1xf32>
    %384 = vector.broadcast %383 : vector<9x1xf32> to vector<9x9xf32>
    %385 = arith.mulf %380, %384 : vector<9x9xf32>
    %cst_274 = arith.constant dense<0.000000e+00> : vector<9x8xf32>
    %386 = tpu.matmul %385, %372, %cst_274 {dimension_numbers = #tpu.dot_dimension_numbers<[1], [0], [0], [1], [0, 0, 1, 1], [], []>} : vector<9x9xf32>, vector<9x8xf32>, vector<9x8xf32> -> vector<9x8xf32>
    %c1_275 = arith.constant 1 : index
    %c0_276 = arith.constant 0 : index
    %c0_277 = arith.constant 0 : index
    %c0_278 = arith.constant 0 : index
    %387 = vector.load %arg16[%c1_275, %c0_276, %c0_277, %c0_278] : memref<2x4x8x32xf32, #tpu.memory_space<vmem>>, vector<1x1x8x32xf32>
    %388 = vector.shape_cast %387 : vector<1x1x8x32xf32> to vector<8x32xf32>
    %cst_279 = arith.constant dense<0.000000e+00> : vector<9x32xf32>
    %389 = tpu.matmul %386, %388, %cst_279 {dimension_numbers = #tpu.dot_dimension_numbers<[1], [0], [0], [1], [0, 0, 1, 1], [], []>} : vector<9x8xf32>, vector<8x32xf32>, vector<9x32xf32> -> vector<9x32xf32>
    %390 = arith.addf %351, %389 : vector<9x32xf32>
    %c1_280 = arith.constant 1 : index
    %c1_281 = arith.constant 1 : index
    %c0_282 = arith.constant 0 : index
    %c0_283 = arith.constant 0 : index
    %391 = vector.load %arg10[%c1_280, %c1_281, %c0_282, %c0_283] : memref<2x4x32x8xf32, #tpu.memory_space<vmem>>, vector<1x1x32x8xf32>
    %392 = vector.shape_cast %391 : vector<1x1x32x8xf32> to vector<32x8xf32>
    %cst_284 = arith.constant dense<0.000000e+00> : vector<9x8xf32>
    %393 = tpu.matmul %350, %392, %cst_284 {dimension_numbers = #tpu.dot_dimension_numbers<[1], [0], [0], [1], [0, 0, 1, 1], [], []>} : vector<9x32xf32>, vector<32x8xf32>, vector<9x8xf32> -> vector<9x8xf32>
    %c1_285 = arith.constant 1 : index
    %c1_286 = arith.constant 1 : index
    %c0_287 = arith.constant 0 : index
    %c0_288 = arith.constant 0 : index
    %394 = vector.load %arg11[%c1_285, %c1_286, %c0_287, %c0_288] : memref<2x4x1x8xf32, #tpu.memory_space<vmem>>, vector<1x1x1x8xf32>
    %395 = vector.shape_cast %394 : vector<1x1x1x8xf32> to vector<1x8xf32>
    %396 = vector.broadcast %395 : vector<1x8xf32> to vector<9x8xf32>
    %397 = arith.addf %393, %396 : vector<9x8xf32>
    %c1_289 = arith.constant 1 : index
    %c1_290 = arith.constant 1 : index
    %c0_291 = arith.constant 0 : index
    %c0_292 = arith.constant 0 : index
    %398 = vector.load %arg12[%c1_289, %c1_290, %c0_291, %c0_292] : memref<2x4x32x8xf32, #tpu.memory_space<vmem>>, vector<1x1x32x8xf32>
    %399 = vector.shape_cast %398 : vector<1x1x32x8xf32> to vector<32x8xf32>
    %cst_293 = arith.constant dense<0.000000e+00> : vector<9x8xf32>
    %400 = tpu.matmul %350, %399, %cst_293 {dimension_numbers = #tpu.dot_dimension_numbers<[1], [0], [0], [1], [0, 0, 1, 1], [], []>} : vector<9x32xf32>, vector<32x8xf32>, vector<9x8xf32> -> vector<9x8xf32>
    %c1_294 = arith.constant 1 : index
    %c1_295 = arith.constant 1 : index
    %c0_296 = arith.constant 0 : index
    %c0_297 = arith.constant 0 : index
    %401 = vector.load %arg13[%c1_294, %c1_295, %c0_296, %c0_297] : memref<2x4x1x8xf32, #tpu.memory_space<vmem>>, vector<1x1x1x8xf32>
    %402 = vector.shape_cast %401 : vector<1x1x1x8xf32> to vector<1x8xf32>
    %403 = vector.broadcast %402 : vector<1x8xf32> to vector<9x8xf32>
    %404 = arith.addf %400, %403 : vector<9x8xf32>
    %c1_298 = arith.constant 1 : index
    %c1_299 = arith.constant 1 : index
    %c0_300 = arith.constant 0 : index
    %c0_301 = arith.constant 0 : index
    %405 = vector.load %arg14[%c1_298, %c1_299, %c0_300, %c0_301] : memref<2x4x32x8xf32, #tpu.memory_space<vmem>>, vector<1x1x32x8xf32>
    %406 = vector.shape_cast %405 : vector<1x1x32x8xf32> to vector<32x8xf32>
    %cst_302 = arith.constant dense<0.000000e+00> : vector<9x8xf32>
    %407 = tpu.matmul %350, %406, %cst_302 {dimension_numbers = #tpu.dot_dimension_numbers<[1], [0], [0], [1], [0, 0, 1, 1], [], []>} : vector<9x32xf32>, vector<32x8xf32>, vector<9x8xf32> -> vector<9x8xf32>
    %c1_303 = arith.constant 1 : index
    %c1_304 = arith.constant 1 : index
    %c0_305 = arith.constant 0 : index
    %c0_306 = arith.constant 0 : index
    %408 = vector.load %arg15[%c1_303, %c1_304, %c0_305, %c0_306] : memref<2x4x1x8xf32, #tpu.memory_space<vmem>>, vector<1x1x1x8xf32>
    %409 = vector.shape_cast %408 : vector<1x1x1x8xf32> to vector<1x8xf32>
    %410 = vector.broadcast %409 : vector<1x8xf32> to vector<9x8xf32>
    %411 = arith.addf %407, %410 : vector<9x8xf32>
    %cst_307 = arith.constant dense<0.000000e+00> : vector<9x9xf32>
    %412 = tpu.matmul %397, %404, %cst_307 {dimension_numbers = #tpu.dot_dimension_numbers<[1], [1], [0], [0], [0, 0, 1, 0], [], []>} : vector<9x8xf32>, vector<9x8xf32>, vector<9x9xf32> -> vector<9x9xf32>
    %cst_308 = arith.constant 0.353553385 : f32
    %413 = vector.broadcast %cst_308 : f32 to vector<9x9xf32>
    %414 = arith.mulf %412, %413 : vector<9x9xf32>
    %cst_309 = arith.constant dense<0xFF800000> : vector<9xf32>
    %415 = vector.multi_reduction <maximumf>, %414, %cst_309 [1] : vector<9x9xf32> to vector<9xf32>
    %416 = vector.shape_cast %415 : vector<9xf32> to vector<9x1xf32>
    %417 = vector.broadcast %416 : vector<9x1xf32> to vector<9x9xf32>
    %418 = arith.subf %414, %417 : vector<9x9xf32>
    %419 = math.exp %418 : vector<9x9xf32>
    %cst_310 = arith.constant dense<0.000000e+00> : vector<9xf32>
    %420 = vector.multi_reduction <add>, %419, %cst_310 [1] : vector<9x9xf32> to vector<9xf32>
    %421 = vector.shape_cast %420 : vector<9xf32> to vector<9x1xf32>
    %422 = tpu.reciprocal %421 {approx = true} : vector<9x1xf32> -> vector<9x1xf32>
    %423 = vector.broadcast %422 : vector<9x1xf32> to vector<9x9xf32>
    %424 = arith.mulf %419, %423 : vector<9x9xf32>
    %cst_311 = arith.constant dense<0.000000e+00> : vector<9x8xf32>
    %425 = tpu.matmul %424, %411, %cst_311 {dimension_numbers = #tpu.dot_dimension_numbers<[1], [0], [0], [1], [0, 0, 1, 1], [], []>} : vector<9x9xf32>, vector<9x8xf32>, vector<9x8xf32> -> vector<9x8xf32>
    %c1_312 = arith.constant 1 : index
    %c1_313 = arith.constant 1 : index
    %c0_314 = arith.constant 0 : index
    %c0_315 = arith.constant 0 : index
    %426 = vector.load %arg16[%c1_312, %c1_313, %c0_314, %c0_315] : memref<2x4x8x32xf32, #tpu.memory_space<vmem>>, vector<1x1x8x32xf32>
    %427 = vector.shape_cast %426 : vector<1x1x8x32xf32> to vector<8x32xf32>
    %cst_316 = arith.constant dense<0.000000e+00> : vector<9x32xf32>
    %428 = tpu.matmul %425, %427, %cst_316 {dimension_numbers = #tpu.dot_dimension_numbers<[1], [0], [0], [1], [0, 0, 1, 1], [], []>} : vector<9x8xf32>, vector<8x32xf32>, vector<9x32xf32> -> vector<9x32xf32>
    %429 = arith.addf %390, %428 : vector<9x32xf32>
    %c1_317 = arith.constant 1 : index
    %c2_318 = arith.constant 2 : index
    %c0_319 = arith.constant 0 : index
    %c0_320 = arith.constant 0 : index
    %430 = vector.load %arg10[%c1_317, %c2_318, %c0_319, %c0_320] : memref<2x4x32x8xf32, #tpu.memory_space<vmem>>, vector<1x1x32x8xf32>
    %431 = vector.shape_cast %430 : vector<1x1x32x8xf32> to vector<32x8xf32>
    %cst_321 = arith.constant dense<0.000000e+00> : vector<9x8xf32>
    %432 = tpu.matmul %350, %431, %cst_321 {dimension_numbers = #tpu.dot_dimension_numbers<[1], [0], [0], [1], [0, 0, 1, 1], [], []>} : vector<9x32xf32>, vector<32x8xf32>, vector<9x8xf32> -> vector<9x8xf32>
    %c1_322 = arith.constant 1 : index
    %c2_323 = arith.constant 2 : index
    %c0_324 = arith.constant 0 : index
    %c0_325 = arith.constant 0 : index
    %433 = vector.load %arg11[%c1_322, %c2_323, %c0_324, %c0_325] : memref<2x4x1x8xf32, #tpu.memory_space<vmem>>, vector<1x1x1x8xf32>
    %434 = vector.shape_cast %433 : vector<1x1x1x8xf32> to vector<1x8xf32>
    %435 = vector.broadcast %434 : vector<1x8xf32> to vector<9x8xf32>
    %436 = arith.addf %432, %435 : vector<9x8xf32>
    %c1_326 = arith.constant 1 : index
    %c2_327 = arith.constant 2 : index
    %c0_328 = arith.constant 0 : index
    %c0_329 = arith.constant 0 : index
    %437 = vector.load %arg12[%c1_326, %c2_327, %c0_328, %c0_329] : memref<2x4x32x8xf32, #tpu.memory_space<vmem>>, vector<1x1x32x8xf32>
    %438 = vector.shape_cast %437 : vector<1x1x32x8xf32> to vector<32x8xf32>
    %cst_330 = arith.constant dense<0.000000e+00> : vector<9x8xf32>
    %439 = tpu.matmul %350, %438, %cst_330 {dimension_numbers = #tpu.dot_dimension_numbers<[1], [0], [0], [1], [0, 0, 1, 1], [], []>} : vector<9x32xf32>, vector<32x8xf32>, vector<9x8xf32> -> vector<9x8xf32>
    %c1_331 = arith.constant 1 : index
    %c2_332 = arith.constant 2 : index
    %c0_333 = arith.constant 0 : index
    %c0_334 = arith.constant 0 : index
    %440 = vector.load %arg13[%c1_331, %c2_332, %c0_333, %c0_334] : memref<2x4x1x8xf32, #tpu.memory_space<vmem>>, vector<1x1x1x8xf32>
    %441 = vector.shape_cast %440 : vector<1x1x1x8xf32> to vector<1x8xf32>
    %442 = vector.broadcast %441 : vector<1x8xf32> to vector<9x8xf32>
    %443 = arith.addf %439, %442 : vector<9x8xf32>
    %c1_335 = arith.constant 1 : index
    %c2_336 = arith.constant 2 : index
    %c0_337 = arith.constant 0 : index
    %c0_338 = arith.constant 0 : index
    %444 = vector.load %arg14[%c1_335, %c2_336, %c0_337, %c0_338] : memref<2x4x32x8xf32, #tpu.memory_space<vmem>>, vector<1x1x32x8xf32>
    %445 = vector.shape_cast %444 : vector<1x1x32x8xf32> to vector<32x8xf32>
    %cst_339 = arith.constant dense<0.000000e+00> : vector<9x8xf32>
    %446 = tpu.matmul %350, %445, %cst_339 {dimension_numbers = #tpu.dot_dimension_numbers<[1], [0], [0], [1], [0, 0, 1, 1], [], []>} : vector<9x32xf32>, vector<32x8xf32>, vector<9x8xf32> -> vector<9x8xf32>
    %c1_340 = arith.constant 1 : index
    %c2_341 = arith.constant 2 : index
    %c0_342 = arith.constant 0 : index
    %c0_343 = arith.constant 0 : index
    %447 = vector.load %arg15[%c1_340, %c2_341, %c0_342, %c0_343] : memref<2x4x1x8xf32, #tpu.memory_space<vmem>>, vector<1x1x1x8xf32>
    %448 = vector.shape_cast %447 : vector<1x1x1x8xf32> to vector<1x8xf32>
    %449 = vector.broadcast %448 : vector<1x8xf32> to vector<9x8xf32>
    %450 = arith.addf %446, %449 : vector<9x8xf32>
    %cst_344 = arith.constant dense<0.000000e+00> : vector<9x9xf32>
    %451 = tpu.matmul %436, %443, %cst_344 {dimension_numbers = #tpu.dot_dimension_numbers<[1], [1], [0], [0], [0, 0, 1, 0], [], []>} : vector<9x8xf32>, vector<9x8xf32>, vector<9x9xf32> -> vector<9x9xf32>
    %cst_345 = arith.constant 0.353553385 : f32
    %452 = vector.broadcast %cst_345 : f32 to vector<9x9xf32>
    %453 = arith.mulf %451, %452 : vector<9x9xf32>
    %cst_346 = arith.constant dense<0xFF800000> : vector<9xf32>
    %454 = vector.multi_reduction <maximumf>, %453, %cst_346 [1] : vector<9x9xf32> to vector<9xf32>
    %455 = vector.shape_cast %454 : vector<9xf32> to vector<9x1xf32>
    %456 = vector.broadcast %455 : vector<9x1xf32> to vector<9x9xf32>
    %457 = arith.subf %453, %456 : vector<9x9xf32>
    %458 = math.exp %457 : vector<9x9xf32>
    %cst_347 = arith.constant dense<0.000000e+00> : vector<9xf32>
    %459 = vector.multi_reduction <add>, %458, %cst_347 [1] : vector<9x9xf32> to vector<9xf32>
    %460 = vector.shape_cast %459 : vector<9xf32> to vector<9x1xf32>
    %461 = tpu.reciprocal %460 {approx = true} : vector<9x1xf32> -> vector<9x1xf32>
    %462 = vector.broadcast %461 : vector<9x1xf32> to vector<9x9xf32>
    %463 = arith.mulf %458, %462 : vector<9x9xf32>
    %cst_348 = arith.constant dense<0.000000e+00> : vector<9x8xf32>
    %464 = tpu.matmul %463, %450, %cst_348 {dimension_numbers = #tpu.dot_dimension_numbers<[1], [0], [0], [1], [0, 0, 1, 1], [], []>} : vector<9x9xf32>, vector<9x8xf32>, vector<9x8xf32> -> vector<9x8xf32>
    %c1_349 = arith.constant 1 : index
    %c2_350 = arith.constant 2 : index
    %c0_351 = arith.constant 0 : index
    %c0_352 = arith.constant 0 : index
    %465 = vector.load %arg16[%c1_349, %c2_350, %c0_351, %c0_352] : memref<2x4x8x32xf32, #tpu.memory_space<vmem>>, vector<1x1x8x32xf32>
    %466 = vector.shape_cast %465 : vector<1x1x8x32xf32> to vector<8x32xf32>
    %cst_353 = arith.constant dense<0.000000e+00> : vector<9x32xf32>
    %467 = tpu.matmul %464, %466, %cst_353 {dimension_numbers = #tpu.dot_dimension_numbers<[1], [0], [0], [1], [0, 0, 1, 1], [], []>} : vector<9x8xf32>, vector<8x32xf32>, vector<9x32xf32> -> vector<9x32xf32>
    %468 = arith.addf %429, %467 : vector<9x32xf32>
    %c1_354 = arith.constant 1 : index
    %c3_355 = arith.constant 3 : index
    %c0_356 = arith.constant 0 : index
    %c0_357 = arith.constant 0 : index
    %469 = vector.load %arg10[%c1_354, %c3_355, %c0_356, %c0_357] : memref<2x4x32x8xf32, #tpu.memory_space<vmem>>, vector<1x1x32x8xf32>
    %470 = vector.shape_cast %469 : vector<1x1x32x8xf32> to vector<32x8xf32>
    %cst_358 = arith.constant dense<0.000000e+00> : vector<9x8xf32>
    %471 = tpu.matmul %350, %470, %cst_358 {dimension_numbers = #tpu.dot_dimension_numbers<[1], [0], [0], [1], [0, 0, 1, 1], [], []>} : vector<9x32xf32>, vector<32x8xf32>, vector<9x8xf32> -> vector<9x8xf32>
    %c1_359 = arith.constant 1 : index
    %c3_360 = arith.constant 3 : index
    %c0_361 = arith.constant 0 : index
    %c0_362 = arith.constant 0 : index
    %472 = vector.load %arg11[%c1_359, %c3_360, %c0_361, %c0_362] : memref<2x4x1x8xf32, #tpu.memory_space<vmem>>, vector<1x1x1x8xf32>
    %473 = vector.shape_cast %472 : vector<1x1x1x8xf32> to vector<1x8xf32>
    %474 = vector.broadcast %473 : vector<1x8xf32> to vector<9x8xf32>
    %475 = arith.addf %471, %474 : vector<9x8xf32>
    %c1_363 = arith.constant 1 : index
    %c3_364 = arith.constant 3 : index
    %c0_365 = arith.constant 0 : index
    %c0_366 = arith.constant 0 : index
    %476 = vector.load %arg12[%c1_363, %c3_364, %c0_365, %c0_366] : memref<2x4x32x8xf32, #tpu.memory_space<vmem>>, vector<1x1x32x8xf32>
    %477 = vector.shape_cast %476 : vector<1x1x32x8xf32> to vector<32x8xf32>
    %cst_367 = arith.constant dense<0.000000e+00> : vector<9x8xf32>
    %478 = tpu.matmul %350, %477, %cst_367 {dimension_numbers = #tpu.dot_dimension_numbers<[1], [0], [0], [1], [0, 0, 1, 1], [], []>} : vector<9x32xf32>, vector<32x8xf32>, vector<9x8xf32> -> vector<9x8xf32>
    %c1_368 = arith.constant 1 : index
    %c3_369 = arith.constant 3 : index
    %c0_370 = arith.constant 0 : index
    %c0_371 = arith.constant 0 : index
    %479 = vector.load %arg13[%c1_368, %c3_369, %c0_370, %c0_371] : memref<2x4x1x8xf32, #tpu.memory_space<vmem>>, vector<1x1x1x8xf32>
    %480 = vector.shape_cast %479 : vector<1x1x1x8xf32> to vector<1x8xf32>
    %481 = vector.broadcast %480 : vector<1x8xf32> to vector<9x8xf32>
    %482 = arith.addf %478, %481 : vector<9x8xf32>
    %c1_372 = arith.constant 1 : index
    %c3_373 = arith.constant 3 : index
    %c0_374 = arith.constant 0 : index
    %c0_375 = arith.constant 0 : index
    %483 = vector.load %arg14[%c1_372, %c3_373, %c0_374, %c0_375] : memref<2x4x32x8xf32, #tpu.memory_space<vmem>>, vector<1x1x32x8xf32>
    %484 = vector.shape_cast %483 : vector<1x1x32x8xf32> to vector<32x8xf32>
    %cst_376 = arith.constant dense<0.000000e+00> : vector<9x8xf32>
    %485 = tpu.matmul %350, %484, %cst_376 {dimension_numbers = #tpu.dot_dimension_numbers<[1], [0], [0], [1], [0, 0, 1, 1], [], []>} : vector<9x32xf32>, vector<32x8xf32>, vector<9x8xf32> -> vector<9x8xf32>
    %c1_377 = arith.constant 1 : index
    %c3_378 = arith.constant 3 : index
    %c0_379 = arith.constant 0 : index
    %c0_380 = arith.constant 0 : index
    %486 = vector.load %arg15[%c1_377, %c3_378, %c0_379, %c0_380] : memref<2x4x1x8xf32, #tpu.memory_space<vmem>>, vector<1x1x1x8xf32>
    %487 = vector.shape_cast %486 : vector<1x1x1x8xf32> to vector<1x8xf32>
    %488 = vector.broadcast %487 : vector<1x8xf32> to vector<9x8xf32>
    %489 = arith.addf %485, %488 : vector<9x8xf32>
    %cst_381 = arith.constant dense<0.000000e+00> : vector<9x9xf32>
    %490 = tpu.matmul %475, %482, %cst_381 {dimension_numbers = #tpu.dot_dimension_numbers<[1], [1], [0], [0], [0, 0, 1, 0], [], []>} : vector<9x8xf32>, vector<9x8xf32>, vector<9x9xf32> -> vector<9x9xf32>
    %cst_382 = arith.constant 0.353553385 : f32
    %491 = vector.broadcast %cst_382 : f32 to vector<9x9xf32>
    %492 = arith.mulf %490, %491 : vector<9x9xf32>
    %cst_383 = arith.constant dense<0xFF800000> : vector<9xf32>
    %493 = vector.multi_reduction <maximumf>, %492, %cst_383 [1] : vector<9x9xf32> to vector<9xf32>
    %494 = vector.shape_cast %493 : vector<9xf32> to vector<9x1xf32>
    %495 = vector.broadcast %494 : vector<9x1xf32> to vector<9x9xf32>
    %496 = arith.subf %492, %495 : vector<9x9xf32>
    %497 = math.exp %496 : vector<9x9xf32>
    %cst_384 = arith.constant dense<0.000000e+00> : vector<9xf32>
    %498 = vector.multi_reduction <add>, %497, %cst_384 [1] : vector<9x9xf32> to vector<9xf32>
    %499 = vector.shape_cast %498 : vector<9xf32> to vector<9x1xf32>
    %500 = tpu.reciprocal %499 {approx = true} : vector<9x1xf32> -> vector<9x1xf32>
    %501 = vector.broadcast %500 : vector<9x1xf32> to vector<9x9xf32>
    %502 = arith.mulf %497, %501 : vector<9x9xf32>
    %cst_385 = arith.constant dense<0.000000e+00> : vector<9x8xf32>
    %503 = tpu.matmul %502, %489, %cst_385 {dimension_numbers = #tpu.dot_dimension_numbers<[1], [0], [0], [1], [0, 0, 1, 1], [], []>} : vector<9x9xf32>, vector<9x8xf32>, vector<9x8xf32> -> vector<9x8xf32>
    %c1_386 = arith.constant 1 : index
    %c3_387 = arith.constant 3 : index
    %c0_388 = arith.constant 0 : index
    %c0_389 = arith.constant 0 : index
    %504 = vector.load %arg16[%c1_386, %c3_387, %c0_388, %c0_389] : memref<2x4x8x32xf32, #tpu.memory_space<vmem>>, vector<1x1x8x32xf32>
    %505 = vector.shape_cast %504 : vector<1x1x8x32xf32> to vector<8x32xf32>
    %cst_390 = arith.constant dense<0.000000e+00> : vector<9x32xf32>
    %506 = tpu.matmul %503, %505, %cst_390 {dimension_numbers = #tpu.dot_dimension_numbers<[1], [0], [0], [1], [0, 0, 1, 1], [], []>} : vector<9x8xf32>, vector<8x32xf32>, vector<9x32xf32> -> vector<9x32xf32>
    %507 = arith.addf %468, %506 : vector<9x32xf32>
    %508 = arith.addf %326, %507 : vector<9x32xf32>
    %c1_391 = arith.constant 1 : index
    %c0_392 = arith.constant 0 : index
    %c0_393 = arith.constant 0 : index
    %509 = vector.load %arg17[%c1_391, %c0_392, %c0_393] : memref<2x1x32xf32, #tpu.memory_space<vmem>>, vector<1x1x32xf32>
    %510 = vector.shape_cast %509 : vector<1x1x32xf32> to vector<1x32xf32>
    %511 = vector.broadcast %510 : vector<1x32xf32> to vector<9x32xf32>
    %512 = arith.addf %508, %511 : vector<9x32xf32>
    %c1_394 = arith.constant 1 : index
    %c0_395 = arith.constant 0 : index
    %c0_396 = arith.constant 0 : index
    %513 = vector.load %arg18[%c1_394, %c0_395, %c0_396] : memref<2x1x32xf32, #tpu.memory_space<vmem>>, vector<1x1x32xf32>
    %514 = vector.shape_cast %513 : vector<1x1x32xf32> to vector<1x32xf32>
    %c1_397 = arith.constant 1 : index
    %c0_398 = arith.constant 0 : index
    %c0_399 = arith.constant 0 : index
    %515 = vector.load %arg19[%c1_397, %c0_398, %c0_399] : memref<2x1x32xf32, #tpu.memory_space<vmem>>, vector<1x1x32xf32>
    %516 = vector.shape_cast %515 : vector<1x1x32xf32> to vector<1x32xf32>
    %cst_400 = arith.constant dense<0.000000e+00> : vector<9xf32>
    %517 = vector.multi_reduction <add>, %512, %cst_400 [1] : vector<9x32xf32> to vector<9xf32>
    %518 = vector.shape_cast %517 : vector<9xf32> to vector<9x1xf32>
    %cst_401 = arith.constant 3.200000e+01 : f32
    %519 = vector.broadcast %cst_401 : f32 to vector<9x1xf32>
    %520 = arith.divf %518, %519 : vector<9x1xf32>
    %521 = vector.broadcast %520 : vector<9x1xf32> to vector<9x32xf32>
    %522 = arith.subf %512, %521 : vector<9x32xf32>
    %523 = arith.mulf %522, %522 : vector<9x32xf32>
    %cst_402 = arith.constant dense<0.000000e+00> : vector<9xf32>
    %524 = vector.multi_reduction <add>, %523, %cst_402 [1] : vector<9x32xf32> to vector<9xf32>
    %525 = vector.shape_cast %524 : vector<9xf32> to vector<9x1xf32>
    %cst_403 = arith.constant 3.200000e+01 : f32
    %526 = vector.broadcast %cst_403 : f32 to vector<9x1xf32>
    %527 = arith.divf %525, %526 : vector<9x1xf32>
    %cst_404 = arith.constant 9.99999974E-6 : f32
    %528 = vector.broadcast %cst_404 : f32 to vector<9x1xf32>
    %529 = arith.addf %527, %528 : vector<9x1xf32>
    %530 = math.rsqrt %529 : vector<9x1xf32>
    %531 = vector.broadcast %530 : vector<9x1xf32> to vector<9x32xf32>
    %532 = arith.mulf %522, %531 : vector<9x32xf32>
    %533 = vector.broadcast %514 : vector<1x32xf32> to vector<9x32xf32>
    %534 = arith.mulf %532, %533 : vector<9x32xf32>
    %535 = vector.broadcast %516 : vector<1x32xf32> to vector<9x32xf32>
    %536 = arith.addf %534, %535 : vector<9x32xf32>
    %c1_405 = arith.constant 1 : index
    %c0_406 = arith.constant 0 : index
    %c0_407 = arith.constant 0 : index
    %537 = vector.load %arg20[%c1_405, %c0_406, %c0_407] : memref<2x32x64xf32, #tpu.memory_space<vmem>>, vector<1x32x64xf32>
    %538 = vector.shape_cast %537 : vector<1x32x64xf32> to vector<32x64xf32>
    %cst_408 = arith.constant dense<0.000000e+00> : vector<9x64xf32>
    %539 = tpu.matmul %536, %538, %cst_408 {dimension_numbers = #tpu.dot_dimension_numbers<[1], [0], [0], [1], [0, 0, 1, 1], [], []>} : vector<9x32xf32>, vector<32x64xf32>, vector<9x64xf32> -> vector<9x64xf32>
    %c1_409 = arith.constant 1 : index
    %c0_410 = arith.constant 0 : index
    %c0_411 = arith.constant 0 : index
    %540 = vector.load %arg21[%c1_409, %c0_410, %c0_411] : memref<2x1x64xf32, #tpu.memory_space<vmem>>, vector<1x1x64xf32>
    %541 = vector.shape_cast %540 : vector<1x1x64xf32> to vector<1x64xf32>
    %542 = vector.broadcast %541 : vector<1x64xf32> to vector<9x64xf32>
    %543 = arith.addf %539, %542 : vector<9x64xf32>
    %544 = arith.mulf %543, %543 : vector<9x64xf32>
    %545 = arith.mulf %543, %544 : vector<9x64xf32>
    %cst_412 = arith.constant 4.471500e-02 : f32
    %546 = vector.broadcast %cst_412 : f32 to vector<9x64xf32>
    %547 = arith.mulf %546, %545 : vector<9x64xf32>
    %548 = arith.addf %543, %547 : vector<9x64xf32>
    %cst_413 = arith.constant 0.797884583 : f32
    %549 = vector.broadcast %cst_413 : f32 to vector<9x64xf32>
    %550 = arith.mulf %549, %548 : vector<9x64xf32>
    %551 = math.tanh %550 : vector<9x64xf32>
    %cst_414 = arith.constant 1.000000e+00 : f32
    %552 = vector.broadcast %cst_414 : f32 to vector<9x64xf32>
    %553 = arith.addf %552, %551 : vector<9x64xf32>
    %cst_415 = arith.constant 5.000000e-01 : f32
    %554 = vector.broadcast %cst_415 : f32 to vector<9x64xf32>
    %555 = arith.mulf %554, %553 : vector<9x64xf32>
    %556 = arith.mulf %543, %555 : vector<9x64xf32>
    %c1_416 = arith.constant 1 : index
    %c0_417 = arith.constant 0 : index
    %c0_418 = arith.constant 0 : index
    %557 = vector.load %arg22[%c1_416, %c0_417, %c0_418] : memref<2x64x32xf32, #tpu.memory_space<vmem>>, vector<1x64x32xf32>
    %558 = vector.shape_cast %557 : vector<1x64x32xf32> to vector<64x32xf32>
    %cst_419 = arith.constant dense<0.000000e+00> : vector<9x32xf32>
    %559 = tpu.matmul %556, %558, %cst_419 {dimension_numbers = #tpu.dot_dimension_numbers<[1], [0], [0], [1], [0, 0, 1, 1], [], []>} : vector<9x64xf32>, vector<64x32xf32>, vector<9x32xf32> -> vector<9x32xf32>
    %560 = arith.addf %512, %559 : vector<9x32xf32>
    %c1_420 = arith.constant 1 : index
    %c0_421 = arith.constant 0 : index
    %c0_422 = arith.constant 0 : index
    %561 = vector.load %arg23[%c1_420, %c0_421, %c0_422] : memref<2x1x32xf32, #tpu.memory_space<vmem>>, vector<1x1x32xf32>
    %562 = vector.shape_cast %561 : vector<1x1x32xf32> to vector<1x32xf32>
    %563 = vector.broadcast %562 : vector<1x32xf32> to vector<9x32xf32>
    %564 = arith.addf %560, %563 : vector<9x32xf32>
    %565 = vector.extract_strided_slice %564 {offsets = [0, 0], sizes = [1, 32], strides = [1, 1]} : vector<9x32xf32> to vector<1x32xf32>
    %c0_423 = arith.constant 0 : index
    %c0_424 = arith.constant 0 : index
    %566 = vector.load %arg24[%c0_423, %c0_424] : memref<1x32xf32, #tpu.memory_space<vmem>>, vector<1x32xf32>
    %c0_425 = arith.constant 0 : index
    %c0_426 = arith.constant 0 : index
    %567 = vector.load %arg25[%c0_425, %c0_426] : memref<1x32xf32, #tpu.memory_space<vmem>>, vector<1x32xf32>
    %cst_427 = arith.constant dense<0.000000e+00> : vector<1xf32>
    %568 = vector.multi_reduction <add>, %565, %cst_427 [1] : vector<1x32xf32> to vector<1xf32>
    %569 = vector.shape_cast %568 : vector<1xf32> to vector<1x1xf32>
    %cst_428 = arith.constant 3.200000e+01 : f32
    %570 = vector.broadcast %cst_428 : f32 to vector<1x1xf32>
    %571 = arith.divf %569, %570 : vector<1x1xf32>
    %572 = vector.broadcast %571 : vector<1x1xf32> to vector<1x32xf32>
    %573 = arith.subf %565, %572 : vector<1x32xf32>
    %574 = arith.mulf %573, %573 : vector<1x32xf32>
    %cst_429 = arith.constant dense<0.000000e+00> : vector<1xf32>
    %575 = vector.multi_reduction <add>, %574, %cst_429 [1] : vector<1x32xf32> to vector<1xf32>
    %576 = vector.shape_cast %575 : vector<1xf32> to vector<1x1xf32>
    %cst_430 = arith.constant 3.200000e+01 : f32
    %577 = vector.broadcast %cst_430 : f32 to vector<1x1xf32>
    %578 = arith.divf %576, %577 : vector<1x1xf32>
    %cst_431 = arith.constant 9.99999974E-6 : f32
    %579 = vector.broadcast %cst_431 : f32 to vector<1x1xf32>
    %580 = arith.addf %578, %579 : vector<1x1xf32>
    %581 = math.rsqrt %580 : vector<1x1xf32>
    %582 = vector.broadcast %581 : vector<1x1xf32> to vector<1x32xf32>
    %583 = arith.mulf %573, %582 : vector<1x32xf32>
    %584 = arith.mulf %583, %566 : vector<1x32xf32>
    %585 = arith.addf %584, %567 : vector<1x32xf32>
    %c0_432 = arith.constant 0 : index
    %c0_433 = arith.constant 0 : index
    %c0_434 = arith.constant 0 : index
    %586 = vector.load %arg26[%c0_432, %c0_433, %c0_434] : memref<2x32x64xf32, #tpu.memory_space<vmem>>, vector<1x32x64xf32>
    %587 = vector.shape_cast %586 : vector<1x32x64xf32> to vector<32x64xf32>
    %cst_435 = arith.constant dense<0.000000e+00> : vector<1x64xf32>
    %588 = tpu.matmul %585, %587, %cst_435 {dimension_numbers = #tpu.dot_dimension_numbers<[1], [0], [0], [1], [0, 0, 1, 1], [], []>} : vector<1x32xf32>, vector<32x64xf32>, vector<1x64xf32> -> vector<1x64xf32>
    %c0_436 = arith.constant 0 : index
    %c0_437 = arith.constant 0 : index
    %c0_438 = arith.constant 0 : index
    %589 = vector.load %arg27[%c0_436, %c0_437, %c0_438] : memref<2x1x64xf32, #tpu.memory_space<vmem>>, vector<1x1x64xf32>
    %590 = vector.shape_cast %589 : vector<1x1x64xf32> to vector<1x64xf32>
    %591 = arith.addf %588, %590 : vector<1x64xf32>
    %592 = arith.mulf %591, %591 : vector<1x64xf32>
    %593 = arith.mulf %591, %592 : vector<1x64xf32>
    %cst_439 = arith.constant 4.471500e-02 : f32
    %594 = vector.broadcast %cst_439 : f32 to vector<1x64xf32>
    %595 = arith.mulf %594, %593 : vector<1x64xf32>
    %596 = arith.addf %591, %595 : vector<1x64xf32>
    %cst_440 = arith.constant 0.797884583 : f32
    %597 = vector.broadcast %cst_440 : f32 to vector<1x64xf32>
    %598 = arith.mulf %597, %596 : vector<1x64xf32>
    %599 = math.tanh %598 : vector<1x64xf32>
    %cst_441 = arith.constant 1.000000e+00 : f32
    %600 = vector.broadcast %cst_441 : f32 to vector<1x64xf32>
    %601 = arith.addf %600, %599 : vector<1x64xf32>
    %cst_442 = arith.constant 5.000000e-01 : f32
    %602 = vector.broadcast %cst_442 : f32 to vector<1x64xf32>
    %603 = arith.mulf %602, %601 : vector<1x64xf32>
    %604 = arith.mulf %591, %603 : vector<1x64xf32>
    %c0_443 = arith.constant 0 : index
    %c0_444 = arith.constant 0 : index
    %c0_445 = arith.constant 0 : index
    %605 = vector.load %arg28[%c0_443, %c0_444, %c0_445] : memref<2x64x3xf32, #tpu.memory_space<vmem>>, vector<1x64x3xf32>
    %606 = vector.shape_cast %605 : vector<1x64x3xf32> to vector<64x3xf32>
    %cst_446 = arith.constant dense<0.000000e+00> : vector<1x3xf32>
    %607 = tpu.matmul %604, %606, %cst_446 {dimension_numbers = #tpu.dot_dimension_numbers<[1], [0], [0], [1], [0, 0, 1, 1], [], []>} : vector<1x64xf32>, vector<64x3xf32>, vector<1x3xf32> -> vector<1x3xf32>
    %c0_447 = arith.constant 0 : index
    %c0_448 = arith.constant 0 : index
    %c0_449 = arith.constant 0 : index
    %608 = vector.load %arg29[%c0_447, %c0_448, %c0_449] : memref<2x1x3xf32, #tpu.memory_space<vmem>>, vector<1x1x3xf32>
    %609 = vector.shape_cast %608 : vector<1x1x3xf32> to vector<1x3xf32>
    %610 = arith.addf %607, %609 : vector<1x3xf32>
    %c0_450 = arith.constant 0 : index
    %c0_451 = arith.constant 0 : index
    %611 = vector.load %arg30[%c0_450, %c0_451] : memref<4x3xf32, #tpu.memory_space<vmem>>, vector<1x3xf32>
    tpu.vector_store %arg30[%c0_450, %c0_451], %610 {strides = array<i32>} : memref<4x3xf32, #tpu.memory_space<vmem>>, vector<1x3xf32>,
    %c1_452 = arith.constant 1 : index
    %c0_453 = arith.constant 0 : index
    %c0_454 = arith.constant 0 : index
    %612 = vector.load %arg26[%c1_452, %c0_453, %c0_454] : memref<2x32x64xf32, #tpu.memory_space<vmem>>, vector<1x32x64xf32>
    %613 = vector.shape_cast %612 : vector<1x32x64xf32> to vector<32x64xf32>
    %cst_455 = arith.constant dense<0.000000e+00> : vector<1x64xf32>
    %614 = tpu.matmul %585, %613, %cst_455 {dimension_numbers = #tpu.dot_dimension_numbers<[1], [0], [0], [1], [0, 0, 1, 1], [], []>} : vector<1x32xf32>, vector<32x64xf32>, vector<1x64xf32> -> vector<1x64xf32>
    %c1_456 = arith.constant 1 : index
    %c0_457 = arith.constant 0 : index
    %c0_458 = arith.constant 0 : index
    %615 = vector.load %arg27[%c1_456, %c0_457, %c0_458] : memref<2x1x64xf32, #tpu.memory_space<vmem>>, vector<1x1x64xf32>
    %616 = vector.shape_cast %615 : vector<1x1x64xf32> to vector<1x64xf32>
    %617 = arith.addf %614, %616 : vector<1x64xf32>
    %618 = arith.mulf %617, %617 : vector<1x64xf32>
    %619 = arith.mulf %617, %618 : vector<1x64xf32>
    %cst_459 = arith.constant 4.471500e-02 : f32
    %620 = vector.broadcast %cst_459 : f32 to vector<1x64xf32>
    %621 = arith.mulf %620, %619 : vector<1x64xf32>
    %622 = arith.addf %617, %621 : vector<1x64xf32>
    %cst_460 = arith.constant 0.797884583 : f32
    %623 = vector.broadcast %cst_460 : f32 to vector<1x64xf32>
    %624 = arith.mulf %623, %622 : vector<1x64xf32>
    %625 = math.tanh %624 : vector<1x64xf32>
    %cst_461 = arith.constant 1.000000e+00 : f32
    %626 = vector.broadcast %cst_461 : f32 to vector<1x64xf32>
    %627 = arith.addf %626, %625 : vector<1x64xf32>
    %cst_462 = arith.constant 5.000000e-01 : f32
    %628 = vector.broadcast %cst_462 : f32 to vector<1x64xf32>
    %629 = arith.mulf %628, %627 : vector<1x64xf32>
    %630 = arith.mulf %617, %629 : vector<1x64xf32>
    %c1_463 = arith.constant 1 : index
    %c0_464 = arith.constant 0 : index
    %c0_465 = arith.constant 0 : index
    %631 = vector.load %arg28[%c1_463, %c0_464, %c0_465] : memref<2x64x3xf32, #tpu.memory_space<vmem>>, vector<1x64x3xf32>
    %632 = vector.shape_cast %631 : vector<1x64x3xf32> to vector<64x3xf32>
    %cst_466 = arith.constant dense<0.000000e+00> : vector<1x3xf32>
    %633 = tpu.matmul %630, %632, %cst_466 {dimension_numbers = #tpu.dot_dimension_numbers<[1], [0], [0], [1], [0, 0, 1, 1], [], []>} : vector<1x64xf32>, vector<64x3xf32>, vector<1x3xf32> -> vector<1x3xf32>
    %c1_467 = arith.constant 1 : index
    %c0_468 = arith.constant 0 : index
    %c0_469 = arith.constant 0 : index
    %634 = vector.load %arg29[%c1_467, %c0_468, %c0_469] : memref<2x1x3xf32, #tpu.memory_space<vmem>>, vector<1x1x3xf32>
    %635 = vector.shape_cast %634 : vector<1x1x3xf32> to vector<1x3xf32>
    %636 = arith.addf %633, %635 : vector<1x3xf32>
    %c2_470 = arith.constant 2 : index
    %c0_471 = arith.constant 0 : index
    %637 = vector.load %arg30[%c2_470, %c0_471] : memref<4x3xf32, #tpu.memory_space<vmem>>, vector<1x3xf32>
    tpu.vector_store %arg30[%c2_470, %c0_471], %636 {strides = array<i32>} : memref<4x3xf32, #tpu.memory_space<vmem>>, vector<1x3xf32>,
    %c1_472 = arith.constant 1 : index
    %c0_473 = arith.constant 0 : index
    %c0_474 = arith.constant 0 : index
    %638 = vector.load %arg0[%c1_472, %c0_473, %c0_474] : memref<2x16x32xf32, #tpu.memory_space<vmem>>, vector<1x16x32xf32>
    %639 = vector.shape_cast %638 : vector<1x16x32xf32> to vector<16x32xf32>
    %c1_475 = arith.constant 1 : index
    %c0_476 = arith.constant 0 : index
    %c0_477 = arith.constant 0 : index
    %640 = vector.load %arg1[%c1_475, %c0_476, %c0_477] : memref<2x16x16xf32, #tpu.memory_space<vmem>>, vector<1x16x16xf32>
    %641 = vector.shape_cast %640 : vector<1x16x16xf32> to vector<16x16xf32>
    %c1_478 = arith.constant 1 : index
    %c0_479 = arith.constant 0 : index
    %c0_480 = arith.constant 0 : index
    %642 = vector.load %arg2[%c1_478, %c0_479, %c0_480] : memref<2x16x1xf32, #tpu.memory_space<vmem>>, vector<1x16x1xf32>
    %643 = vector.shape_cast %642 : vector<1x16x1xf32> to vector<16x1xf32>
    %644 = vector.broadcast %643 : vector<16x1xf32> to vector<16x32xf32>
    %645 = arith.mulf %639, %644 : vector<16x32xf32>
    %cst_481 = arith.constant dense<0.000000e+00> : vector<16x32xf32>
    %646 = tpu.matmul %641, %645, %cst_481 {dimension_numbers = #tpu.dot_dimension_numbers<[1], [0], [0], [1], [0, 0, 1, 1], [], []>} : vector<16x16xf32>, vector<16x32xf32>, vector<16x32xf32> -> vector<16x32xf32>
    %c0_482 = arith.constant 0 : index
    %c0_483 = arith.constant 0 : index
    %647 = vector.load %arg3[%c0_482, %c0_483] : memref<32x32xf32, #tpu.memory_space<vmem>>, vector<32x32xf32>
    %cst_484 = arith.constant dense<0.000000e+00> : vector<16x32xf32>
    %648 = tpu.matmul %646, %647, %cst_484 {dimension_numbers = #tpu.dot_dimension_numbers<[1], [0], [0], [1], [0, 0, 1, 1], [], []>} : vector<16x32xf32>, vector<32x32xf32>, vector<16x32xf32> -> vector<16x32xf32>
    %c0_485 = arith.constant 0 : index
    %c0_486 = arith.constant 0 : index
    %649 = vector.load %arg4[%c0_485, %c0_486] : memref<1x32xf32, #tpu.memory_space<vmem>>, vector<1x32xf32>
    %650 = vector.broadcast %649 : vector<1x32xf32> to vector<16x32xf32>
    %651 = arith.addf %648, %650 : vector<16x32xf32>
    %cst_487 = arith.constant 0.000000e+00 : f32
    %652 = vector.broadcast %cst_487 : f32 to vector<16x32xf32>
    %653 = arith.maximumf %651, %652 : vector<16x32xf32>
    %c0_488 = arith.constant 0 : index
    %c0_489 = arith.constant 0 : index
    %654 = vector.load %arg5[%c0_488, %c0_489] : memref<32x8xf32, #tpu.memory_space<vmem>>, vector<32x8xf32>
    %cst_490 = arith.constant dense<0.000000e+00> : vector<16x8xf32>
    %655 = tpu.matmul %653, %654, %cst_490 {dimension_numbers = #tpu.dot_dimension_numbers<[1], [0], [0], [1], [0, 0, 1, 1], [], []>} : vector<16x32xf32>, vector<32x8xf32>, vector<16x8xf32> -> vector<16x8xf32>
    %c0_491 = arith.constant 0 : index
    %c0_492 = arith.constant 0 : index
    %656 = vector.load %arg6[%c0_491, %c0_492] : memref<1x8xf32, #tpu.memory_space<vmem>>, vector<1x8xf32>
    %657 = vector.broadcast %656 : vector<1x8xf32> to vector<16x8xf32>
    %658 = arith.addf %655, %657 : vector<16x8xf32>
    %cst_493 = arith.constant dense<0xFF800000> : vector<16xf32>
    %659 = vector.multi_reduction <maximumf>, %658, %cst_493 [1] : vector<16x8xf32> to vector<16xf32>
    %660 = vector.shape_cast %659 : vector<16xf32> to vector<16x1xf32>
    %661 = vector.broadcast %660 : vector<16x1xf32> to vector<16x8xf32>
    %662 = arith.subf %658, %661 : vector<16x8xf32>
    %663 = math.exp %662 : vector<16x8xf32>
    %cst_494 = arith.constant dense<0.000000e+00> : vector<16xf32>
    %664 = vector.multi_reduction <add>, %663, %cst_494 [1] : vector<16x8xf32> to vector<16xf32>
    %665 = vector.shape_cast %664 : vector<16xf32> to vector<16x1xf32>
    %666 = tpu.reciprocal %665 {approx = true} : vector<16x1xf32> -> vector<16x1xf32>
    %667 = vector.broadcast %666 : vector<16x1xf32> to vector<16x8xf32>
    %668 = arith.mulf %663, %667 : vector<16x8xf32>
    %669 = vector.broadcast %643 : vector<16x1xf32> to vector<16x32xf32>
    %670 = arith.mulf %653, %669 : vector<16x32xf32>
    %671 = vector.broadcast %643 : vector<16x1xf32> to vector<16x8xf32>
    %672 = arith.mulf %668, %671 : vector<16x8xf32>
    %cst_495 = arith.constant dense<0.000000e+00> : vector<8x32xf32>
    %673 = tpu.matmul %672, %670, %cst_495 {dimension_numbers = #tpu.dot_dimension_numbers<[0], [0], [1], [1], [0, 1, 1, 1], [], []>} : vector<16x8xf32>, vector<16x32xf32>, vector<8x32xf32> -> vector<8x32xf32>
    %cst_496 = arith.constant dense<0.000000e+00> : vector<8x16xf32>
    %674 = tpu.matmul %672, %641, %cst_496 {dimension_numbers = #tpu.dot_dimension_numbers<[0], [0], [1], [1], [0, 1, 1, 1], [], []>} : vector<16x8xf32>, vector<16x16xf32>, vector<8x16xf32> -> vector<8x16xf32>
    %cst_497 = arith.constant dense<0.000000e+00> : vector<8x8xf32>
    %675 = tpu.matmul %674, %672, %cst_497 {dimension_numbers = #tpu.dot_dimension_numbers<[1], [0], [0], [1], [0, 0, 1, 1], [], []>} : vector<8x16xf32>, vector<16x8xf32>, vector<8x8xf32> -> vector<8x8xf32>
    %676 = arith.mulf %675, %4 : vector<8x8xf32>
    %677 = vector.shape_cast %676 : vector<8x8xf32> to vector<1x8x8xf32>
    %cst_498 = arith.constant dense<0.000000e+00> : vector<1xf32>
    %678 = vector.multi_reduction <add>, %677, %cst_498 [1, 2] : vector<1x8x8xf32> to vector<1xf32>
    %679 = vector.shape_cast %678 : vector<1xf32> to vector<1x1x1xf32>
    %680 = vector.extract %679[0, 0, 0] : f32 from vector<1x1x1xf32>
    %681 = vector.broadcast %680 : f32 to vector<1x1xf32>
    %cst_499 = arith.constant dense<0.000000e+00> : vector<16xf32>
    %682 = vector.multi_reduction <add>, %641, %cst_499 [1] : vector<16x16xf32> to vector<16xf32>
    %683 = vector.shape_cast %682 : vector<16xf32> to vector<16x1xf32>
    %684 = vector.broadcast %683 : vector<16x1xf32> to vector<16x8xf32>
    %685 = arith.mulf %684, %672 : vector<16x8xf32>
    %686 = arith.mulf %685, %672 : vector<16x8xf32>
    %687 = vector.shape_cast %686 : vector<16x8xf32> to vector<1x16x8xf32>
    %cst_500 = arith.constant dense<0.000000e+00> : vector<1xf32>
    %688 = vector.multi_reduction <add>, %687, %cst_500 [1, 2] : vector<1x16x8xf32> to vector<1xf32>
    %689 = vector.shape_cast %688 : vector<1xf32> to vector<1x1x1xf32>
    %690 = vector.extract %689[0, 0, 0] : f32 from vector<1x1x1xf32>
    %691 = vector.broadcast %690 : f32 to vector<1x1xf32>
    %692 = arith.divf %681, %691 : vector<1x1xf32>
    %693 = arith.subf %62, %692 : vector<1x1xf32>
    %cst_501 = arith.constant dense<0.000000e+00> : vector<8x8xf32>
    %694 = tpu.matmul %672, %672, %cst_501 {dimension_numbers = #tpu.dot_dimension_numbers<[0], [0], [1], [1], [0, 1, 1, 1], [], []>} : vector<16x8xf32>, vector<16x8xf32>, vector<8x8xf32> -> vector<8x8xf32>
    %695 = arith.mulf %694, %694 : vector<8x8xf32>
    %696 = vector.shape_cast %695 : vector<8x8xf32> to vector<1x8x8xf32>
    %cst_502 = arith.constant dense<0.000000e+00> : vector<1xf32>
    %697 = vector.multi_reduction <add>, %696, %cst_502 [1, 2] : vector<1x8x8xf32> to vector<1xf32>
    %698 = vector.shape_cast %697 : vector<1xf32> to vector<1x1x1xf32>
    %699 = vector.extract %698[0, 0, 0] : f32 from vector<1x1x1xf32>
    %700 = vector.broadcast %699 : f32 to vector<1x1xf32>
    %701 = math.sqrt %700 : vector<1x1xf32>
    %702 = vector.broadcast %701 : vector<1x1xf32> to vector<8x8xf32>
    %703 = arith.divf %694, %702 : vector<8x8xf32>
    %cst_503 = arith.constant 0.353553385 : f32
    %704 = vector.broadcast %cst_503 : f32 to vector<8x8xf32>
    %705 = arith.mulf %4, %704 : vector<8x8xf32>
    %706 = arith.subf %703, %705 : vector<8x8xf32>
    %707 = arith.mulf %706, %706 : vector<8x8xf32>
    %708 = vector.shape_cast %707 : vector<8x8xf32> to vector<1x8x8xf32>
    %cst_504 = arith.constant dense<0.000000e+00> : vector<1xf32>
    %709 = vector.multi_reduction <add>, %708, %cst_504 [1, 2] : vector<1x8x8xf32> to vector<1xf32>
    %710 = vector.shape_cast %709 : vector<1xf32> to vector<1x1x1xf32>
    %711 = vector.extract %710[0, 0, 0] : f32 from vector<1x1x1xf32>
    %712 = vector.broadcast %711 : f32 to vector<1x1xf32>
    %713 = math.sqrt %712 : vector<1x1xf32>
    %714 = arith.addf %83, %713 : vector<1x1xf32>
    %c0_505 = arith.constant 0 : index
    %c0_506 = arith.constant 0 : index
    %c0_507 = arith.constant 0 : index
    %715 = vector.load %arg7[%c0_505, %c0_506, %c0_507] : memref<1x1x32xf32, #tpu.memory_space<vmem>>, vector<1x1x32xf32>
    %716 = vector.shape_cast %715 : vector<1x1x32xf32> to vector<1x32xf32>
    %c0_508 = arith.constant 0 : index
    %c0_509 = arith.constant 0 : index
    %717 = vector.load %arg32[%c0_508, %c0_509] : memref<9x32xf32, #tpu.memory_space<vmem>>, vector<1x32xf32>
    tpu.vector_store %arg32[%c0_508, %c0_509], %716 {strides = array<i32>} : memref<9x32xf32, #tpu.memory_space<vmem>>, vector<1x32xf32>,
    %c1_510 = arith.constant 1 : index
    %c0_511 = arith.constant 0 : index
    %718 = vector.load %arg32[%c1_510, %c0_511] : memref<9x32xf32, #tpu.memory_space<vmem>>, vector<8x32xf32>
    tpu.vector_store %arg32[%c1_510, %c0_511], %673 {strides = array<i32>} : memref<9x32xf32, #tpu.memory_space<vmem>>, vector<8x32xf32>,
    %c0_512 = arith.constant 0 : index
    %c0_513 = arith.constant 0 : index
    %719 = vector.load %arg32[%c0_512, %c0_513] : memref<9x32xf32, #tpu.memory_space<vmem>>, vector<9x32xf32>
    %c0_514 = arith.constant 0 : index
    %c0_515 = arith.constant 0 : index
    %c0_516 = arith.constant 0 : index
    %720 = vector.load %arg8[%c0_514, %c0_515, %c0_516] : memref<2x1x32xf32, #tpu.memory_space<vmem>>, vector<1x1x32xf32>
    %721 = vector.shape_cast %720 : vector<1x1x32xf32> to vector<1x32xf32>
    %c0_517 = arith.constant 0 : index
    %c0_518 = arith.constant 0 : index
    %c0_519 = arith.constant 0 : index
    %722 = vector.load %arg9[%c0_517, %c0_518, %c0_519] : memref<2x1x32xf32, #tpu.memory_space<vmem>>, vector<1x1x32xf32>
    %723 = vector.shape_cast %722 : vector<1x1x32xf32> to vector<1x32xf32>
    %cst_520 = arith.constant dense<0.000000e+00> : vector<9xf32>
    %724 = vector.multi_reduction <add>, %719, %cst_520 [1] : vector<9x32xf32> to vector<9xf32>
    %725 = vector.shape_cast %724 : vector<9xf32> to vector<9x1xf32>
    %cst_521 = arith.constant 3.200000e+01 : f32
    %726 = vector.broadcast %cst_521 : f32 to vector<9x1xf32>
    %727 = arith.divf %725, %726 : vector<9x1xf32>
    %728 = vector.broadcast %727 : vector<9x1xf32> to vector<9x32xf32>
    %729 = arith.subf %719, %728 : vector<9x32xf32>
    %730 = arith.mulf %729, %729 : vector<9x32xf32>
    %cst_522 = arith.constant dense<0.000000e+00> : vector<9xf32>
    %731 = vector.multi_reduction <add>, %730, %cst_522 [1] : vector<9x32xf32> to vector<9xf32>
    %732 = vector.shape_cast %731 : vector<9xf32> to vector<9x1xf32>
    %cst_523 = arith.constant 3.200000e+01 : f32
    %733 = vector.broadcast %cst_523 : f32 to vector<9x1xf32>
    %734 = arith.divf %732, %733 : vector<9x1xf32>
    %cst_524 = arith.constant 9.99999974E-6 : f32
    %735 = vector.broadcast %cst_524 : f32 to vector<9x1xf32>
    %736 = arith.addf %734, %735 : vector<9x1xf32>
    %737 = math.rsqrt %736 : vector<9x1xf32>
    %738 = vector.broadcast %737 : vector<9x1xf32> to vector<9x32xf32>
    %739 = arith.mulf %729, %738 : vector<9x32xf32>
    %740 = vector.broadcast %721 : vector<1x32xf32> to vector<9x32xf32>
    %741 = arith.mulf %739, %740 : vector<9x32xf32>
    %742 = vector.broadcast %723 : vector<1x32xf32> to vector<9x32xf32>
    %743 = arith.addf %741, %742 : vector<9x32xf32>
    %cst_525 = arith.constant 0.000000e+00 : f32
    %744 = vector.broadcast %cst_525 : f32 to vector<9x32xf32>
    %c0_526 = arith.constant 0 : index
    %c0_527 = arith.constant 0 : index
    %c0_528 = arith.constant 0 : index
    %c0_529 = arith.constant 0 : index
    %745 = vector.load %arg10[%c0_526, %c0_527, %c0_528, %c0_529] : memref<2x4x32x8xf32, #tpu.memory_space<vmem>>, vector<1x1x32x8xf32>
    %746 = vector.shape_cast %745 : vector<1x1x32x8xf32> to vector<32x8xf32>
    %cst_530 = arith.constant dense<0.000000e+00> : vector<9x8xf32>
    %747 = tpu.matmul %743, %746, %cst_530 {dimension_numbers = #tpu.dot_dimension_numbers<[1], [0], [0], [1], [0, 0, 1, 1], [], []>} : vector<9x32xf32>, vector<32x8xf32>, vector<9x8xf32> -> vector<9x8xf32>
    %c0_531 = arith.constant 0 : index
    %c0_532 = arith.constant 0 : index
    %c0_533 = arith.constant 0 : index
    %c0_534 = arith.constant 0 : index
    %748 = vector.load %arg11[%c0_531, %c0_532, %c0_533, %c0_534] : memref<2x4x1x8xf32, #tpu.memory_space<vmem>>, vector<1x1x1x8xf32>
    %749 = vector.shape_cast %748 : vector<1x1x1x8xf32> to vector<1x8xf32>
    %750 = vector.broadcast %749 : vector<1x8xf32> to vector<9x8xf32>
    %751 = arith.addf %747, %750 : vector<9x8xf32>
    %c0_535 = arith.constant 0 : index
    %c0_536 = arith.constant 0 : index
    %c0_537 = arith.constant 0 : index
    %c0_538 = arith.constant 0 : index
    %752 = vector.load %arg12[%c0_535, %c0_536, %c0_537, %c0_538] : memref<2x4x32x8xf32, #tpu.memory_space<vmem>>, vector<1x1x32x8xf32>
    %753 = vector.shape_cast %752 : vector<1x1x32x8xf32> to vector<32x8xf32>
    %cst_539 = arith.constant dense<0.000000e+00> : vector<9x8xf32>
    %754 = tpu.matmul %743, %753, %cst_539 {dimension_numbers = #tpu.dot_dimension_numbers<[1], [0], [0], [1], [0, 0, 1, 1], [], []>} : vector<9x32xf32>, vector<32x8xf32>, vector<9x8xf32> -> vector<9x8xf32>
    %c0_540 = arith.constant 0 : index
    %c0_541 = arith.constant 0 : index
    %c0_542 = arith.constant 0 : index
    %c0_543 = arith.constant 0 : index
    %755 = vector.load %arg13[%c0_540, %c0_541, %c0_542, %c0_543] : memref<2x4x1x8xf32, #tpu.memory_space<vmem>>, vector<1x1x1x8xf32>
    %756 = vector.shape_cast %755 : vector<1x1x1x8xf32> to vector<1x8xf32>
    %757 = vector.broadcast %756 : vector<1x8xf32> to vector<9x8xf32>
    %758 = arith.addf %754, %757 : vector<9x8xf32>
    %c0_544 = arith.constant 0 : index
    %c0_545 = arith.constant 0 : index
    %c0_546 = arith.constant 0 : index
    %c0_547 = arith.constant 0 : index
    %759 = vector.load %arg14[%c0_544, %c0_545, %c0_546, %c0_547] : memref<2x4x32x8xf32, #tpu.memory_space<vmem>>, vector<1x1x32x8xf32>
    %760 = vector.shape_cast %759 : vector<1x1x32x8xf32> to vector<32x8xf32>
    %cst_548 = arith.constant dense<0.000000e+00> : vector<9x8xf32>
    %761 = tpu.matmul %743, %760, %cst_548 {dimension_numbers = #tpu.dot_dimension_numbers<[1], [0], [0], [1], [0, 0, 1, 1], [], []>} : vector<9x32xf32>, vector<32x8xf32>, vector<9x8xf32> -> vector<9x8xf32>
    %c0_549 = arith.constant 0 : index
    %c0_550 = arith.constant 0 : index
    %c0_551 = arith.constant 0 : index
    %c0_552 = arith.constant 0 : index
    %762 = vector.load %arg15[%c0_549, %c0_550, %c0_551, %c0_552] : memref<2x4x1x8xf32, #tpu.memory_space<vmem>>, vector<1x1x1x8xf32>
    %763 = vector.shape_cast %762 : vector<1x1x1x8xf32> to vector<1x8xf32>
    %764 = vector.broadcast %763 : vector<1x8xf32> to vector<9x8xf32>
    %765 = arith.addf %761, %764 : vector<9x8xf32>
    %cst_553 = arith.constant dense<0.000000e+00> : vector<9x9xf32>
    %766 = tpu.matmul %751, %758, %cst_553 {dimension_numbers = #tpu.dot_dimension_numbers<[1], [1], [0], [0], [0, 0, 1, 0], [], []>} : vector<9x8xf32>, vector<9x8xf32>, vector<9x9xf32> -> vector<9x9xf32>
    %cst_554 = arith.constant 0.353553385 : f32
    %767 = vector.broadcast %cst_554 : f32 to vector<9x9xf32>
    %768 = arith.mulf %766, %767 : vector<9x9xf32>
    %cst_555 = arith.constant dense<0xFF800000> : vector<9xf32>
    %769 = vector.multi_reduction <maximumf>, %768, %cst_555 [1] : vector<9x9xf32> to vector<9xf32>
    %770 = vector.shape_cast %769 : vector<9xf32> to vector<9x1xf32>
    %771 = vector.broadcast %770 : vector<9x1xf32> to vector<9x9xf32>
    %772 = arith.subf %768, %771 : vector<9x9xf32>
    %773 = math.exp %772 : vector<9x9xf32>
    %cst_556 = arith.constant dense<0.000000e+00> : vector<9xf32>
    %774 = vector.multi_reduction <add>, %773, %cst_556 [1] : vector<9x9xf32> to vector<9xf32>
    %775 = vector.shape_cast %774 : vector<9xf32> to vector<9x1xf32>
    %776 = tpu.reciprocal %775 {approx = true} : vector<9x1xf32> -> vector<9x1xf32>
    %777 = vector.broadcast %776 : vector<9x1xf32> to vector<9x9xf32>
    %778 = arith.mulf %773, %777 : vector<9x9xf32>
    %cst_557 = arith.constant dense<0.000000e+00> : vector<9x8xf32>
    %779 = tpu.matmul %778, %765, %cst_557 {dimension_numbers = #tpu.dot_dimension_numbers<[1], [0], [0], [1], [0, 0, 1, 1], [], []>} : vector<9x9xf32>, vector<9x8xf32>, vector<9x8xf32> -> vector<9x8xf32>
    %c0_558 = arith.constant 0 : index
    %c0_559 = arith.constant 0 : index
    %c0_560 = arith.constant 0 : index
    %c0_561 = arith.constant 0 : index
    %780 = vector.load %arg16[%c0_558, %c0_559, %c0_560, %c0_561] : memref<2x4x8x32xf32, #tpu.memory_space<vmem>>, vector<1x1x8x32xf32>
    %781 = vector.shape_cast %780 : vector<1x1x8x32xf32> to vector<8x32xf32>
    %cst_562 = arith.constant dense<0.000000e+00> : vector<9x32xf32>
    %782 = tpu.matmul %779, %781, %cst_562 {dimension_numbers = #tpu.dot_dimension_numbers<[1], [0], [0], [1], [0, 0, 1, 1], [], []>} : vector<9x8xf32>, vector<8x32xf32>, vector<9x32xf32> -> vector<9x32xf32>
    %783 = arith.addf %744, %782 : vector<9x32xf32>
    %c0_563 = arith.constant 0 : index
    %c1_564 = arith.constant 1 : index
    %c0_565 = arith.constant 0 : index
    %c0_566 = arith.constant 0 : index
    %784 = vector.load %arg10[%c0_563, %c1_564, %c0_565, %c0_566] : memref<2x4x32x8xf32, #tpu.memory_space<vmem>>, vector<1x1x32x8xf32>
    %785 = vector.shape_cast %784 : vector<1x1x32x8xf32> to vector<32x8xf32>
    %cst_567 = arith.constant dense<0.000000e+00> : vector<9x8xf32>
    %786 = tpu.matmul %743, %785, %cst_567 {dimension_numbers = #tpu.dot_dimension_numbers<[1], [0], [0], [1], [0, 0, 1, 1], [], []>} : vector<9x32xf32>, vector<32x8xf32>, vector<9x8xf32> -> vector<9x8xf32>
    %c0_568 = arith.constant 0 : index
    %c1_569 = arith.constant 1 : index
    %c0_570 = arith.constant 0 : index
    %c0_571 = arith.constant 0 : index
    %787 = vector.load %arg11[%c0_568, %c1_569, %c0_570, %c0_571] : memref<2x4x1x8xf32, #tpu.memory_space<vmem>>, vector<1x1x1x8xf32>
    %788 = vector.shape_cast %787 : vector<1x1x1x8xf32> to vector<1x8xf32>
    %789 = vector.broadcast %788 : vector<1x8xf32> to vector<9x8xf32>
    %790 = arith.addf %786, %789 : vector<9x8xf32>
    %c0_572 = arith.constant 0 : index
    %c1_573 = arith.constant 1 : index
    %c0_574 = arith.constant 0 : index
    %c0_575 = arith.constant 0 : index
    %791 = vector.load %arg12[%c0_572, %c1_573, %c0_574, %c0_575] : memref<2x4x32x8xf32, #tpu.memory_space<vmem>>, vector<1x1x32x8xf32>
    %792 = vector.shape_cast %791 : vector<1x1x32x8xf32> to vector<32x8xf32>
    %cst_576 = arith.constant dense<0.000000e+00> : vector<9x8xf32>
    %793 = tpu.matmul %743, %792, %cst_576 {dimension_numbers = #tpu.dot_dimension_numbers<[1], [0], [0], [1], [0, 0, 1, 1], [], []>} : vector<9x32xf32>, vector<32x8xf32>, vector<9x8xf32> -> vector<9x8xf32>
    %c0_577 = arith.constant 0 : index
    %c1_578 = arith.constant 1 : index
    %c0_579 = arith.constant 0 : index
    %c0_580 = arith.constant 0 : index
    %794 = vector.load %arg13[%c0_577, %c1_578, %c0_579, %c0_580] : memref<2x4x1x8xf32, #tpu.memory_space<vmem>>, vector<1x1x1x8xf32>
    %795 = vector.shape_cast %794 : vector<1x1x1x8xf32> to vector<1x8xf32>
    %796 = vector.broadcast %795 : vector<1x8xf32> to vector<9x8xf32>
    %797 = arith.addf %793, %796 : vector<9x8xf32>
    %c0_581 = arith.constant 0 : index
    %c1_582 = arith.constant 1 : index
    %c0_583 = arith.constant 0 : index
    %c0_584 = arith.constant 0 : index
    %798 = vector.load %arg14[%c0_581, %c1_582, %c0_583, %c0_584] : memref<2x4x32x8xf32, #tpu.memory_space<vmem>>, vector<1x1x32x8xf32>
    %799 = vector.shape_cast %798 : vector<1x1x32x8xf32> to vector<32x8xf32>
    %cst_585 = arith.constant dense<0.000000e+00> : vector<9x8xf32>
    %800 = tpu.matmul %743, %799, %cst_585 {dimension_numbers = #tpu.dot_dimension_numbers<[1], [0], [0], [1], [0, 0, 1, 1], [], []>} : vector<9x32xf32>, vector<32x8xf32>, vector<9x8xf32> -> vector<9x8xf32>
    %c0_586 = arith.constant 0 : index
    %c1_587 = arith.constant 1 : index
    %c0_588 = arith.constant 0 : index
    %c0_589 = arith.constant 0 : index
    %801 = vector.load %arg15[%c0_586, %c1_587, %c0_588, %c0_589] : memref<2x4x1x8xf32, #tpu.memory_space<vmem>>, vector<1x1x1x8xf32>
    %802 = vector.shape_cast %801 : vector<1x1x1x8xf32> to vector<1x8xf32>
    %803 = vector.broadcast %802 : vector<1x8xf32> to vector<9x8xf32>
    %804 = arith.addf %800, %803 : vector<9x8xf32>
    %cst_590 = arith.constant dense<0.000000e+00> : vector<9x9xf32>
    %805 = tpu.matmul %790, %797, %cst_590 {dimension_numbers = #tpu.dot_dimension_numbers<[1], [1], [0], [0], [0, 0, 1, 0], [], []>} : vector<9x8xf32>, vector<9x8xf32>, vector<9x9xf32> -> vector<9x9xf32>
    %cst_591 = arith.constant 0.353553385 : f32
    %806 = vector.broadcast %cst_591 : f32 to vector<9x9xf32>
    %807 = arith.mulf %805, %806 : vector<9x9xf32>
    %cst_592 = arith.constant dense<0xFF800000> : vector<9xf32>
    %808 = vector.multi_reduction <maximumf>, %807, %cst_592 [1] : vector<9x9xf32> to vector<9xf32>
    %809 = vector.shape_cast %808 : vector<9xf32> to vector<9x1xf32>
    %810 = vector.broadcast %809 : vector<9x1xf32> to vector<9x9xf32>
    %811 = arith.subf %807, %810 : vector<9x9xf32>
    %812 = math.exp %811 : vector<9x9xf32>
    %cst_593 = arith.constant dense<0.000000e+00> : vector<9xf32>
    %813 = vector.multi_reduction <add>, %812, %cst_593 [1] : vector<9x9xf32> to vector<9xf32>
    %814 = vector.shape_cast %813 : vector<9xf32> to vector<9x1xf32>
    %815 = tpu.reciprocal %814 {approx = true} : vector<9x1xf32> -> vector<9x1xf32>
    %816 = vector.broadcast %815 : vector<9x1xf32> to vector<9x9xf32>
    %817 = arith.mulf %812, %816 : vector<9x9xf32>
    %cst_594 = arith.constant dense<0.000000e+00> : vector<9x8xf32>
    %818 = tpu.matmul %817, %804, %cst_594 {dimension_numbers = #tpu.dot_dimension_numbers<[1], [0], [0], [1], [0, 0, 1, 1], [], []>} : vector<9x9xf32>, vector<9x8xf32>, vector<9x8xf32> -> vector<9x8xf32>
    %c0_595 = arith.constant 0 : index
    %c1_596 = arith.constant 1 : index
    %c0_597 = arith.constant 0 : index
    %c0_598 = arith.constant 0 : index
    %819 = vector.load %arg16[%c0_595, %c1_596, %c0_597, %c0_598] : memref<2x4x8x32xf32, #tpu.memory_space<vmem>>, vector<1x1x8x32xf32>
    %820 = vector.shape_cast %819 : vector<1x1x8x32xf32> to vector<8x32xf32>
    %cst_599 = arith.constant dense<0.000000e+00> : vector<9x32xf32>
    %821 = tpu.matmul %818, %820, %cst_599 {dimension_numbers = #tpu.dot_dimension_numbers<[1], [0], [0], [1], [0, 0, 1, 1], [], []>} : vector<9x8xf32>, vector<8x32xf32>, vector<9x32xf32> -> vector<9x32xf32>
    %822 = arith.addf %783, %821 : vector<9x32xf32>
    %c0_600 = arith.constant 0 : index
    %c2_601 = arith.constant 2 : index
    %c0_602 = arith.constant 0 : index
    %c0_603 = arith.constant 0 : index
    %823 = vector.load %arg10[%c0_600, %c2_601, %c0_602, %c0_603] : memref<2x4x32x8xf32, #tpu.memory_space<vmem>>, vector<1x1x32x8xf32>
    %824 = vector.shape_cast %823 : vector<1x1x32x8xf32> to vector<32x8xf32>
    %cst_604 = arith.constant dense<0.000000e+00> : vector<9x8xf32>
    %825 = tpu.matmul %743, %824, %cst_604 {dimension_numbers = #tpu.dot_dimension_numbers<[1], [0], [0], [1], [0, 0, 1, 1], [], []>} : vector<9x32xf32>, vector<32x8xf32>, vector<9x8xf32> -> vector<9x8xf32>
    %c0_605 = arith.constant 0 : index
    %c2_606 = arith.constant 2 : index
    %c0_607 = arith.constant 0 : index
    %c0_608 = arith.constant 0 : index
    %826 = vector.load %arg11[%c0_605, %c2_606, %c0_607, %c0_608] : memref<2x4x1x8xf32, #tpu.memory_space<vmem>>, vector<1x1x1x8xf32>
    %827 = vector.shape_cast %826 : vector<1x1x1x8xf32> to vector<1x8xf32>
    %828 = vector.broadcast %827 : vector<1x8xf32> to vector<9x8xf32>
    %829 = arith.addf %825, %828 : vector<9x8xf32>
    %c0_609 = arith.constant 0 : index
    %c2_610 = arith.constant 2 : index
    %c0_611 = arith.constant 0 : index
    %c0_612 = arith.constant 0 : index
    %830 = vector.load %arg12[%c0_609, %c2_610, %c0_611, %c0_612] : memref<2x4x32x8xf32, #tpu.memory_space<vmem>>, vector<1x1x32x8xf32>
    %831 = vector.shape_cast %830 : vector<1x1x32x8xf32> to vector<32x8xf32>
    %cst_613 = arith.constant dense<0.000000e+00> : vector<9x8xf32>
    %832 = tpu.matmul %743, %831, %cst_613 {dimension_numbers = #tpu.dot_dimension_numbers<[1], [0], [0], [1], [0, 0, 1, 1], [], []>} : vector<9x32xf32>, vector<32x8xf32>, vector<9x8xf32> -> vector<9x8xf32>
    %c0_614 = arith.constant 0 : index
    %c2_615 = arith.constant 2 : index
    %c0_616 = arith.constant 0 : index
    %c0_617 = arith.constant 0 : index
    %833 = vector.load %arg13[%c0_614, %c2_615, %c0_616, %c0_617] : memref<2x4x1x8xf32, #tpu.memory_space<vmem>>, vector<1x1x1x8xf32>
    %834 = vector.shape_cast %833 : vector<1x1x1x8xf32> to vector<1x8xf32>
    %835 = vector.broadcast %834 : vector<1x8xf32> to vector<9x8xf32>
    %836 = arith.addf %832, %835 : vector<9x8xf32>
    %c0_618 = arith.constant 0 : index
    %c2_619 = arith.constant 2 : index
    %c0_620 = arith.constant 0 : index
    %c0_621 = arith.constant 0 : index
    %837 = vector.load %arg14[%c0_618, %c2_619, %c0_620, %c0_621] : memref<2x4x32x8xf32, #tpu.memory_space<vmem>>, vector<1x1x32x8xf32>
    %838 = vector.shape_cast %837 : vector<1x1x32x8xf32> to vector<32x8xf32>
    %cst_622 = arith.constant dense<0.000000e+00> : vector<9x8xf32>
    %839 = tpu.matmul %743, %838, %cst_622 {dimension_numbers = #tpu.dot_dimension_numbers<[1], [0], [0], [1], [0, 0, 1, 1], [], []>} : vector<9x32xf32>, vector<32x8xf32>, vector<9x8xf32> -> vector<9x8xf32>
    %c0_623 = arith.constant 0 : index
    %c2_624 = arith.constant 2 : index
    %c0_625 = arith.constant 0 : index
    %c0_626 = arith.constant 0 : index
    %840 = vector.load %arg15[%c0_623, %c2_624, %c0_625, %c0_626] : memref<2x4x1x8xf32, #tpu.memory_space<vmem>>, vector<1x1x1x8xf32>
    %841 = vector.shape_cast %840 : vector<1x1x1x8xf32> to vector<1x8xf32>
    %842 = vector.broadcast %841 : vector<1x8xf32> to vector<9x8xf32>
    %843 = arith.addf %839, %842 : vector<9x8xf32>
    %cst_627 = arith.constant dense<0.000000e+00> : vector<9x9xf32>
    %844 = tpu.matmul %829, %836, %cst_627 {dimension_numbers = #tpu.dot_dimension_numbers<[1], [1], [0], [0], [0, 0, 1, 0], [], []>} : vector<9x8xf32>, vector<9x8xf32>, vector<9x9xf32> -> vector<9x9xf32>
    %cst_628 = arith.constant 0.353553385 : f32
    %845 = vector.broadcast %cst_628 : f32 to vector<9x9xf32>
    %846 = arith.mulf %844, %845 : vector<9x9xf32>
    %cst_629 = arith.constant dense<0xFF800000> : vector<9xf32>
    %847 = vector.multi_reduction <maximumf>, %846, %cst_629 [1] : vector<9x9xf32> to vector<9xf32>
    %848 = vector.shape_cast %847 : vector<9xf32> to vector<9x1xf32>
    %849 = vector.broadcast %848 : vector<9x1xf32> to vector<9x9xf32>
    %850 = arith.subf %846, %849 : vector<9x9xf32>
    %851 = math.exp %850 : vector<9x9xf32>
    %cst_630 = arith.constant dense<0.000000e+00> : vector<9xf32>
    %852 = vector.multi_reduction <add>, %851, %cst_630 [1] : vector<9x9xf32> to vector<9xf32>
    %853 = vector.shape_cast %852 : vector<9xf32> to vector<9x1xf32>
    %854 = tpu.reciprocal %853 {approx = true} : vector<9x1xf32> -> vector<9x1xf32>
    %855 = vector.broadcast %854 : vector<9x1xf32> to vector<9x9xf32>
    %856 = arith.mulf %851, %855 : vector<9x9xf32>
    %cst_631 = arith.constant dense<0.000000e+00> : vector<9x8xf32>
    %857 = tpu.matmul %856, %843, %cst_631 {dimension_numbers = #tpu.dot_dimension_numbers<[1], [0], [0], [1], [0, 0, 1, 1], [], []>} : vector<9x9xf32>, vector<9x8xf32>, vector<9x8xf32> -> vector<9x8xf32>
    %c0_632 = arith.constant 0 : index
    %c2_633 = arith.constant 2 : index
    %c0_634 = arith.constant 0 : index
    %c0_635 = arith.constant 0 : index
    %858 = vector.load %arg16[%c0_632, %c2_633, %c0_634, %c0_635] : memref<2x4x8x32xf32, #tpu.memory_space<vmem>>, vector<1x1x8x32xf32>
    %859 = vector.shape_cast %858 : vector<1x1x8x32xf32> to vector<8x32xf32>
    %cst_636 = arith.constant dense<0.000000e+00> : vector<9x32xf32>
    %860 = tpu.matmul %857, %859, %cst_636 {dimension_numbers = #tpu.dot_dimension_numbers<[1], [0], [0], [1], [0, 0, 1, 1], [], []>} : vector<9x8xf32>, vector<8x32xf32>, vector<9x32xf32> -> vector<9x32xf32>
    %861 = arith.addf %822, %860 : vector<9x32xf32>
    %c0_637 = arith.constant 0 : index
    %c3_638 = arith.constant 3 : index
    %c0_639 = arith.constant 0 : index
    %c0_640 = arith.constant 0 : index
    %862 = vector.load %arg10[%c0_637, %c3_638, %c0_639, %c0_640] : memref<2x4x32x8xf32, #tpu.memory_space<vmem>>, vector<1x1x32x8xf32>
    %863 = vector.shape_cast %862 : vector<1x1x32x8xf32> to vector<32x8xf32>
    %cst_641 = arith.constant dense<0.000000e+00> : vector<9x8xf32>
    %864 = tpu.matmul %743, %863, %cst_641 {dimension_numbers = #tpu.dot_dimension_numbers<[1], [0], [0], [1], [0, 0, 1, 1], [], []>} : vector<9x32xf32>, vector<32x8xf32>, vector<9x8xf32> -> vector<9x8xf32>
    %c0_642 = arith.constant 0 : index
    %c3_643 = arith.constant 3 : index
    %c0_644 = arith.constant 0 : index
    %c0_645 = arith.constant 0 : index
    %865 = vector.load %arg11[%c0_642, %c3_643, %c0_644, %c0_645] : memref<2x4x1x8xf32, #tpu.memory_space<vmem>>, vector<1x1x1x8xf32>
    %866 = vector.shape_cast %865 : vector<1x1x1x8xf32> to vector<1x8xf32>
    %867 = vector.broadcast %866 : vector<1x8xf32> to vector<9x8xf32>
    %868 = arith.addf %864, %867 : vector<9x8xf32>
    %c0_646 = arith.constant 0 : index
    %c3_647 = arith.constant 3 : index
    %c0_648 = arith.constant 0 : index
    %c0_649 = arith.constant 0 : index
    %869 = vector.load %arg12[%c0_646, %c3_647, %c0_648, %c0_649] : memref<2x4x32x8xf32, #tpu.memory_space<vmem>>, vector<1x1x32x8xf32>
    %870 = vector.shape_cast %869 : vector<1x1x32x8xf32> to vector<32x8xf32>
    %cst_650 = arith.constant dense<0.000000e+00> : vector<9x8xf32>
    %871 = tpu.matmul %743, %870, %cst_650 {dimension_numbers = #tpu.dot_dimension_numbers<[1], [0], [0], [1], [0, 0, 1, 1], [], []>} : vector<9x32xf32>, vector<32x8xf32>, vector<9x8xf32> -> vector<9x8xf32>
    %c0_651 = arith.constant 0 : index
    %c3_652 = arith.constant 3 : index
    %c0_653 = arith.constant 0 : index
    %c0_654 = arith.constant 0 : index
    %872 = vector.load %arg13[%c0_651, %c3_652, %c0_653, %c0_654] : memref<2x4x1x8xf32, #tpu.memory_space<vmem>>, vector<1x1x1x8xf32>
    %873 = vector.shape_cast %872 : vector<1x1x1x8xf32> to vector<1x8xf32>
    %874 = vector.broadcast %873 : vector<1x8xf32> to vector<9x8xf32>
    %875 = arith.addf %871, %874 : vector<9x8xf32>
    %c0_655 = arith.constant 0 : index
    %c3_656 = arith.constant 3 : index
    %c0_657 = arith.constant 0 : index
    %c0_658 = arith.constant 0 : index
    %876 = vector.load %arg14[%c0_655, %c3_656, %c0_657, %c0_658] : memref<2x4x32x8xf32, #tpu.memory_space<vmem>>, vector<1x1x32x8xf32>
    %877 = vector.shape_cast %876 : vector<1x1x32x8xf32> to vector<32x8xf32>
    %cst_659 = arith.constant dense<0.000000e+00> : vector<9x8xf32>
    %878 = tpu.matmul %743, %877, %cst_659 {dimension_numbers = #tpu.dot_dimension_numbers<[1], [0], [0], [1], [0, 0, 1, 1], [], []>} : vector<9x32xf32>, vector<32x8xf32>, vector<9x8xf32> -> vector<9x8xf32>
    %c0_660 = arith.constant 0 : index
    %c3_661 = arith.constant 3 : index
    %c0_662 = arith.constant 0 : index
    %c0_663 = arith.constant 0 : index
    %879 = vector.load %arg15[%c0_660, %c3_661, %c0_662, %c0_663] : memref<2x4x1x8xf32, #tpu.memory_space<vmem>>, vector<1x1x1x8xf32>
    %880 = vector.shape_cast %879 : vector<1x1x1x8xf32> to vector<1x8xf32>
    %881 = vector.broadcast %880 : vector<1x8xf32> to vector<9x8xf32>
    %882 = arith.addf %878, %881 : vector<9x8xf32>
    %cst_664 = arith.constant dense<0.000000e+00> : vector<9x9xf32>
    %883 = tpu.matmul %868, %875, %cst_664 {dimension_numbers = #tpu.dot_dimension_numbers<[1], [1], [0], [0], [0, 0, 1, 0], [], []>} : vector<9x8xf32>, vector<9x8xf32>, vector<9x9xf32> -> vector<9x9xf32>
    %cst_665 = arith.constant 0.353553385 : f32
    %884 = vector.broadcast %cst_665 : f32 to vector<9x9xf32>
    %885 = arith.mulf %883, %884 : vector<9x9xf32>
    %cst_666 = arith.constant dense<0xFF800000> : vector<9xf32>
    %886 = vector.multi_reduction <maximumf>, %885, %cst_666 [1] : vector<9x9xf32> to vector<9xf32>
    %887 = vector.shape_cast %886 : vector<9xf32> to vector<9x1xf32>
    %888 = vector.broadcast %887 : vector<9x1xf32> to vector<9x9xf32>
    %889 = arith.subf %885, %888 : vector<9x9xf32>
    %890 = math.exp %889 : vector<9x9xf32>
    %cst_667 = arith.constant dense<0.000000e+00> : vector<9xf32>
    %891 = vector.multi_reduction <add>, %890, %cst_667 [1] : vector<9x9xf32> to vector<9xf32>
    %892 = vector.shape_cast %891 : vector<9xf32> to vector<9x1xf32>
    %893 = tpu.reciprocal %892 {approx = true} : vector<9x1xf32> -> vector<9x1xf32>
    %894 = vector.broadcast %893 : vector<9x1xf32> to vector<9x9xf32>
    %895 = arith.mulf %890, %894 : vector<9x9xf32>
    %cst_668 = arith.constant dense<0.000000e+00> : vector<9x8xf32>
    %896 = tpu.matmul %895, %882, %cst_668 {dimension_numbers = #tpu.dot_dimension_numbers<[1], [0], [0], [1], [0, 0, 1, 1], [], []>} : vector<9x9xf32>, vector<9x8xf32>, vector<9x8xf32> -> vector<9x8xf32>
    %c0_669 = arith.constant 0 : index
    %c3_670 = arith.constant 3 : index
    %c0_671 = arith.constant 0 : index
    %c0_672 = arith.constant 0 : index
    %897 = vector.load %arg16[%c0_669, %c3_670, %c0_671, %c0_672] : memref<2x4x8x32xf32, #tpu.memory_space<vmem>>, vector<1x1x8x32xf32>
    %898 = vector.shape_cast %897 : vector<1x1x8x32xf32> to vector<8x32xf32>
    %cst_673 = arith.constant dense<0.000000e+00> : vector<9x32xf32>
    %899 = tpu.matmul %896, %898, %cst_673 {dimension_numbers = #tpu.dot_dimension_numbers<[1], [0], [0], [1], [0, 0, 1, 1], [], []>} : vector<9x8xf32>, vector<8x32xf32>, vector<9x32xf32> -> vector<9x32xf32>
    %900 = arith.addf %861, %899 : vector<9x32xf32>
    %901 = arith.addf %719, %900 : vector<9x32xf32>
    %c0_674 = arith.constant 0 : index
    %c0_675 = arith.constant 0 : index
    %c0_676 = arith.constant 0 : index
    %902 = vector.load %arg17[%c0_674, %c0_675, %c0_676] : memref<2x1x32xf32, #tpu.memory_space<vmem>>, vector<1x1x32xf32>
    %903 = vector.shape_cast %902 : vector<1x1x32xf32> to vector<1x32xf32>
    %904 = vector.broadcast %903 : vector<1x32xf32> to vector<9x32xf32>
    %905 = arith.addf %901, %904 : vector<9x32xf32>
    %c0_677 = arith.constant 0 : index
    %c0_678 = arith.constant 0 : index
    %c0_679 = arith.constant 0 : index
    %906 = vector.load %arg18[%c0_677, %c0_678, %c0_679] : memref<2x1x32xf32, #tpu.memory_space<vmem>>, vector<1x1x32xf32>
    %907 = vector.shape_cast %906 : vector<1x1x32xf32> to vector<1x32xf32>
    %c0_680 = arith.constant 0 : index
    %c0_681 = arith.constant 0 : index
    %c0_682 = arith.constant 0 : index
    %908 = vector.load %arg19[%c0_680, %c0_681, %c0_682] : memref<2x1x32xf32, #tpu.memory_space<vmem>>, vector<1x1x32xf32>
    %909 = vector.shape_cast %908 : vector<1x1x32xf32> to vector<1x32xf32>
    %cst_683 = arith.constant dense<0.000000e+00> : vector<9xf32>
    %910 = vector.multi_reduction <add>, %905, %cst_683 [1] : vector<9x32xf32> to vector<9xf32>
    %911 = vector.shape_cast %910 : vector<9xf32> to vector<9x1xf32>
    %cst_684 = arith.constant 3.200000e+01 : f32
    %912 = vector.broadcast %cst_684 : f32 to vector<9x1xf32>
    %913 = arith.divf %911, %912 : vector<9x1xf32>
    %914 = vector.broadcast %913 : vector<9x1xf32> to vector<9x32xf32>
    %915 = arith.subf %905, %914 : vector<9x32xf32>
    %916 = arith.mulf %915, %915 : vector<9x32xf32>
    %cst_685 = arith.constant dense<0.000000e+00> : vector<9xf32>
    %917 = vector.multi_reduction <add>, %916, %cst_685 [1] : vector<9x32xf32> to vector<9xf32>
    %918 = vector.shape_cast %917 : vector<9xf32> to vector<9x1xf32>
    %cst_686 = arith.constant 3.200000e+01 : f32
    %919 = vector.broadcast %cst_686 : f32 to vector<9x1xf32>
    %920 = arith.divf %918, %919 : vector<9x1xf32>
    %cst_687 = arith.constant 9.99999974E-6 : f32
    %921 = vector.broadcast %cst_687 : f32 to vector<9x1xf32>
    %922 = arith.addf %920, %921 : vector<9x1xf32>
    %923 = math.rsqrt %922 : vector<9x1xf32>
    %924 = vector.broadcast %923 : vector<9x1xf32> to vector<9x32xf32>
    %925 = arith.mulf %915, %924 : vector<9x32xf32>
    %926 = vector.broadcast %907 : vector<1x32xf32> to vector<9x32xf32>
    %927 = arith.mulf %925, %926 : vector<9x32xf32>
    %928 = vector.broadcast %909 : vector<1x32xf32> to vector<9x32xf32>
    %929 = arith.addf %927, %928 : vector<9x32xf32>
    %c0_688 = arith.constant 0 : index
    %c0_689 = arith.constant 0 : index
    %c0_690 = arith.constant 0 : index
    %930 = vector.load %arg20[%c0_688, %c0_689, %c0_690] : memref<2x32x64xf32, #tpu.memory_space<vmem>>, vector<1x32x64xf32>
    %931 = vector.shape_cast %930 : vector<1x32x64xf32> to vector<32x64xf32>
    %cst_691 = arith.constant dense<0.000000e+00> : vector<9x64xf32>
    %932 = tpu.matmul %929, %931, %cst_691 {dimension_numbers = #tpu.dot_dimension_numbers<[1], [0], [0], [1], [0, 0, 1, 1], [], []>} : vector<9x32xf32>, vector<32x64xf32>, vector<9x64xf32> -> vector<9x64xf32>
    %c0_692 = arith.constant 0 : index
    %c0_693 = arith.constant 0 : index
    %c0_694 = arith.constant 0 : index
    %933 = vector.load %arg21[%c0_692, %c0_693, %c0_694] : memref<2x1x64xf32, #tpu.memory_space<vmem>>, vector<1x1x64xf32>
    %934 = vector.shape_cast %933 : vector<1x1x64xf32> to vector<1x64xf32>
    %935 = vector.broadcast %934 : vector<1x64xf32> to vector<9x64xf32>
    %936 = arith.addf %932, %935 : vector<9x64xf32>
    %937 = arith.mulf %936, %936 : vector<9x64xf32>
    %938 = arith.mulf %936, %937 : vector<9x64xf32>
    %cst_695 = arith.constant 4.471500e-02 : f32
    %939 = vector.broadcast %cst_695 : f32 to vector<9x64xf32>
    %940 = arith.mulf %939, %938 : vector<9x64xf32>
    %941 = arith.addf %936, %940 : vector<9x64xf32>
    %cst_696 = arith.constant 0.797884583 : f32
    %942 = vector.broadcast %cst_696 : f32 to vector<9x64xf32>
    %943 = arith.mulf %942, %941 : vector<9x64xf32>
    %944 = math.tanh %943 : vector<9x64xf32>
    %cst_697 = arith.constant 1.000000e+00 : f32
    %945 = vector.broadcast %cst_697 : f32 to vector<9x64xf32>
    %946 = arith.addf %945, %944 : vector<9x64xf32>
    %cst_698 = arith.constant 5.000000e-01 : f32
    %947 = vector.broadcast %cst_698 : f32 to vector<9x64xf32>
    %948 = arith.mulf %947, %946 : vector<9x64xf32>
    %949 = arith.mulf %936, %948 : vector<9x64xf32>
    %c0_699 = arith.constant 0 : index
    %c0_700 = arith.constant 0 : index
    %c0_701 = arith.constant 0 : index
    %950 = vector.load %arg22[%c0_699, %c0_700, %c0_701] : memref<2x64x32xf32, #tpu.memory_space<vmem>>, vector<1x64x32xf32>
    %951 = vector.shape_cast %950 : vector<1x64x32xf32> to vector<64x32xf32>
    %cst_702 = arith.constant dense<0.000000e+00> : vector<9x32xf32>
    %952 = tpu.matmul %949, %951, %cst_702 {dimension_numbers = #tpu.dot_dimension_numbers<[1], [0], [0], [1], [0, 0, 1, 1], [], []>} : vector<9x64xf32>, vector<64x32xf32>, vector<9x32xf32> -> vector<9x32xf32>
    %953 = arith.addf %905, %952 : vector<9x32xf32>
    %c0_703 = arith.constant 0 : index
    %c0_704 = arith.constant 0 : index
    %c0_705 = arith.constant 0 : index
    %954 = vector.load %arg23[%c0_703, %c0_704, %c0_705] : memref<2x1x32xf32, #tpu.memory_space<vmem>>, vector<1x1x32xf32>
    %955 = vector.shape_cast %954 : vector<1x1x32xf32> to vector<1x32xf32>
    %956 = vector.broadcast %955 : vector<1x32xf32> to vector<9x32xf32>
    %957 = arith.addf %953, %956 : vector<9x32xf32>
    %c1_706 = arith.constant 1 : index
    %c0_707 = arith.constant 0 : index
    %c0_708 = arith.constant 0 : index
    %958 = vector.load %arg8[%c1_706, %c0_707, %c0_708] : memref<2x1x32xf32, #tpu.memory_space<vmem>>, vector<1x1x32xf32>
    %959 = vector.shape_cast %958 : vector<1x1x32xf32> to vector<1x32xf32>
    %c1_709 = arith.constant 1 : index
    %c0_710 = arith.constant 0 : index
    %c0_711 = arith.constant 0 : index
    %960 = vector.load %arg9[%c1_709, %c0_710, %c0_711] : memref<2x1x32xf32, #tpu.memory_space<vmem>>, vector<1x1x32xf32>
    %961 = vector.shape_cast %960 : vector<1x1x32xf32> to vector<1x32xf32>
    %cst_712 = arith.constant dense<0.000000e+00> : vector<9xf32>
    %962 = vector.multi_reduction <add>, %957, %cst_712 [1] : vector<9x32xf32> to vector<9xf32>
    %963 = vector.shape_cast %962 : vector<9xf32> to vector<9x1xf32>
    %cst_713 = arith.constant 3.200000e+01 : f32
    %964 = vector.broadcast %cst_713 : f32 to vector<9x1xf32>
    %965 = arith.divf %963, %964 : vector<9x1xf32>
    %966 = vector.broadcast %965 : vector<9x1xf32> to vector<9x32xf32>
    %967 = arith.subf %957, %966 : vector<9x32xf32>
    %968 = arith.mulf %967, %967 : vector<9x32xf32>
    %cst_714 = arith.constant dense<0.000000e+00> : vector<9xf32>
    %969 = vector.multi_reduction <add>, %968, %cst_714 [1] : vector<9x32xf32> to vector<9xf32>
    %970 = vector.shape_cast %969 : vector<9xf32> to vector<9x1xf32>
    %cst_715 = arith.constant 3.200000e+01 : f32
    %971 = vector.broadcast %cst_715 : f32 to vector<9x1xf32>
    %972 = arith.divf %970, %971 : vector<9x1xf32>
    %cst_716 = arith.constant 9.99999974E-6 : f32
    %973 = vector.broadcast %cst_716 : f32 to vector<9x1xf32>
    %974 = arith.addf %972, %973 : vector<9x1xf32>
    %975 = math.rsqrt %974 : vector<9x1xf32>
    %976 = vector.broadcast %975 : vector<9x1xf32> to vector<9x32xf32>
    %977 = arith.mulf %967, %976 : vector<9x32xf32>
    %978 = vector.broadcast %959 : vector<1x32xf32> to vector<9x32xf32>
    %979 = arith.mulf %977, %978 : vector<9x32xf32>
    %980 = vector.broadcast %961 : vector<1x32xf32> to vector<9x32xf32>
    %981 = arith.addf %979, %980 : vector<9x32xf32>
    %cst_717 = arith.constant 0.000000e+00 : f32
    %982 = vector.broadcast %cst_717 : f32 to vector<9x32xf32>
    %c1_718 = arith.constant 1 : index
    %c0_719 = arith.constant 0 : index
    %c0_720 = arith.constant 0 : index
    %c0_721 = arith.constant 0 : index
    %983 = vector.load %arg10[%c1_718, %c0_719, %c0_720, %c0_721] : memref<2x4x32x8xf32, #tpu.memory_space<vmem>>, vector<1x1x32x8xf32>
    %984 = vector.shape_cast %983 : vector<1x1x32x8xf32> to vector<32x8xf32>
    %cst_722 = arith.constant dense<0.000000e+00> : vector<9x8xf32>
    %985 = tpu.matmul %981, %984, %cst_722 {dimension_numbers = #tpu.dot_dimension_numbers<[1], [0], [0], [1], [0, 0, 1, 1], [], []>} : vector<9x32xf32>, vector<32x8xf32>, vector<9x8xf32> -> vector<9x8xf32>
    %c1_723 = arith.constant 1 : index
    %c0_724 = arith.constant 0 : index
    %c0_725 = arith.constant 0 : index
    %c0_726 = arith.constant 0 : index
    %986 = vector.load %arg11[%c1_723, %c0_724, %c0_725, %c0_726] : memref<2x4x1x8xf32, #tpu.memory_space<vmem>>, vector<1x1x1x8xf32>
    %987 = vector.shape_cast %986 : vector<1x1x1x8xf32> to vector<1x8xf32>
    %988 = vector.broadcast %987 : vector<1x8xf32> to vector<9x8xf32>
    %989 = arith.addf %985, %988 : vector<9x8xf32>
    %c1_727 = arith.constant 1 : index
    %c0_728 = arith.constant 0 : index
    %c0_729 = arith.constant 0 : index
    %c0_730 = arith.constant 0 : index
    %990 = vector.load %arg12[%c1_727, %c0_728, %c0_729, %c0_730] : memref<2x4x32x8xf32, #tpu.memory_space<vmem>>, vector<1x1x32x8xf32>
    %991 = vector.shape_cast %990 : vector<1x1x32x8xf32> to vector<32x8xf32>
    %cst_731 = arith.constant dense<0.000000e+00> : vector<9x8xf32>
    %992 = tpu.matmul %981, %991, %cst_731 {dimension_numbers = #tpu.dot_dimension_numbers<[1], [0], [0], [1], [0, 0, 1, 1], [], []>} : vector<9x32xf32>, vector<32x8xf32>, vector<9x8xf32> -> vector<9x8xf32>
    %c1_732 = arith.constant 1 : index
    %c0_733 = arith.constant 0 : index
    %c0_734 = arith.constant 0 : index
    %c0_735 = arith.constant 0 : index
    %993 = vector.load %arg13[%c1_732, %c0_733, %c0_734, %c0_735] : memref<2x4x1x8xf32, #tpu.memory_space<vmem>>, vector<1x1x1x8xf32>
    %994 = vector.shape_cast %993 : vector<1x1x1x8xf32> to vector<1x8xf32>
    %995 = vector.broadcast %994 : vector<1x8xf32> to vector<9x8xf32>
    %996 = arith.addf %992, %995 : vector<9x8xf32>
    %c1_736 = arith.constant 1 : index
    %c0_737 = arith.constant 0 : index
    %c0_738 = arith.constant 0 : index
    %c0_739 = arith.constant 0 : index
    %997 = vector.load %arg14[%c1_736, %c0_737, %c0_738, %c0_739] : memref<2x4x32x8xf32, #tpu.memory_space<vmem>>, vector<1x1x32x8xf32>
    %998 = vector.shape_cast %997 : vector<1x1x32x8xf32> to vector<32x8xf32>
    %cst_740 = arith.constant dense<0.000000e+00> : vector<9x8xf32>
    %999 = tpu.matmul %981, %998, %cst_740 {dimension_numbers = #tpu.dot_dimension_numbers<[1], [0], [0], [1], [0, 0, 1, 1], [], []>} : vector<9x32xf32>, vector<32x8xf32>, vector<9x8xf32> -> vector<9x8xf32>
    %c1_741 = arith.constant 1 : index
    %c0_742 = arith.constant 0 : index
    %c0_743 = arith.constant 0 : index
    %c0_744 = arith.constant 0 : index
    %1000 = vector.load %arg15[%c1_741, %c0_742, %c0_743, %c0_744] : memref<2x4x1x8xf32, #tpu.memory_space<vmem>>, vector<1x1x1x8xf32>
    %1001 = vector.shape_cast %1000 : vector<1x1x1x8xf32> to vector<1x8xf32>
    %1002 = vector.broadcast %1001 : vector<1x8xf32> to vector<9x8xf32>
    %1003 = arith.addf %999, %1002 : vector<9x8xf32>
    %cst_745 = arith.constant dense<0.000000e+00> : vector<9x9xf32>
    %1004 = tpu.matmul %989, %996, %cst_745 {dimension_numbers = #tpu.dot_dimension_numbers<[1], [1], [0], [0], [0, 0, 1, 0], [], []>} : vector<9x8xf32>, vector<9x8xf32>, vector<9x9xf32> -> vector<9x9xf32>
    %cst_746 = arith.constant 0.353553385 : f32
    %1005 = vector.broadcast %cst_746 : f32 to vector<9x9xf32>
    %1006 = arith.mulf %1004, %1005 : vector<9x9xf32>
    %cst_747 = arith.constant dense<0xFF800000> : vector<9xf32>
    %1007 = vector.multi_reduction <maximumf>, %1006, %cst_747 [1] : vector<9x9xf32> to vector<9xf32>
    %1008 = vector.shape_cast %1007 : vector<9xf32> to vector<9x1xf32>
    %1009 = vector.broadcast %1008 : vector<9x1xf32> to vector<9x9xf32>
    %1010 = arith.subf %1006, %1009 : vector<9x9xf32>
    %1011 = math.exp %1010 : vector<9x9xf32>
    %cst_748 = arith.constant dense<0.000000e+00> : vector<9xf32>
    %1012 = vector.multi_reduction <add>, %1011, %cst_748 [1] : vector<9x9xf32> to vector<9xf32>
    %1013 = vector.shape_cast %1012 : vector<9xf32> to vector<9x1xf32>
    %1014 = tpu.reciprocal %1013 {approx = true} : vector<9x1xf32> -> vector<9x1xf32>
    %1015 = vector.broadcast %1014 : vector<9x1xf32> to vector<9x9xf32>
    %1016 = arith.mulf %1011, %1015 : vector<9x9xf32>
    %cst_749 = arith.constant dense<0.000000e+00> : vector<9x8xf32>
    %1017 = tpu.matmul %1016, %1003, %cst_749 {dimension_numbers = #tpu.dot_dimension_numbers<[1], [0], [0], [1], [0, 0, 1, 1], [], []>} : vector<9x9xf32>, vector<9x8xf32>, vector<9x8xf32> -> vector<9x8xf32>
    %c1_750 = arith.constant 1 : index
    %c0_751 = arith.constant 0 : index
    %c0_752 = arith.constant 0 : index
    %c0_753 = arith.constant 0 : index
    %1018 = vector.load %arg16[%c1_750, %c0_751, %c0_752, %c0_753] : memref<2x4x8x32xf32, #tpu.memory_space<vmem>>, vector<1x1x8x32xf32>
    %1019 = vector.shape_cast %1018 : vector<1x1x8x32xf32> to vector<8x32xf32>
    %cst_754 = arith.constant dense<0.000000e+00> : vector<9x32xf32>
    %1020 = tpu.matmul %1017, %1019, %cst_754 {dimension_numbers = #tpu.dot_dimension_numbers<[1], [0], [0], [1], [0, 0, 1, 1], [], []>} : vector<9x8xf32>, vector<8x32xf32>, vector<9x32xf32> -> vector<9x32xf32>
    %1021 = arith.addf %982, %1020 : vector<9x32xf32>
    %c1_755 = arith.constant 1 : index
    %c1_756 = arith.constant 1 : index
    %c0_757 = arith.constant 0 : index
    %c0_758 = arith.constant 0 : index
    %1022 = vector.load %arg10[%c1_755, %c1_756, %c0_757, %c0_758] : memref<2x4x32x8xf32, #tpu.memory_space<vmem>>, vector<1x1x32x8xf32>
    %1023 = vector.shape_cast %1022 : vector<1x1x32x8xf32> to vector<32x8xf32>
    %cst_759 = arith.constant dense<0.000000e+00> : vector<9x8xf32>
    %1024 = tpu.matmul %981, %1023, %cst_759 {dimension_numbers = #tpu.dot_dimension_numbers<[1], [0], [0], [1], [0, 0, 1, 1], [], []>} : vector<9x32xf32>, vector<32x8xf32>, vector<9x8xf32> -> vector<9x8xf32>
    %c1_760 = arith.constant 1 : index
    %c1_761 = arith.constant 1 : index
    %c0_762 = arith.constant 0 : index
    %c0_763 = arith.constant 0 : index
    %1025 = vector.load %arg11[%c1_760, %c1_761, %c0_762, %c0_763] : memref<2x4x1x8xf32, #tpu.memory_space<vmem>>, vector<1x1x1x8xf32>
    %1026 = vector.shape_cast %1025 : vector<1x1x1x8xf32> to vector<1x8xf32>
    %1027 = vector.broadcast %1026 : vector<1x8xf32> to vector<9x8xf32>
    %1028 = arith.addf %1024, %1027 : vector<9x8xf32>
    %c1_764 = arith.constant 1 : index
    %c1_765 = arith.constant 1 : index
    %c0_766 = arith.constant 0 : index
    %c0_767 = arith.constant 0 : index
    %1029 = vector.load %arg12[%c1_764, %c1_765, %c0_766, %c0_767] : memref<2x4x32x8xf32, #tpu.memory_space<vmem>>, vector<1x1x32x8xf32>
    %1030 = vector.shape_cast %1029 : vector<1x1x32x8xf32> to vector<32x8xf32>
    %cst_768 = arith.constant dense<0.000000e+00> : vector<9x8xf32>
    %1031 = tpu.matmul %981, %1030, %cst_768 {dimension_numbers = #tpu.dot_dimension_numbers<[1], [0], [0], [1], [0, 0, 1, 1], [], []>} : vector<9x32xf32>, vector<32x8xf32>, vector<9x8xf32> -> vector<9x8xf32>
    %c1_769 = arith.constant 1 : index
    %c1_770 = arith.constant 1 : index
    %c0_771 = arith.constant 0 : index
    %c0_772 = arith.constant 0 : index
    %1032 = vector.load %arg13[%c1_769, %c1_770, %c0_771, %c0_772] : memref<2x4x1x8xf32, #tpu.memory_space<vmem>>, vector<1x1x1x8xf32>
    %1033 = vector.shape_cast %1032 : vector<1x1x1x8xf32> to vector<1x8xf32>
    %1034 = vector.broadcast %1033 : vector<1x8xf32> to vector<9x8xf32>
    %1035 = arith.addf %1031, %1034 : vector<9x8xf32>
    %c1_773 = arith.constant 1 : index
    %c1_774 = arith.constant 1 : index
    %c0_775 = arith.constant 0 : index
    %c0_776 = arith.constant 0 : index
    %1036 = vector.load %arg14[%c1_773, %c1_774, %c0_775, %c0_776] : memref<2x4x32x8xf32, #tpu.memory_space<vmem>>, vector<1x1x32x8xf32>
    %1037 = vector.shape_cast %1036 : vector<1x1x32x8xf32> to vector<32x8xf32>
    %cst_777 = arith.constant dense<0.000000e+00> : vector<9x8xf32>
    %1038 = tpu.matmul %981, %1037, %cst_777 {dimension_numbers = #tpu.dot_dimension_numbers<[1], [0], [0], [1], [0, 0, 1, 1], [], []>} : vector<9x32xf32>, vector<32x8xf32>, vector<9x8xf32> -> vector<9x8xf32>
    %c1_778 = arith.constant 1 : index
    %c1_779 = arith.constant 1 : index
    %c0_780 = arith.constant 0 : index
    %c0_781 = arith.constant 0 : index
    %1039 = vector.load %arg15[%c1_778, %c1_779, %c0_780, %c0_781] : memref<2x4x1x8xf32, #tpu.memory_space<vmem>>, vector<1x1x1x8xf32>
    %1040 = vector.shape_cast %1039 : vector<1x1x1x8xf32> to vector<1x8xf32>
    %1041 = vector.broadcast %1040 : vector<1x8xf32> to vector<9x8xf32>
    %1042 = arith.addf %1038, %1041 : vector<9x8xf32>
    %cst_782 = arith.constant dense<0.000000e+00> : vector<9x9xf32>
    %1043 = tpu.matmul %1028, %1035, %cst_782 {dimension_numbers = #tpu.dot_dimension_numbers<[1], [1], [0], [0], [0, 0, 1, 0], [], []>} : vector<9x8xf32>, vector<9x8xf32>, vector<9x9xf32> -> vector<9x9xf32>
    %cst_783 = arith.constant 0.353553385 : f32
    %1044 = vector.broadcast %cst_783 : f32 to vector<9x9xf32>
    %1045 = arith.mulf %1043, %1044 : vector<9x9xf32>
    %cst_784 = arith.constant dense<0xFF800000> : vector<9xf32>
    %1046 = vector.multi_reduction <maximumf>, %1045, %cst_784 [1] : vector<9x9xf32> to vector<9xf32>
    %1047 = vector.shape_cast %1046 : vector<9xf32> to vector<9x1xf32>
    %1048 = vector.broadcast %1047 : vector<9x1xf32> to vector<9x9xf32>
    %1049 = arith.subf %1045, %1048 : vector<9x9xf32>
    %1050 = math.exp %1049 : vector<9x9xf32>
    %cst_785 = arith.constant dense<0.000000e+00> : vector<9xf32>
    %1051 = vector.multi_reduction <add>, %1050, %cst_785 [1] : vector<9x9xf32> to vector<9xf32>
    %1052 = vector.shape_cast %1051 : vector<9xf32> to vector<9x1xf32>
    %1053 = tpu.reciprocal %1052 {approx = true} : vector<9x1xf32> -> vector<9x1xf32>
    %1054 = vector.broadcast %1053 : vector<9x1xf32> to vector<9x9xf32>
    %1055 = arith.mulf %1050, %1054 : vector<9x9xf32>
    %cst_786 = arith.constant dense<0.000000e+00> : vector<9x8xf32>
    %1056 = tpu.matmul %1055, %1042, %cst_786 {dimension_numbers = #tpu.dot_dimension_numbers<[1], [0], [0], [1], [0, 0, 1, 1], [], []>} : vector<9x9xf32>, vector<9x8xf32>, vector<9x8xf32> -> vector<9x8xf32>
    %c1_787 = arith.constant 1 : index
    %c1_788 = arith.constant 1 : index
    %c0_789 = arith.constant 0 : index
    %c0_790 = arith.constant 0 : index
    %1057 = vector.load %arg16[%c1_787, %c1_788, %c0_789, %c0_790] : memref<2x4x8x32xf32, #tpu.memory_space<vmem>>, vector<1x1x8x32xf32>
    %1058 = vector.shape_cast %1057 : vector<1x1x8x32xf32> to vector<8x32xf32>
    %cst_791 = arith.constant dense<0.000000e+00> : vector<9x32xf32>
    %1059 = tpu.matmul %1056, %1058, %cst_791 {dimension_numbers = #tpu.dot_dimension_numbers<[1], [0], [0], [1], [0, 0, 1, 1], [], []>} : vector<9x8xf32>, vector<8x32xf32>, vector<9x32xf32> -> vector<9x32xf32>
    %1060 = arith.addf %1021, %1059 : vector<9x32xf32>
    %c1_792 = arith.constant 1 : index
    %c2_793 = arith.constant 2 : index
    %c0_794 = arith.constant 0 : index
    %c0_795 = arith.constant 0 : index
    %1061 = vector.load %arg10[%c1_792, %c2_793, %c0_794, %c0_795] : memref<2x4x32x8xf32, #tpu.memory_space<vmem>>, vector<1x1x32x8xf32>
    %1062 = vector.shape_cast %1061 : vector<1x1x32x8xf32> to vector<32x8xf32>
    %cst_796 = arith.constant dense<0.000000e+00> : vector<9x8xf32>
    %1063 = tpu.matmul %981, %1062, %cst_796 {dimension_numbers = #tpu.dot_dimension_numbers<[1], [0], [0], [1], [0, 0, 1, 1], [], []>} : vector<9x32xf32>, vector<32x8xf32>, vector<9x8xf32> -> vector<9x8xf32>
    %c1_797 = arith.constant 1 : index
    %c2_798 = arith.constant 2 : index
    %c0_799 = arith.constant 0 : index
    %c0_800 = arith.constant 0 : index
    %1064 = vector.load %arg11[%c1_797, %c2_798, %c0_799, %c0_800] : memref<2x4x1x8xf32, #tpu.memory_space<vmem>>, vector<1x1x1x8xf32>
    %1065 = vector.shape_cast %1064 : vector<1x1x1x8xf32> to vector<1x8xf32>
    %1066 = vector.broadcast %1065 : vector<1x8xf32> to vector<9x8xf32>
    %1067 = arith.addf %1063, %1066 : vector<9x8xf32>
    %c1_801 = arith.constant 1 : index
    %c2_802 = arith.constant 2 : index
    %c0_803 = arith.constant 0 : index
    %c0_804 = arith.constant 0 : index
    %1068 = vector.load %arg12[%c1_801, %c2_802, %c0_803, %c0_804] : memref<2x4x32x8xf32, #tpu.memory_space<vmem>>, vector<1x1x32x8xf32>
    %1069 = vector.shape_cast %1068 : vector<1x1x32x8xf32> to vector<32x8xf32>
    %cst_805 = arith.constant dense<0.000000e+00> : vector<9x8xf32>
    %1070 = tpu.matmul %981, %1069, %cst_805 {dimension_numbers = #tpu.dot_dimension_numbers<[1], [0], [0], [1], [0, 0, 1, 1], [], []>} : vector<9x32xf32>, vector<32x8xf32>, vector<9x8xf32> -> vector<9x8xf32>
    %c1_806 = arith.constant 1 : index
    %c2_807 = arith.constant 2 : index
    %c0_808 = arith.constant 0 : index
    %c0_809 = arith.constant 0 : index
    %1071 = vector.load %arg13[%c1_806, %c2_807, %c0_808, %c0_809] : memref<2x4x1x8xf32, #tpu.memory_space<vmem>>, vector<1x1x1x8xf32>
    %1072 = vector.shape_cast %1071 : vector<1x1x1x8xf32> to vector<1x8xf32>
    %1073 = vector.broadcast %1072 : vector<1x8xf32> to vector<9x8xf32>
    %1074 = arith.addf %1070, %1073 : vector<9x8xf32>
    %c1_810 = arith.constant 1 : index
    %c2_811 = arith.constant 2 : index
    %c0_812 = arith.constant 0 : index
    %c0_813 = arith.constant 0 : index
    %1075 = vector.load %arg14[%c1_810, %c2_811, %c0_812, %c0_813] : memref<2x4x32x8xf32, #tpu.memory_space<vmem>>, vector<1x1x32x8xf32>
    %1076 = vector.shape_cast %1075 : vector<1x1x32x8xf32> to vector<32x8xf32>
    %cst_814 = arith.constant dense<0.000000e+00> : vector<9x8xf32>
    %1077 = tpu.matmul %981, %1076, %cst_814 {dimension_numbers = #tpu.dot_dimension_numbers<[1], [0], [0], [1], [0, 0, 1, 1], [], []>} : vector<9x32xf32>, vector<32x8xf32>, vector<9x8xf32> -> vector<9x8xf32>
    %c1_815 = arith.constant 1 : index
    %c2_816 = arith.constant 2 : index
    %c0_817 = arith.constant 0 : index
    %c0_818 = arith.constant 0 : index
    %1078 = vector.load %arg15[%c1_815, %c2_816, %c0_817, %c0_818] : memref<2x4x1x8xf32, #tpu.memory_space<vmem>>, vector<1x1x1x8xf32>
    %1079 = vector.shape_cast %1078 : vector<1x1x1x8xf32> to vector<1x8xf32>
    %1080 = vector.broadcast %1079 : vector<1x8xf32> to vector<9x8xf32>
    %1081 = arith.addf %1077, %1080 : vector<9x8xf32>
    %cst_819 = arith.constant dense<0.000000e+00> : vector<9x9xf32>
    %1082 = tpu.matmul %1067, %1074, %cst_819 {dimension_numbers = #tpu.dot_dimension_numbers<[1], [1], [0], [0], [0, 0, 1, 0], [], []>} : vector<9x8xf32>, vector<9x8xf32>, vector<9x9xf32> -> vector<9x9xf32>
    %cst_820 = arith.constant 0.353553385 : f32
    %1083 = vector.broadcast %cst_820 : f32 to vector<9x9xf32>
    %1084 = arith.mulf %1082, %1083 : vector<9x9xf32>
    %cst_821 = arith.constant dense<0xFF800000> : vector<9xf32>
    %1085 = vector.multi_reduction <maximumf>, %1084, %cst_821 [1] : vector<9x9xf32> to vector<9xf32>
    %1086 = vector.shape_cast %1085 : vector<9xf32> to vector<9x1xf32>
    %1087 = vector.broadcast %1086 : vector<9x1xf32> to vector<9x9xf32>
    %1088 = arith.subf %1084, %1087 : vector<9x9xf32>
    %1089 = math.exp %1088 : vector<9x9xf32>
    %cst_822 = arith.constant dense<0.000000e+00> : vector<9xf32>
    %1090 = vector.multi_reduction <add>, %1089, %cst_822 [1] : vector<9x9xf32> to vector<9xf32>
    %1091 = vector.shape_cast %1090 : vector<9xf32> to vector<9x1xf32>
    %1092 = tpu.reciprocal %1091 {approx = true} : vector<9x1xf32> -> vector<9x1xf32>
    %1093 = vector.broadcast %1092 : vector<9x1xf32> to vector<9x9xf32>
    %1094 = arith.mulf %1089, %1093 : vector<9x9xf32>
    %cst_823 = arith.constant dense<0.000000e+00> : vector<9x8xf32>
    %1095 = tpu.matmul %1094, %1081, %cst_823 {dimension_numbers = #tpu.dot_dimension_numbers<[1], [0], [0], [1], [0, 0, 1, 1], [], []>} : vector<9x9xf32>, vector<9x8xf32>, vector<9x8xf32> -> vector<9x8xf32>
    %c1_824 = arith.constant 1 : index
    %c2_825 = arith.constant 2 : index
    %c0_826 = arith.constant 0 : index
    %c0_827 = arith.constant 0 : index
    %1096 = vector.load %arg16[%c1_824, %c2_825, %c0_826, %c0_827] : memref<2x4x8x32xf32, #tpu.memory_space<vmem>>, vector<1x1x8x32xf32>
    %1097 = vector.shape_cast %1096 : vector<1x1x8x32xf32> to vector<8x32xf32>
    %cst_828 = arith.constant dense<0.000000e+00> : vector<9x32xf32>
    %1098 = tpu.matmul %1095, %1097, %cst_828 {dimension_numbers = #tpu.dot_dimension_numbers<[1], [0], [0], [1], [0, 0, 1, 1], [], []>} : vector<9x8xf32>, vector<8x32xf32>, vector<9x32xf32> -> vector<9x32xf32>
    %1099 = arith.addf %1060, %1098 : vector<9x32xf32>
    %c1_829 = arith.constant 1 : index
    %c3_830 = arith.constant 3 : index
    %c0_831 = arith.constant 0 : index
    %c0_832 = arith.constant 0 : index
    %1100 = vector.load %arg10[%c1_829, %c3_830, %c0_831, %c0_832] : memref<2x4x32x8xf32, #tpu.memory_space<vmem>>, vector<1x1x32x8xf32>
    %1101 = vector.shape_cast %1100 : vector<1x1x32x8xf32> to vector<32x8xf32>
    %cst_833 = arith.constant dense<0.000000e+00> : vector<9x8xf32>
    %1102 = tpu.matmul %981, %1101, %cst_833 {dimension_numbers = #tpu.dot_dimension_numbers<[1], [0], [0], [1], [0, 0, 1, 1], [], []>} : vector<9x32xf32>, vector<32x8xf32>, vector<9x8xf32> -> vector<9x8xf32>
    %c1_834 = arith.constant 1 : index
    %c3_835 = arith.constant 3 : index
    %c0_836 = arith.constant 0 : index
    %c0_837 = arith.constant 0 : index
    %1103 = vector.load %arg11[%c1_834, %c3_835, %c0_836, %c0_837] : memref<2x4x1x8xf32, #tpu.memory_space<vmem>>, vector<1x1x1x8xf32>
    %1104 = vector.shape_cast %1103 : vector<1x1x1x8xf32> to vector<1x8xf32>
    %1105 = vector.broadcast %1104 : vector<1x8xf32> to vector<9x8xf32>
    %1106 = arith.addf %1102, %1105 : vector<9x8xf32>
    %c1_838 = arith.constant 1 : index
    %c3_839 = arith.constant 3 : index
    %c0_840 = arith.constant 0 : index
    %c0_841 = arith.constant 0 : index
    %1107 = vector.load %arg12[%c1_838, %c3_839, %c0_840, %c0_841] : memref<2x4x32x8xf32, #tpu.memory_space<vmem>>, vector<1x1x32x8xf32>
    %1108 = vector.shape_cast %1107 : vector<1x1x32x8xf32> to vector<32x8xf32>
    %cst_842 = arith.constant dense<0.000000e+00> : vector<9x8xf32>
    %1109 = tpu.matmul %981, %1108, %cst_842 {dimension_numbers = #tpu.dot_dimension_numbers<[1], [0], [0], [1], [0, 0, 1, 1], [], []>} : vector<9x32xf32>, vector<32x8xf32>, vector<9x8xf32> -> vector<9x8xf32>
    %c1_843 = arith.constant 1 : index
    %c3_844 = arith.constant 3 : index
    %c0_845 = arith.constant 0 : index
    %c0_846 = arith.constant 0 : index
    %1110 = vector.load %arg13[%c1_843, %c3_844, %c0_845, %c0_846] : memref<2x4x1x8xf32, #tpu.memory_space<vmem>>, vector<1x1x1x8xf32>
    %1111 = vector.shape_cast %1110 : vector<1x1x1x8xf32> to vector<1x8xf32>
    %1112 = vector.broadcast %1111 : vector<1x8xf32> to vector<9x8xf32>
    %1113 = arith.addf %1109, %1112 : vector<9x8xf32>
    %c1_847 = arith.constant 1 : index
    %c3_848 = arith.constant 3 : index
    %c0_849 = arith.constant 0 : index
    %c0_850 = arith.constant 0 : index
    %1114 = vector.load %arg14[%c1_847, %c3_848, %c0_849, %c0_850] : memref<2x4x32x8xf32, #tpu.memory_space<vmem>>, vector<1x1x32x8xf32>
    %1115 = vector.shape_cast %1114 : vector<1x1x32x8xf32> to vector<32x8xf32>
    %cst_851 = arith.constant dense<0.000000e+00> : vector<9x8xf32>
    %1116 = tpu.matmul %981, %1115, %cst_851 {dimension_numbers = #tpu.dot_dimension_numbers<[1], [0], [0], [1], [0, 0, 1, 1], [], []>} : vector<9x32xf32>, vector<32x8xf32>, vector<9x8xf32> -> vector<9x8xf32>
    %c1_852 = arith.constant 1 : index
    %c3_853 = arith.constant 3 : index
    %c0_854 = arith.constant 0 : index
    %c0_855 = arith.constant 0 : index
    %1117 = vector.load %arg15[%c1_852, %c3_853, %c0_854, %c0_855] : memref<2x4x1x8xf32, #tpu.memory_space<vmem>>, vector<1x1x1x8xf32>
    %1118 = vector.shape_cast %1117 : vector<1x1x1x8xf32> to vector<1x8xf32>
    %1119 = vector.broadcast %1118 : vector<1x8xf32> to vector<9x8xf32>
    %1120 = arith.addf %1116, %1119 : vector<9x8xf32>
    %cst_856 = arith.constant dense<0.000000e+00> : vector<9x9xf32>
    %1121 = tpu.matmul %1106, %1113, %cst_856 {dimension_numbers = #tpu.dot_dimension_numbers<[1], [1], [0], [0], [0, 0, 1, 0], [], []>} : vector<9x8xf32>, vector<9x8xf32>, vector<9x9xf32> -> vector<9x9xf32>
    %cst_857 = arith.constant 0.353553385 : f32
    %1122 = vector.broadcast %cst_857 : f32 to vector<9x9xf32>
    %1123 = arith.mulf %1121, %1122 : vector<9x9xf32>
    %cst_858 = arith.constant dense<0xFF800000> : vector<9xf32>
    %1124 = vector.multi_reduction <maximumf>, %1123, %cst_858 [1] : vector<9x9xf32> to vector<9xf32>
    %1125 = vector.shape_cast %1124 : vector<9xf32> to vector<9x1xf32>
    %1126 = vector.broadcast %1125 : vector<9x1xf32> to vector<9x9xf32>
    %1127 = arith.subf %1123, %1126 : vector<9x9xf32>
    %1128 = math.exp %1127 : vector<9x9xf32>
    %cst_859 = arith.constant dense<0.000000e+00> : vector<9xf32>
    %1129 = vector.multi_reduction <add>, %1128, %cst_859 [1] : vector<9x9xf32> to vector<9xf32>
    %1130 = vector.shape_cast %1129 : vector<9xf32> to vector<9x1xf32>
    %1131 = tpu.reciprocal %1130 {approx = true} : vector<9x1xf32> -> vector<9x1xf32>
    %1132 = vector.broadcast %1131 : vector<9x1xf32> to vector<9x9xf32>
    %1133 = arith.mulf %1128, %1132 : vector<9x9xf32>
    %cst_860 = arith.constant dense<0.000000e+00> : vector<9x8xf32>
    %1134 = tpu.matmul %1133, %1120, %cst_860 {dimension_numbers = #tpu.dot_dimension_numbers<[1], [0], [0], [1], [0, 0, 1, 1], [], []>} : vector<9x9xf32>, vector<9x8xf32>, vector<9x8xf32> -> vector<9x8xf32>
    %c1_861 = arith.constant 1 : index
    %c3_862 = arith.constant 3 : index
    %c0_863 = arith.constant 0 : index
    %c0_864 = arith.constant 0 : index
    %1135 = vector.load %arg16[%c1_861, %c3_862, %c0_863, %c0_864] : memref<2x4x8x32xf32, #tpu.memory_space<vmem>>, vector<1x1x8x32xf32>
    %1136 = vector.shape_cast %1135 : vector<1x1x8x32xf32> to vector<8x32xf32>
    %cst_865 = arith.constant dense<0.000000e+00> : vector<9x32xf32>
    %1137 = tpu.matmul %1134, %1136, %cst_865 {dimension_numbers = #tpu.dot_dimension_numbers<[1], [0], [0], [1], [0, 0, 1, 1], [], []>} : vector<9x8xf32>, vector<8x32xf32>, vector<9x32xf32> -> vector<9x32xf32>
    %1138 = arith.addf %1099, %1137 : vector<9x32xf32>
    %1139 = arith.addf %957, %1138 : vector<9x32xf32>
    %c1_866 = arith.constant 1 : index
    %c0_867 = arith.constant 0 : index
    %c0_868 = arith.constant 0 : index
    %1140 = vector.load %arg17[%c1_866, %c0_867, %c0_868] : memref<2x1x32xf32, #tpu.memory_space<vmem>>, vector<1x1x32xf32>
    %1141 = vector.shape_cast %1140 : vector<1x1x32xf32> to vector<1x32xf32>
    %1142 = vector.broadcast %1141 : vector<1x32xf32> to vector<9x32xf32>
    %1143 = arith.addf %1139, %1142 : vector<9x32xf32>
    %c1_869 = arith.constant 1 : index
    %c0_870 = arith.constant 0 : index
    %c0_871 = arith.constant 0 : index
    %1144 = vector.load %arg18[%c1_869, %c0_870, %c0_871] : memref<2x1x32xf32, #tpu.memory_space<vmem>>, vector<1x1x32xf32>
    %1145 = vector.shape_cast %1144 : vector<1x1x32xf32> to vector<1x32xf32>
    %c1_872 = arith.constant 1 : index
    %c0_873 = arith.constant 0 : index
    %c0_874 = arith.constant 0 : index
    %1146 = vector.load %arg19[%c1_872, %c0_873, %c0_874] : memref<2x1x32xf32, #tpu.memory_space<vmem>>, vector<1x1x32xf32>
    %1147 = vector.shape_cast %1146 : vector<1x1x32xf32> to vector<1x32xf32>
    %cst_875 = arith.constant dense<0.000000e+00> : vector<9xf32>
    %1148 = vector.multi_reduction <add>, %1143, %cst_875 [1] : vector<9x32xf32> to vector<9xf32>
    %1149 = vector.shape_cast %1148 : vector<9xf32> to vector<9x1xf32>
    %cst_876 = arith.constant 3.200000e+01 : f32
    %1150 = vector.broadcast %cst_876 : f32 to vector<9x1xf32>
    %1151 = arith.divf %1149, %1150 : vector<9x1xf32>
    %1152 = vector.broadcast %1151 : vector<9x1xf32> to vector<9x32xf32>
    %1153 = arith.subf %1143, %1152 : vector<9x32xf32>
    %1154 = arith.mulf %1153, %1153 : vector<9x32xf32>
    %cst_877 = arith.constant dense<0.000000e+00> : vector<9xf32>
    %1155 = vector.multi_reduction <add>, %1154, %cst_877 [1] : vector<9x32xf32> to vector<9xf32>
    %1156 = vector.shape_cast %1155 : vector<9xf32> to vector<9x1xf32>
    %cst_878 = arith.constant 3.200000e+01 : f32
    %1157 = vector.broadcast %cst_878 : f32 to vector<9x1xf32>
    %1158 = arith.divf %1156, %1157 : vector<9x1xf32>
    %cst_879 = arith.constant 9.99999974E-6 : f32
    %1159 = vector.broadcast %cst_879 : f32 to vector<9x1xf32>
    %1160 = arith.addf %1158, %1159 : vector<9x1xf32>
    %1161 = math.rsqrt %1160 : vector<9x1xf32>
    %1162 = vector.broadcast %1161 : vector<9x1xf32> to vector<9x32xf32>
    %1163 = arith.mulf %1153, %1162 : vector<9x32xf32>
    %1164 = vector.broadcast %1145 : vector<1x32xf32> to vector<9x32xf32>
    %1165 = arith.mulf %1163, %1164 : vector<9x32xf32>
    %1166 = vector.broadcast %1147 : vector<1x32xf32> to vector<9x32xf32>
    %1167 = arith.addf %1165, %1166 : vector<9x32xf32>
    %c1_880 = arith.constant 1 : index
    %c0_881 = arith.constant 0 : index
    %c0_882 = arith.constant 0 : index
    %1168 = vector.load %arg20[%c1_880, %c0_881, %c0_882] : memref<2x32x64xf32, #tpu.memory_space<vmem>>, vector<1x32x64xf32>
    %1169 = vector.shape_cast %1168 : vector<1x32x64xf32> to vector<32x64xf32>
    %cst_883 = arith.constant dense<0.000000e+00> : vector<9x64xf32>
    %1170 = tpu.matmul %1167, %1169, %cst_883 {dimension_numbers = #tpu.dot_dimension_numbers<[1], [0], [0], [1], [0, 0, 1, 1], [], []>} : vector<9x32xf32>, vector<32x64xf32>, vector<9x64xf32> -> vector<9x64xf32>
    %c1_884 = arith.constant 1 : index
    %c0_885 = arith.constant 0 : index
    %c0_886 = arith.constant 0 : index
    %1171 = vector.load %arg21[%c1_884, %c0_885, %c0_886] : memref<2x1x64xf32, #tpu.memory_space<vmem>>, vector<1x1x64xf32>
    %1172 = vector.shape_cast %1171 : vector<1x1x64xf32> to vector<1x64xf32>
    %1173 = vector.broadcast %1172 : vector<1x64xf32> to vector<9x64xf32>
    %1174 = arith.addf %1170, %1173 : vector<9x64xf32>
    %1175 = arith.mulf %1174, %1174 : vector<9x64xf32>
    %1176 = arith.mulf %1174, %1175 : vector<9x64xf32>
    %cst_887 = arith.constant 4.471500e-02 : f32
    %1177 = vector.broadcast %cst_887 : f32 to vector<9x64xf32>
    %1178 = arith.mulf %1177, %1176 : vector<9x64xf32>
    %1179 = arith.addf %1174, %1178 : vector<9x64xf32>
    %cst_888 = arith.constant 0.797884583 : f32
    %1180 = vector.broadcast %cst_888 : f32 to vector<9x64xf32>
    %1181 = arith.mulf %1180, %1179 : vector<9x64xf32>
    %1182 = math.tanh %1181 : vector<9x64xf32>
    %cst_889 = arith.constant 1.000000e+00 : f32
    %1183 = vector.broadcast %cst_889 : f32 to vector<9x64xf32>
    %1184 = arith.addf %1183, %1182 : vector<9x64xf32>
    %cst_890 = arith.constant 5.000000e-01 : f32
    %1185 = vector.broadcast %cst_890 : f32 to vector<9x64xf32>
    %1186 = arith.mulf %1185, %1184 : vector<9x64xf32>
    %1187 = arith.mulf %1174, %1186 : vector<9x64xf32>
    %c1_891 = arith.constant 1 : index
    %c0_892 = arith.constant 0 : index
    %c0_893 = arith.constant 0 : index
    %1188 = vector.load %arg22[%c1_891, %c0_892, %c0_893] : memref<2x64x32xf32, #tpu.memory_space<vmem>>, vector<1x64x32xf32>
    %1189 = vector.shape_cast %1188 : vector<1x64x32xf32> to vector<64x32xf32>
    %cst_894 = arith.constant dense<0.000000e+00> : vector<9x32xf32>
    %1190 = tpu.matmul %1187, %1189, %cst_894 {dimension_numbers = #tpu.dot_dimension_numbers<[1], [0], [0], [1], [0, 0, 1, 1], [], []>} : vector<9x64xf32>, vector<64x32xf32>, vector<9x32xf32> -> vector<9x32xf32>
    %1191 = arith.addf %1143, %1190 : vector<9x32xf32>
    %c1_895 = arith.constant 1 : index
    %c0_896 = arith.constant 0 : index
    %c0_897 = arith.constant 0 : index
    %1192 = vector.load %arg23[%c1_895, %c0_896, %c0_897] : memref<2x1x32xf32, #tpu.memory_space<vmem>>, vector<1x1x32xf32>
    %1193 = vector.shape_cast %1192 : vector<1x1x32xf32> to vector<1x32xf32>
    %1194 = vector.broadcast %1193 : vector<1x32xf32> to vector<9x32xf32>
    %1195 = arith.addf %1191, %1194 : vector<9x32xf32>
    %1196 = vector.extract_strided_slice %1195 {offsets = [0, 0], sizes = [1, 32], strides = [1, 1]} : vector<9x32xf32> to vector<1x32xf32>
    %c0_898 = arith.constant 0 : index
    %c0_899 = arith.constant 0 : index
    %1197 = vector.load %arg24[%c0_898, %c0_899] : memref<1x32xf32, #tpu.memory_space<vmem>>, vector<1x32xf32>
    %c0_900 = arith.constant 0 : index
    %c0_901 = arith.constant 0 : index
    %1198 = vector.load %arg25[%c0_900, %c0_901] : memref<1x32xf32, #tpu.memory_space<vmem>>, vector<1x32xf32>
    %cst_902 = arith.constant dense<0.000000e+00> : vector<1xf32>
    %1199 = vector.multi_reduction <add>, %1196, %cst_902 [1] : vector<1x32xf32> to vector<1xf32>
    %1200 = vector.shape_cast %1199 : vector<1xf32> to vector<1x1xf32>
    %cst_903 = arith.constant 3.200000e+01 : f32
    %1201 = vector.broadcast %cst_903 : f32 to vector<1x1xf32>
    %1202 = arith.divf %1200, %1201 : vector<1x1xf32>
    %1203 = vector.broadcast %1202 : vector<1x1xf32> to vector<1x32xf32>
    %1204 = arith.subf %1196, %1203 : vector<1x32xf32>
    %1205 = arith.mulf %1204, %1204 : vector<1x32xf32>
    %cst_904 = arith.constant dense<0.000000e+00> : vector<1xf32>
    %1206 = vector.multi_reduction <add>, %1205, %cst_904 [1] : vector<1x32xf32> to vector<1xf32>
    %1207 = vector.shape_cast %1206 : vector<1xf32> to vector<1x1xf32>
    %cst_905 = arith.constant 3.200000e+01 : f32
    %1208 = vector.broadcast %cst_905 : f32 to vector<1x1xf32>
    %1209 = arith.divf %1207, %1208 : vector<1x1xf32>
    %cst_906 = arith.constant 9.99999974E-6 : f32
    %1210 = vector.broadcast %cst_906 : f32 to vector<1x1xf32>
    %1211 = arith.addf %1209, %1210 : vector<1x1xf32>
    %1212 = math.rsqrt %1211 : vector<1x1xf32>
    %1213 = vector.broadcast %1212 : vector<1x1xf32> to vector<1x32xf32>
    %1214 = arith.mulf %1204, %1213 : vector<1x32xf32>
    %1215 = arith.mulf %1214, %1197 : vector<1x32xf32>
    %1216 = arith.addf %1215, %1198 : vector<1x32xf32>
    %c0_907 = arith.constant 0 : index
    %c0_908 = arith.constant 0 : index
    %c0_909 = arith.constant 0 : index
    %1217 = vector.load %arg26[%c0_907, %c0_908, %c0_909] : memref<2x32x64xf32, #tpu.memory_space<vmem>>, vector<1x32x64xf32>
    %1218 = vector.shape_cast %1217 : vector<1x32x64xf32> to vector<32x64xf32>
    %cst_910 = arith.constant dense<0.000000e+00> : vector<1x64xf32>
    %1219 = tpu.matmul %1216, %1218, %cst_910 {dimension_numbers = #tpu.dot_dimension_numbers<[1], [0], [0], [1], [0, 0, 1, 1], [], []>} : vector<1x32xf32>, vector<32x64xf32>, vector<1x64xf32> -> vector<1x64xf32>
    %c0_911 = arith.constant 0 : index
    %c0_912 = arith.constant 0 : index
    %c0_913 = arith.constant 0 : index
    %1220 = vector.load %arg27[%c0_911, %c0_912, %c0_913] : memref<2x1x64xf32, #tpu.memory_space<vmem>>, vector<1x1x64xf32>
    %1221 = vector.shape_cast %1220 : vector<1x1x64xf32> to vector<1x64xf32>
    %1222 = arith.addf %1219, %1221 : vector<1x64xf32>
    %1223 = arith.mulf %1222, %1222 : vector<1x64xf32>
    %1224 = arith.mulf %1222, %1223 : vector<1x64xf32>
    %cst_914 = arith.constant 4.471500e-02 : f32
    %1225 = vector.broadcast %cst_914 : f32 to vector<1x64xf32>
    %1226 = arith.mulf %1225, %1224 : vector<1x64xf32>
    %1227 = arith.addf %1222, %1226 : vector<1x64xf32>
    %cst_915 = arith.constant 0.797884583 : f32
    %1228 = vector.broadcast %cst_915 : f32 to vector<1x64xf32>
    %1229 = arith.mulf %1228, %1227 : vector<1x64xf32>
    %1230 = math.tanh %1229 : vector<1x64xf32>
    %cst_916 = arith.constant 1.000000e+00 : f32
    %1231 = vector.broadcast %cst_916 : f32 to vector<1x64xf32>
    %1232 = arith.addf %1231, %1230 : vector<1x64xf32>
    %cst_917 = arith.constant 5.000000e-01 : f32
    %1233 = vector.broadcast %cst_917 : f32 to vector<1x64xf32>
    %1234 = arith.mulf %1233, %1232 : vector<1x64xf32>
    %1235 = arith.mulf %1222, %1234 : vector<1x64xf32>
    %c0_918 = arith.constant 0 : index
    %c0_919 = arith.constant 0 : index
    %c0_920 = arith.constant 0 : index
    %1236 = vector.load %arg28[%c0_918, %c0_919, %c0_920] : memref<2x64x3xf32, #tpu.memory_space<vmem>>, vector<1x64x3xf32>
    %1237 = vector.shape_cast %1236 : vector<1x64x3xf32> to vector<64x3xf32>
    %cst_921 = arith.constant dense<0.000000e+00> : vector<1x3xf32>
    %1238 = tpu.matmul %1235, %1237, %cst_921 {dimension_numbers = #tpu.dot_dimension_numbers<[1], [0], [0], [1], [0, 0, 1, 1], [], []>} : vector<1x64xf32>, vector<64x3xf32>, vector<1x3xf32> -> vector<1x3xf32>
    %c0_922 = arith.constant 0 : index
    %c0_923 = arith.constant 0 : index
    %c0_924 = arith.constant 0 : index
    %1239 = vector.load %arg29[%c0_922, %c0_923, %c0_924] : memref<2x1x3xf32, #tpu.memory_space<vmem>>, vector<1x1x3xf32>
    %1240 = vector.shape_cast %1239 : vector<1x1x3xf32> to vector<1x3xf32>
    %1241 = arith.addf %1238, %1240 : vector<1x3xf32>
    %c1_925 = arith.constant 1 : index
    %c0_926 = arith.constant 0 : index
    %1242 = vector.load %arg30[%c1_925, %c0_926] : memref<4x3xf32, #tpu.memory_space<vmem>>, vector<1x3xf32>
    tpu.vector_store %arg30[%c1_925, %c0_926], %1241 {strides = array<i32>} : memref<4x3xf32, #tpu.memory_space<vmem>>, vector<1x3xf32>,
    %c1_927 = arith.constant 1 : index
    %c0_928 = arith.constant 0 : index
    %c0_929 = arith.constant 0 : index
    %1243 = vector.load %arg26[%c1_927, %c0_928, %c0_929] : memref<2x32x64xf32, #tpu.memory_space<vmem>>, vector<1x32x64xf32>
    %1244 = vector.shape_cast %1243 : vector<1x32x64xf32> to vector<32x64xf32>
    %cst_930 = arith.constant dense<0.000000e+00> : vector<1x64xf32>
    %1245 = tpu.matmul %1216, %1244, %cst_930 {dimension_numbers = #tpu.dot_dimension_numbers<[1], [0], [0], [1], [0, 0, 1, 1], [], []>} : vector<1x32xf32>, vector<32x64xf32>, vector<1x64xf32> -> vector<1x64xf32>
    %c1_931 = arith.constant 1 : index
    %c0_932 = arith.constant 0 : index
    %c0_933 = arith.constant 0 : index
    %1246 = vector.load %arg27[%c1_931, %c0_932, %c0_933] : memref<2x1x64xf32, #tpu.memory_space<vmem>>, vector<1x1x64xf32>
    %1247 = vector.shape_cast %1246 : vector<1x1x64xf32> to vector<1x64xf32>
    %1248 = arith.addf %1245, %1247 : vector<1x64xf32>
    %1249 = arith.mulf %1248, %1248 : vector<1x64xf32>
    %1250 = arith.mulf %1248, %1249 : vector<1x64xf32>
    %cst_934 = arith.constant 4.471500e-02 : f32
    %1251 = vector.broadcast %cst_934 : f32 to vector<1x64xf32>
    %1252 = arith.mulf %1251, %1250 : vector<1x64xf32>
    %1253 = arith.addf %1248, %1252 : vector<1x64xf32>
    %cst_935 = arith.constant 0.797884583 : f32
    %1254 = vector.broadcast %cst_935 : f32 to vector<1x64xf32>
    %1255 = arith.mulf %1254, %1253 : vector<1x64xf32>
    %1256 = math.tanh %1255 : vector<1x64xf32>
    %cst_936 = arith.constant 1.000000e+00 : f32
    %1257 = vector.broadcast %cst_936 : f32 to vector<1x64xf32>
    %1258 = arith.addf %1257, %1256 : vector<1x64xf32>
    %cst_937 = arith.constant 5.000000e-01 : f32
    %1259 = vector.broadcast %cst_937 : f32 to vector<1x64xf32>
    %1260 = arith.mulf %1259, %1258 : vector<1x64xf32>
    %1261 = arith.mulf %1248, %1260 : vector<1x64xf32>
    %c1_938 = arith.constant 1 : index
    %c0_939 = arith.constant 0 : index
    %c0_940 = arith.constant 0 : index
    %1262 = vector.load %arg28[%c1_938, %c0_939, %c0_940] : memref<2x64x3xf32, #tpu.memory_space<vmem>>, vector<1x64x3xf32>
    %1263 = vector.shape_cast %1262 : vector<1x64x3xf32> to vector<64x3xf32>
    %cst_941 = arith.constant dense<0.000000e+00> : vector<1x3xf32>
    %1264 = tpu.matmul %1261, %1263, %cst_941 {dimension_numbers = #tpu.dot_dimension_numbers<[1], [0], [0], [1], [0, 0, 1, 1], [], []>} : vector<1x64xf32>, vector<64x3xf32>, vector<1x3xf32> -> vector<1x3xf32>
    %c1_942 = arith.constant 1 : index
    %c0_943 = arith.constant 0 : index
    %c0_944 = arith.constant 0 : index
    %1265 = vector.load %arg29[%c1_942, %c0_943, %c0_944] : memref<2x1x3xf32, #tpu.memory_space<vmem>>, vector<1x1x3xf32>
    %1266 = vector.shape_cast %1265 : vector<1x1x3xf32> to vector<1x3xf32>
    %1267 = arith.addf %1264, %1266 : vector<1x3xf32>
    %c3_945 = arith.constant 3 : index
    %c0_946 = arith.constant 0 : index
    %1268 = vector.load %arg30[%c3_945, %c0_946] : memref<4x3xf32, #tpu.memory_space<vmem>>, vector<1x3xf32>
    tpu.vector_store %arg30[%c3_945, %c0_946], %1267 {strides = array<i32>} : memref<4x3xf32, #tpu.memory_space<vmem>>, vector<1x3xf32>,
    %cst_947 = arith.constant 5.000000e-01 : f32
    %1269 = vector.broadcast %cst_947 : f32 to vector<1x1xf32>
    %1270 = arith.mulf %693, %1269 : vector<1x1xf32>
    %c0_948 = arith.constant 0 : index
    %c0_949 = arith.constant 0 : index
    %1271 = vector.load %arg31[%c0_948, %c0_949] : memref<2x1xf32, #tpu.memory_space<vmem>>, vector<1x1xf32>
    tpu.vector_store %arg31[%c0_948, %c0_949], %1270 {strides = array<i32>} : memref<2x1xf32, #tpu.memory_space<vmem>>, vector<1x1xf32>,
    %cst_950 = arith.constant 5.000000e-01 : f32
    %1272 = vector.broadcast %cst_950 : f32 to vector<1x1xf32>
    %1273 = arith.mulf %714, %1272 : vector<1x1xf32>
    %c1_951 = arith.constant 1 : index
    %c0_952 = arith.constant 0 : index
    %1274 = vector.load %arg31[%c1_951, %c0_952] : memref<2x1xf32, #tpu.memory_space<vmem>>, vector<1x1xf32>
    tpu.vector_store %arg31[%c1_951, %c0_952], %1273 {strides = array<i32>} : memref<2x1xf32, #tpu.memory_space<vmem>>, vector<1x1xf32>,
    return
  }
}

</mosaic_0001>

<bundles_post_ra>
// kernel: _graph_transformer_forward.1
= control target key start
LH: loop header
LB: loop body
LE: loop exit
PB: predicated region body
PF: predicated region fallthrough
CT: control target
= control target key end

     0   :  { %v14985_v0 = vmov 0   ;;  %s14986_s3 = smov 2   ;;  %s14987_s7 = smov 1   ;;  %vm154_vm0 = vcmask 130048   ;;  %vm247_vm1 = vcmask 261120   ;;  %v14990_v21 = vmov 0.0   ;;  %s16518_s0 = inlined_call_operand.smem [shape: u32[32], index: -1, kind: input, shape index: {}] }
   0x1   :  { %14759 = vset.pattern.permute.xlu0 %v14985_v0  ;;  %s15028_s6 = sld [smem:[%s16518_s0 + %s14986_s3]]   ;;  %s14988_s11 = smov 3   ;;  %vm423_vm2 = vcmask 64512   ;;  %vm14993_vm3 = vmmov 0   ;;  %vm850_vm4 = vcmask 253952   ;;  %vm1283_vm5 = vcmask 1040384  }
   0x2   :  { %s15033_s10 = sld [smem:[%s16518_s0 + %s14987_s7]]   ;;  %s14989_s18 = smov 5   ;;  %vm1253_vm6 = vcmask 72704   ;;  %vm1257_vm7 = vcmask 65536   ;;  %vm3247_vm8 = vcmask 523264   ;;  %vm6019_vm9 = vcmask 16384  }
   0x3   :  { %s15045_s14 = sld [smem:[%s16518_s0 + %s14988_s11]]   ;;  %s14991_s22 = smov 4   ;;  %vm12179_vm15 = vcmask 0  }
   0x4   :  { %s15052_s17 = sld [smem:[%s16518_s0]]   ;;  %s14992_s26 = smov 6  }
   0x5   :  { %s15072_s21 = sld [smem:[%s16518_s0 + %s14989_s18]]   ;;  %s14994_s30 = smov 7  }
   0x6   :  { %s15085_s25 = sld [smem:[%s16518_s0 + %s14991_s22]]   ;;  %s14995_s4 = smov 10  }
   0x7   :  { %v141_v1 = vld [vmem:[%s15028_s6 + $0x8] sm:$0xff]  ;;  %v140_v2 = vld [vmem:[%s15028_s6] sm:$0xff]  ;;  %s15097_s29 = sld [smem:[%s16518_s0 + %s14992_s26]]   ;;  %s14996_s9 = smov 12  }
   0x8   :  { %149 = vperm.xlu0 %14759, %v141_v1   ;;  %v15038_v3 = vld [vmem:[%s15033_s10] sm:$0xff]  ;;  %v15063_v12 = vld [vmem:[%s15033_s10 + $0x8] sm:$0xff]  ;;  %s12197_s3 = sld [smem:[%s16518_s0 + %s14994_s30]]   ;;  %s14997_s15 = smov 14  }
   0x9   :  { %13527 = vmatprep.mubr.msk.f32.mxu0 %vm154_vm0, %v15038_v3  ;;  %v239_v4 = vld [vmem:[%s15045_s14 + $0x18] sm:$0xff]  ;;  %v238_v5 = vld [vmem:[%s15045_s14 + $0x10] sm:$0xff]  ;;  %v237_v13 = vld [vmem:[%s15045_s14 + $0x8] sm:$0xff]  ;;  %s15158_s8 = sld [smem:[%s16518_s0 + %s14995_s4]]   ;;  %s14998_s20 = smov 8  }
   0xa   :  { %13530 = vmatprep.subr.mxu1 %v239_v4  ;;  %v137_v6 = vld [vmem:[%s15052_s17 + $0x8] sm:$0xff]  ;;  %v136_v9 = vld [vmem:[%s15052_s17] sm:$0xff]  ;;  %s15163_s13 = sld [smem:[%s16518_s0 + %s14996_s9]]   ;;  %s14999_s26 = smov 9  }
   0xb   :  { %13531 = vmatpush3.msra.mxu1 %v239_v4  ;;  %v236_v14 = vld [vmem:[%s15045_s14] sm:$0xff]  ;;  %v334_v15 = vld [vmem:[%s15072_s21 + $0x18] sm:$0xff]  ;;  %v333_v18 = vld [vmem:[%s15072_s21 + $0x10] sm:$0xff]  ;;  %s15171_s19 = sld [smem:[%s16518_s0 + %s14997_s15]]   ;;  %s15000_s1 = smov 13  }
   0xc   :  { %144 = vperm.xlu0 %14759, %v140_v2   ;;  %13532 = vmatprep.subr.mxu1 %v238_v5  ;;  %v332_v19 = vld [vmem:[%s15072_s21 + $0x8] sm:$0xff]  ;;  %v331_v20 = vld [vmem:[%s15072_s21] sm:$0xff]  ;;  %s15184_s24 = sld [smem:[%s16518_s0 + %s14998_s20]]   ;;  %s15001_s5 = smov 11  }
   0xd   :  { %13533 = vmatpush3.msra.mxu1 %v238_v5  ;;  %v12225_v22 = vld [vmem:[%s15085_s25] ss:$0 sm:$0xff]  ;;  %s15189_s30 = sld [smem:[%s16518_s0 + %s14999_s26]]   ;;  %s15002_s12 = smov 15  }
   0xe   :  { %13534 = vmatprep.subr.mxu1 %v237_v13  ;;  %v12228_v32 = vld [vmem:[%s15097_s29] ss:$0 sm:$0xff]  ;;  %s15215_s4 = sld [smem:[%s16518_s0 + %s15000_s1]]   ;;  %s15003_s20 = smov 16  }
   0xf   :  { %13535 = vmatpush3.msra.mxu1 %v237_v13  ;;  %v849_v57 = vld [vmem:[%s12197_s3] sm:$0x1]  ;;  %s15220_s11 = sld [smem:[%s16518_s0 + %s15001_s5]]   ;;  %s15004_s27 = smov 17  }
  0x10   :  { %13536 = vmatprep.subr.mxu1 %v236_v14  ;;  %851 = vst.msk [vmem:[#allocation2] sm:$0x1] %vm850_vm4, %v849_v57  ;;  %v6904_v62 = vld [vmem:[%s12197_s3] sm:$0x1]  ;;  %s15226_s18 = sld [smem:[%s16518_s0 + %s15002_s12]]   ;;  %s15005_s3 = smov 20  }
  0x11   :  { %13537 = vmatpush3.msra.mxu1 %v236_v14  ;;  %s15289_s26 = sld [smem:[%s16518_s0 + %s15003_s20]]   ;;  %s15006_s12 = smov 18  }
  0x12   :  { %13566 = vmatprep.subr.mxu1 %v14990_v21  ;;  %s15402_s2 = sld [smem:[%s16518_s0 + %s15004_s27]]   ;;  %s15007_s22 = smov 19  }
  0x13   :  { %s15422_s9 = sld [smem:[%s16518_s0 + %s15005_s3]]   ;;  %s15008_s1 = smov 22  }
  0x14   :  { %s15431_s20 = sld [smem:[%s16518_s0 + %s15006_s12]]   ;;  %s15009_s12 = smov 21  }
  0x15   :  { %s15436_s28 = sld [smem:[%s16518_s0 + %s15007_s22]]   ;;  %s15010_s23 = smov 23  }
  0x16   :  { %v12243_v57 = vld [vmem:[%s15226_s18] ss:$0 sm:$0xff]  ;;  %s15445_s7 = sld [smem:[%s16518_s0 + %s15008_s1]]   ;;  %s15011_s5 = smov 26  }
  0x17   :  { %s15458_s22 = sld [smem:[%s16518_s0 + %s15009_s12]]   ;;  %s15013_s12 = smov 25  }
  0x18   :  { %s15466_s3 = sld [smem:[%s16518_s0 + %s15010_s23]]   ;;  %s15012_s23 = smov 24  }
  0x19   :  { %s15721_s16 = sld [smem:[%s16518_s0 + %s15011_s5]]  }
  0x1a   :  { %s15743_s5 = sld [smem:[%s16518_s0 + %s15012_s23]]  }
  0x1f   :  { %16526 = sst [smem:[#allocation3_spill]] %s15721_s16 }
  0x83   :  { %v15055_v7 = vpop.permute.xlu0 %149 }
  0x84   :  { %v153_v8 = vmul.f32 %v15055_v7, %v137_v6 }
  0x86   :  { %13523 = vmatprep.subr.mxu0 %v153_v8 }
  0x87   :  { %v15059_v10 = vpop.permute.xlu0 %144  ;;  %13524 = vmatpush3.msra.mxu0 %v153_v8 }
  0x88   :  { %v152_v11 = vmul.f32 %v15059_v10, %v136_v9 }
  0x8a   :  { %13525 = vmatprep.subr.mxu0 %v152_v11 }
  0x8b   :  { %13526 = vmatpush3.msra.mxu0 %v152_v11 }
  0x8c   :  { %13528 = vmatmul.mubr.msk.f32.vlgmr.msra.gmra.mxu0 %vm154_vm0, %v15063_v12  ;;  %13541 = vmatprep.subr.mxu0 %v334_v15 }
  0x8d   :  { %13542 = vmatpush3.msra.mxu0 %v334_v15  ;;  %v903_v15 = vld [vmem:[%s15158_s8 + $0x18] sm:$0xff] }
  0x8e   :  { %13543 = vmatprep.subr.mxu0 %v333_v18 }
  0x8f   :  { %13544 = vmatpush3.msra.mxu0 %v333_v18  ;;  %v994_v18 = vld [vmem:[%s15163_s13 + $0x10] sm:$0xff] }
  0x90   :  { %13545 = vmatprep.subr.mxu0 %v332_v19 }
  0x91   :  { %13546 = vmatpush3.msra.mxu0 %v332_v19  ;;  %v901_v19 = vld [vmem:[%s15158_s8 + $0x8] sm:$0xff] }
  0x92   :  { %13547 = vmatprep.subr.mxu0 %v331_v20 }
  0x93   :  { %13548 = vmatpush3.msra.mxu0 %v331_v20  ;;  %v993_v20 = vld [vmem:[%s15163_s13 + $0x8] sm:$0xff] }
  0x94   :  { %13552 = vmatprep.subr.mxu0 %v14990_v21 }
 0x14c   :  { %v13529_v16 = vpop.f32.mrf.mxu0 }
 0x14e   :  { %v227_v17 = vpop.f32.mrf.mxu0 }
 0x14f   :  { %13538 = vmatprep.mubr.msk.f32.mxu1 %vm247_vm1, %v227_v17  ;;  %v902_v17 = vld [vmem:[%s15158_s8 + $0x10] sm:$0xff] }
 0x150   :  { %13539 = vmatmul.mubr.msk.f32.vlgmr.msra.gmra.mxu1 %vm247_vm1, %v13529_v16  ;;  %v995_v16 = vld [vmem:[%s15163_s13 + $0x18] sm:$0xff] }
 0x151   :  { %13570 = vmatprep.mubr.msk.f32.mxu1 %vm14993_vm3, %v14990_v21 }
 0x210   :  { %v13540_v23 = vpop.f32.mrf.mxu1 }
 0x211   :  { %v326_v24 = vadd.f32 %v13540_v23, %v12225_v22  ;;  %v992_v23 = vld [vmem:[%s15163_s13] sm:$0xff] }
 0x212   :  { %v320_v25 = vpop.f32.mrf.mxu1 }
 0x213   :  { %v330_v26 = vmax.f32 %v326_v24, 0.0  ;;  %v321_v27 = vadd.f32 %v12225_v22, %v320_v25  ;;  %v900_v22 = vld [vmem:[%s15158_s8] sm:$0xff]  ;;  %v1081_v24 = vld [vmem:[%s15171_s19 + $0x18] sm:$0xff] }
 0x215   :  { %v447_v28 = vmul.f32 %v330_v26, %v15055_v7  ;;  %v329_v29 = vmax.f32 %v321_v27, 0.0 }
 0x217   :  { %v446_v30 = vmul.f32 %v329_v29, %v15059_v10  ;;  %13549 = vmatprep.mubr.msk.f32.mxu0 %vm247_vm1, %v329_v29 }
 0x218   :  { %13550 = vmatmul.mubr.msk.f32.vlgmr.msra.gmra.mxu0 %vm247_vm1, %v330_v26 }
 0x219   :  { %13553 = vmatpush3.msra.mxu0 %v447_v28  ;;  %13556 = vmatprep.mubr.msk.f32.mxu0 %vm14993_vm3, %v14990_v21 }
 0x21a   :  { %13554 = vmatprep.subr.mxu0 %v14990_v21 }
 0x21b   :  { %13555 = vmatpush3.msra.mxu0 %v446_v30 }
 0x21c   :  { %13559 = vmatprep.subr.mxu0 %v14990_v21 }
 0x2d8   :  { %v13551_v31 = vpop.f32.mrf.mxu0 }
 0x2d9   :  { %v420_v35 = vadd.f32 %v13551_v31, %v12228_v32 }
 0x2da   :  { %v414_v33 = vpop.f32.mrf.mxu0 }
 0x2db   :  { %v415_v34 = vadd.f32 %v12228_v32, %v414_v33  ;;  %v427_v37 = vsel %vm423_vm2, %v420_v35, -inf }
 0x2dd   :  { %v424_v36 = vsel %vm423_vm2, %v415_v34, -inf }
 0x2de   :  { %425 = vmax.xlane.f32.xlu1 %v424_v36  ;;  %v12236_v36 = vld [vmem:[%s15189_s30] ss:$0 sm:$0xff] }
 0x2e2   :  { %428 = vmax.xlane.f32.xlu1 %v427_v37 }
 0x367   :  { %v426_v38 = vpop.xlane.xlu1 %425 }
 0x368   :  { %v430_v39 = vsub.f32 %v415_v34, %v426_v38  ;;  %v12235_v34 = vld [vmem:[%s15184_s24] ss:$0 sm:$0xff] }
 0x36a   :  { %v432_v40 = vmul.f32 1.442695, %v430_v39 }
 0x36b   :  { %v429_v41 = vpop.xlane.xlu1 %428 }
 0x36c   :  { %14761 = vpow2.f32 %v432_v40  ;;  %v431_v42 = vsub.f32 %v420_v35, %v429_v41 }
 0x36e   :  { %v434_v43 = vmul.f32 1.442695, %v431_v42 }
 0x370   :  { %14763 = vpow2.f32 %v434_v43  ;;  %v1080_v43 = vld [vmem:[%s15171_s19 + $0x10] sm:$0xff] }
 0x379   :  { %v14762_v44 = vpop.eup %14761 }
 0x37a   :  { %v436_v45 = vsel %vm423_vm2, %v14762_v44, 0.0 }
 0x37b   :  { %437 = vadd.xlane.f32.xlu0 %v436_v45  ;;  %v1078_v45 = vld [vmem:[%s15171_s19] sm:$0xff] }
 0x37d   :  { %v14764_v46 = vpop.eup %14763 }
 0x37e   :  { %v439_v47 = vsel %vm423_vm2, %v14764_v46, 0.0 }
 0x37f   :  { %440 = vadd.xlane.f32.xlu1 %v439_v47 }
 0x404   :  { %v438_v48 = vpop.xlane.xlu0 %437 }
 0x405   :  { %14765 = vrcp.f32 %v438_v48 }
 0x408   :  { %v441_v49 = vpop.xlane.xlu1 %440 }
 0x409   :  { %14767 = vrcp.f32 %v441_v49 }
 0x412   :  { %v14766_v50 = vpop.eup %14765 }
 0x413   :  { %v444_v51 = vmul.f32 %v14766_v50, %v14762_v44  ;;  %v1079_v44 = vld [vmem:[%s15171_s19 + $0x8] sm:$0xff]  ;;  %v12237_v50 = vld [vmem:[%s15220_s11] ss:$0 sm:$0xff] }
 0x415   :  { %v15109_v52 = vmul.f32 %v444_v51, %v15059_v10 }
 0x416   :  { %v14768_v53 = vpop.eup %14767 }
 0x417   :  { %450 = vxpose.xlu1.b32.start [1/2] (short) (narrow) %v15109_v52, 8  ;;  %v445_v54 = vmul.f32 %v14768_v53, %v14764_v46  ;;  %v12240_v46 = vld [vmem:[%s15215_s4] ss:$0 sm:$0xff] }
 0x419   :  { %v15113_v55 = vmul.f32 %v445_v54, %v15055_v7 }
 0x41b   :  { %451 = vxpose.xlu1.b32.end [2/2] (short) (narrow) %v15113_v55, 8  ;;  %13567 = vmatpush3.msra.mxu1 %v15113_v55 }
 0x41c   :  { %13568 = vmatprep.subr.mxu1 %v14990_v21 }
 0x41d   :  { %13569 = vmatpush3.msra.mxu1 %v15109_v52 }
 0x41e   :  { %13580 = vmatprep.subr.mxu1 %v903_v15 }
 0x439   :  { %14760 = vset.pattern.permute.xlu1 %v14985_v0 }
 0x493   :  { %v466_v56 = vpop.trf.xlu1 }
 0x494   :  { %13557 = vmatmul.mubr.msk.f32.vlgmr.msra.gmra.mxu0 %vm154_vm0, %v466_v56 }
 0x495   :  { %13560 = vmatpush3.msra.mxu0 %v15063_v12  ;;  %13563 = vmatprep.mubr.msk.f32.mxu0 %vm14993_vm3, %v14990_v21 }
 0x496   :  { %13561 = vmatprep.subr.mxu0 %v14990_v21 }
 0x497   :  { %13562 = vmatpush3.msra.mxu0 %v15038_v3 }
 0x498   :  { %13573 = vmatprep.subr.mxu0 %v14990_v21  ;;  %13564 = vmatmul.mubr.msk.f32.vlgmr.msra.gmra.mxu0 %vm154_vm0, %v466_v56 }
 0x499   :  { %13574 = vmatpush3.msra.mxu0 %v15113_v55  ;;  %13577 = vmatprep.mubr.msk.f32.mxu0 %vm14993_vm3, %v14990_v21 }
 0x49a   :  { %13575 = vmatprep.subr.mxu0 %v14990_v21 }
 0x49b   :  { %13576 = vmatpush3.msra.mxu0 %v15109_v52 }
 0x49c   :  { %13578 = vmatmul.mubr.msk.f32.vlgmr.msra.gmra.mxu0 %vm154_vm0, %v466_v56  ;;  %13591 = vmatprep.subr.mxu0 %v995_v16 }
 0x49d   :  { %13592 = vmatpush3.msra.mxu0 %v995_v16 }
 0x49e   :  { %13593 = vmatprep.subr.mxu0 %v994_v18 }
 0x49f   :  { %13594 = vmatpush3.msra.mxu0 %v994_v18 }
 0x4a0   :  { %13595 = vmatprep.subr.mxu0 %v993_v20 }
 0x4a1   :  { %13596 = vmatpush3.msra.mxu0 %v993_v20  ;;  %v12274_v20 = vld [vmem:[%s15226_s18 + $0x1] ss:$0 sm:$0xff] }
 0x4a2   :  { %13597 = vmatprep.subr.mxu0 %v992_v23 }
 0x4a3   :  { %13598 = vmatpush3.msra.mxu0 %v992_v23 }
 0x554   :  { %v551_v58 = vpop.f32.mrf.mxu0 }
 0x555   :  { %852 = vst.msk [vmem:[#allocation2 + $0x1] sm:$0xff] %vm247_vm1, %v551_v58  ;;  %v12256_v58 = vld [vmem:[%s15158_s8 + $0x38] sm:$0xff] }
 0x556   :  { %v13558_v59 = vpop.f32.mrf.mxu0 }
 0x558   :  { %v621_v60 = vpop.f32.mrf.mxu0 }
 0x559   :  { %13571 = vmatmul.mubr.msk.f32.vlgmr.msra.gmra.mxu1 %vm154_vm0, %v621_v60 }
 0x55a   :  { %v13565_v61 = vpop.f32.mrf.mxu0  ;;  %13581 = vmatpush3.msra.mxu1 %v903_v15  ;;  %v12258_v15 = vld [vmem:[%s15220_s11 + $0x1] ss:$0 sm:$0xff] }
 0x55b   :  { %13582 = vmatprep.subr.mxu1 %v902_v17 }
 0x55c   :  { %v15140_v63 = vpop.f32.mrf.mxu0  ;;  %v15142_v0 = vld [vmem:[#allocation2] sm:$0xff]  ;;  %v15147_v3 = vld [vmem:[#allocation2 + $0x8] sm:$0x1]  ;;  %13583 = vmatpush3.msra.mxu1 %v902_v17 }
 0x55d   :  { %v857_v1 = vsel %vm247_vm1, %v15142_v0, 0.0  ;;  %6905 = vst.msk [vmem:[#allocation2] sm:$0x1] %vm850_vm4, %v6904_v62  ;;  %v860_v4 = vsel %vm850_vm4, %v15147_v3, 0.0  ;;  %13584 = vmatprep.subr.mxu1 %v901_v19 }
 0x55e   :  { %858 = vadd.xlane.f32.xlu0 %v857_v1  ;;  %v13579_v2 = vpop.f32.mrf.mxu0  ;;  %13585 = vmatpush3.msra.mxu1 %v901_v19 }
 0x55f   :  { %13586 = vmatprep.subr.mxu1 %v900_v22  ;;  %v12255_v2 = vld [vmem:[%s15158_s8 + $0x30] sm:$0xff] }
 0x560   :  { %13587 = vmatpush3.msra.mxu1 %v900_v22 }
 0x561   :  { %13602 = vmatprep.subr.mxu1 %v1081_v24 }
 0x562   :  { %861 = vadd.xlane.f32.xlu0 %v860_v4  ;;  %v12254_v4 = vld [vmem:[%s15158_s8 + $0x28] sm:$0xff] }
 0x5e7   :  { %v859_v5 = vpop.xlane.xlu0 %858 }
 0x5e8   :  { %v864_v6 = vmul.f32 0.03125, %v859_v5  ;;  %v12253_v5 = vld [vmem:[%s15158_s8 + $0x20] sm:$0xff] }
 0x5ea   :  { %v866_v7 = vsub.f32 %v15142_v0, %v864_v6  ;;  %v12272_v6 = vld [vmem:[%s15171_s19 + $0x38] sm:$0xff] }
 0x5eb   :  { %v862_v8 = vpop.xlane.xlu0 %861 }
 0x5ec   :  { %v865_v9 = vmul.f32 0.03125, %v862_v8  ;;  %v868_v10 = vmul.f32 %v866_v7, %v866_v7  ;;  %v12270_v8 = vld [vmem:[%s15171_s19 + $0x28] sm:$0xff] }
 0x5ee   :  { %v867_v11 = vsub.f32 %v15147_v3, %v865_v9  ;;  %v870_v12 = vsel %vm247_vm1, %v868_v10, 0.0  ;;  %v12269_v9 = vld [vmem:[%s15171_s19 + $0x20] sm:$0xff] }
 0x5ef   :  { %871 = vadd.xlane.f32.xlu0 %v870_v12 }
 0x5f0   :  { %v869_v13 = vmul.f32 %v867_v11, %v867_v11 }
 0x5f2   :  { %v873_v14 = vsel %vm850_vm4, %v869_v13, 0.0 }
 0x5f3   :  { %874 = vadd.xlane.f32.xlu0 %v873_v14 }
 0x619   :  { %v15179_v25 = vpop.f32.mrf.mxu1 }
 0x61b   :  { %v13572_v26 = vpop.f32.mrf.mxu1 }
 0x678   :  { %v872_v27 = vpop.xlane.xlu0 %871 }
 0x679   :  { %v876_v28 = vmul.f32 0.03125, %v872_v27 }
 0x67b   :  { %v878_v29 = vadd.f32 1e-05, %v876_v28 }
 0x67c   :  { %v875_v30 = vpop.xlane.xlu0 %874 }
 0x67d   :  { %14769 = vrsqrt.f32 %v878_v29  ;;  %v877_v31 = vmul.f32 0.03125, %v875_v30 }
 0x67f   :  { %v879_v32 = vadd.f32 1e-05, %v877_v31 }
 0x681   :  { %14771 = vrsqrt.f32 %v879_v32 }
 0x68a   :  { %v14770_v33 = vpop.eup %14769 }
 0x68b   :  { %v882_v35 = vmul.f32 %v14770_v33, %v866_v7  ;;  %v12271_v7 = vld [vmem:[%s15171_s19 + $0x30] sm:$0xff] }
 0x68d   :  { %v890_v37 = vmul.f32 %v12235_v34, %v882_v35 }
 0x68e   :  { %v14772_v38 = vpop.eup %14771 }
 0x68f   :  { %v15193_v39 = vadd.f32 %v12236_v36, %v890_v37  ;;  %v883_v40 = vmul.f32 %v14772_v38, %v867_v11  ;;  %v12264_v37 = vld [vmem:[%s15163_s13 + $0x38] sm:$0xff] }
 0x691   :  { %v891_v41 = vmul.f32 %v12235_v34, %v883_v40  ;;  %13588 = vmatprep.mubr.msk.f32.mxu1 %vm247_vm1, %v15193_v39  ;;  %13599 = vmatprep.mubr.msk.f32.mxu0 %vm247_vm1, %v15193_v39 }
 0x693   :  { %v15199_v42 = vadd.f32 %v12236_v36, %v891_v41 }
 0x695   :  { %13589 = vmatmul.mubr.msk.f32.vlgmr.msra.gmra.mxu1 %vm247_vm1, %v15199_v42  ;;  %13600 = vmatmul.mubr.msk.f32.vlgmr.msra.gmra.mxu0 %vm247_vm1, %v15199_v42 }
 0x696   :  { %13603 = vmatpush3.msra.mxu1 %v1081_v24  ;;  %13610 = vmatprep.mubr.msk.f32.mxu1 %vm247_vm1, %v15193_v39 }
 0x697   :  { %13604 = vmatprep.subr.mxu1 %v1080_v43 }
 0x698   :  { %13605 = vmatpush3.msra.mxu1 %v1080_v43 }
 0x699   :  { %13606 = vmatprep.subr.mxu1 %v1079_v44 }
 0x69a   :  { %13607 = vmatpush3.msra.mxu1 %v1079_v44 }
 0x69b   :  { %13608 = vmatprep.subr.mxu1 %v1078_v45 }
 0x69c   :  { %13609 = vmatpush3.msra.mxu1 %v1078_v45 }
 0x69d   :  { %13611 = vmatmul.mubr.msk.f32.vlgmr.msra.gmra.mxu1 %vm247_vm1, %v15199_v42 }
 0x755   :  { %v13590_v47 = vpop.f32.mrf.mxu1  ;;  %v13601_v48 = vpop.f32.mrf.mxu0 }
 0x756   :  { %v1075_v49 = vadd.f32 %v13601_v48, %v12240_v46  ;;  %v989_v60 = vadd.f32 %v13590_v47, %v12237_v50  ;;  %v12262_v47 = vld [vmem:[%s15163_s13 + $0x28] sm:$0xff]  ;;  %v12261_v48 = vld [vmem:[%s15163_s13 + $0x20] sm:$0xff] }
 0x757   :  { %v983_v51 = vpop.f32.mrf.mxu1  ;;  %v1069_v53 = vpop.f32.mrf.mxu0 }
 0x758   :  { %v984_v54 = vadd.f32 %v12237_v50, %v983_v51  ;;  %v1070_v56 = vadd.f32 %v12240_v46, %v1069_v53  ;;  %13613 = vmatprep.subr.msk.mxu0 %vm423_vm2, %v1075_v49  ;;  %v12263_v46 = vld [vmem:[%s15163_s13 + $0x30] sm:$0xff]  ;;  %v12266_v53 = vld [vmem:[%s15215_s4 + $0x1] ss:$0 sm:$0xff] }
 0x759   :  { %13614 = vmatpush3.xpose.msk.msra.mxu0 %vm423_vm2, %v1075_v49 }
 0x75a   :  { %13615 = vmatprep.subr.msk.mxu0 %vm423_vm2, %v1070_v56  ;;  %13617 = vmatprep.mubr.msk.f32.mxu0 %vm423_vm2, %v984_v54 }
 0x75d   :  { %v13612_v59 = vpop.f32.mrf.mxu1  ;;  %13616 = vmatpush3.xpose.msk.msra.mxu0 %vm423_vm2, %v1070_v56 }
 0x75e   :  { %v1161_v61 = vadd.f32 %v13612_v59, %v12243_v57  ;;  %13627 = vmatprep.subr.mxu0 %v12256_v58 }
 0x75f   :  { %v1155_v62 = vpop.f32.mrf.mxu1 }
 0x760   :  { %v1156_v1 = vadd.f32 %v12243_v57, %v1155_v62  ;;  %13620 = vmatprep.subr.msk.mxu1 %vm1283_vm5, %v1161_v61  ;;  %13618 = vmatmul.mubr.msk.f32.vlgmr.msra.gmra.mxu0 %vm423_vm2, %v989_v60 }
 0x761   :  { %13621 = vmatpush3.msk.msra.mxu1 %vm1283_vm5, %v1161_v61  ;;  %13628 = vmatpush3.msra.mxu0 %v12256_v58 }
 0x762   :  { %13622 = vmatprep.subr.mxu1 %v1156_v1  ;;  %13635 = vmatprep.mubr.msk.f32.mxu0 %vm247_vm1, %v15193_v39 }
 0x763   :  { %13623 = vmatpush3.msra.mxu1 %v1156_v1  ;;  %13629 = vmatprep.subr.mxu0 %v12255_v2 }
 0x764   :  { %13630 = vmatpush3.msra.mxu0 %v12255_v2  ;;  %13638 = vmatprep.subr.mxu1 %v12264_v37 }
 0x765   :  { %13631 = vmatprep.subr.mxu0 %v12254_v4 }
 0x766   :  { %13632 = vmatpush3.msra.mxu0 %v12254_v4 }
 0x767   :  { %13633 = vmatprep.subr.mxu0 %v12253_v5 }
 0x768   :  { %13634 = vmatpush3.msra.mxu0 %v12253_v5 }
 0x769   :  { %13636 = vmatmul.mubr.msk.f32.vlgmr.msra.gmra.mxu0 %vm247_vm1, %v15199_v42  ;;  %13649 = vmatprep.subr.mxu0 %v12272_v6 }
 0x76a   :  { %13650 = vmatpush3.msra.mxu0 %v12272_v6  ;;  %13657 = vmatprep.mubr.msk.f32.mxu0 %vm247_vm1, %v15193_v39 }
 0x76b   :  { %13651 = vmatprep.subr.mxu0 %v12271_v7 }
 0x76c   :  { %13652 = vmatpush3.msra.mxu0 %v12271_v7 }
 0x76d   :  { %13653 = vmatprep.subr.mxu0 %v12270_v8 }
 0x76e   :  { %13654 = vmatpush3.msra.mxu0 %v12270_v8 }
 0x76f   :  { %13655 = vmatprep.subr.mxu0 %v12269_v9 }
 0x770   :  { %13656 = vmatpush3.msra.mxu0 %v12269_v9 }
 0x771   :  { %13658 = vmatmul.mubr.msk.f32.vlgmr.msra.gmra.mxu0 %vm247_vm1, %v15199_v42 }
 0x820   :  { %v13619_v10 = vpop.f32.mrf.mxu0 }
 0x821   :  { %v1252_v13 = vmul.f32 0.35355338, %v13619_v10 }
 0x822   :  { %v1242_v11 = vpop.f32.mrf.mxu0 }
 0x823   :  { %v1251_v12 = vmul.f32 0.35355338, %v1242_v11  ;;  %v1258_v17 = vsel %vm1257_vm7, %v1252_v13, -inf }
 0x825   :  { %v1254_v14 = vsel %vm1253_vm6, %v1251_v12, -inf }
 0x826   :  { %1255 = vmax.xlane.f32.xlu0 %v1254_v14  ;;  %v1362_v14 = vld [vmem:[%s15289_s26] sm:$0xff] }
 0x829   :  { %v13637_v16 = vpop.f32.mrf.mxu0 }
 0x82a   :  { %v15257_v18 = vadd.f32 %v13637_v16, %v12258_v15  ;;  %1259 = vmax.xlane.f32.xlu0 %v1258_v17 }
 0x82b   :  { %v1442_v19 = vpop.f32.mrf.mxu0 }
 0x82c   :  { %v1443_v49 = vadd.f32 %v12258_v15, %v1442_v19  ;;  %v12284_v15 = vld [vmem:[%s15289_s26 + $0x8] sm:$0xff] }
 0x831   :  { %v13659_v22 = vpop.f32.mrf.mxu0 }
 0x832   :  { %v1624_v23 = vadd.f32 %v13659_v22, %v12274_v20 }
 0x833   :  { %v1618_v24 = vpop.f32.mrf.mxu0 }
 0x834   :  { %v1619_v26 = vadd.f32 %v12274_v20, %v1618_v24  ;;  %13667 = vmatprep.subr.msk.mxu0 %vm1283_vm5, %v1624_v23  ;;  %v12299_v24 = vld [vmem:[%s15163_s13 + $0x50] sm:$0xff] }
 0x835   :  { %13668 = vmatpush3.msk.msra.mxu0 %vm1283_vm5, %v1624_v23  ;;  %v12300_v23 = vld [vmem:[%s15163_s13 + $0x58] sm:$0xff] }
 0x836   :  { %13669 = vmatprep.subr.mxu0 %v1619_v26 }
 0x837   :  { %13670 = vmatpush3.msra.mxu0 %v1619_v26  ;;  %v12298_v26 = vld [vmem:[%s15163_s13 + $0x48] sm:$0xff] }
 0x838   :  { %13679 = vmatprep.subr.mxu0 %v1362_v14 }
 0x8af   :  { %v1256_v27 = vpop.xlane.xlu0 %1255 }
 0x8b0   :  { %v1261_v28 = vsub.f32 %v1251_v12, %v1256_v27  ;;  %v12297_v27 = vld [vmem:[%s15163_s13 + $0x40] sm:$0xff] }
 0x8b2   :  { %v1263_v29 = vmul.f32 1.442695, %v1261_v28  ;;  %v12292_v28 = vld [vmem:[%s15158_s8 + $0x58] sm:$0xff] }
 0x8b3   :  { %v1260_v30 = vpop.xlane.xlu0 %1259 }
 0x8b4   :  { %14773 = vpow2.f32 %v1263_v29  ;;  %v1262_v31 = vsub.f32 %v1252_v13, %v1260_v30 }
 0x8b6   :  { %v1265_v32 = vmul.f32 1.442695, %v1262_v31  ;;  %v12291_v31 = vld [vmem:[%s15158_s8 + $0x50] sm:$0xff] }
 0x8b8   :  { %14775 = vpow2.f32 %v1265_v32  ;;  %v12290_v32 = vld [vmem:[%s15158_s8 + $0x48] sm:$0xff] }
 0x8c1   :  { %v14774_v33 = vpop.eup %14773 }
 0x8c2   :  { %v1267_v34 = vsel %vm1253_vm6, %v14774_v33, 0.0 }
 0x8c3   :  { %1268 = vadd.xlane.f32.xlu0 %v1267_v34  ;;  %v12289_v34 = vld [vmem:[%s15158_s8 + $0x40] sm:$0xff] }
 0x8c5   :  { %v14776_v35 = vpop.eup %14775 }
 0x8c6   :  { %v1270_v36 = vsel %vm1257_vm7, %v14776_v35, 0.0 }
 0x8c7   :  { %1271 = vadd.xlane.f32.xlu0 %v1270_v36 }
 0x94c   :  { %v1269_v38 = vpop.xlane.xlu0 %1268 }
 0x94d   :  { %14777 = vrcp.f32 %v1269_v38  ;;  %v12307_v38 = vld [vmem:[%s15171_s19 + $0x50] sm:$0xff] }
 0x950   :  { %v1272_v40 = vpop.xlane.xlu0 %1271 }
 0x951   :  { %14779 = vrcp.f32 %v1272_v40 }
 0x95a   :  { %v14778_v41 = vpop.eup %14777 }
 0x95b   :  { %v1275_v43 = vmul.f32 %v14778_v41, %v14774_v33 }
 0x95d   :  { %13624 = vmatprep.mubr.msk.f32.mxu1 %vm1253_vm6, %v1275_v43  ;;  %v12306_v43 = vld [vmem:[%s15171_s19 + $0x48] sm:$0xff] }
 0x95e   :  { %v14780_v44 = vpop.eup %14779 }
 0x95f   :  { %v1276_v45 = vmul.f32 %v14780_v44, %v14776_v35  ;;  %v12308_v35 = vld [vmem:[%s15171_s19 + $0x58] sm:$0xff] }
 0x961   :  { %13625 = vmatmul.mubr.msk.f32.vlgmr.msra.gmra.mxu1 %vm1253_vm6, %v1276_v45 }
 0x962   :  { %13639 = vmatpush3.msra.mxu1 %v12264_v37  ;;  %13646 = vmatprep.mubr.msk.f32.mxu1 %vm247_vm1, %v15193_v39  ;;  %v12302_v37 = vld [vmem:[%s15215_s4 + $0x2] ss:$0 sm:$0xff] }
 0x963   :  { %13640 = vmatprep.subr.mxu1 %v12263_v46 }
 0x964   :  { %13641 = vmatpush3.msra.mxu1 %v12263_v46  ;;  %v12305_v46 = vld [vmem:[%s15171_s19 + $0x40] sm:$0xff] }
 0x965   :  { %13642 = vmatprep.subr.mxu1 %v12262_v47 }
 0x966   :  { %13643 = vmatpush3.msra.mxu1 %v12262_v47 }
 0x967   :  { %13644 = vmatprep.subr.mxu1 %v12261_v48 }
 0x968   :  { %13645 = vmatpush3.msra.mxu1 %v12261_v48 }
 0x969   :  { %13647 = vmatmul.mubr.msk.f32.vlgmr.msra.gmra.mxu1 %vm247_vm1, %v15199_v42 }
 0x96a   :  { %13664 = vmatprep.mubr.msk.f32.mxu1 %vm423_vm2, %v1443_v49 }
 0xa21   :  { %v13626_v50 = vpop.f32.mrf.mxu1 }
 0xa23   :  { %v1353_v51 = vpop.f32.mrf.mxu1 }
 0xa29   :  { %v13648_v54 = vpop.f32.mrf.mxu1 }
 0xa2a   :  { %v1536_v56 = vadd.f32 %v13648_v54, %v12266_v53 }
 0xa2b   :  { %v1530_v57 = vpop.f32.mrf.mxu1 }
 0xa2c   :  { %v1531_v58 = vadd.f32 %v12266_v53, %v1530_v57  ;;  %13660 = vmatprep.subr.msk.mxu1 %vm423_vm2, %v1536_v56 }
 0xa2d   :  { %13661 = vmatpush3.xpose.msk.msra.mxu1 %vm423_vm2, %v1536_v56  ;;  %v12310_v56 = vld [vmem:[%s15226_s18 + $0x2] ss:$0 sm:$0xff] }
 0xa2e   :  { %13662 = vmatprep.subr.msk.mxu1 %vm423_vm2, %v1531_v58 }
 0xa31   :  { %13663 = vmatpush3.xpose.msk.msra.mxu1 %vm423_vm2, %v1531_v58 }
 0xa32   :  { %13674 = vmatprep.subr.mxu1 %v12284_v15 }
 0xa34   :  { %13665 = vmatmul.mubr.msk.f32.vlgmr.msra.gmra.mxu1 %vm423_vm2, %v15257_v18 }
 0xa35   :  { %13675 = vmatpush3.msra.mxu1 %v12284_v15 }
 0xa36   :  { %13684 = vmatprep.subr.mxu1 %v12292_v28 }
 0xaf4   :  { %v13666_v59 = vpop.f32.mrf.mxu1 }
 0xaf5   :  { %v1715_v60 = vmul.f32 0.35355338, %v13666_v59 }
 0xaf6   :  { %v1705_v61 = vpop.f32.mrf.mxu1 }
 0xaf7   :  { %v1714_v62 = vmul.f32 0.35355338, %v1705_v61  ;;  %v1719_v1 = vsel %vm1257_vm7, %v1715_v60, -inf }
 0xaf8   :  { %1720 = vmax.xlane.f32.xlu0 %v1719_v1 }
 0xaf9   :  { %v1716_v2 = vsel %vm1253_vm6, %v1714_v62, -inf }
 0xafa   :  { %1717 = vmax.xlane.f32.xlu1 %v1716_v2 }
 0xb81   :  { %v1721_v4 = vpop.xlane.xlu0 %1720 }
 0xb82   :  { %v1723_v5 = vsub.f32 %v1715_v60, %v1721_v4 }
 0xb83   :  { %v1718_v6 = vpop.xlane.xlu1 %1717 }
 0xb84   :  { %v1722_v7 = vsub.f32 %v1714_v62, %v1718_v6  ;;  %v1726_v8 = vmul.f32 1.442695, %v1723_v5 }
 0xb86   :  { %v1724_v9 = vmul.f32 1.442695, %v1722_v7 }
 0xb88   :  { %14781 = vpow2.f32 %v1724_v9 }
 0xb89   :  { %14783 = vpow2.f32 %v1726_v8 }
 0xb95   :  { %v14782_v10 = vpop.eup %14781 }
 0xb96   :  { %v1728_v11 = vsel %vm1253_vm6, %v14782_v10, 0.0  ;;  %v14784_v12 = vpop.eup %14783 }
 0xb97   :  { %1729 = vadd.xlane.f32.xlu0 %v1728_v11  ;;  %v1731_v13 = vsel %vm1257_vm7, %v14784_v12, 0.0 }
 0xb9b   :  { %1732 = vadd.xlane.f32.xlu0 %v1731_v13 }
 0xc20   :  { %v1730_v16 = vpop.xlane.xlu0 %1729 }
 0xc21   :  { %14785 = vrcp.f32 %v1730_v16  ;;  %v12326_v16 = vld [vmem:[%s15158_s8 + $0x78] sm:$0xff] }
 0xc24   :  { %v1733_v17 = vpop.xlane.xlu0 %1732 }
 0xc25   :  { %14787 = vrcp.f32 %v1733_v17  ;;  %v12320_v17 = vld [vmem:[%s15289_s26 + $0x10] sm:$0xff] }
 0xc2e   :  { %v14786_v18 = vpop.eup %14785 }
 0xc2f   :  { %v1736_v19 = vmul.f32 %v14786_v18, %v14782_v10 }
 0xc31   :  { %13671 = vmatprep.mubr.msk.f32.mxu0 %vm1253_vm6, %v1736_v19 }
 0xc32   :  { %v14788_v20 = vpop.eup %14787 }
 0xc33   :  { %v1737_v22 = vmul.f32 %v14788_v20, %v14784_v12 }
 0xc35   :  { %13672 = vmatmul.mubr.msk.f32.vlgmr.msra.gmra.mxu0 %vm1253_vm6, %v1737_v22 }
 0xc36   :  { %13681 = vmatprep.mubr.msk.f32.mxu0 %vm423_vm2, %v1353_v51  ;;  %13680 = vmatpush3.msra.mxu0 %v1362_v14 }
 0xc37   :  { %13695 = vmatprep.subr.mxu0 %v12300_v23 }
 0xc39   :  { %13682 = vmatmul.mubr.msk.f32.vlgmr.msra.gmra.mxu0 %vm423_vm2, %v13626_v50  ;;  %v12294_v50 = vld [vmem:[%s15220_s11 + $0x2] ss:$0 sm:$0xff] }
 0xc3a   :  { %13696 = vmatpush3.msra.mxu0 %v12300_v23  ;;  %13703 = vmatprep.mubr.msk.f32.mxu0 %vm247_vm1, %v15193_v39 }
 0xc3b   :  { %13697 = vmatprep.subr.mxu0 %v12299_v24 }
 0xc3c   :  { %13698 = vmatpush3.msra.mxu0 %v12299_v24 }
 0xc3d   :  { %13699 = vmatprep.subr.mxu0 %v12298_v26 }
 0xc3e   :  { %13700 = vmatpush3.msra.mxu0 %v12298_v26  ;;  %v12325_v26 = vld [vmem:[%s15158_s8 + $0x70] sm:$0xff] }
 0xc3f   :  { %13701 = vmatprep.subr.mxu0 %v12297_v27 }
 0xc40   :  { %13702 = vmatpush3.msra.mxu0 %v12297_v27  ;;  %v12324_v27 = vld [vmem:[%s15158_s8 + $0x68] sm:$0xff] }
 0xc41   :  { %13704 = vmatmul.mubr.msk.f32.vlgmr.msra.gmra.mxu0 %vm247_vm1, %v15199_v42 }
 0xcf5   :  { %v13673_v29 = vpop.f32.mrf.mxu0 }
 0xcf7   :  { %v1813_v30 = vpop.f32.mrf.mxu0 }
 0xcf8   :  { %13676 = vmatprep.mubr.msk.f32.mxu1 %vm423_vm2, %v1813_v30  ;;  %v12341_v30 = vld [vmem:[%s15171_s19 + $0x70] sm:$0xff] }
 0xcf9   :  { %13677 = vmatmul.mubr.msk.f32.vlgmr.msra.gmra.mxu1 %vm423_vm2, %v13673_v29  ;;  %v15312_v33 = vpop.f32.mrf.mxu0  ;;  %v12342_v29 = vld [vmem:[%s15171_s19 + $0x78] sm:$0xff] }
 0xcfa   :  { %13685 = vmatpush3.msra.mxu1 %v12292_v28  ;;  %13692 = vmatprep.mubr.msk.f32.mxu1 %vm247_vm1, %v15193_v39  ;;  %v12323_v28 = vld [vmem:[%s15158_s8 + $0x60] sm:$0xff] }
 0xcfb   :  { %13686 = vmatprep.subr.mxu1 %v12291_v31  ;;  %v15316_v36 = vpop.f32.mrf.mxu0 }
 0xcfc   :  { %13687 = vmatpush3.msra.mxu1 %v12291_v31  ;;  %v12340_v31 = vld [vmem:[%s15171_s19 + $0x68] sm:$0xff] }
 0xcfd   :  { %13688 = vmatprep.subr.mxu1 %v12290_v32 }
 0xcfe   :  { %13689 = vmatpush3.msra.mxu1 %v12290_v32  ;;  %v12339_v32 = vld [vmem:[%s15171_s19 + $0x60] sm:$0xff] }
 0xcff   :  { %13690 = vmatprep.subr.mxu1 %v12289_v34 }
 0xd00   :  { %13691 = vmatpush3.msra.mxu1 %v12289_v34  ;;  %v12334_v34 = vld [vmem:[%s15163_s13 + $0x78] sm:$0xff] }
 0xd01   :  { %13693 = vmatmul.mubr.msk.f32.vlgmr.msra.gmra.mxu1 %vm247_vm1, %v15199_v42  ;;  %v13705_v40 = vpop.f32.mrf.mxu0  ;;  %13706 = vmatprep.subr.mxu1 %v12308_v35 }
 0xd02   :  { %v2159_v41 = vadd.f32 %v13705_v40, %v12302_v37  ;;  %13707 = vmatpush3.msra.mxu1 %v12308_v35  ;;  %13714 = vmatprep.mubr.msk.f32.mxu1 %vm247_vm1, %v15193_v39  ;;  %v12332_v40 = vld [vmem:[%s15163_s13 + $0x68] sm:$0xff] }
 0xd03   :  { %v2153_v44 = vpop.f32.mrf.mxu0  ;;  %13708 = vmatprep.subr.mxu1 %v12307_v38 }
 0xd04   :  { %v2154_v45 = vadd.f32 %v12302_v37, %v2153_v44  ;;  %13709 = vmatpush3.msra.mxu1 %v12307_v38  ;;  %13717 = vmatprep.subr.msk.mxu0 %vm423_vm2, %v2159_v41  ;;  %v12333_v38 = vld [vmem:[%s15163_s13 + $0x70] sm:$0xff] }
 0xd05   :  { %13710 = vmatprep.subr.mxu1 %v12306_v43  ;;  %13718 = vmatpush3.xpose.msk.msra.mxu0 %vm423_vm2, %v2159_v41  ;;  %v12328_v41 = vld [vmem:[%s15220_s11 + $0x3] ss:$0 sm:$0xff] }
 0xd06   :  { %13711 = vmatpush3.msra.mxu1 %v12306_v43  ;;  %13719 = vmatprep.subr.msk.mxu0 %vm423_vm2, %v2154_v45  ;;  %v12331_v43 = vld [vmem:[%s15163_s13 + $0x60] sm:$0xff] }
 0xd07   :  { %13712 = vmatprep.subr.mxu1 %v12305_v46 }
 0xd08   :  { %13713 = vmatpush3.msra.mxu1 %v12305_v46 }
 0xd09   :  { %13715 = vmatmul.mubr.msk.f32.vlgmr.msra.gmra.mxu1 %vm247_vm1, %v15199_v42  ;;  %13720 = vmatpush3.xpose.msk.msra.mxu0 %vm423_vm2, %v2154_v45 }
 0xd0a   :  { %13731 = vmatprep.subr.mxu0 %v12320_v17 }
 0xdb9   :  { %v15332_v47 = vpop.f32.mrf.mxu1 }
 0xdbb   :  { %v15334_v48 = vpop.f32.mrf.mxu1 }
 0xdc1   :  { %v13694_v49 = vpop.f32.mrf.mxu1 }
 0xdc2   :  { %v2071_v54 = vadd.f32 %v13694_v49, %v12294_v50 }
 0xdc3   :  { %v2065_v51 = vpop.f32.mrf.mxu1 }
 0xdc4   :  { %v2066_v53 = vadd.f32 %v12294_v50, %v2065_v51 }
 0xdc6   :  { %13721 = vmatprep.mubr.msk.f32.mxu0 %vm423_vm2, %v2066_v53 }
 0xdc7   :  { %13722 = vmatmul.mubr.msk.f32.vlgmr.msra.gmra.mxu0 %vm423_vm2, %v2071_v54 }
 0xdc8   :  { %13732 = vmatpush3.msra.mxu0 %v12320_v17  ;;  %v12354_v17 = vld [vmem:[%s15289_s26 + $0x18] sm:$0xff] }
 0xdc9   :  { %v13716_v57 = vpop.f32.mrf.mxu1  ;;  %13747 = vmatprep.subr.mxu0 %v12334_v34 }
 0xdca   :  { %v2247_v58 = vadd.f32 %v13716_v57, %v12310_v56 }
 0xdcb   :  { %v2241_v59 = vpop.f32.mrf.mxu1 }
 0xdcc   :  { %v2242_v60 = vadd.f32 %v12310_v56, %v2241_v59  ;;  %13724 = vmatprep.subr.msk.mxu1 %vm1283_vm5, %v2247_v58  ;;  %v1983_v56 = vadd.f32 %v15312_v33, %v15332_v47 }
 0xdcd   :  { %13725 = vmatpush3.msk.msra.mxu1 %vm1283_vm5, %v2247_v58 }
 0xdce   :  { %13726 = vmatprep.subr.mxu1 %v2242_v60 }
 0xdcf   :  { %13727 = vmatpush3.msra.mxu1 %v2242_v60 }
 0xdd0   :  { %13736 = vmatprep.subr.mxu1 %v12326_v16 }
 0xe87   :  { %v13723_v61 = vpop.f32.mrf.mxu0 }
 0xe88   :  { %v2338_v2 = vmul.f32 0.35355338, %v13723_v61  ;;  %v12336_v61 = vld [vmem:[%s15215_s4 + $0x3] ss:$0 sm:$0xff] }
 0xe89   :  { %v2328_v62 = vpop.f32.mrf.mxu0 }
 0xe8a   :  { %v2337_v1 = vmul.f32 0.35355338, %v2328_v62  ;;  %v2342_v5 = vsel %vm1257_vm7, %v2338_v2, -inf }
 0xe8c   :  { %v2339_v4 = vsel %vm1253_vm6, %v2337_v1, -inf }
 0xe8d   :  { %2340 = vmax.xlane.f32.xlu0 %v2339_v4 }
 0xe91   :  { %2343 = vmax.xlane.f32.xlu0 %v2342_v5 }
 0xf16   :  { %v2341_v6 = vpop.xlane.xlu0 %2340 }
 0xf17   :  { %v2345_v7 = vsub.f32 %v2337_v1, %v2341_v6 }
 0xf19   :  { %v2347_v8 = vmul.f32 1.442695, %v2345_v7 }
 0xf1a   :  { %v2344_v9 = vpop.xlane.xlu0 %2343 }
 0xf1b   :  { %14789 = vpow2.f32 %v2347_v8  ;;  %v2346_v10 = vsub.f32 %v2338_v2, %v2344_v9 }
 0xf1d   :  { %v2349_v11 = vmul.f32 1.442695, %v2346_v10 }
 0xf1f   :  { %14791 = vpow2.f32 %v2349_v11 }
 0xf28   :  { %v14790_v12 = vpop.eup %14789 }
 0xf29   :  { %v2351_v13 = vsel %vm1253_vm6, %v14790_v12, 0.0 }
 0xf2a   :  { %2352 = vadd.xlane.f32.xlu0 %v2351_v13 }
 0xf2c   :  { %v14792_v14 = vpop.eup %14791 }
 0xf2d   :  { %v2354_v15 = vsel %vm1257_vm7, %v14792_v14, 0.0 }
 0xf2e   :  { %2355 = vadd.xlane.f32.xlu0 %v2354_v15 }
 0xfb3   :  { %v2353_v18 = vpop.xlane.xlu0 %2352 }
 0xfb4   :  { %14793 = vrcp.f32 %v2353_v18 }
 0xfb7   :  { %v2356_v19 = vpop.xlane.xlu0 %2355 }
 0xfb8   :  { %14795 = vrcp.f32 %v2356_v19 }
 0xfc1   :  { %v14794_v20 = vpop.eup %14793 }
 0xfc2   :  { %v2359_v22 = vmul.f32 %v14794_v20, %v14790_v12 }
 0xfc4   :  { %13728 = vmatprep.mubr.msk.f32.mxu1 %vm1253_vm6, %v2359_v22 }
 0xfc5   :  { %v14796_v23 = vpop.eup %14795 }
 0xfc6   :  { %v2360_v24 = vmul.f32 %v14796_v23, %v14792_v14 }
 0xfc8   :  { %13729 = vmatmul.mubr.msk.f32.vlgmr.msra.gmra.mxu1 %vm1253_vm6, %v2360_v24 }
 0xfc9   :  { %13737 = vmatpush3.msra.mxu1 %v12326_v16  ;;  %13744 = vmatprep.mubr.msk.f32.mxu1 %vm247_vm1, %v15193_v39 }
 0xfca   :  { %13738 = vmatprep.subr.mxu1 %v12325_v26 }
 0xfcb   :  { %13739 = vmatpush3.msra.mxu1 %v12325_v26 }
 0xfcc   :  { %13740 = vmatprep.subr.mxu1 %v12324_v27 }
 0xfcd   :  { %13741 = vmatpush3.msra.mxu1 %v12324_v27 }
 0xfce   :  { %13742 = vmatprep.subr.mxu1 %v12323_v28 }
 0xfcf   :  { %13743 = vmatpush3.msra.mxu1 %v12323_v28 }
 0xfd0   :  { %13745 = vmatmul.mubr.msk.f32.vlgmr.msra.gmra.mxu1 %vm247_vm1, %v15199_v42  ;;  %13758 = vmatprep.subr.mxu1 %v12342_v29 }
 0xfd1   :  { %13759 = vmatpush3.msra.mxu1 %v12342_v29  ;;  %13766 = vmatprep.mubr.msk.f32.mxu1 %vm247_vm1, %v15193_v39 }
 0xfd2   :  { %13760 = vmatprep.subr.mxu1 %v12341_v30 }
 0xfd3   :  { %13761 = vmatpush3.msra.mxu1 %v12341_v30  ;;  %v12357_v30 = vld [vmem:[%s15402_s2] ss:$0 sm:$0xff] }
 0xfd4   :  { %13762 = vmatprep.subr.mxu1 %v12340_v31 }
 0xfd5   :  { %13763 = vmatpush3.msra.mxu1 %v12340_v31 }
 0xfd6   :  { %13764 = vmatprep.subr.mxu1 %v12339_v32 }
 0xfd7   :  { %13765 = vmatpush3.msra.mxu1 %v12339_v32 }
 0xfd8   :  { %13767 = vmatmul.mubr.msk.f32.vlgmr.msra.gmra.mxu1 %vm247_vm1, %v15199_v42 }
0x1088   :  { %v13730_v35 = vpop.f32.mrf.mxu1 }
0x108a   :  { %v2436_v37 = vpop.f32.mrf.mxu1 }
0x108b   :  { %13733 = vmatprep.mubr.msk.f32.mxu0 %vm423_vm2, %v2436_v37 }
0x108c   :  { %13734 = vmatmul.mubr.msk.f32.vlgmr.msra.gmra.mxu0 %vm423_vm2, %v13730_v35 }
0x108d   :  { %13748 = vmatpush3.msra.mxu0 %v12334_v34  ;;  %13755 = vmatprep.mubr.msk.f32.mxu0 %vm247_vm1, %v15193_v39  ;;  %v12344_v39 = vld [vmem:[%s15226_s18 + $0x3] ss:$0 sm:$0xff] }
0x108e   :  { %13749 = vmatprep.subr.mxu0 %v12333_v38 }
0x108f   :  { %13750 = vmatpush3.msra.mxu0 %v12333_v38 }
0x1090   :  { %v13746_v44 = vpop.f32.mrf.mxu1  ;;  %13751 = vmatprep.subr.mxu0 %v12332_v40 }
0x1091   :  { %v2615_v45 = vadd.f32 %v13746_v44, %v12328_v41  ;;  %13752 = vmatpush3.msra.mxu0 %v12332_v40 }
0x1092   :  { %v2609_v46 = vpop.f32.mrf.mxu1  ;;  %13753 = vmatprep.subr.mxu0 %v12331_v43 }
0x1093   :  { %v2610_v49 = vadd.f32 %v12328_v41, %v2609_v46  ;;  %13754 = vmatpush3.msra.mxu0 %v12331_v43 }
0x1094   :  { %13756 = vmatmul.mubr.msk.f32.vlgmr.msra.gmra.mxu0 %vm247_vm1, %v15199_v42  ;;  %v1978_v42 = vadd.f32 %v15316_v36, %v15334_v48 }
0x1095   :  { %13773 = vmatprep.mubr.msk.f32.mxu0 %vm423_vm2, %v2610_v49 }
0x1098   :  { %v13768_v50 = vpop.f32.mrf.mxu1 }
0x1099   :  { %v2791_v51 = vadd.f32 %v13768_v50, %v12344_v39 }
0x109a   :  { %v2785_v53 = vpop.f32.mrf.mxu1 }
0x109b   :  { %v2786_v54 = vadd.f32 %v12344_v39, %v2785_v53  ;;  %13776 = vmatprep.subr.msk.mxu1 %vm1283_vm5, %v2791_v51  ;;  %v3132_v53 = vld [vmem:[%s15422_s9 + $0x18] sm:$0xff] }
0x109c   :  { %13777 = vmatpush3.msk.msra.mxu1 %vm1283_vm5, %v2791_v51 }
0x109d   :  { %13778 = vmatprep.subr.mxu1 %v2786_v54 }
0x109e   :  { %13779 = vmatpush3.msra.mxu1 %v2786_v54  ;;  %v3131_v54 = vld [vmem:[%s15422_s9 + $0x10] sm:$0xff] }
0x109f   :  { %13788 = vmatprep.subr.mxu1 %v3132_v53 }
0x114c   :  { %v13735_v57 = vpop.f32.mrf.mxu0 }
0x114d   :  { %v2529_v58 = vadd.f32 %v13735_v57, %v1983_v56  ;;  %v3130_v56 = vld [vmem:[%s15422_s9 + $0x8] sm:$0xff]  ;;  %v3129_v57 = vld [vmem:[%s15422_s9] sm:$0xff] }
0x114e   :  { %v2519_v59 = vpop.f32.mrf.mxu0 }
0x114f   :  { %v2528_v60 = vadd.f32 %v2519_v59, %v1978_v42 }
0x1154   :  { %v13757_v62 = vpop.f32.mrf.mxu0 }
0x1155   :  { %v2703_v1 = vadd.f32 %v13757_v62, %v12336_v61 }
0x1156   :  { %v2697_v2 = vpop.f32.mrf.mxu0 }
0x1157   :  { %v2698_v4 = vadd.f32 %v12336_v61, %v2697_v2  ;;  %13769 = vmatprep.subr.msk.mxu0 %vm423_vm2, %v2703_v1  ;;  %v12358_v2 = vld [vmem:[%s15431_s20] ss:$0 sm:$0xff] }
0x1158   :  { %13770 = vmatpush3.xpose.msk.msra.mxu0 %vm423_vm2, %v2703_v1 }
0x1159   :  { %13771 = vmatprep.subr.msk.mxu0 %vm423_vm2, %v2698_v4 }
0x115c   :  { %13772 = vmatpush3.xpose.msk.msra.mxu0 %vm423_vm2, %v2698_v4 }
0x115d   :  { %13783 = vmatprep.subr.mxu0 %v12354_v17 }
0x115f   :  { %13774 = vmatmul.mubr.msk.f32.vlgmr.msra.gmra.mxu0 %vm423_vm2, %v2615_v45 }
0x1160   :  { %13784 = vmatpush3.msra.mxu0 %v12354_v17 }
0x121f   :  { %v13775_v33 = vpop.f32.mrf.mxu0 }
0x1220   :  { %v2882_v48 = vmul.f32 0.35355338, %v13775_v33 }
0x1221   :  { %v2872_v36 = vpop.f32.mrf.mxu0 }
0x1222   :  { %v2881_v47 = vmul.f32 0.35355338, %v2872_v36  ;;  %v2886_v6 = vsel %vm1257_vm7, %v2882_v48, -inf }
0x1224   :  { %v2883_v5 = vsel %vm1253_vm6, %v2881_v47, -inf }
0x1225   :  { %2884 = vmax.xlane.f32.xlu0 %v2883_v5 }
0x1229   :  { %2887 = vmax.xlane.f32.xlu0 %v2886_v6 }
0x12ae   :  { %v2885_v7 = vpop.xlane.xlu0 %2884 }
0x12af   :  { %v2889_v8 = vsub.f32 %v2881_v47, %v2885_v7 }
0x12b1   :  { %v2891_v9 = vmul.f32 1.442695, %v2889_v8  ;;  %v3246_v8 = vld [vmem:[%s15445_s7 + $0x38] sm:$0xff] }
0x12b2   :  { %v2888_v10 = vpop.xlane.xlu0 %2887  ;;  %13799 = vmatprep.subr.mxu0 %v3246_v8 }
0x12b3   :  { %14797 = vpow2.f32 %v2891_v9  ;;  %v2890_v11 = vsub.f32 %v2882_v48, %v2888_v10  ;;  %v12359_v48 = vld [vmem:[%s15436_s28] ss:$0 sm:$0xff]  ;;  %v3245_v9 = vld [vmem:[%s15445_s7 + $0x30] sm:$0xff]  ;;  %v3244_v10 = vld [vmem:[%s15445_s7 + $0x28] sm:$0xff] }
0x12b5   :  { %v2893_v12 = vmul.f32 1.442695, %v2890_v11  ;;  %v3243_v11 = vld [vmem:[%s15445_s7 + $0x20] sm:$0xff] }
0x12b7   :  { %14799 = vpow2.f32 %v2893_v12  ;;  %v3242_v12 = vld [vmem:[%s15445_s7 + $0x18] sm:$0xff] }
0x12c0   :  { %v14798_v13 = vpop.eup %14797 }
0x12c1   :  { %v2895_v14 = vsel %vm1253_vm6, %v14798_v13, 0.0 }
0x12c2   :  { %2896 = vadd.xlane.f32.xlu1 %v2895_v14  ;;  %v3240_v14 = vld [vmem:[%s15445_s7 + $0x8] sm:$0xff] }
0x12c4   :  { %v14800_v15 = vpop.eup %14799 }
0x12c5   :  { %v2898_v16 = vsel %vm1257_vm7, %v14800_v15, 0.0 }
0x12c6   :  { %2899 = vadd.xlane.f32.xlu0 %v2898_v16  ;;  %v12360_v16 = vld [vmem:[%s15458_s22] ss:$0 sm:$0xff] }
0x134b   :  { %v2897_v18 = vpop.xlane.xlu1 %2896 }
0x134c   :  { %14801 = vrcp.f32 %v2897_v18 }
0x134f   :  { %v2900_v19 = vpop.xlane.xlu0 %2899 }
0x1350   :  { %14803 = vrcp.f32 %v2900_v19 }
0x1359   :  { %v14802_v20 = vpop.eup %14801 }
0x135a   :  { %v2903_v22 = vmul.f32 %v14802_v20, %v14798_v13  ;;  %v3241_v13 = vld [vmem:[%s15445_s7 + $0x10] sm:$0xff] }
0x135c   :  { %13780 = vmatprep.mubr.msk.f32.mxu1 %vm1253_vm6, %v2903_v22 }
0x135d   :  { %v14804_v23 = vpop.eup %14803 }
0x135e   :  { %v2904_v24 = vmul.f32 %v14804_v23, %v14800_v15  ;;  %v3239_v15 = vld [vmem:[%s15445_s7] sm:$0xff] }
0x1360   :  { %13781 = vmatmul.mubr.msk.f32.vlgmr.msra.gmra.mxu1 %vm1253_vm6, %v2904_v24 }
0x1361   :  { %13789 = vmatpush3.msra.mxu1 %v3132_v53 }
0x1362   :  { %13790 = vmatprep.subr.mxu1 %v3131_v54 }
0x1363   :  { %13791 = vmatpush3.msra.mxu1 %v3131_v54 }
0x1364   :  { %13792 = vmatprep.subr.mxu1 %v3130_v56 }
0x1365   :  { %13793 = vmatpush3.msra.mxu1 %v3130_v56 }
0x1366   :  { %13794 = vmatprep.subr.mxu1 %v3129_v57 }
0x1367   :  { %13795 = vmatpush3.msra.mxu1 %v3129_v57 }
0x1420   :  { %v13782_v26 = vpop.f32.mrf.mxu1 }
0x1422   :  { %v2980_v27 = vpop.f32.mrf.mxu1 }
0x1423   :  { %13785 = vmatprep.mubr.msk.f32.mxu0 %vm423_vm2, %v2980_v27 }
0x1424   :  { %13786 = vmatmul.mubr.msk.f32.vlgmr.msra.gmra.mxu0 %vm423_vm2, %v13782_v26 }
0x1425   :  { %13800 = vmatpush3.msra.mxu0 %v3246_v8 }
0x1426   :  { %13801 = vmatprep.subr.mxu0 %v3245_v9 }
0x1427   :  { %13802 = vmatpush3.msra.mxu0 %v3245_v9 }
0x1428   :  { %13803 = vmatprep.subr.mxu0 %v3244_v10 }
0x1429   :  { %13804 = vmatpush3.msra.mxu0 %v3244_v10 }
0x142a   :  { %13805 = vmatprep.subr.mxu0 %v3243_v11 }
0x142b   :  { %13806 = vmatpush3.msra.mxu0 %v3243_v11 }
0x142c   :  { %13807 = vmatprep.subr.mxu0 %v3242_v12 }
0x142d   :  { %13808 = vmatpush3.msra.mxu0 %v3242_v12 }
0x142e   :  { %13809 = vmatprep.subr.mxu0 %v3241_v13 }
0x142f   :  { %13810 = vmatpush3.msra.mxu0 %v3241_v13 }
0x1430   :  { %13811 = vmatprep.subr.mxu0 %v3240_v14 }
0x1431   :  { %13812 = vmatpush3.msra.mxu0 %v3240_v14 }
0x1432   :  { %13813 = vmatprep.subr.mxu0 %v3239_v15 }
0x1433   :  { %13814 = vmatpush3.msra.mxu0 %v3239_v15 }
0x14e4   :  { %v13787_v28 = vpop.f32.mrf.mxu0 }
0x14e5   :  { %v3073_v29 = vadd.f32 %v13787_v28, %v2529_v58 }
0x14e6   :  { %v3063_v31 = vpop.f32.mrf.mxu0 }
0x14e7   :  { %v3075_v32 = vadd.f32 %v3073_v29, %v15147_v3  ;;  %v3072_v34 = vadd.f32 %v3063_v31, %v2528_v60 }
0x14e9   :  { %v15406_v35 = vadd.f32 %v12357_v30, %v3075_v32  ;;  %v3074_v37 = vadd.f32 %v3072_v34, %v15142_v0 }
0x14eb   :  { %v15409_v38 = vadd.f32 %v12357_v30, %v3074_v37  ;;  %v3090_v40 = vsel %vm850_vm4, %v15406_v35, 0.0 }
0x14ec   :  { %3091 = vadd.xlane.f32.xlu0 %v3090_v40 }
0x14ed   :  { %v3087_v41 = vsel %vm247_vm1, %v15409_v38, 0.0 }
0x14ee   :  { %3088 = vadd.xlane.f32.xlu1 %v3087_v41 }
0x1575   :  { %v3092_v43 = vpop.xlane.xlu0 %3091 }
0x1576   :  { %v3094_v44 = vmul.f32 0.03125, %v3092_v43 }
0x1577   :  { %v3089_v45 = vpop.xlane.xlu1 %3088 }
0x1578   :  { %v3096_v3 = vsub.f32 %v15406_v35, %v3094_v44  ;;  %v3093_v46 = vmul.f32 0.03125, %v3089_v45 }
0x157a   :  { %v3095_v49 = vsub.f32 %v15409_v38, %v3093_v46  ;;  %v3098_v39 = vmul.f32 %v3096_v3, %v3096_v3 }
0x157c   :  { %v3102_v0 = vsel %vm850_vm4, %v3098_v39, 0.0  ;;  %v3097_v50 = vmul.f32 %v3095_v49, %v3095_v49 }
0x157d   :  { %3103 = vadd.xlane.f32.xlu0 %v3102_v0 }
0x157e   :  { %v3099_v51 = vsel %vm247_vm1, %v3097_v50, 0.0 }
0x157f   :  { %3100 = vadd.xlane.f32.xlu1 %v3099_v51 }
0x1606   :  { %v3104_v42 = vpop.xlane.xlu0 %3103 }
0x1607   :  { %v3106_v58 = vmul.f32 0.03125, %v3104_v42 }
0x1608   :  { %v3101_v59 = vpop.xlane.xlu1 %3100 }
0x1609   :  { %v3108_v60 = vadd.f32 1e-05, %v3106_v58  ;;  %v3105_v61 = vmul.f32 0.03125, %v3101_v59 }
0x160b   :  { %14805 = vrsqrt.f32 %v3108_v60  ;;  %v3107_v62 = vadd.f32 1e-05, %v3105_v61 }
0x160d   :  { %14807 = vrsqrt.f32 %v3107_v62 }
0x1618   :  { %v14806_v1 = vpop.eup %14805 }
0x1619   :  { %v3112_v4 = vmul.f32 %v14806_v1, %v3096_v3 }
0x161a   :  { %v14808_v33 = vpop.eup %14807 }
0x161b   :  { %v3111_v36 = vmul.f32 %v14808_v33, %v3095_v49  ;;  %v3120_v47 = vmul.f32 %v12358_v2, %v3112_v4  ;;  %v12365_v49 = vld [vmem:[%s15466_s3] ss:$0 sm:$0xff]  ;;  %v12389_v4 = vld [vmem:[%s15171_s19 + $0x98] sm:$0xff]  ;;  %v12372_v33 = vld [vmem:[%s15158_s8 + $0x90] sm:$0xff] }
0x161c   :  { %13840 = vmatprep.subr.mxu0 %v12389_v4 }
0x161d   :  { %v3119_v5 = vmul.f32 %v12358_v2, %v3111_v36  ;;  %v3128_v7 = vadd.f32 %v12359_v48, %v3120_v47  ;;  %v12373_v2 = vld [vmem:[%s15158_s8 + $0x98] sm:$0xff]  ;;  %v12388_v36 = vld [vmem:[%s15171_s19 + $0x90] sm:$0xff]  ;;  %v12371_v47 = vld [vmem:[%s15158_s8 + $0x88] sm:$0xff] }
0x161e   :  { %13818 = vmatprep.subr.mxu1 %v12373_v2 }
0x161f   :  { %v3127_v6 = vadd.f32 %v12359_v48, %v3119_v5  ;;  %v12387_v48 = vld [vmem:[%s15171_s19 + $0x88] sm:$0xff]  ;;  %v12370_v5 = vld [vmem:[%s15158_s8 + $0x80] sm:$0xff] }
0x1621   :  { %13796 = vmatprep.mubr.msk.f32.mxu1 %vm247_vm1, %v3127_v6  ;;  %v12386_v6 = vld [vmem:[%s15171_s19 + $0x80] sm:$0xff] }
0x1622   :  { %13797 = vmatmul.mubr.msk.f32.vlgmr.msra.gmra.mxu1 %vm247_vm1, %v3128_v7  ;;  %v12381_v7 = vld [vmem:[%s15163_s13 + $0x98] sm:$0xff] }
0x1623   :  { %13819 = vmatpush3.msra.mxu1 %v12373_v2 }
0x1624   :  { %13820 = vmatprep.subr.mxu1 %v12372_v33 }
0x1625   :  { %13821 = vmatpush3.msra.mxu1 %v12372_v33 }
0x1626   :  { %13822 = vmatprep.subr.mxu1 %v12371_v47 }
0x1627   :  { %13823 = vmatpush3.msra.mxu1 %v12371_v47 }
0x1628   :  { %13824 = vmatprep.subr.mxu1 %v12370_v5 }
0x1629   :  { %13825 = vmatpush3.msra.mxu1 %v12370_v5 }
0x162a   :  { %13829 = vmatprep.subr.mxu1 %v12381_v7 }
0x16e2   :  { %v13798_v17 = vpop.f32.mrf.mxu1 }
0x16e3   :  { %v3218_v18 = vadd.f32 %v13798_v17, %v12360_v16 }
0x16e4   :  { %v3212_v19 = vpop.f32.mrf.mxu1 }
0x16e5   :  { %v3222_v20 = vmul.f32 %v3218_v18, %v3218_v18  ;;  %v3213_v22 = vadd.f32 %v12360_v16, %v3212_v19  ;;  %v12368_v16 = vld [vmem:[%s15184_s24 + $0x1] ss:$0 sm:$0xff] }
0x16e7   :  { %v3224_v23 = vmul.f32 %v3222_v20, %v3218_v18  ;;  %v3221_v24 = vmul.f32 %v3213_v22, %v3213_v22  ;;  %v12369_v20 = vld [vmem:[%s15189_s30 + $0x1] ss:$0 sm:$0xff] }
0x16e9   :  { %v3226_v26 = vmul.f32 0.044715, %v3224_v23  ;;  %v3223_v27 = vmul.f32 %v3221_v24, %v3213_v22 }
0x16eb   :  { %v3228_v28 = vadd.f32 %v3226_v26, %v3218_v18  ;;  %v3225_v29 = vmul.f32 0.044715, %v3223_v27  ;;  %v12380_v26 = vld [vmem:[%s15163_s13 + $0x90] sm:$0xff]  ;;  %v12379_v27 = vld [vmem:[%s15163_s13 + $0x88] sm:$0xff] }
0x16ed   :  { %v3230_v30 = vmul.f32 0.7978846, %v3228_v28  ;;  %v3227_v31 = vadd.f32 %v3225_v29, %v3213_v22  ;;  %v12378_v28 = vld [vmem:[%s15163_s13 + $0x80] sm:$0xff] }
0x16ee   :  { %v12391_v29 = vld [vmem:[%s15226_s18 + $0x4] ss:$0 sm:$0xff] }
0x16ef   :  { %14809 = vtanh.f32 %v3230_v30  ;;  %v3229_v32 = vmul.f32 0.7978846, %v3227_v31 }
0x16f1   :  { %14811 = vtanh.f32 %v3229_v32 }
0x16fc   :  { %v14810_v34 = vpop.eup %14809 }
0x16fd   :  { %v3234_v37 = vadd.f32 1.0, %v14810_v34  ;;  %v12375_v34 = vld [vmem:[%s15220_s11 + $0x4] ss:$0 sm:$0xff] }
0x16fe   :  { %v14812_v40 = vpop.eup %14811 }
0x16ff   :  { %v3233_v41 = vadd.f32 1.0, %v14812_v40  ;;  %v3236_v43 = vmul.f32 0.5, %v3234_v37 }
0x1701   :  { %v3235_v44 = vmul.f32 0.5, %v3233_v41  ;;  %v3238_v3 = vmul.f32 %v3236_v43, %v3218_v18 }
0x1703   :  { %v3237_v45 = vmul.f32 %v3235_v44, %v3213_v22  ;;  %v12383_v44 = vld [vmem:[%s15215_s4 + $0x4] ss:$0 sm:$0xff] }
0x1705   :  { %13815 = vmatprep.mubr.msk.f32.mxu0 %vm3247_vm8, %v3237_v45 }
0x1706   :  { %13816 = vmatmul.mubr.msk.f32.vlgmr.msra.gmra.mxu0 %vm3247_vm8, %v3238_v3 }
0x1707   :  { %13841 = vmatpush3.msra.mxu0 %v12389_v4 }
0x1708   :  { %13842 = vmatprep.subr.mxu0 %v12388_v36 }
0x1709   :  { %13843 = vmatpush3.msra.mxu0 %v12388_v36 }
0x170a   :  { %13844 = vmatprep.subr.mxu0 %v12387_v48 }
0x170b   :  { %13845 = vmatpush3.msra.mxu0 %v12387_v48 }
0x170c   :  { %13846 = vmatprep.subr.mxu0 %v12386_v6 }
0x170d   :  { %13847 = vmatpush3.msra.mxu0 %v12386_v6 }
0x17c6   :  { %v13817_v46 = vpop.f32.mrf.mxu0 }
0x17c7   :  { %v3330_v39 = vadd.f32 %v13817_v46, %v15406_v35 }
0x17c8   :  { %v3320_v0 = vpop.f32.mrf.mxu0 }
0x17c9   :  { %v15470_v50 = vadd.f32 %v12365_v49, %v3330_v39  ;;  %v3329_v51 = vadd.f32 %v3320_v0, %v15409_v38  ;;  %v12413_v39 = vld [vmem:[%s15163_s13 + $0xb8] sm:$0xff] }
0x17cb   :  { %v15473_v53 = vadd.f32 %v12365_v49, %v3329_v51  ;;  %v3347_v54 = vsel %vm850_vm4, %v15470_v50, 0.0  ;;  %v12412_v51 = vld [vmem:[%s15163_s13 + $0xb0] sm:$0xff] }
0x17cc   :  { %3348 = vadd.xlane.f32.xlu0 %v3347_v54  ;;  %v12411_v54 = vld [vmem:[%s15163_s13 + $0xa8] sm:$0xff] }
0x17cd   :  { %v3344_v56 = vsel %vm247_vm1, %v15473_v53, 0.0 }
0x17ce   :  { %3345 = vadd.xlane.f32.xlu1 %v3344_v56  ;;  %v12410_v56 = vld [vmem:[%s15163_s13 + $0xa0] sm:$0xff] }
0x1855   :  { %v3349_v57 = vpop.xlane.xlu0 %3348 }
0x1856   :  { %v3351_v42 = vmul.f32 0.03125, %v3349_v57 }
0x1857   :  { %v3346_v35 = vpop.xlane.xlu1 %3345 }
0x1858   :  { %v3353_v58 = vsub.f32 %v15470_v50, %v3351_v42  ;;  %v3350_v59 = vmul.f32 0.03125, %v3346_v35 }
0x185a   :  { %v3352_v38 = vsub.f32 %v15473_v53, %v3350_v59  ;;  %v3355_v60 = vmul.f32 %v3353_v58, %v3353_v58 }
0x185c   :  { %v3359_v61 = vsel %vm850_vm4, %v3355_v60, 0.0  ;;  %v3354_v62 = vmul.f32 %v3352_v38, %v3352_v38  ;;  %v12415_v60 = vld [vmem:[%s15215_s4 + $0x5] ss:$0 sm:$0xff] }
0x185d   :  { %3360 = vadd.xlane.f32.xlu0 %v3359_v61 }
0x185e   :  { %v3356_v1 = vsel %vm247_vm1, %v3354_v62, 0.0 }
0x185f   :  { %3357 = vadd.xlane.f32.xlu1 %v3356_v1 }
0x18e6   :  { %v3361_v8 = vpop.xlane.xlu0 %3360 }
0x18e7   :  { %v3363_v9 = vmul.f32 0.03125, %v3361_v8 }
0x18e8   :  { %v3358_v10 = vpop.xlane.xlu1 %3357 }
0x18e9   :  { %v3365_v11 = vadd.f32 1e-05, %v3363_v9  ;;  %v3362_v12 = vmul.f32 0.03125, %v3358_v10  ;;  %v12405_v10 = vld [vmem:[%s15158_s8 + $0xb8] sm:$0xff] }
0x18eb   :  { %14813 = vrsqrt.f32 %v3365_v11  ;;  %v3364_v13 = vadd.f32 1e-05, %v3362_v12 }
0x18ed   :  { %14815 = vrsqrt.f32 %v3364_v13 }
0x18f8   :  { %v14814_v14 = vpop.eup %14813 }
0x18f9   :  { %v3369_v15 = vmul.f32 %v14814_v14, %v3353_v58 }
0x18fa   :  { %v14816_v17 = vpop.eup %14815 }
0x18fb   :  { %v3368_v18 = vmul.f32 %v14816_v17, %v3352_v38  ;;  %v3377_v19 = vmul.f32 %v12368_v16, %v3369_v15  ;;  %v12404_v17 = vld [vmem:[%s15158_s8 + $0xb0] sm:$0xff] }
0x18fd   :  { %v3376_v22 = vmul.f32 %v12368_v16, %v3368_v18  ;;  %v15496_v24 = vadd.f32 %v12369_v20, %v3377_v19  ;;  %v12403_v18 = vld [vmem:[%s15158_s8 + $0xa8] sm:$0xff]  ;;  %v12402_v19 = vld [vmem:[%s15158_s8 + $0xa0] sm:$0xff] }
0x18ff   :  { %v15494_v23 = vadd.f32 %v12369_v20, %v3376_v22  ;;  %v12421_v20 = vld [vmem:[%s15171_s19 + $0xb8] sm:$0xff]  ;;  %v12420_v22 = vld [vmem:[%s15171_s19 + $0xb0] sm:$0xff] }
0x1901   :  { %13826 = vmatprep.mubr.msk.f32.mxu1 %vm247_vm1, %v15494_v23  ;;  %13848 = vmatprep.mubr.msk.f32.mxu0 %vm247_vm1, %v15494_v23 }
0x1902   :  { %13827 = vmatmul.mubr.msk.f32.vlgmr.msra.gmra.mxu1 %vm247_vm1, %v15496_v24  ;;  %13849 = vmatmul.mubr.msk.f32.vlgmr.msra.gmra.mxu0 %vm247_vm1, %v15496_v24 }
0x1903   :  { %13830 = vmatpush3.msra.mxu1 %v12381_v7  ;;  %13837 = vmatprep.mubr.msk.f32.mxu1 %vm247_vm1, %v15494_v23 }
0x1904   :  { %13831 = vmatprep.subr.mxu1 %v12380_v26 }
0x1905   :  { %13832 = vmatpush3.msra.mxu1 %v12380_v26  ;;  %v12419_v26 = vld [vmem:[%s15171_s19 + $0xa8] sm:$0xff] }
0x1906   :  { %13833 = vmatprep.subr.mxu1 %v12379_v27 }
0x1907   :  { %13834 = vmatpush3.msra.mxu1 %v12379_v27  ;;  %v12418_v27 = vld [vmem:[%s15171_s19 + $0xa0] sm:$0xff] }
0x1908   :  { %13835 = vmatprep.subr.mxu1 %v12378_v28 }
0x1909   :  { %13836 = vmatpush3.msra.mxu1 %v12378_v28 }
0x190a   :  { %13838 = vmatmul.mubr.msk.f32.vlgmr.msra.gmra.mxu1 %vm247_vm1, %v15496_v24 }
0x19c2   :  { %v13828_v30 = vpop.f32.mrf.mxu1  ;;  %v13850_v31 = vpop.f32.mrf.mxu0 }
0x19c3   :  { %v3653_v32 = vadd.f32 %v13850_v31, %v12391_v29  ;;  %v3477_v0 = vadd.f32 %v13828_v30, %v12375_v34  ;;  %v12407_v31 = vld [vmem:[%s15220_s11 + $0x5] ss:$0 sm:$0xff] }
0x19c4   :  { %v3471_v37 = vpop.f32.mrf.mxu1  ;;  %v3647_v40 = vpop.f32.mrf.mxu0 }
0x19c5   :  { %v3472_v41 = vadd.f32 %v12375_v34, %v3471_v37  ;;  %v3648_v43 = vadd.f32 %v12391_v29, %v3647_v40  ;;  %13858 = vmatprep.subr.msk.mxu0 %vm1283_vm5, %v3653_v32  ;;  %v12423_v40 = vld [vmem:[%s15226_s18 + $0x5] ss:$0 sm:$0xff] }
0x19c6   :  { %13859 = vmatpush3.msk.msra.mxu0 %vm1283_vm5, %v3653_v32 }
0x19c7   :  { %13855 = vmatprep.mubr.msk.f32.mxu1 %vm423_vm2, %v3472_v41  ;;  %13860 = vmatprep.subr.mxu0 %v3648_v43 }
0x19c8   :  { %13861 = vmatpush3.msra.mxu0 %v3648_v43 }
0x19c9   :  { %13865 = vmatprep.subr.mxu0 %v12405_v10 }
0x19ca   :  { %v13839_v45 = vpop.f32.mrf.mxu1 }
0x19cb   :  { %v3565_v3 = vadd.f32 %v13839_v45, %v12383_v44 }
0x19cc   :  { %v3559_v46 = vpop.f32.mrf.mxu1 }
0x19cd   :  { %v3560_v49 = vadd.f32 %v12383_v44, %v3559_v46  ;;  %13851 = vmatprep.subr.msk.mxu1 %vm423_vm2, %v3565_v3 }
0x19ce   :  { %13852 = vmatpush3.xpose.msk.msra.mxu1 %vm423_vm2, %v3565_v3 }
0x19cf   :  { %13853 = vmatprep.subr.msk.mxu1 %vm423_vm2, %v3560_v49 }
0x19d2   :  { %13854 = vmatpush3.xpose.msk.msra.mxu1 %vm423_vm2, %v3560_v49 }
0x19d3   :  { %13876 = vmatprep.subr.mxu1 %v12413_v39 }
0x19d5   :  { %13856 = vmatmul.mubr.msk.f32.vlgmr.msra.gmra.mxu1 %vm423_vm2, %v3477_v0 }
0x19d6   :  { %13877 = vmatpush3.msra.mxu1 %v12413_v39  ;;  %13884 = vmatprep.mubr.msk.f32.mxu1 %vm247_vm1, %v15494_v23 }
0x19d7   :  { %13878 = vmatprep.subr.mxu1 %v12412_v51 }
0x19d8   :  { %13879 = vmatpush3.msra.mxu1 %v12412_v51 }
0x19d9   :  { %13880 = vmatprep.subr.mxu1 %v12411_v54 }
0x19da   :  { %13881 = vmatpush3.msra.mxu1 %v12411_v54 }
0x19db   :  { %13882 = vmatprep.subr.mxu1 %v12410_v56 }
0x19dc   :  { %13883 = vmatpush3.msra.mxu1 %v12410_v56 }
0x19dd   :  { %13885 = vmatmul.mubr.msk.f32.vlgmr.msra.gmra.mxu1 %vm247_vm1, %v15496_v24 }
0x1a95   :  { %v13857_v57 = vpop.f32.mrf.mxu1 }
0x1a96   :  { %v3744_v42 = vmul.f32 0.35355338, %v13857_v57 }
0x1a97   :  { %v3734_v35 = vpop.f32.mrf.mxu1 }
0x1a98   :  { %v3743_v58 = vmul.f32 0.35355338, %v3734_v35  ;;  %v3748_v59 = vsel %vm1257_vm7, %v3744_v42, -inf }
0x1a99   :  { %3749 = vmax.xlane.f32.xlu0 %v3748_v59 }
0x1a9a   :  { %v3745_v38 = vsel %vm1253_vm6, %v3743_v58, -inf }
0x1a9b   :  { %3746 = vmax.xlane.f32.xlu1 %v3745_v38 }
0x1a9d   :  { %v13886_v61 = vpop.f32.mrf.mxu1 }
0x1a9e   :  { %v4026_v62 = vadd.f32 %v13886_v61, %v12415_v60 }
0x1a9f   :  { %v4020_v1 = vpop.f32.mrf.mxu1 }
0x1aa0   :  { %v4021_v2 = vadd.f32 %v12415_v60, %v4020_v1  ;;  %13898 = vmatprep.subr.msk.mxu1 %vm423_vm2, %v4026_v62  ;;  %v12433_v1 = vld [vmem:[%s15289_s26 + $0x28] sm:$0xff] }
0x1aa1   :  { %13899 = vmatpush3.xpose.msk.msra.mxu1 %vm423_vm2, %v4026_v62  ;;  %v12401_v62 = vld [vmem:[%s15289_s26 + $0x20] sm:$0xff] }
0x1aa2   :  { %13900 = vmatprep.subr.msk.mxu1 %vm423_vm2, %v4021_v2 }
0x1aa5   :  { %13901 = vmatpush3.xpose.msk.msra.mxu1 %vm423_vm2, %v4021_v2 }
0x1aa6   :  { %13912 = vmatprep.subr.mxu1 %v12433_v1 }
0x1b22   :  { %v3750_v4 = vpop.xlane.xlu0 %3749 }
0x1b23   :  { %v3752_v33 = vsub.f32 %v3744_v42, %v3750_v4 }
0x1b24   :  { %v3747_v36 = vpop.xlane.xlu1 %3746 }
0x1b25   :  { %v3755_v47 = vmul.f32 1.442695, %v3752_v33  ;;  %v3751_v48 = vsub.f32 %v3743_v58, %v3747_v36 }
0x1b27   :  { %14817 = vpow2.f32 %v3755_v47  ;;  %v3753_v5 = vmul.f32 1.442695, %v3751_v48 }
0x1b29   :  { %14819 = vpow2.f32 %v3753_v5  ;;  %v12449_v5 = vld [vmem:[%s15163_s13 + $0xd8] sm:$0xff] }
0x1b34   :  { %v14818_v6 = vpop.eup %14817 }
0x1b35   :  { %v3760_v7 = vsel %vm1257_vm7, %v14818_v6, 0.0 }
0x1b36   :  { %v14820_v8 = vpop.eup %14819  ;;  %3761 = vadd.xlane.f32.xlu0 %v3760_v7  ;;  %v12447_v7 = vld [vmem:[%s15163_s13 + $0xc8] sm:$0xff] }
0x1b37   :  { %v3757_v9 = vsel %vm1253_vm6, %v14820_v8, 0.0 }
0x1b38   :  { %3758 = vadd.xlane.f32.xlu1 %v3757_v9  ;;  %v12441_v9 = vld [vmem:[%s15158_s8 + $0xd8] sm:$0xff] }
0x1bbf   :  { %v3762_v11 = vpop.xlane.xlu0 %3761 }
0x1bc0   :  { %14821 = vrcp.f32 %v3762_v11 }
0x1bc1   :  { %v3759_v12 = vpop.xlane.xlu1 %3758 }
0x1bc2   :  { %14823 = vrcp.f32 %v3759_v12  ;;  %v12440_v12 = vld [vmem:[%s15158_s8 + $0xd0] sm:$0xff] }
0x1bcd   :  { %v14822_v13 = vpop.eup %14821 }
0x1bce   :  { %v3766_v16 = vmul.f32 %v14822_v13, %v14818_v6  ;;  %v12448_v6 = vld [vmem:[%s15163_s13 + $0xd0] sm:$0xff]  ;;  %v12439_v13 = vld [vmem:[%s15158_s8 + $0xc8] sm:$0xff] }
0x1bcf   :  { %v14824_v14 = vpop.eup %14823 }
0x1bd0   :  { %v3765_v15 = vmul.f32 %v14824_v14, %v14820_v8  ;;  %v12446_v8 = vld [vmem:[%s15163_s13 + $0xc0] sm:$0xff] }
0x1bd2   :  { %13862 = vmatprep.mubr.msk.f32.mxu0 %vm1253_vm6, %v3765_v15  ;;  %v12438_v15 = vld [vmem:[%s15158_s8 + $0xc0] sm:$0xff] }
0x1bd3   :  { %13863 = vmatmul.mubr.msk.f32.vlgmr.msra.gmra.mxu0 %vm1253_vm6, %v3766_v16  ;;  %v12457_v16 = vld [vmem:[%s15171_s19 + $0xd8] sm:$0xff] }
0x1bd4   :  { %13866 = vmatpush3.msra.mxu0 %v12405_v10  ;;  %13873 = vmatprep.mubr.msk.f32.mxu0 %vm247_vm1, %v15494_v23 }
0x1bd5   :  { %13867 = vmatprep.subr.mxu0 %v12404_v17 }
0x1bd6   :  { %13868 = vmatpush3.msra.mxu0 %v12404_v17 }
0x1bd7   :  { %13869 = vmatprep.subr.mxu0 %v12403_v18 }
0x1bd8   :  { %13870 = vmatpush3.msra.mxu0 %v12403_v18  ;;  %v12451_v18 = vld [vmem:[%s15215_s4 + $0x6] ss:$0 sm:$0xff] }
0x1bd9   :  { %13871 = vmatprep.subr.mxu0 %v12402_v19 }
0x1bda   :  { %13872 = vmatpush3.msra.mxu0 %v12402_v19  ;;  %v12456_v19 = vld [vmem:[%s15171_s19 + $0xd0] sm:$0xff] }
0x1bdb   :  { %13874 = vmatmul.mubr.msk.f32.vlgmr.msra.gmra.mxu0 %vm247_vm1, %v15496_v24  ;;  %13887 = vmatprep.subr.mxu0 %v12421_v20 }
0x1bdc   :  { %13888 = vmatpush3.msra.mxu0 %v12421_v20  ;;  %13895 = vmatprep.mubr.msk.f32.mxu0 %vm247_vm1, %v15494_v23 }
0x1bdd   :  { %13889 = vmatprep.subr.mxu0 %v12420_v22 }
0x1bde   :  { %13890 = vmatpush3.msra.mxu0 %v12420_v22 }
0x1bdf   :  { %13891 = vmatprep.subr.mxu0 %v12419_v26 }
0x1be0   :  { %13892 = vmatpush3.msra.mxu0 %v12419_v26  ;;  %v12455_v26 = vld [vmem:[%s15171_s19 + $0xc8] sm:$0xff] }
0x1be1   :  { %13893 = vmatprep.subr.mxu0 %v12418_v27 }
0x1be2   :  { %13894 = vmatpush3.msra.mxu0 %v12418_v27 }
0x1be3   :  { %13896 = vmatmul.mubr.msk.f32.vlgmr.msra.gmra.mxu0 %vm247_vm1, %v15496_v24 }
0x1c93   :  { %v13864_v28 = vpop.f32.mrf.mxu0 }
0x1c95   :  { %v3842_v29 = vpop.f32.mrf.mxu0 }
0x1c9b   :  { %v13875_v30 = vpop.f32.mrf.mxu0 }
0x1c9c   :  { %v3938_v37 = vadd.f32 %v13875_v30, %v12407_v31 }
0x1c9d   :  { %v3932_v32 = vpop.f32.mrf.mxu0 }
0x1c9e   :  { %v3933_v34 = vadd.f32 %v12407_v31, %v3932_v32 }
0x1ca0   :  { %13902 = vmatprep.mubr.msk.f32.mxu1 %vm423_vm2, %v3933_v34  ;;  %v12443_v34 = vld [vmem:[%s15220_s11 + $0x6] ss:$0 sm:$0xff] }
0x1ca1   :  { %13903 = vmatmul.mubr.msk.f32.vlgmr.msra.gmra.mxu1 %vm423_vm2, %v3938_v37 }
0x1ca2   :  { %13913 = vmatpush3.msra.mxu1 %v12433_v1 }
0x1ca3   :  { %v13897_v41 = vpop.f32.mrf.mxu0  ;;  %13922 = vmatprep.subr.mxu1 %v12441_v9 }
0x1ca4   :  { %v4114_v43 = vadd.f32 %v13897_v41, %v12423_v40 }
0x1ca5   :  { %v4108_v44 = vpop.f32.mrf.mxu0 }
0x1ca6   :  { %v4109_v45 = vadd.f32 %v12423_v40, %v4108_v44  ;;  %13905 = vmatprep.subr.msk.mxu0 %vm1283_vm5, %v4114_v43 }
0x1ca7   :  { %13906 = vmatpush3.msk.msra.mxu0 %vm1283_vm5, %v4114_v43  ;;  %v12459_v43 = vld [vmem:[%s15226_s18 + $0x6] ss:$0 sm:$0xff] }
0x1ca8   :  { %13907 = vmatprep.subr.mxu0 %v4109_v45 }
0x1ca9   :  { %13908 = vmatpush3.msra.mxu0 %v4109_v45 }
0x1caa   :  { %13917 = vmatprep.subr.mxu0 %v12401_v62 }
0x1d61   :  { %v13904_v3 = vpop.f32.mrf.mxu1 }
0x1d62   :  { %v4205_v46 = vmul.f32 0.35355338, %v13904_v3 }
0x1d63   :  { %v4195_v49 = vpop.f32.mrf.mxu1 }
0x1d64   :  { %v4204_v39 = vmul.f32 0.35355338, %v4195_v49  ;;  %v4209_v0 = vsel %vm1257_vm7, %v4205_v46, -inf }
0x1d65   :  { %4210 = vmax.xlane.f32.xlu0 %v4209_v0 }
0x1d66   :  { %v4206_v51 = vsel %vm1253_vm6, %v4204_v39, -inf }
0x1d67   :  { %4207 = vmax.xlane.f32.xlu1 %v4206_v51 }
0x1dee   :  { %v4211_v54 = vpop.xlane.xlu0 %4210 }
0x1def   :  { %v4213_v56 = vsub.f32 %v4205_v46, %v4211_v54 }
0x1df0   :  { %v4208_v57 = vpop.xlane.xlu1 %4207 }
0x1df1   :  { %v4216_v42 = vmul.f32 1.442695, %v4213_v56  ;;  %v4212_v35 = vsub.f32 %v4204_v39, %v4208_v57 }
0x1df3   :  { %14825 = vpow2.f32 %v4216_v42  ;;  %v4214_v58 = vmul.f32 1.442695, %v4212_v35 }
0x1df5   :  { %14827 = vpow2.f32 %v4214_v58 }
0x1e00   :  { %v14826_v59 = vpop.eup %14825 }
0x1e01   :  { %v4221_v38 = vsel %vm1257_vm7, %v14826_v59, 0.0 }
0x1e02   :  { %v14828_v60 = vpop.eup %14827  ;;  %4222 = vadd.xlane.f32.xlu0 %v4221_v38 }
0x1e03   :  { %v4218_v61 = vsel %vm1253_vm6, %v14828_v60, 0.0 }
0x1e04   :  { %4219 = vadd.xlane.f32.xlu1 %v4218_v61 }
0x1e8b   :  { %v4223_v2 = vpop.xlane.xlu0 %4222 }
0x1e8c   :  { %14829 = vrcp.f32 %v4223_v2  ;;  %v12475_v2 = vld [vmem:[%s15158_s8 + $0xf8] sm:$0xff] }
0x1e8d   :  { %v4220_v4 = vpop.xlane.xlu1 %4219 }
0x1e8e   :  { %14831 = vrcp.f32 %v4220_v4  ;;  %v12469_v4 = vld [vmem:[%s15289_s26 + $0x30] sm:$0xff] }
0x1e99   :  { %v14830_v33 = vpop.eup %14829 }
0x1e9a   :  { %v4227_v48 = vmul.f32 %v14830_v33, %v14826_v59 }
0x1e9b   :  { %v14832_v36 = vpop.eup %14831 }
0x1e9c   :  { %v4226_v47 = vmul.f32 %v14832_v36, %v14828_v60 }
0x1e9e   :  { %13909 = vmatprep.mubr.msk.f32.mxu0 %vm1253_vm6, %v4226_v47 }
0x1e9f   :  { %13910 = vmatmul.mubr.msk.f32.vlgmr.msra.gmra.mxu0 %vm1253_vm6, %v4227_v48 }
0x1ea0   :  { %13919 = vmatprep.mubr.msk.f32.mxu0 %vm423_vm2, %v3842_v29  ;;  %13918 = vmatpush3.msra.mxu0 %v12401_v62  ;;  %v12454_v29 = vld [vmem:[%s15171_s19 + $0xc0] sm:$0xff] }
0x1ea1   :  { %13933 = vmatprep.subr.mxu0 %v12449_v5 }
0x1ea3   :  { %13920 = vmatmul.mubr.msk.f32.vlgmr.msra.gmra.mxu0 %vm423_vm2, %v13864_v28 }
0x1ea4   :  { %13934 = vmatpush3.msra.mxu0 %v12449_v5  ;;  %13941 = vmatprep.mubr.msk.f32.mxu0 %vm247_vm1, %v15494_v23 }
0x1ea5   :  { %13935 = vmatprep.subr.mxu0 %v12448_v6 }
0x1ea6   :  { %13936 = vmatpush3.msra.mxu0 %v12448_v6 }
0x1ea7   :  { %13937 = vmatprep.subr.mxu0 %v12447_v7 }
0x1ea8   :  { %13938 = vmatpush3.msra.mxu0 %v12447_v7  ;;  %v12474_v7 = vld [vmem:[%s15158_s8 + $0xf0] sm:$0xff] }
0x1ea9   :  { %13939 = vmatprep.subr.mxu0 %v12446_v8 }
0x1eaa   :  { %13940 = vmatpush3.msra.mxu0 %v12446_v8  ;;  %v12473_v8 = vld [vmem:[%s15158_s8 + $0xe8] sm:$0xff] }
0x1eab   :  { %13942 = vmatmul.mubr.msk.f32.vlgmr.msra.gmra.mxu0 %vm247_vm1, %v15496_v24 }
0x1f5f   :  { %v13911_v10 = vpop.f32.mrf.mxu0 }
0x1f61   :  { %v4303_v11 = vpop.f32.mrf.mxu0 }
0x1f62   :  { %13914 = vmatprep.mubr.msk.f32.mxu1 %vm423_vm2, %v4303_v11  ;;  %v12490_v11 = vld [vmem:[%s15171_s19 + $0xf0] sm:$0xff] }
0x1f63   :  { %13915 = vmatmul.mubr.msk.f32.vlgmr.msra.gmra.mxu1 %vm423_vm2, %v13911_v10  ;;  %v15590_v14 = vpop.f32.mrf.mxu0  ;;  %v12491_v10 = vld [vmem:[%s15171_s19 + $0xf8] sm:$0xff] }
0x1f64   :  { %13923 = vmatpush3.msra.mxu1 %v12441_v9  ;;  %13930 = vmatprep.mubr.msk.f32.mxu1 %vm247_vm1, %v15494_v23  ;;  %v12472_v9 = vld [vmem:[%s15158_s8 + $0xe0] sm:$0xff] }
0x1f65   :  { %13924 = vmatprep.subr.mxu1 %v12440_v12  ;;  %v15594_v17 = vpop.f32.mrf.mxu0 }
0x1f66   :  { %13925 = vmatpush3.msra.mxu1 %v12440_v12  ;;  %v12489_v12 = vld [vmem:[%s15171_s19 + $0xe8] sm:$0xff] }
0x1f67   :  { %13926 = vmatprep.subr.mxu1 %v12439_v13 }
0x1f68   :  { %13927 = vmatpush3.msra.mxu1 %v12439_v13  ;;  %v12488_v13 = vld [vmem:[%s15171_s19 + $0xe0] sm:$0xff] }
0x1f69   :  { %13928 = vmatprep.subr.mxu1 %v12438_v15 }
0x1f6a   :  { %13929 = vmatpush3.msra.mxu1 %v12438_v15  ;;  %v12483_v15 = vld [vmem:[%s15163_s13 + $0xf8] sm:$0xff] }
0x1f6b   :  { %13931 = vmatmul.mubr.msk.f32.vlgmr.msra.gmra.mxu1 %vm247_vm1, %v15496_v24  ;;  %v13943_v20 = vpop.f32.mrf.mxu0  ;;  %13944 = vmatprep.subr.mxu1 %v12457_v16 }
0x1f6c   :  { %v4649_v22 = vadd.f32 %v13943_v20, %v12451_v18  ;;  %13945 = vmatpush3.msra.mxu1 %v12457_v16  ;;  %13952 = vmatprep.mubr.msk.f32.mxu1 %vm247_vm1, %v15494_v23  ;;  %v12481_v20 = vld [vmem:[%s15163_s13 + $0xe8] sm:$0xff] }
0x1f6d   :  { %v4643_v27 = vpop.f32.mrf.mxu0  ;;  %13946 = vmatprep.subr.mxu1 %v12456_v19 }
0x1f6e   :  { %v4644_v28 = vadd.f32 %v12451_v18, %v4643_v27  ;;  %13947 = vmatpush3.msra.mxu1 %v12456_v19  ;;  %13955 = vmatprep.subr.msk.mxu0 %vm423_vm2, %v4649_v22  ;;  %v12482_v19 = vld [vmem:[%s15163_s13 + $0xf0] sm:$0xff] }
0x1f6f   :  { %13948 = vmatprep.subr.mxu1 %v12455_v26  ;;  %13956 = vmatpush3.xpose.msk.msra.mxu0 %vm423_vm2, %v4649_v22  ;;  %v12477_v22 = vld [vmem:[%s15220_s11 + $0x7] ss:$0 sm:$0xff] }
0x1f70   :  { %13949 = vmatpush3.msra.mxu1 %v12455_v26  ;;  %13957 = vmatprep.subr.msk.mxu0 %vm423_vm2, %v4644_v28  ;;  %v12480_v26 = vld [vmem:[%s15163_s13 + $0xe0] sm:$0xff] }
0x1f71   :  { %13950 = vmatprep.subr.mxu1 %v12454_v29 }
0x1f72   :  { %13951 = vmatpush3.msra.mxu1 %v12454_v29 }
0x1f73   :  { %13953 = vmatmul.mubr.msk.f32.vlgmr.msra.gmra.mxu1 %vm247_vm1, %v15496_v24  ;;  %13958 = vmatpush3.xpose.msk.msra.mxu0 %vm423_vm2, %v4644_v28 }
0x1f74   :  { %13969 = vmatprep.subr.mxu0 %v12469_v4 }
0x2023   :  { %v15610_v30 = vpop.f32.mrf.mxu1 }
0x2025   :  { %v15612_v31 = vpop.f32.mrf.mxu1 }
0x202b   :  { %v13932_v32 = vpop.f32.mrf.mxu1 }
0x202c   :  { %v4561_v41 = vadd.f32 %v13932_v32, %v12443_v34 }
0x202d   :  { %v4555_v37 = vpop.f32.mrf.mxu1 }
0x202e   :  { %v4556_v40 = vadd.f32 %v12443_v34, %v4555_v37 }
0x2030   :  { %13959 = vmatprep.mubr.msk.f32.mxu0 %vm423_vm2, %v4556_v40 }
0x2031   :  { %13960 = vmatmul.mubr.msk.f32.vlgmr.msra.gmra.mxu0 %vm423_vm2, %v4561_v41 }
0x2032   :  { %13970 = vmatpush3.msra.mxu0 %v12469_v4  ;;  %v12503_v4 = vld [vmem:[%s15289_s26 + $0x38] sm:$0xff] }
0x2033   :  { %v13954_v44 = vpop.f32.mrf.mxu1  ;;  %13985 = vmatprep.subr.mxu0 %v12483_v15 }
0x2034   :  { %v4737_v45 = vadd.f32 %v13954_v44, %v12459_v43 }
0x2035   :  { %v4731_v3 = vpop.f32.mrf.mxu1 }
0x2036   :  { %v4732_v46 = vadd.f32 %v12459_v43, %v4731_v3  ;;  %13962 = vmatprep.subr.msk.mxu1 %vm1283_vm5, %v4737_v45  ;;  %v4473_v43 = vadd.f32 %v15590_v14, %v15610_v30 }
0x2037   :  { %13963 = vmatpush3.msk.msra.mxu1 %vm1283_vm5, %v4737_v45 }
0x2038   :  { %13964 = vmatprep.subr.mxu1 %v4732_v46 }
0x2039   :  { %13965 = vmatpush3.msra.mxu1 %v4732_v46 }
0x203a   :  { %13974 = vmatprep.subr.mxu1 %v12475_v2 }
0x20f1   :  { %v13961_v49 = vpop.f32.mrf.mxu0 }
0x20f2   :  { %v4828_v39 = vmul.f32 0.35355338, %v13961_v49  ;;  %v12485_v49 = vld [vmem:[%s15215_s4 + $0x7] ss:$0 sm:$0xff] }
0x20f3   :  { %v4818_v0 = vpop.f32.mrf.mxu0 }
0x20f4   :  { %v4827_v51 = vmul.f32 0.35355338, %v4818_v0  ;;  %v4832_v54 = vsel %vm1257_vm7, %v4828_v39, -inf }
0x20f5   :  { %4833 = vmax.xlane.f32.xlu0 %v4832_v54 }
0x20f6   :  { %v4829_v56 = vsel %vm1253_vm6, %v4827_v51, -inf }
0x20f7   :  { %4830 = vmax.xlane.f32.xlu1 %v4829_v56 }
0x217e   :  { %v4834_v57 = vpop.xlane.xlu0 %4833 }
0x217f   :  { %v4836_v42 = vsub.f32 %v4828_v39, %v4834_v57 }
0x2180   :  { %v4831_v35 = vpop.xlane.xlu1 %4830 }
0x2181   :  { %v4839_v58 = vmul.f32 1.442695, %v4836_v42  ;;  %v4835_v59 = vsub.f32 %v4827_v51, %v4831_v35 }
0x2183   :  { %14833 = vpow2.f32 %v4839_v58  ;;  %v4837_v38 = vmul.f32 1.442695, %v4835_v59 }
0x2185   :  { %14835 = vpow2.f32 %v4837_v38 }
0x2190   :  { %v14834_v60 = vpop.eup %14833 }
0x2191   :  { %v4844_v61 = vsel %vm1257_vm7, %v14834_v60, 0.0 }
0x2192   :  { %v14836_v62 = vpop.eup %14835  ;;  %4845 = vadd.xlane.f32.xlu0 %v4844_v61 }
0x2193   :  { %v4841_v1 = vsel %vm1253_vm6, %v14836_v62, 0.0 }
0x2194   :  { %4842 = vadd.xlane.f32.xlu1 %v4841_v1 }
0x221b   :  { %v4846_v33 = vpop.xlane.xlu0 %4845 }
0x221c   :  { %14837 = vrcp.f32 %v4846_v33 }
0x221d   :  { %v4843_v36 = vpop.xlane.xlu1 %4842 }
0x221e   :  { %14839 = vrcp.f32 %v4843_v36 }
0x2229   :  { %v14838_v47 = vpop.eup %14837 }
0x222a   :  { %v4850_v6 = vmul.f32 %v14838_v47, %v14834_v60 }
0x222b   :  { %v14840_v48 = vpop.eup %14839 }
0x222c   :  { %v4849_v5 = vmul.f32 %v14840_v48, %v14836_v62 }
0x222e   :  { %13966 = vmatprep.mubr.msk.f32.mxu1 %vm1253_vm6, %v4849_v5 }
0x222f   :  { %13967 = vmatmul.mubr.msk.f32.vlgmr.msra.gmra.mxu1 %vm1253_vm6, %v4850_v6 }
0x2230   :  { %13975 = vmatpush3.msra.mxu1 %v12475_v2  ;;  %13982 = vmatprep.mubr.msk.f32.mxu1 %vm247_vm1, %v15494_v23 }
0x2231   :  { %13976 = vmatprep.subr.mxu1 %v12474_v7 }
0x2232   :  { %13977 = vmatpush3.msra.mxu1 %v12474_v7 }
0x2233   :  { %13978 = vmatprep.subr.mxu1 %v12473_v8 }
0x2234   :  { %13979 = vmatpush3.msra.mxu1 %v12473_v8 }
0x2235   :  { %13980 = vmatprep.subr.mxu1 %v12472_v9 }
0x2236   :  { %13981 = vmatpush3.msra.mxu1 %v12472_v9 }
0x2237   :  { %13983 = vmatmul.mubr.msk.f32.vlgmr.msra.gmra.mxu1 %vm247_vm1, %v15496_v24  ;;  %13996 = vmatprep.subr.mxu1 %v12491_v10 }
0x2238   :  { %13997 = vmatpush3.msra.mxu1 %v12491_v10  ;;  %14004 = vmatprep.mubr.msk.f32.mxu1 %vm247_vm1, %v15494_v23 }
0x2239   :  { %13998 = vmatprep.subr.mxu1 %v12490_v11 }
0x223a   :  { %13999 = vmatpush3.msra.mxu1 %v12490_v11 }
0x223b   :  { %14000 = vmatprep.subr.mxu1 %v12489_v12 }
0x223c   :  { %14001 = vmatpush3.msra.mxu1 %v12489_v12  ;;  %v12507_v12 = vld [vmem:[%s15402_s2 + $0x1] ss:$0 sm:$0xff] }
0x223d   :  { %14002 = vmatprep.subr.mxu1 %v12488_v13 }
0x223e   :  { %14003 = vmatpush3.msra.mxu1 %v12488_v13 }
0x223f   :  { %14005 = vmatmul.mubr.msk.f32.vlgmr.msra.gmra.mxu1 %vm247_vm1, %v15496_v24 }
0x22ef   :  { %v13968_v16 = vpop.f32.mrf.mxu1 }
0x22f1   :  { %v4926_v18 = vpop.f32.mrf.mxu1 }
0x22f2   :  { %13971 = vmatprep.mubr.msk.f32.mxu0 %vm423_vm2, %v4926_v18 }
0x22f3   :  { %13972 = vmatmul.mubr.msk.f32.vlgmr.msra.gmra.mxu0 %vm423_vm2, %v13968_v16 }
0x22f4   :  { %13986 = vmatpush3.msra.mxu0 %v12483_v15  ;;  %13993 = vmatprep.mubr.msk.f32.mxu0 %vm247_vm1, %v15494_v23  ;;  %v12493_v23 = vld [vmem:[%s15226_s18 + $0x7] ss:$0 sm:$0xff] }
0x22f5   :  { %13987 = vmatprep.subr.mxu0 %v12482_v19 }
0x22f6   :  { %13988 = vmatpush3.msra.mxu0 %v12482_v19 }
0x22f7   :  { %v13984_v27 = vpop.f32.mrf.mxu1  ;;  %13989 = vmatprep.subr.mxu0 %v12481_v20 }
0x22f8   :  { %v5105_v28 = vadd.f32 %v13984_v27, %v12477_v22  ;;  %13990 = vmatpush3.msra.mxu0 %v12481_v20 }
0x22f9   :  { %v5099_v29 = vpop.f32.mrf.mxu1  ;;  %13991 = vmatprep.subr.mxu0 %v12480_v26 }
0x22fa   :  { %v5100_v32 = vadd.f32 %v12477_v22, %v5099_v29  ;;  %13992 = vmatpush3.msra.mxu0 %v12480_v26 }
0x22fb   :  { %13994 = vmatmul.mubr.msk.f32.vlgmr.msra.gmra.mxu0 %vm247_vm1, %v15496_v24  ;;  %v4468_v24 = vadd.f32 %v15594_v17, %v15612_v31 }
0x22fc   :  { %14011 = vmatprep.mubr.msk.f32.mxu0 %vm423_vm2, %v5100_v32 }
0x22ff   :  { %v14006_v34 = vpop.f32.mrf.mxu1 }
0x2300   :  { %v5281_v37 = vadd.f32 %v14006_v34, %v12493_v23 }
0x2301   :  { %v5275_v40 = vpop.f32.mrf.mxu1 }
0x2302   :  { %v5276_v41 = vadd.f32 %v12493_v23, %v5275_v40  ;;  %14014 = vmatprep.subr.msk.mxu1 %vm1283_vm5, %v5281_v37  ;;  %v12515_v40 = vld [vmem:[%s15422_s9 + $0x38] sm:$0xff] }
0x2303   :  { %14015 = vmatpush3.msk.msra.mxu1 %vm1283_vm5, %v5281_v37 }
0x2304   :  { %14016 = vmatprep.subr.mxu1 %v5276_v41 }
0x2305   :  { %14017 = vmatpush3.msra.mxu1 %v5276_v41  ;;  %v12514_v41 = vld [vmem:[%s15422_s9 + $0x30] sm:$0xff] }
0x2306   :  { %14026 = vmatprep.subr.mxu1 %v12515_v40 }
0x23b3   :  { %v13973_v44 = vpop.f32.mrf.mxu0 }
0x23b4   :  { %v5019_v45 = vadd.f32 %v13973_v44, %v4473_v43  ;;  %v12513_v43 = vld [vmem:[%s15422_s9 + $0x28] sm:$0xff]  ;;  %v12512_v44 = vld [vmem:[%s15422_s9 + $0x20] sm:$0xff] }
0x23b5   :  { %v5009_v3 = vpop.f32.mrf.mxu0 }
0x23b6   :  { %v5018_v46 = vadd.f32 %v5009_v3, %v4468_v24 }
0x23bb   :  { %v13995_v39 = vpop.f32.mrf.mxu0 }
0x23bc   :  { %v5193_v0 = vadd.f32 %v13995_v39, %v12485_v49 }
0x23bd   :  { %v5187_v51 = vpop.f32.mrf.mxu0 }
0x23be   :  { %v5188_v54 = vadd.f32 %v12485_v49, %v5187_v51  ;;  %14007 = vmatprep.subr.msk.mxu0 %vm423_vm2, %v5193_v0  ;;  %v12510_v51 = vld [vmem:[%s15431_s20 + $0x1] ss:$0 sm:$0xff] }
0x23bf   :  { %14008 = vmatpush3.xpose.msk.msra.mxu0 %vm423_vm2, %v5193_v0 }
0x23c0   :  { %14009 = vmatprep.subr.msk.mxu0 %vm423_vm2, %v5188_v54 }
0x23c3   :  { %14010 = vmatpush3.xpose.msk.msra.mxu0 %vm423_vm2, %v5188_v54 }
0x23c4   :  { %14021 = vmatprep.subr.mxu0 %v12503_v4 }
0x23c6   :  { %14012 = vmatmul.mubr.msk.f32.vlgmr.msra.gmra.mxu0 %vm423_vm2, %v5105_v28 }
0x23c7   :  { %14022 = vmatpush3.msra.mxu0 %v12503_v4 }
0x2486   :  { %v14013_v14 = vpop.f32.mrf.mxu0 }
0x2487   :  { %v5372_v17 = vmul.f32 0.35355338, %v14013_v14 }
0x2488   :  { %v5362_v30 = vpop.f32.mrf.mxu0 }
0x2489   :  { %v5371_v31 = vmul.f32 0.35355338, %v5362_v30  ;;  %v5376_v56 = vsel %vm1257_vm7, %v5372_v17, -inf }
0x248a   :  { %5377 = vmax.xlane.f32.xlu0 %v5376_v56 }
0x248b   :  { %v5373_v57 = vsel %vm1253_vm6, %v5371_v31, -inf }
0x248c   :  { %5374 = vmax.xlane.f32.xlu1 %v5373_v57 }
0x2513   :  { %v5378_v42 = vpop.xlane.xlu0 %5377 }
0x2514   :  { %v5380_v35 = vsub.f32 %v5372_v17, %v5378_v42 }
0x2515   :  { %v5375_v58 = vpop.xlane.xlu1 %5374 }
0x2516   :  { %v5383_v59 = vmul.f32 1.442695, %v5380_v35  ;;  %v5379_v38 = vsub.f32 %v5371_v31, %v5375_v58  ;;  %v12511_v31 = vld [vmem:[%s15436_s28 + $0x1] ss:$0 sm:$0xff]  ;;  %v12527_v35 = vld [vmem:[%s15445_s7 + $0x78] sm:$0xff]  ;;  %v12526_v58 = vld [vmem:[%s15445_s7 + $0x70] sm:$0xff] }
0x2517   :  { %14037 = vmatprep.subr.mxu0 %v12527_v35 }
0x2518   :  { %14841 = vpow2.f32 %v5383_v59  ;;  %v5381_v60 = vmul.f32 1.442695, %v5379_v38  ;;  %v12525_v59 = vld [vmem:[%s15445_s7 + $0x68] sm:$0xff]  ;;  %v12524_v38 = vld [vmem:[%s15445_s7 + $0x60] sm:$0xff] }
0x251a   :  { %14843 = vpow2.f32 %v5381_v60  ;;  %v12523_v60 = vld [vmem:[%s15445_s7 + $0x58] sm:$0xff] }
0x2525   :  { %v14842_v61 = vpop.eup %14841 }
0x2526   :  { %v5388_v62 = vsel %vm1257_vm7, %v14842_v61, 0.0 }
0x2527   :  { %v14844_v1 = vpop.eup %14843  ;;  %5389 = vadd.xlane.f32.xlu0 %v5388_v62  ;;  %v12521_v62 = vld [vmem:[%s15445_s7 + $0x48] sm:$0xff] }
0x2528   :  { %v5385_v2 = vsel %vm1253_vm6, %v14844_v1, 0.0 }
0x2529   :  { %5386 = vadd.xlane.f32.xlu1 %v5385_v2  ;;  %v12517_v2 = vld [vmem:[%s15458_s22 + $0x1] ss:$0 sm:$0xff] }
0x25b0   :  { %v5390_v33 = vpop.xlane.xlu0 %5389 }
0x25b1   :  { %14845 = vrcp.f32 %v5390_v33 }
0x25b2   :  { %v5387_v36 = vpop.xlane.xlu1 %5386 }
0x25b3   :  { %14847 = vrcp.f32 %v5387_v36 }
0x25be   :  { %v14846_v47 = vpop.eup %14845 }
0x25bf   :  { %v5394_v6 = vmul.f32 %v14846_v47, %v14842_v61  ;;  %v12522_v61 = vld [vmem:[%s15445_s7 + $0x50] sm:$0xff] }
0x25c0   :  { %v14848_v48 = vpop.eup %14847 }
0x25c1   :  { %v5393_v5 = vmul.f32 %v14848_v48, %v14844_v1  ;;  %v12520_v1 = vld [vmem:[%s15445_s7 + $0x40] sm:$0xff] }
0x25c3   :  { %14018 = vmatprep.mubr.msk.f32.mxu1 %vm1253_vm6, %v5393_v5 }
0x25c4   :  { %14019 = vmatmul.mubr.msk.f32.vlgmr.msra.gmra.mxu1 %vm1253_vm6, %v5394_v6 }
0x25c5   :  { %14027 = vmatpush3.msra.mxu1 %v12515_v40 }
0x25c6   :  { %14028 = vmatprep.subr.mxu1 %v12514_v41 }
0x25c7   :  { %14029 = vmatpush3.msra.mxu1 %v12514_v41 }
0x25c8   :  { %14030 = vmatprep.subr.mxu1 %v12513_v43 }
0x25c9   :  { %14031 = vmatpush3.msra.mxu1 %v12513_v43 }
0x25ca   :  { %14032 = vmatprep.subr.mxu1 %v12512_v44 }
0x25cb   :  { %14033 = vmatpush3.msra.mxu1 %v12512_v44 }
0x25cc   :  { %14056 = vmatprep.subr.mxu1 %v14990_v21 }
0x2684   :  { %v14020_v7 = vpop.f32.mrf.mxu1 }
0x2686   :  { %v5470_v8 = vpop.f32.mrf.mxu1 }
0x2687   :  { %14023 = vmatprep.mubr.msk.f32.mxu0 %vm423_vm2, %v5470_v8 }
0x2688   :  { %14024 = vmatmul.mubr.msk.f32.vlgmr.msra.gmra.mxu0 %vm423_vm2, %v14020_v7 }
0x2689   :  { %14038 = vmatpush3.msra.mxu0 %v12527_v35 }
0x268a   :  { %14039 = vmatprep.subr.mxu0 %v12526_v58 }
0x268b   :  { %14040 = vmatpush3.msra.mxu0 %v12526_v58 }
0x268c   :  { %14041 = vmatprep.subr.mxu0 %v12525_v59 }
0x268d   :  { %14042 = vmatpush3.msra.mxu0 %v12525_v59 }
0x268e   :  { %14043 = vmatprep.subr.mxu0 %v12524_v38 }
0x268f   :  { %14044 = vmatpush3.msra.mxu0 %v12524_v38 }
0x2690   :  { %14045 = vmatprep.subr.mxu0 %v12523_v60 }
0x2691   :  { %14046 = vmatpush3.msra.mxu0 %v12523_v60 }
0x2692   :  { %14047 = vmatprep.subr.mxu0 %v12522_v61 }
0x2693   :  { %14048 = vmatpush3.msra.mxu0 %v12522_v61 }
0x2694   :  { %14049 = vmatprep.subr.mxu0 %v12521_v62 }
0x2695   :  { %14050 = vmatpush3.msra.mxu0 %v12521_v62 }
0x2696   :  { %14051 = vmatprep.subr.mxu0 %v12520_v1 }
0x2697   :  { %14052 = vmatpush3.msra.mxu0 %v12520_v1 }
0x2698   :  { %14086 = vmatprep.subr.mxu0 %v14990_v21 }
0x2748   :  { %v14025_v9 = vpop.f32.mrf.mxu0 }
0x2749   :  { %v5563_v10 = vadd.f32 %v14025_v9, %v5019_v45 }
0x274a   :  { %v5553_v11 = vpop.f32.mrf.mxu0 }
0x274b   :  { %v5565_v13 = vadd.f32 %v5563_v10, %v15470_v50  ;;  %v5562_v15 = vadd.f32 %v5553_v11, %v5018_v46 }
0x274d   :  { %v5564_v16 = vadd.f32 %v5562_v15, %v15473_v53  ;;  %v5575_v18 = vadd.f32 %v12507_v12, %v5565_v13 }
0x274f   :  { %v5583_v19 = vsel %vm850_vm4, %v5575_v18, 0.0  ;;  %v15681_v20 = vadd.f32 %v12507_v12, %v5564_v16 }
0x2750   :  { %5584 = vadd.xlane.f32.xlu0 %v5583_v19 }
0x2751   :  { %v5580_v22 = vsel %vm247_vm1, %v15681_v20, 0.0 }
0x2752   :  { %5581 = vadd.xlane.f32.xlu1 %v5580_v22 }
0x27d9   :  { %v5585_v26 = vpop.xlane.xlu0 %5584 }
0x27da   :  { %v5587_v27 = vmul.f32 0.03125, %v5585_v26 }
0x27db   :  { %v5582_v28 = vpop.xlane.xlu1 %5581 }
0x27dc   :  { %v5589_v50 = vsub.f32 %v5575_v18, %v5587_v27  ;;  %v5586_v29 = vmul.f32 0.03125, %v5582_v28 }
0x27de   :  { %v5588_v53 = vsub.f32 %v15681_v20, %v5586_v29  ;;  %v5591_v32 = vmul.f32 %v5589_v50, %v5589_v50 }
0x27e0   :  { %v5595_v23 = vsel %vm850_vm4, %v5591_v32, 0.0  ;;  %v5590_v34 = vmul.f32 %v5588_v53, %v5588_v53 }
0x27e1   :  { %5596 = vadd.xlane.f32.xlu0 %v5595_v23 }
0x27e2   :  { %v5592_v37 = vsel %vm247_vm1, %v5590_v34, 0.0 }
0x27e3   :  { %5593 = vadd.xlane.f32.xlu1 %v5592_v37 }
0x286a   :  { %v5597_v24 = vpop.xlane.xlu0 %5596 }
0x286b   :  { %v5599_v45 = vmul.f32 0.03125, %v5597_v24  ;;  %v12554_v24 = vld [vmem:[%s15028_s6 + $0x10] sm:$0xff] }
0x286c   :  { %v5594_v3 = vpop.xlane.xlu1 %5593 }
0x286d   :  { %v5601_v46 = vadd.f32 1e-05, %v5599_v45  ;;  %v5598_v49 = vmul.f32 0.03125, %v5594_v3  ;;  %v12537_v45 = vld [vmem:[%s15721_s16 + $0x38] sm:$0xff]  ;;  %v5852_v3 = vld [vmem:[%s15721_s16 + $0x10] sm:$0xff] }
0x286f   :  { %14849 = vrsqrt.f32 %v5601_v46  ;;  %v5600_v39 = vadd.f32 1e-05, %v5598_v49  ;;  %v12536_v46 = vld [vmem:[%s15721_s16 + $0x30] sm:$0xff]  ;;  %v5851_v49 = vld [vmem:[%s15721_s16 + $0x8] sm:$0xff] }
0x2871   :  { %14851 = vrsqrt.f32 %v5600_v39  ;;  %v12535_v39 = vld [vmem:[%s15721_s16 + $0x28] sm:$0xff] }
0x287c   :  { %v14850_v0 = vpop.eup %14849 }
0x287d   :  { %v5605_v54 = vmul.f32 %v14850_v0, %v5589_v50  ;;  %v5850_v0 = vld [vmem:[%s15721_s16] sm:$0xff] }
0x287e   :  { %v14852_v14 = vpop.eup %14851 }
0x287f   :  { %v5604_v17 = vmul.f32 %v14852_v14, %v5588_v53  ;;  %v5613_v30 = vmul.f32 %v12510_v51, %v5605_v54  ;;  %v12531_v53 = vld [vmem:[%s15466_s3 + $0x1] ss:$0 sm:$0xff]  ;;  %v12555_v54 = vld [vmem:[%s15028_s6 + $0x18] sm:$0xff]  ;;  %s15748_s6 = sld [smem:[%s16518_s0 + %s15013_s12]]   ;;  %s15015_s12 = smov 27  }
0x2880   :  { %s15800_s23 = sld [smem:[%s16518_s0 + %s15015_s12]]  }
0x2881   :  { %v5612_v56 = vmul.f32 %v12510_v51, %v5604_v17  ;;  %v5621_v42 = vadd.f32 %v12511_v31, %v5613_v30  ;;  %v12534_v51 = vld [vmem:[%s15721_s16 + $0x20] sm:$0xff] }
0x2883   :  { %v5620_v57 = vadd.f32 %v12511_v31, %v5612_v56  ;;  %v5833_v56 = vld [vmem:[%s15743_s5] sm:$0x1] }
0x2885   :  { %14034 = vmatprep.mubr.msk.f32.mxu1 %vm247_vm1, %v5620_v57  ;;  %16527 = sst [smem:[#allocation4_spill]] %s15748_s6 }
0x2886   :  { %14035 = vmatmul.mubr.msk.f32.vlgmr.msra.gmra.mxu1 %vm247_vm1, %v5621_v42  ;;  %v5834_v42 = vld [vmem:[%s15748_s6] sm:$0x1]  ;;  %16529 = sst [smem:[#allocation6_spill]] %s15800_s23 }
0x2887   :  { %14064 = vmatprep.mubr.msk.f32.mxu1 %vm14993_vm3, %v14990_v21 }
0x2946   :  { %v14036_v4 = vpop.f32.mrf.mxu1 }
0x2947   :  { %v5713_v33 = vadd.f32 %v14036_v4, %v12517_v2 }
0x2948   :  { %v5707_v36 = vpop.f32.mrf.mxu1 }
0x2949   :  { %v5717_v47 = vmul.f32 %v5713_v33, %v5713_v33  ;;  %v5708_v48 = vadd.f32 %v12517_v2, %v5707_v36 }
0x294b   :  { %v5719_v5 = vmul.f32 %v5717_v47, %v5713_v33  ;;  %v5716_v6 = vmul.f32 %v5708_v48, %v5708_v48 }
0x294d   :  { %v5721_v7 = vmul.f32 0.044715, %v5719_v5  ;;  %v5718_v8 = vmul.f32 %v5716_v6, %v5708_v48  ;;  %v12551_v6 = vld [vmem:[%s15052_s17 + $0x18] sm:$0xff] }
0x294f   :  { %v5723_v9 = vadd.f32 %v5721_v7, %v5713_v33  ;;  %v5720_v10 = vmul.f32 0.044715, %v5718_v8 }
0x2951   :  { %v5725_v11 = vmul.f32 0.7978846, %v5723_v9  ;;  %v5722_v12 = vadd.f32 %v5720_v10, %v5708_v48 }
0x2953   :  { %14853 = vtanh.f32 %v5725_v11  ;;  %v5724_v13 = vmul.f32 0.7978846, %v5722_v12  ;;  %v5854_v12 = vld [vmem:[%s15800_s23] sm:$0x1] }
0x2955   :  { %14855 = vtanh.f32 %v5724_v13  ;;  %v12538_v13 = vld [vmem:[%s15800_s23 + $0x1] sm:$0x1] }
0x2960   :  { %v14854_v15 = vpop.eup %14853 }
0x2961   :  { %v5729_v16 = vadd.f32 1.0, %v14854_v15 }
0x2962   :  { %v14856_v18 = vpop.eup %14855 }
0x2963   :  { %v5728_v19 = vadd.f32 1.0, %v14856_v18  ;;  %v5731_v22 = vmul.f32 0.5, %v5729_v16 }
0x2965   :  { %v5730_v26 = vmul.f32 0.5, %v5728_v19  ;;  %v5733_v28 = vmul.f32 %v5731_v22, %v5713_v33 }
0x2967   :  { %v5732_v27 = vmul.f32 %v5730_v26, %v5708_v48 }
0x2969   :  { %14053 = vmatprep.mubr.msk.f32.mxu0 %vm3247_vm8, %v5732_v27 }
0x296a   :  { %14054 = vmatmul.mubr.msk.f32.vlgmr.msra.gmra.mxu0 %vm3247_vm8, %v5733_v28 }
0x296b   :  { %14094 = vmatprep.mubr.msk.f32.mxu0 %vm14993_vm3, %v14990_v21  ;;  %14087 = vmatpush3.msra.mxu0 %v12537_v45  ;;  %v12550_v45 = vld [vmem:[%s15052_s17 + $0x10] sm:$0xff]  ;;  %s15016_s17 = smov 29  }
0x296c   :  { %14088 = vmatprep.subr.mxu0 %v14990_v21  ;;  %s15828_s15 = sld [smem:[%s16518_s0 + %s15016_s17]]  }
0x296d   :  { %14089 = vmatpush3.msra.mxu0 %v12536_v46 }
0x296e   :  { %14090 = vmatprep.subr.mxu0 %v14990_v21 }
0x296f   :  { %14091 = vmatpush3.msra.mxu0 %v12535_v39 }
0x2970   :  { %14092 = vmatprep.subr.mxu0 %v14990_v21 }
0x2971   :  { %14093 = vmatpush3.msra.mxu0 %v12534_v51 }
0x2972   :  { %14097 = vmatprep.subr.mxu0 %v14990_v21 }
0x2a2a   :  { %v14055_v50 = vpop.f32.mrf.mxu0 }
0x2a2c   :  { %v5815_v29 = vpop.f32.mrf.mxu0 }
0x2a2d   :  { %v5823_v32 = vadd.f32 %v5815_v29, %v15681_v20  ;;  %v5853_v20 = vld [vmem:[%s15721_s16 + $0x18] sm:$0xff]  ;;  %s15014_s16 = smov 28  }
0x2a2e   :  { %14057 = vmatpush3.msra.mxu1 %v5853_v20  ;;  %s15761_s1 = sld [smem:[%s16518_s0 + %s15014_s16]]   ;;  %s15017_s16 = smov 30  }
0x2a2f   :  { %v5832_v23 = vadd.f32 %v12531_v53, %v5823_v32  ;;  %14058 = vmatprep.subr.mxu1 %v14990_v21  ;;  %s15833_s6 = sld [smem:[%s16518_s0 + %s15017_s16]]  }
0x2a30   :  { %14059 = vmatpush3.msra.mxu1 %v5852_v3 }
0x2a31   :  { %v5835_v34 = vsel %vm850_vm4, %v5832_v23, 0.0  ;;  %14060 = vmatprep.subr.mxu1 %v14990_v21 }
0x2a32   :  { %5836 = vadd.xlane.f32.xlu1 %v5835_v34  ;;  %14061 = vmatpush3.msra.mxu1 %v5851_v49 }
0x2a33   :  { %14062 = vmatprep.subr.mxu1 %v14990_v21 }
0x2a34   :  { %14063 = vmatpush3.msra.mxu1 %v5850_v0  ;;  %16528 = sst [smem:[#allocation5_spill]] %s15761_s1  ;;  %v5944_v59 = vld [vmem:[%s15761_s1 + $0x38] sm:$0xff]  ;;  %v5943_v60 = vld [vmem:[%s15761_s1 + $0x30] sm:$0xff]  ;;  %v5942_v62 = vld [vmem:[%s15761_s1 + $0x28] sm:$0xff] }
0x2a35   :  { %14067 = vmatprep.subr.mxu1 %v14990_v21  ;;  %v12547_v38 = vld [vmem:[%s15761_s1 + $0x78] sm:$0xff]  ;;  %v12546_v61 = vld [vmem:[%s15761_s1 + $0x70] sm:$0xff]  ;;  %v12545_v1 = vld [vmem:[%s15761_s1 + $0x68] sm:$0xff] }
0x2a36   :  { %v5941_v2 = vld [vmem:[%s15761_s1 + $0x20] sm:$0xff]  ;;  %v5940_v33 = vld [vmem:[%s15761_s1 + $0x18] sm:$0xff]  ;;  %v5939_v47 = vld [vmem:[%s15761_s1 + $0x10] sm:$0xff] }
0x2a37   :  { %v12544_v4 = vld [vmem:[%s15761_s1 + $0x60] sm:$0xff]  ;;  %v12543_v36 = vld [vmem:[%s15761_s1 + $0x58] sm:$0xff]  ;;  %v12542_v48 = vld [vmem:[%s15761_s1 + $0x50] sm:$0xff] }
0x2a38   :  { %v5938_v5 = vld [vmem:[%s15761_s1 + $0x8] sm:$0xff]  ;;  %v5937_v10 = vld [vmem:[%s15761_s1] sm:$0xff]  ;;  %v15808_v0 = vld [vmem:[%s15033_s10 + $0x10] sm:$0xff] }
0x2a39   :  { %v12541_v8 = vld [vmem:[%s15761_s1 + $0x48] sm:$0xff]  ;;  %v12540_v11 = vld [vmem:[%s15761_s1 + $0x40] sm:$0xff] }
0x2a43   :  { %6208 = vperm.xlu1 %14760, %v12555_v54   ;;  %v15814_v54 = vld [vmem:[%s15033_s10 + $0x18] sm:$0xff] }
0x2abb   :  { %v5837_v37 = vpop.xlane.xlu1 %5836 }
0x2abc   :  { %v5838_v40 = vmul.f32 0.03125, %v5837_v37 }
0x2abe   :  { %v5839_v41 = vsub.f32 %v5832_v23, %v5838_v40 }
0x2abf   :  { %v15789_v7 = vpop.permute.xlu1 %6208 }
0x2ac0   :  { %v5840_v43 = vmul.f32 %v5839_v41, %v5839_v41  ;;  %v6212_v9 = vmul.f32 %v12551_v6, %v15789_v7 }
0x2ac2   :  { %v5841_v44 = vsel %vm850_vm4, %v5840_v43, 0.0 }
0x2ac3   :  { %5842 = vadd.xlane.f32.xlu0 %v5841_v44 }
0x2ad9   :  { %6203 = vperm.xlu0 %14759, %v12554_v24  }
0x2b4c   :  { %v5843_v14 = vpop.xlane.xlu0 %5842 }
0x2b4d   :  { %v5844_v17 = vmul.f32 0.03125, %v5843_v14  ;;  %v6297_v14 = vld [vmem:[%s15045_s14 + $0x18] sm:$0xff] }
0x2b4f   :  { %v5845_v30 = vadd.f32 1e-05, %v5844_v17  ;;  %v6296_v17 = vld [vmem:[%s15045_s14 + $0x10] sm:$0xff] }
0x2b51   :  { %14857 = vrsqrt.f32 %v5845_v30  ;;  %v6295_v30 = vld [vmem:[%s15045_s14 + $0x8] sm:$0xff] }
0x2b54   :  { %v15805_v3 = vpop.permute.xlu0 %6203 }
0x2b55   :  { %v6211_v51 = vmul.f32 %v12550_v45, %v15805_v3 }
0x2b5e   :  { %v14858_v31 = vpop.eup %14857 }
0x2b5f   :  { %v5847_v57 = vmul.f32 %v14858_v31, %v5839_v41  ;;  %v6294_v31 = vld [vmem:[%s15045_s14] sm:$0xff]  ;;  %s16530_s14 = sld [smem:[#allocation3_spill]] }
0x2b61   :  { %v5848_v35 = vmul.f32 %v5847_v57, %v5833_v56  ;;  %v5945_v56 = vld [vmem:[%s15828_s15] sm:$0x1]  ;;  %v12548_v57 = vld [vmem:[%s15828_s15 + $0x1] sm:$0x1] }
0x2b63   :  { %v5849_v58 = vadd.f32 %v5848_v35, %v5834_v42 }
0x2b65   :  { %14065 = vmatmul.mubr.msk.f32.vlgmr.msra.gmra.mxu1 %vm247_vm1, %v5849_v58  ;;  %14095 = vmatmul.mubr.msk.f32.vlgmr.msra.gmra.mxu0 %vm247_vm1, %v5849_v58 }
0x2b66   :  { %14083 = vmatprep.mubr.msk.f32.mxu1 %vm14993_vm3, %v14990_v21  ;;  %14113 = vmatprep.mubr.msk.f32.mxu0 %vm14993_vm3, %v14990_v21 }
0x2b67   :  { %14068 = vmatpush3.msra.mxu1 %v5944_v59  ;;  %14098 = vmatpush3.msra.mxu0 %v12547_v38 }
0x2b68   :  { %14069 = vmatprep.subr.mxu1 %v14990_v21  ;;  %14099 = vmatprep.subr.mxu0 %v14990_v21 }
0x2b69   :  { %14070 = vmatpush3.msra.mxu1 %v5943_v60  ;;  %14100 = vmatpush3.msra.mxu0 %v12546_v61 }
0x2b6a   :  { %14071 = vmatprep.subr.mxu1 %v14990_v21  ;;  %14101 = vmatprep.subr.mxu0 %v14990_v21 }
0x2b6b   :  { %14072 = vmatpush3.msra.mxu1 %v5942_v62  ;;  %14102 = vmatpush3.msra.mxu0 %v12545_v1  ;;  %v6391_v1 = vld [vmem:[%s15072_s21 + $0x18] sm:$0xff] }
0x2b6c   :  { %14073 = vmatprep.subr.mxu1 %v14990_v21  ;;  %14103 = vmatprep.subr.mxu0 %v14990_v21 }
0x2b6d   :  { %14074 = vmatpush3.msra.mxu1 %v5941_v2  ;;  %14104 = vmatpush3.msra.mxu0 %v12544_v4  ;;  %v6390_v2 = vld [vmem:[%s15072_s21 + $0x10] sm:$0xff]  ;;  %v6389_v4 = vld [vmem:[%s15072_s21 + $0x8] sm:$0xff] }
0x2b6e   :  { %14075 = vmatprep.subr.mxu1 %v14990_v21  ;;  %14105 = vmatprep.subr.mxu0 %v14990_v21 }
0x2b6f   :  { %14076 = vmatpush3.msra.mxu1 %v5940_v33  ;;  %14106 = vmatpush3.msra.mxu0 %v12543_v36  ;;  %v6388_v33 = vld [vmem:[%s15072_s21] sm:$0xff] }
0x2b70   :  { %14077 = vmatprep.subr.mxu1 %v14990_v21  ;;  %14107 = vmatprep.subr.mxu0 %v14990_v21  ;;  %v12558_v36 = vld [vmem:[%s15085_s25] ss:$0 sm:$0xff] }
0x2b71   :  { %14078 = vmatpush3.msra.mxu1 %v5939_v47  ;;  %14108 = vmatpush3.msra.mxu0 %v12542_v48 }
0x2b72   :  { %14079 = vmatprep.subr.mxu1 %v14990_v21  ;;  %14109 = vmatprep.subr.mxu0 %v14990_v21 }
0x2b73   :  { %14080 = vmatpush3.msra.mxu1 %v5938_v5  ;;  %14110 = vmatpush3.msra.mxu0 %v12541_v8 }
0x2b74   :  { %14081 = vmatprep.subr.mxu1 %v14990_v21  ;;  %14111 = vmatprep.subr.mxu0 %v14990_v21 }
0x2b75   :  { %14082 = vmatpush3.msra.mxu1 %v5937_v10  ;;  %14112 = vmatpush3.msra.mxu0 %v12540_v11 }
0x2b76   :  { %14116 = vmatprep.subr.mxu1 %v6212_v9  ;;  %14134 = vmatprep.subr.mxu0 %v6391_v1 }
0x2c25   :  { %v5924_v15 = vpop.f32.mrf.mxu1  ;;  %v6094_v16 = vpop.f32.mrf.mxu0 }
0x2c26   :  { %v5925_v18 = vadd.f32 %v5924_v15, %v5854_v12  ;;  %v6095_v19 = vadd.f32 %v12538_v13, %v6094_v16  ;;  %v12561_v12 = vld [vmem:[%s15097_s29] ss:$0 sm:$0xff] }
0x2c27   :  { %v14066_v22 = vpop.f32.mrf.mxu1  ;;  %v14096_v26 = vpop.f32.mrf.mxu0 }
0x2c28   :  { %v5928_v27 = vmul.f32 %v5925_v18, %v5925_v18  ;;  %v6098_v28 = vmul.f32 %v6095_v19, %v6095_v19 }
0x2c2a   :  { %v5929_v50 = vmul.f32 %v5928_v27, %v5925_v18  ;;  %v6099_v29 = vmul.f32 %v6098_v28, %v6095_v19 }
0x2c2c   :  { %v5930_v53 = vmul.f32 0.044715, %v5929_v50  ;;  %v6100_v32 = vmul.f32 0.044715, %v6099_v29 }
0x2c2e   :  { %v5931_v23 = vadd.f32 %v5930_v53, %v5925_v18  ;;  %v6101_v34 = vadd.f32 %v6100_v32, %v6095_v19 }
0x2c30   :  { %v5932_v37 = vmul.f32 0.7978846, %v5931_v23  ;;  %v6102_v40 = vmul.f32 0.7978846, %v6101_v34 }
0x2c32   :  { %14859 = vtanh.f32 %v5932_v37 }
0x2c33   :  { %14861 = vtanh.f32 %v6102_v40 }
0x2c3f   :  { %v14860_v41 = vpop.eup %14859 }
0x2c40   :  { %v14862_v43 = vpop.eup %14861  ;;  %v5934_v44 = vadd.f32 1.0, %v14860_v41 }
0x2c41   :  { %v6104_v24 = vadd.f32 1.0, %v14862_v43 }
0x2c42   :  { %v5935_v20 = vmul.f32 0.5, %v5934_v44 }
0x2c43   :  { %v6105_v46 = vmul.f32 0.5, %v6104_v24 }
0x2c44   :  { %v5936_v49 = vmul.f32 %v5935_v20, %v5925_v18 }
0x2c45   :  { %v6106_v39 = vmul.f32 %v6105_v46, %v6095_v19 }
0x2c46   :  { %14084 = vmatmul.mubr.msk.f32.vlgmr.msra.gmra.mxu1 %vm3247_vm8, %v5936_v49 }
0x2c47   :  { %14114 = vmatmul.mubr.msk.f32.vlgmr.msra.gmra.mxu0 %vm3247_vm8, %v6106_v39  ;;  %14117 = vmatpush3.msra.mxu1 %v6212_v9 }
0x2c48   :  { %14118 = vmatprep.subr.mxu1 %v6211_v51  ;;  %14120 = vmatprep.mubr.msk.f32.mxu1 %vm154_vm0, %v15808_v0 }
0x2c49   :  { %14119 = vmatpush3.msra.mxu1 %v6211_v51  ;;  %14135 = vmatpush3.msra.mxu0 %v6391_v1  ;;  %v6956_v1 = vld [vmem:[%s15158_s8 + $0x18] sm:$0xff] }
0x2c4a   :  { %14121 = vmatmul.mubr.msk.f32.vlgmr.msra.gmra.mxu1 %vm154_vm0, %v15814_v54  ;;  %14123 = vmatprep.subr.mxu1 %v6297_v14 }
0x2c4b   :  { %14124 = vmatpush3.msra.mxu1 %v6297_v14  ;;  %14136 = vmatprep.subr.mxu0 %v6390_v2 }
0x2c4c   :  { %14125 = vmatprep.subr.mxu1 %v6296_v17  ;;  %14137 = vmatpush3.msra.mxu0 %v6390_v2  ;;  %v7048_v2 = vld [vmem:[%s15163_s13 + $0x18] sm:$0xff] }
0x2c4d   :  { %14126 = vmatpush3.msra.mxu1 %v6296_v17  ;;  %14138 = vmatprep.subr.mxu0 %v6389_v4 }
0x2c4e   :  { %14127 = vmatprep.subr.mxu1 %v6295_v30  ;;  %14139 = vmatpush3.msra.mxu0 %v6389_v4  ;;  %v6955_v4 = vld [vmem:[%s15158_s8 + $0x10] sm:$0xff] }
0x2c4f   :  { %14128 = vmatpush3.msra.mxu1 %v6295_v30  ;;  %14140 = vmatprep.subr.mxu0 %v6388_v33 }
0x2c50   :  { %14129 = vmatprep.subr.mxu1 %v6294_v31  ;;  %14141 = vmatpush3.msra.mxu0 %v6388_v33  ;;  %v7047_v33 = vld [vmem:[%s15163_s13 + $0x10] sm:$0xff] }
0x2c51   :  { %14130 = vmatpush3.msra.mxu1 %v6294_v31  ;;  %14159 = vmatprep.subr.mxu0 %v14990_v21 }
0x2c52   :  { %14145 = vmatprep.subr.mxu1 %v14990_v21 }
0x2d06   :  { %v6015_v42 = vpop.f32.mrf.mxu1 }
0x2d07   :  { %v6016_v35 = vadd.f32 %v6015_v42, %v5945_v56  ;;  %v6187_v58 = vpop.f32.mrf.mxu0 }
0x2d08   :  { %v6188_v59 = vadd.f32 %v12548_v57, %v6187_v58  ;;  %v14085_v38 = vpop.f32.mrf.mxu1 }
0x2d09   :  { %6020 = vst.msk [vmem:[%s15833_s6] sm:$0x1] %vm6019_vm9, %v6016_v35  ;;  %v14115_v60 = vpop.f32.mrf.mxu0 }
0x2d0a   :  { %6191 = vst.msk [vmem:[%s15833_s6 + $0x2] sm:$0x1] %vm6019_vm9, %v6188_v59  ;;  %v14122_v61 = vpop.f32.mrf.mxu1 }
0x2d0c   :  { %v6285_v62 = vpop.f32.mrf.mxu1 }
0x2d0d   :  { %14131 = vmatprep.mubr.msk.f32.mxu1 %vm247_vm1, %v6285_v62 }
0x2d0e   :  { %14132 = vmatmul.mubr.msk.f32.vlgmr.msra.gmra.mxu1 %vm247_vm1, %v14122_v61 }
0x2d0f   :  { %14149 = vmatprep.mubr.msk.f32.mxu1 %vm14993_vm3, %v14990_v21 }
0x2dce   :  { %v14133_v47 = vpop.f32.mrf.mxu1 }
0x2dcf   :  { %v6383_v48 = vadd.f32 %v14133_v47, %v12558_v36  ;;  %v7046_v47 = vld [vmem:[%s15163_s13 + $0x8] sm:$0xff] }
0x2dd0   :  { %v6377_v5 = vpop.f32.mrf.mxu1 }
0x2dd1   :  { %v6387_v6 = vmax.f32 %v6383_v48, 0.0  ;;  %v6378_v8 = vadd.f32 %v12558_v36, %v6377_v5  ;;  %v6954_v36 = vld [vmem:[%s15158_s8 + $0x8] sm:$0xff]  ;;  %v6953_v48 = vld [vmem:[%s15158_s8] sm:$0xff] }
0x2dd2   :  { %v7045_v5 = vld [vmem:[%s15163_s13] sm:$0xff] }
0x2dd3   :  { %v6503_v9 = vmul.f32 %v6387_v6, %v15789_v7  ;;  %v6386_v10 = vmax.f32 %v6378_v8, 0.0 }
0x2dd5   :  { %v6502_v11 = vmul.f32 %v6386_v10, %v15805_v3  ;;  %14142 = vmatprep.mubr.msk.f32.mxu0 %vm247_vm1, %v6386_v10  ;;  %14146 = vmatpush3.msra.mxu1 %v6503_v9 }
0x2dd6   :  { %14143 = vmatmul.mubr.msk.f32.vlgmr.msra.gmra.mxu0 %vm247_vm1, %v6387_v6  ;;  %14147 = vmatprep.subr.mxu1 %v14990_v21  ;;  %v7134_v6 = vld [vmem:[%s15171_s19 + $0x18] sm:$0xff] }
0x2dd7   :  { %14148 = vmatpush3.msra.mxu1 %v6502_v11  ;;  %14163 = vmatprep.mubr.msk.f32.mxu0 %vm14993_vm3, %v14990_v21 }
0x2dd8   :  { %14152 = vmatprep.subr.mxu1 %v14990_v21 }
0x2e96   :  { %v14144_v13 = vpop.f32.mrf.mxu0 }
0x2e97   :  { %v6477_v15 = vadd.f32 %v14144_v13, %v12561_v12 }
0x2e98   :  { %v6471_v16 = vpop.f32.mrf.mxu0 }
0x2e99   :  { %v6472_v18 = vadd.f32 %v12561_v12, %v6471_v16  ;;  %v6483_v19 = vsel %vm423_vm2, %v6477_v15, -inf }
0x2e9a   :  { %6484 = vmax.xlane.f32.xlu0 %v6483_v19  ;;  %v12568_v19 = vld [vmem:[%s15184_s24] ss:$0 sm:$0xff] }
0x2e9b   :  { %v6480_v22 = vsel %vm423_vm2, %v6472_v18, -inf }
0x2e9c   :  { %6481 = vmax.xlane.f32.xlu1 %v6480_v22 }
0x2f23   :  { %v6485_v26 = vpop.xlane.xlu0 %6484 }
0x2f24   :  { %v6487_v27 = vsub.f32 %v6477_v15, %v6485_v26  ;;  %v12569_v26 = vld [vmem:[%s15189_s30] ss:$0 sm:$0xff] }
0x2f25   :  { %v6482_v28 = vpop.xlane.xlu1 %6481 }
0x2f26   :  { %v6490_v50 = vmul.f32 1.442695, %v6487_v27  ;;  %v6486_v29 = vsub.f32 %v6472_v18, %v6482_v28 }
0x2f28   :  { %14863 = vpow2.f32 %v6490_v50  ;;  %v6488_v53 = vmul.f32 1.442695, %v6486_v29 }
0x2f2a   :  { %14865 = vpow2.f32 %v6488_v53 }
0x2f35   :  { %v14864_v32 = vpop.eup %14863 }
0x2f36   :  { %v6495_v23 = vsel %vm423_vm2, %v14864_v32, 0.0 }
0x2f37   :  { %v14866_v34 = vpop.eup %14865  ;;  %6496 = vadd.xlane.f32.xlu0 %v6495_v23  ;;  %v7133_v23 = vld [vmem:[%s15171_s19 + $0x10] sm:$0xff] }
0x2f38   :  { %v6492_v37 = vsel %vm423_vm2, %v14866_v34, 0.0 }
0x2f39   :  { %6493 = vadd.xlane.f32.xlu1 %v6492_v37  ;;  %v7131_v37 = vld [vmem:[%s15171_s19] sm:$0xff] }
0x2fc0   :  { %v6497_v40 = vpop.xlane.xlu0 %6496 }
0x2fc1   :  { %14867 = vrcp.f32 %v6497_v40  ;;  %v12573_v40 = vld [vmem:[%s15215_s4] ss:$0 sm:$0xff] }
0x2fc2   :  { %v6494_v41 = vpop.xlane.xlu1 %6493 }
0x2fc3   :  { %14869 = vrcp.f32 %v6494_v41 }
0x2fce   :  { %v14868_v43 = vpop.eup %14867 }
0x2fcf   :  { %v6501_v44 = vmul.f32 %v14868_v43, %v14864_v32 }
0x2fd0   :  { %v14870_v24 = vpop.eup %14869 }
0x2fd1   :  { %v15865_v20 = vmul.f32 %v6501_v44, %v15789_v7  ;;  %v6500_v45 = vmul.f32 %v14870_v24, %v14866_v34  ;;  %v7132_v34 = vld [vmem:[%s15171_s19 + $0x8] sm:$0xff]  ;;  %v12570_v24 = vld [vmem:[%s15220_s11] ss:$0 sm:$0xff] }
0x2fd3   :  { %14160 = vmatpush3.msra.mxu0 %v15865_v20  ;;  %v15869_v46 = vmul.f32 %v6500_v45, %v15805_v3 }
0x2fd4   :  { %14161 = vmatprep.subr.mxu0 %v14990_v21 }
0x2fd5   :  { %6506 = vxpose.xlu1.b32.start [1/2] (short) (narrow) %v15869_v46, 8  ;;  %14162 = vmatpush3.msra.mxu0 %v15869_v46 }
0x2fd6   :  { %14173 = vmatprep.subr.mxu0 %v6956_v1 }
0x2fd9   :  { %6507 = vxpose.xlu1.b32.end [2/2] (short) (narrow) %v15865_v20, 8 }
0x3051   :  { %v6522_v49 = vpop.trf.xlu1 }
0x3052   :  { %14150 = vmatmul.mubr.msk.f32.vlgmr.msra.gmra.mxu1 %vm154_vm0, %v6522_v49 }
0x3053   :  { %14153 = vmatpush3.msra.mxu1 %v15814_v54  ;;  %14156 = vmatprep.mubr.msk.f32.mxu1 %vm14993_vm3, %v14990_v21 }
0x3054   :  { %14154 = vmatprep.subr.mxu1 %v14990_v21 }
0x3055   :  { %14155 = vmatpush3.msra.mxu1 %v15808_v0 }
0x3056   :  { %14166 = vmatprep.subr.mxu1 %v14990_v21  ;;  %14157 = vmatmul.mubr.msk.f32.vlgmr.msra.gmra.mxu1 %vm154_vm0, %v6522_v49 }
0x3057   :  { %14167 = vmatpush3.msra.mxu1 %v15865_v20  ;;  %14170 = vmatprep.mubr.msk.f32.mxu1 %vm14993_vm3, %v14990_v21 }
0x3058   :  { %14168 = vmatprep.subr.mxu1 %v14990_v21 }
0x3059   :  { %14169 = vmatpush3.msra.mxu1 %v15869_v46 }
0x305a   :  { %14171 = vmatmul.mubr.msk.f32.vlgmr.msra.gmra.mxu1 %vm154_vm0, %v6522_v49  ;;  %14184 = vmatprep.subr.mxu1 %v7048_v2 }
0x305b   :  { %14185 = vmatpush3.msra.mxu1 %v7048_v2 }
0x305c   :  { %14186 = vmatprep.subr.mxu1 %v7047_v33 }
0x305d   :  { %14187 = vmatpush3.msra.mxu1 %v7047_v33 }
0x305e   :  { %14188 = vmatprep.subr.mxu1 %v7046_v47 }
0x305f   :  { %14189 = vmatpush3.msra.mxu1 %v7046_v47 }
0x3060   :  { %14190 = vmatprep.subr.mxu1 %v7045_v5 }
0x3061   :  { %14191 = vmatpush3.msra.mxu1 %v7045_v5 }
0x3112   :  { %v6607_v7 = vpop.f32.mrf.mxu1 }
0x3113   :  { %6906 = vst.msk [vmem:[#allocation2 + $0x1] sm:$0xff] %vm247_vm1, %v6607_v7 }
0x3114   :  { %v14151_v3 = vpop.f32.mrf.mxu1 }
0x3116   :  { %v6677_v39 = vpop.f32.mrf.mxu1 }
0x3117   :  { %14164 = vmatmul.mubr.msk.f32.vlgmr.msra.gmra.mxu0 %vm154_vm0, %v6677_v39  ;;  %v12576_v39 = vld [vmem:[%s15226_s18] ss:$0 sm:$0xff] }
0x3118   :  { %v14158_v0 = vpop.f32.mrf.mxu1  ;;  %14174 = vmatpush3.msra.mxu0 %v6956_v1 }
0x3119   :  { %14175 = vmatprep.subr.mxu0 %v6955_v4  ;;  %v12589_v0 = vld [vmem:[%s15158_s8 + $0x38] sm:$0xff] }
0x311a   :  { %v15891_v51 = vpop.f32.mrf.mxu1  ;;  %v15893_v54 = vld [vmem:[#allocation2] sm:$0xff]  ;;  %v15897_v30 = vld [vmem:[#allocation2 + $0x8] sm:$0x1]  ;;  %14176 = vmatpush3.msra.mxu0 %v6955_v4 }
0x311b   :  { %v6911_v14 = vsel %vm247_vm1, %v15893_v54, 0.0  ;;  %v6914_v31 = vsel %vm850_vm4, %v15897_v30, 0.0  ;;  %14177 = vmatprep.subr.mxu0 %v6954_v36 }
0x311c   :  { %6912 = vadd.xlane.f32.xlu0 %v6911_v14  ;;  %v14172_v17 = vpop.f32.mrf.mxu1  ;;  %14178 = vmatpush3.msra.mxu0 %v6954_v36  ;;  %v12591_v36 = vld [vmem:[%s15220_s11 + $0x1] ss:$0 sm:$0xff] }
0x311d   :  { %14179 = vmatprep.subr.mxu0 %v6953_v48 }
0x311e   :  { %14180 = vmatpush3.msra.mxu0 %v6953_v48 }
0x311f   :  { %14195 = vmatprep.subr.mxu0 %v7134_v6 }
0x3120   :  { %6915 = vadd.xlane.f32.xlu0 %v6914_v31 }
0x31a5   :  { %v6913_v56 = vpop.xlane.xlu0 %6912 }
0x31a6   :  { %v6917_v57 = vmul.f32 0.03125, %v6913_v56 }
0x31a8   :  { %v6919_v42 = vsub.f32 %v15893_v54, %v6917_v57 }
0x31a9   :  { %v6916_v35 = vpop.xlane.xlu0 %6915 }
0x31aa   :  { %v6918_v58 = vmul.f32 0.03125, %v6916_v35  ;;  %v6921_v59 = vmul.f32 %v6919_v42, %v6919_v42  ;;  %v12587_v35 = vld [vmem:[%s15158_s8 + $0x28] sm:$0xff] }
0x31ac   :  { %v6920_v38 = vsub.f32 %v15897_v30, %v6918_v58  ;;  %v6923_v60 = vsel %vm247_vm1, %v6921_v59, 0.0  ;;  %v12586_v58 = vld [vmem:[%s15158_s8 + $0x20] sm:$0xff]  ;;  %v12605_v59 = vld [vmem:[%s15171_s19 + $0x38] sm:$0xff] }
0x31ad   :  { %6924 = vadd.xlane.f32.xlu0 %v6923_v60  ;;  %v12603_v60 = vld [vmem:[%s15171_s19 + $0x28] sm:$0xff] }
0x31ae   :  { %v6922_v61 = vmul.f32 %v6920_v38, %v6920_v38 }
0x31b0   :  { %v6926_v62 = vsel %vm850_vm4, %v6922_v61, 0.0  ;;  %v12602_v61 = vld [vmem:[%s15171_s19 + $0x20] sm:$0xff] }
0x31b1   :  { %6927 = vadd.xlane.f32.xlu0 %v6926_v62 }
0x31d7   :  { %v15914_v8 = vpop.f32.mrf.mxu0 }
0x31d9   :  { %v14165_v9 = vpop.f32.mrf.mxu0 }
0x31da   :  { %v12607_v9 = vld [vmem:[%s15226_s18 + $0x1] ss:$0 sm:$0xff] }
0x3236   :  { %v6925_v10 = vpop.xlane.xlu0 %6924 }
0x3237   :  { %v6929_v11 = vmul.f32 0.03125, %v6925_v10 }
0x3239   :  { %v6931_v12 = vadd.f32 1e-05, %v6929_v11 }
0x323a   :  { %v6928_v13 = vpop.xlane.xlu0 %6927 }
0x323b   :  { %14871 = vrsqrt.f32 %v6931_v12  ;;  %v6930_v15 = vmul.f32 0.03125, %v6928_v13 }
0x323d   :  { %v6932_v16 = vadd.f32 1e-05, %v6930_v15 }
0x323f   :  { %14873 = vrsqrt.f32 %v6932_v16 }
0x3248   :  { %v14872_v18 = vpop.eup %14871 }
0x3249   :  { %v6935_v22 = vmul.f32 %v14872_v18, %v6919_v42  ;;  %v12588_v42 = vld [vmem:[%s15158_s8 + $0x30] sm:$0xff] }
0x324b   :  { %v6943_v27 = vmul.f32 %v12568_v19, %v6935_v22 }
0x324c   :  { %v14874_v28 = vpop.eup %14873 }
0x324d   :  { %v15918_v50 = vadd.f32 %v12569_v26, %v6943_v27  ;;  %v6936_v29 = vmul.f32 %v14874_v28, %v6920_v38  ;;  %v12604_v38 = vld [vmem:[%s15171_s19 + $0x30] sm:$0xff] }
0x324f   :  { %v6944_v53 = vmul.f32 %v12568_v19, %v6936_v29  ;;  %14181 = vmatprep.mubr.msk.f32.mxu0 %vm247_vm1, %v15918_v50  ;;  %14192 = vmatprep.mubr.msk.f32.mxu1 %vm247_vm1, %v15918_v50 }
0x3251   :  { %v15924_v32 = vadd.f32 %v12569_v26, %v6944_v53 }
0x3253   :  { %14182 = vmatmul.mubr.msk.f32.vlgmr.msra.gmra.mxu0 %vm247_vm1, %v15924_v32  ;;  %14193 = vmatmul.mubr.msk.f32.vlgmr.msra.gmra.mxu1 %vm247_vm1, %v15924_v32 }
0x3254   :  { %14196 = vmatpush3.msra.mxu0 %v7134_v6  ;;  %14203 = vmatprep.mubr.msk.f32.mxu0 %vm247_vm1, %v15918_v50 }
0x3255   :  { %14197 = vmatprep.subr.mxu0 %v7133_v23 }
0x3256   :  { %14198 = vmatpush3.msra.mxu0 %v7133_v23  ;;  %v12597_v23 = vld [vmem:[%s15163_s13 + $0x38] sm:$0xff] }
0x3257   :  { %14199 = vmatprep.subr.mxu0 %v7132_v34 }
0x3258   :  { %14200 = vmatpush3.msra.mxu0 %v7132_v34 }
0x3259   :  { %14201 = vmatprep.subr.mxu0 %v7131_v37 }
0x325a   :  { %14202 = vmatpush3.msra.mxu0 %v7131_v37 }
0x325b   :  { %14204 = vmatmul.mubr.msk.f32.vlgmr.msra.gmra.mxu0 %vm247_vm1, %v15924_v32 }
0x3313   :  { %v14183_v41 = vpop.f32.mrf.mxu0  ;;  %v14194_v43 = vpop.f32.mrf.mxu1 }
0x3314   :  { %v7128_v44 = vadd.f32 %v14194_v43, %v12573_v40  ;;  %v7042_v17 = vadd.f32 %v14183_v41, %v12570_v24 }
0x3315   :  { %v7036_v45 = vpop.f32.mrf.mxu0  ;;  %v7122_v49 = vpop.f32.mrf.mxu1 }
0x3316   :  { %v7037_v7 = vadd.f32 %v12570_v24, %v7036_v45  ;;  %v7123_v3 = vadd.f32 %v12573_v40, %v7122_v49  ;;  %14206 = vmatprep.subr.msk.mxu1 %vm423_vm2, %v7128_v44  ;;  %v12596_v24 = vld [vmem:[%s15163_s13 + $0x30] sm:$0xff]  ;;  %v12595_v45 = vld [vmem:[%s15163_s13 + $0x28] sm:$0xff]  ;;  %v12594_v49 = vld [vmem:[%s15163_s13 + $0x20] sm:$0xff] }
0x3317   :  { %14207 = vmatpush3.xpose.msk.msra.mxu1 %vm423_vm2, %v7128_v44 }
0x3318   :  { %14208 = vmatprep.subr.msk.mxu1 %vm423_vm2, %v7123_v3  ;;  %14210 = vmatprep.mubr.msk.f32.mxu1 %vm423_vm2, %v7037_v7 }
0x331b   :  { %v14205_v14 = vpop.f32.mrf.mxu0  ;;  %14209 = vmatpush3.xpose.msk.msra.mxu1 %vm423_vm2, %v7123_v3 }
0x331c   :  { %v7214_v31 = vadd.f32 %v14205_v14, %v12576_v39  ;;  %14220 = vmatprep.subr.mxu1 %v12589_v0 }
0x331d   :  { %v7208_v56 = vpop.f32.mrf.mxu0 }
0x331e   :  { %v7209_v57 = vadd.f32 %v12576_v39, %v7208_v56  ;;  %14213 = vmatprep.subr.msk.mxu0 %vm1283_vm5, %v7214_v31  ;;  %14211 = vmatmul.mubr.msk.f32.vlgmr.msra.gmra.mxu1 %vm423_vm2, %v7042_v17 }
0x331f   :  { %14214 = vmatpush3.msk.msra.mxu0 %vm1283_vm5, %v7214_v31  ;;  %14221 = vmatpush3.msra.mxu1 %v12589_v0  ;;  %v12599_v0 = vld [vmem:[%s15215_s4 + $0x1] ss:$0 sm:$0xff] }
0x3320   :  { %14215 = vmatprep.subr.mxu0 %v7209_v57  ;;  %14228 = vmatprep.mubr.msk.f32.mxu1 %vm247_vm1, %v15918_v50 }
0x3321   :  { %14216 = vmatpush3.msra.mxu0 %v7209_v57  ;;  %14222 = vmatprep.subr.mxu1 %v12588_v42 }
0x3322   :  { %14223 = vmatpush3.msra.mxu1 %v12588_v42  ;;  %14231 = vmatprep.subr.mxu0 %v12597_v23 }
0x3323   :  { %14224 = vmatprep.subr.mxu1 %v12587_v35 }
0x3324   :  { %14225 = vmatpush3.msra.mxu1 %v12587_v35 }
0x3325   :  { %14226 = vmatprep.subr.mxu1 %v12586_v58 }
0x3326   :  { %14227 = vmatpush3.msra.mxu1 %v12586_v58 }
0x3327   :  { %14229 = vmatmul.mubr.msk.f32.vlgmr.msra.gmra.mxu1 %vm247_vm1, %v15924_v32  ;;  %14242 = vmatprep.subr.mxu1 %v12605_v59 }
0x3328   :  { %14243 = vmatpush3.msra.mxu1 %v12605_v59  ;;  %14250 = vmatprep.mubr.msk.f32.mxu1 %vm247_vm1, %v15918_v50 }
0x3329   :  { %14244 = vmatprep.subr.mxu1 %v12604_v38 }
0x332a   :  { %14245 = vmatpush3.msra.mxu1 %v12604_v38 }
0x332b   :  { %14246 = vmatprep.subr.mxu1 %v12603_v60 }
0x332c   :  { %14247 = vmatpush3.msra.mxu1 %v12603_v60 }
0x332d   :  { %14248 = vmatprep.subr.mxu1 %v12602_v61 }
0x332e   :  { %14249 = vmatpush3.msra.mxu1 %v12602_v61 }
0x332f   :  { %14251 = vmatmul.mubr.msk.f32.vlgmr.msra.gmra.mxu1 %vm247_vm1, %v15924_v32 }
0x33de   :  { %v14212_v62 = vpop.f32.mrf.mxu1 }
0x33df   :  { %v7305_v4 = vmul.f32 0.35355338, %v14212_v62 }
0x33e0   :  { %v7295_v1 = vpop.f32.mrf.mxu1 }
0x33e1   :  { %v7304_v2 = vmul.f32 0.35355338, %v7295_v1  ;;  %v7309_v48 = vsel %vm1257_vm7, %v7305_v4, -inf }
0x33e3   :  { %v7306_v33 = vsel %vm1253_vm6, %v7304_v2, -inf }
0x33e4   :  { %7307 = vmax.xlane.f32.xlu0 %v7306_v33 }
0x33e7   :  { %v14230_v47 = vpop.f32.mrf.mxu1 }
0x33e8   :  { %v15967_v5 = vadd.f32 %v14230_v47, %v12591_v36  ;;  %7310 = vmax.xlane.f32.xlu0 %v7309_v48 }
0x33e9   :  { %v7490_v6 = vpop.f32.mrf.mxu1 }
0x33ea   :  { %v7491_v7 = vadd.f32 %v12591_v36, %v7490_v6  ;;  %v12617_v6 = vld [vmem:[%s15289_s26 + $0x8] sm:$0xff] }
0x33ef   :  { %v14252_v10 = vpop.f32.mrf.mxu1 }
0x33f0   :  { %v7668_v11 = vadd.f32 %v14252_v10, %v12607_v9 }
0x33f1   :  { %v7662_v12 = vpop.f32.mrf.mxu1 }
0x33f2   :  { %v7663_v13 = vadd.f32 %v12607_v9, %v7662_v12  ;;  %14260 = vmatprep.subr.msk.mxu1 %vm1283_vm5, %v7668_v11 }
0x33f3   :  { %14261 = vmatpush3.msk.msra.mxu1 %vm1283_vm5, %v7668_v11 }
0x33f4   :  { %14262 = vmatprep.subr.mxu1 %v7663_v13 }
0x33f5   :  { %14263 = vmatpush3.msra.mxu1 %v7663_v13 }
0x346d   :  { %v7308_v15 = vpop.xlane.xlu0 %7307 }
0x346e   :  { %v7312_v16 = vsub.f32 %v7304_v2, %v7308_v15 }
0x3470   :  { %v7314_v18 = vmul.f32 1.442695, %v7312_v16  ;;  %v12633_v16 = vld [vmem:[%s15163_s13 + $0x58] sm:$0xff] }
0x3471   :  { %v7311_v19 = vpop.xlane.xlu0 %7310 }
0x3472   :  { %14875 = vpow2.f32 %v7314_v18  ;;  %v7313_v22 = vsub.f32 %v7305_v4, %v7311_v19  ;;  %v12632_v18 = vld [vmem:[%s15163_s13 + $0x50] sm:$0xff]  ;;  %v12631_v19 = vld [vmem:[%s15163_s13 + $0x48] sm:$0xff] }
0x3474   :  { %v7316_v26 = vmul.f32 1.442695, %v7313_v22  ;;  %v12630_v22 = vld [vmem:[%s15163_s13 + $0x40] sm:$0xff] }
0x3476   :  { %14877 = vpow2.f32 %v7316_v26  ;;  %v12625_v26 = vld [vmem:[%s15158_s8 + $0x58] sm:$0xff] }
0x347f   :  { %v14876_v27 = vpop.eup %14875 }
0x3480   :  { %v7318_v28 = vsel %vm1253_vm6, %v14876_v27, 0.0 }
0x3481   :  { %7319 = vadd.xlane.f32.xlu0 %v7318_v28 }
0x3483   :  { %v14878_v29 = vpop.eup %14877 }
0x3484   :  { %v7321_v53 = vsel %vm1257_vm7, %v14878_v29, 0.0 }
0x3485   :  { %7322 = vadd.xlane.f32.xlu0 %v7321_v53  ;;  %v12623_v53 = vld [vmem:[%s15158_s8 + $0x48] sm:$0xff] }
0x350a   :  { %v7320_v34 = vpop.xlane.xlu0 %7319 }
0x350b   :  { %14879 = vrcp.f32 %v7320_v34  ;;  %v12622_v34 = vld [vmem:[%s15158_s8 + $0x40] sm:$0xff] }
0x350e   :  { %v7323_v37 = vpop.xlane.xlu0 %7322 }
0x350f   :  { %14881 = vrcp.f32 %v7323_v37  ;;  %v12641_v37 = vld [vmem:[%s15171_s19 + $0x58] sm:$0xff] }
0x3518   :  { %v14880_v40 = vpop.eup %14879 }
0x3519   :  { %v7326_v41 = vmul.f32 %v14880_v40, %v14876_v27 }
0x351b   :  { %14217 = vmatprep.mubr.msk.f32.mxu0 %vm1253_vm6, %v7326_v41  ;;  %v12635_v41 = vld [vmem:[%s15215_s4 + $0x2] ss:$0 sm:$0xff] }
0x351c   :  { %v14882_v43 = vpop.eup %14881 }
0x351d   :  { %v7327_v44 = vmul.f32 %v14882_v43, %v14878_v29  ;;  %v12624_v29 = vld [vmem:[%s15158_s8 + $0x50] sm:$0xff] }
0x351e   :  { %v12640_v43 = vld [vmem:[%s15171_s19 + $0x50] sm:$0xff] }
0x351f   :  { %14218 = vmatmul.mubr.msk.f32.vlgmr.msra.gmra.mxu0 %vm1253_vm6, %v7327_v44 }
0x3520   :  { %14232 = vmatpush3.msra.mxu0 %v12597_v23  ;;  %14239 = vmatprep.mubr.msk.f32.mxu0 %vm247_vm1, %v15918_v50 }
0x3521   :  { %14233 = vmatprep.subr.mxu0 %v12596_v24 }
0x3522   :  { %14234 = vmatpush3.msra.mxu0 %v12596_v24 }
0x3523   :  { %14235 = vmatprep.subr.mxu0 %v12595_v45 }
0x3524   :  { %14236 = vmatpush3.msra.mxu0 %v12595_v45  ;;  %v12639_v45 = vld [vmem:[%s15171_s19 + $0x48] sm:$0xff] }
0x3525   :  { %14237 = vmatprep.subr.mxu0 %v12594_v49 }
0x3526   :  { %14238 = vmatpush3.msra.mxu0 %v12594_v49 }
0x3527   :  { %14240 = vmatmul.mubr.msk.f32.vlgmr.msra.gmra.mxu0 %vm247_vm1, %v15924_v32 }
0x3528   :  { %14257 = vmatprep.mubr.msk.f32.mxu0 %vm423_vm2, %v7491_v7 }
0x35df   :  { %v14219_v3 = vpop.f32.mrf.mxu0 }
0x35e1   :  { %v7403_v39 = vpop.f32.mrf.mxu0 }
0x35e7   :  { %v14241_v14 = vpop.f32.mrf.mxu0 }
0x35e8   :  { %v7582_v17 = vadd.f32 %v14241_v14, %v12599_v0 }
0x35e9   :  { %v7576_v31 = vpop.f32.mrf.mxu0 }
0x35ea   :  { %v7577_v56 = vadd.f32 %v12599_v0, %v7576_v31  ;;  %14253 = vmatprep.subr.msk.mxu0 %vm423_vm2, %v7582_v17 }
0x35eb   :  { %14254 = vmatpush3.xpose.msk.msra.mxu0 %vm423_vm2, %v7582_v17  ;;  %v12627_v17 = vld [vmem:[%s15220_s11 + $0x2] ss:$0 sm:$0xff] }
0x35ec   :  { %14255 = vmatprep.subr.msk.mxu0 %vm423_vm2, %v7577_v56 }
0x35ef   :  { %14256 = vmatpush3.xpose.msk.msra.mxu0 %vm423_vm2, %v7577_v56 }
0x35f0   :  { %14267 = vmatprep.subr.mxu0 %v12617_v6 }
0x35f2   :  { %14258 = vmatmul.mubr.msk.f32.vlgmr.msra.gmra.mxu0 %vm423_vm2, %v15967_v5  ;;  %v7412_v5 = vld [vmem:[%s15289_s26] sm:$0xff] }
0x35f3   :  { %14272 = vmatprep.subr.mxu1 %v7412_v5  ;;  %14268 = vmatpush3.msra.mxu0 %v12617_v6 }
0x35f4   :  { %14277 = vmatprep.subr.mxu0 %v12625_v26 }
0x36b2   :  { %v14259_v57 = vpop.f32.mrf.mxu0 }
0x36b3   :  { %v7759_v58 = vmul.f32 0.35355338, %v14259_v57 }
0x36b4   :  { %v7749_v42 = vpop.f32.mrf.mxu0 }
0x36b5   :  { %v7758_v35 = vmul.f32 0.35355338, %v7749_v42  ;;  %v7763_v38 = vsel %vm1257_vm7, %v7759_v58, -inf  ;;  %v12643_v42 = vld [vmem:[%s15226_s18 + $0x2] ss:$0 sm:$0xff] }
0x36b7   :  { %v7760_v59 = vsel %vm1253_vm6, %v7758_v35, -inf }
0x36b8   :  { %7761 = vmax.xlane.f32.xlu0 %v7760_v59 }
0x36bc   :  { %7764 = vmax.xlane.f32.xlu0 %v7763_v38 }
0x3741   :  { %v7762_v60 = vpop.xlane.xlu0 %7761 }
0x3742   :  { %v7766_v61 = vsub.f32 %v7758_v35, %v7762_v60 }
0x3744   :  { %v7768_v62 = vmul.f32 1.442695, %v7766_v61 }
0x3745   :  { %v7765_v1 = vpop.xlane.xlu0 %7764 }
0x3746   :  { %14883 = vpow2.f32 %v7768_v62  ;;  %v7767_v2 = vsub.f32 %v7759_v58, %v7765_v1 }
0x3748   :  { %v7770_v4 = vmul.f32 1.442695, %v7767_v2 }
0x374a   :  { %14885 = vpow2.f32 %v7770_v4 }
0x3753   :  { %v14884_v33 = vpop.eup %14883 }
0x3754   :  { %v7772_v36 = vsel %vm1253_vm6, %v14884_v33, 0.0 }
0x3755   :  { %7773 = vadd.xlane.f32.xlu0 %v7772_v36 }
0x3757   :  { %v14886_v47 = vpop.eup %14885 }
0x3758   :  { %v7775_v48 = vsel %vm1257_vm7, %v14886_v47, 0.0 }
0x3759   :  { %7776 = vadd.xlane.f32.xlu0 %v7775_v48 }
0x37de   :  { %v7774_v9 = vpop.xlane.xlu0 %7773 }
0x37df   :  { %14887 = vrcp.f32 %v7774_v9 }
0x37e2   :  { %v7777_v10 = vpop.xlane.xlu0 %7776 }
0x37e3   :  { %14889 = vrcp.f32 %v7777_v10 }
0x37ec   :  { %v14888_v11 = vpop.eup %14887 }
0x37ed   :  { %v7780_v12 = vmul.f32 %v14888_v11, %v14884_v33 }
0x37ef   :  { %14264 = vmatprep.mubr.msk.f32.mxu1 %vm1253_vm6, %v7780_v12 }
0x37f0   :  { %v14890_v13 = vpop.eup %14889 }
0x37f1   :  { %v7781_v15 = vmul.f32 %v14890_v13, %v14886_v47  ;;  %v12659_v13 = vld [vmem:[%s15158_s8 + $0x78] sm:$0xff] }
0x37f3   :  { %14265 = vmatmul.mubr.msk.f32.vlgmr.msra.gmra.mxu1 %vm1253_vm6, %v7781_v15  ;;  %v12653_v15 = vld [vmem:[%s15289_s26 + $0x10] sm:$0xff] }
0x37f4   :  { %14274 = vmatprep.mubr.msk.f32.mxu1 %vm423_vm2, %v7403_v39  ;;  %14273 = vmatpush3.msra.mxu1 %v7412_v5 }
0x37f5   :  { %14288 = vmatprep.subr.mxu1 %v12633_v16 }
0x37f7   :  { %14275 = vmatmul.mubr.msk.f32.vlgmr.msra.gmra.mxu1 %vm423_vm2, %v14219_v3  ;;  %v12638_v3 = vld [vmem:[%s15171_s19 + $0x40] sm:$0xff] }
0x37f8   :  { %14289 = vmatpush3.msra.mxu1 %v12633_v16  ;;  %14296 = vmatprep.mubr.msk.f32.mxu1 %vm247_vm1, %v15918_v50 }
0x37f9   :  { %14290 = vmatprep.subr.mxu1 %v12632_v18 }
0x37fa   :  { %14291 = vmatpush3.msra.mxu1 %v12632_v18 }
0x37fb   :  { %14292 = vmatprep.subr.mxu1 %v12631_v19 }
0x37fc   :  { %14293 = vmatpush3.msra.mxu1 %v12631_v19 }
0x37fd   :  { %14294 = vmatprep.subr.mxu1 %v12630_v22 }
0x37fe   :  { %14295 = vmatpush3.msra.mxu1 %v12630_v22 }
0x37ff   :  { %14297 = vmatmul.mubr.msk.f32.vlgmr.msra.gmra.mxu1 %vm247_vm1, %v15924_v32 }
0x38b3   :  { %v14266_v27 = vpop.f32.mrf.mxu1 }
0x38b5   :  { %v7857_v28 = vpop.f32.mrf.mxu1 }
0x38b6   :  { %14269 = vmatprep.mubr.msk.f32.mxu0 %vm423_vm2, %v7857_v28  ;;  %v12658_v28 = vld [vmem:[%s15158_s8 + $0x70] sm:$0xff] }
0x38b7   :  { %14270 = vmatmul.mubr.msk.f32.vlgmr.msra.gmra.mxu0 %vm423_vm2, %v14266_v27  ;;  %v16017_v23 = vpop.f32.mrf.mxu1 }
0x38b8   :  { %14278 = vmatpush3.msra.mxu0 %v12625_v26  ;;  %14285 = vmatprep.mubr.msk.f32.mxu0 %vm247_vm1, %v15918_v50 }
0x38b9   :  { %14279 = vmatprep.subr.mxu0 %v12624_v29  ;;  %v16021_v40 = vpop.f32.mrf.mxu1 }
0x38ba   :  { %14280 = vmatpush3.msra.mxu0 %v12624_v29  ;;  %v12657_v29 = vld [vmem:[%s15158_s8 + $0x68] sm:$0xff] }
0x38bb   :  { %14281 = vmatprep.subr.mxu0 %v12623_v53 }
0x38bc   :  { %14282 = vmatpush3.msra.mxu0 %v12623_v53  ;;  %v12656_v53 = vld [vmem:[%s15158_s8 + $0x60] sm:$0xff] }
0x38bd   :  { %14283 = vmatprep.subr.mxu0 %v12622_v34 }
0x38be   :  { %14284 = vmatpush3.msra.mxu0 %v12622_v34  ;;  %v12675_v34 = vld [vmem:[%s15171_s19 + $0x78] sm:$0xff] }
0x38bf   :  { %14286 = vmatmul.mubr.msk.f32.vlgmr.msra.gmra.mxu0 %vm247_vm1, %v15924_v32  ;;  %v14298_v44 = vpop.f32.mrf.mxu1  ;;  %14299 = vmatprep.subr.mxu0 %v12641_v37 }
0x38c0   :  { %v8198_v24 = vadd.f32 %v14298_v44, %v12635_v41  ;;  %14300 = vmatpush3.msra.mxu0 %v12641_v37  ;;  %14307 = vmatprep.mubr.msk.f32.mxu0 %vm247_vm1, %v15918_v50  ;;  %v12674_v37 = vld [vmem:[%s15171_s19 + $0x70] sm:$0xff]  ;;  %v12667_v44 = vld [vmem:[%s15163_s13 + $0x78] sm:$0xff] }
0x38c1   :  { %v8192_v49 = vpop.f32.mrf.mxu1  ;;  %14301 = vmatprep.subr.mxu0 %v12640_v43 }
0x38c2   :  { %v8193_v7 = vadd.f32 %v12635_v41, %v8192_v49  ;;  %14302 = vmatpush3.msra.mxu0 %v12640_v43  ;;  %14310 = vmatprep.subr.msk.mxu1 %vm423_vm2, %v8198_v24  ;;  %v12673_v41 = vld [vmem:[%s15171_s19 + $0x68] sm:$0xff]  ;;  %v12672_v43 = vld [vmem:[%s15171_s19 + $0x60] sm:$0xff]  ;;  %v12666_v49 = vld [vmem:[%s15163_s13 + $0x70] sm:$0xff] }
0x38c3   :  { %14303 = vmatprep.subr.mxu0 %v12639_v45  ;;  %14311 = vmatpush3.xpose.msk.msra.mxu1 %vm423_vm2, %v8198_v24 }
0x38c4   :  { %14304 = vmatpush3.msra.mxu0 %v12639_v45  ;;  %14312 = vmatprep.subr.msk.mxu1 %vm423_vm2, %v8193_v7 }
0x38c5   :  { %14305 = vmatprep.subr.mxu0 %v12638_v3 }
0x38c6   :  { %14306 = vmatpush3.msra.mxu0 %v12638_v3  ;;  %v12661_v3 = vld [vmem:[%s15220_s11 + $0x3] ss:$0 sm:$0xff] }
0x38c7   :  { %14308 = vmatmul.mubr.msk.f32.vlgmr.msra.gmra.mxu0 %vm247_vm1, %v15924_v32  ;;  %14313 = vmatpush3.xpose.msk.msra.mxu1 %vm423_vm2, %v8193_v7  ;;  %v12665_v7 = vld [vmem:[%s15163_s13 + $0x68] sm:$0xff] }
0x38c8   :  { %14324 = vmatprep.subr.mxu1 %v12653_v15 }
0x3977   :  { %v16037_v39 = vpop.f32.mrf.mxu0 }
0x3979   :  { %v16039_v0 = vpop.f32.mrf.mxu0 }
0x397f   :  { %v14287_v14 = vpop.f32.mrf.mxu0 }
0x3980   :  { %v8112_v57 = vadd.f32 %v14287_v14, %v12627_v17  ;;  %v12664_v14 = vld [vmem:[%s15163_s13 + $0x60] sm:$0xff] }
0x3981   :  { %v8106_v31 = vpop.f32.mrf.mxu0 }
0x3982   :  { %v8107_v56 = vadd.f32 %v12627_v17, %v8106_v31 }
0x3984   :  { %14314 = vmatprep.mubr.msk.f32.mxu1 %vm423_vm2, %v8107_v56 }
0x3985   :  { %14315 = vmatmul.mubr.msk.f32.vlgmr.msra.gmra.mxu1 %vm423_vm2, %v8112_v57 }
0x3986   :  { %14325 = vmatpush3.msra.mxu1 %v12653_v15 }
0x3987   :  { %v14309_v35 = vpop.f32.mrf.mxu0  ;;  %14340 = vmatprep.subr.mxu1 %v12667_v44 }
0x3988   :  { %v8284_v58 = vadd.f32 %v14309_v35, %v12643_v42 }
0x3989   :  { %v8278_v59 = vpop.f32.mrf.mxu0 }
0x398a   :  { %v8279_v38 = vadd.f32 %v12643_v42, %v8278_v59  ;;  %14317 = vmatprep.subr.msk.mxu0 %vm1283_vm5, %v8284_v58 }
0x398b   :  { %14318 = vmatpush3.msk.msra.mxu0 %vm1283_vm5, %v8284_v58 }
0x398c   :  { %14319 = vmatprep.subr.mxu0 %v8279_v38 }
0x398d   :  { %14320 = vmatpush3.msra.mxu0 %v8279_v38  ;;  %v8026_v38 = vadd.f32 %v16017_v23, %v16037_v39 }
0x398e   :  { %14329 = vmatprep.subr.mxu0 %v12659_v13 }
0x3a45   :  { %v14316_v60 = vpop.f32.mrf.mxu1 }
0x3a46   :  { %v8375_v1 = vmul.f32 0.35355338, %v14316_v60 }
0x3a47   :  { %v8365_v61 = vpop.f32.mrf.mxu1 }
0x3a48   :  { %v8374_v62 = vmul.f32 0.35355338, %v8365_v61  ;;  %v8379_v4 = vsel %vm1257_vm7, %v8375_v1, -inf }
0x3a4a   :  { %v8376_v2 = vsel %vm1253_vm6, %v8374_v62, -inf }
0x3a4b   :  { %8377 = vmax.xlane.f32.xlu0 %v8376_v2  ;;  %v12669_v2 = vld [vmem:[%s15215_s4 + $0x3] ss:$0 sm:$0xff] }
0x3a4f   :  { %8380 = vmax.xlane.f32.xlu0 %v8379_v4 }
0x3ad4   :  { %v8378_v33 = vpop.xlane.xlu0 %8377 }
0x3ad5   :  { %v8382_v36 = vsub.f32 %v8374_v62, %v8378_v33 }
0x3ad7   :  { %v8384_v47 = vmul.f32 1.442695, %v8382_v36 }
0x3ad8   :  { %v8381_v48 = vpop.xlane.xlu0 %8380 }
0x3ad9   :  { %14891 = vpow2.f32 %v8384_v47  ;;  %v8383_v5 = vsub.f32 %v8375_v1, %v8381_v48 }
0x3adb   :  { %v8386_v6 = vmul.f32 1.442695, %v8383_v5 }
0x3add   :  { %14893 = vpow2.f32 %v8386_v6 }
0x3ae6   :  { %v14892_v9 = vpop.eup %14891 }
0x3ae7   :  { %v8388_v10 = vsel %vm1253_vm6, %v14892_v9, 0.0 }
0x3ae8   :  { %8389 = vadd.xlane.f32.xlu1 %v8388_v10 }
0x3aea   :  { %v14894_v11 = vpop.eup %14893 }
0x3aeb   :  { %v8391_v12 = vsel %vm1257_vm7, %v14894_v11, 0.0 }
0x3aec   :  { %8392 = vadd.xlane.f32.xlu0 %v8391_v12 }
0x3b71   :  { %v8390_v16 = vpop.xlane.xlu1 %8389 }
0x3b72   :  { %14895 = vrcp.f32 %v8390_v16 }
0x3b75   :  { %v8393_v18 = vpop.xlane.xlu0 %8392 }
0x3b76   :  { %14897 = vrcp.f32 %v8393_v18 }
0x3b7f   :  { %v14896_v19 = vpop.eup %14895 }
0x3b80   :  { %v8396_v22 = vmul.f32 %v14896_v19, %v14892_v9 }
0x3b82   :  { %14321 = vmatprep.mubr.msk.f32.mxu0 %vm1253_vm6, %v8396_v22  ;;  %v12687_v22 = vld [vmem:[%s15289_s26 + $0x18] sm:$0xff] }
0x3b83   :  { %v14898_v26 = vpop.eup %14897 }
0x3b84   :  { %v8397_v27 = vmul.f32 %v14898_v26, %v14894_v11 }
0x3b86   :  { %14322 = vmatmul.mubr.msk.f32.vlgmr.msra.gmra.mxu0 %vm1253_vm6, %v8397_v27 }
0x3b87   :  { %14330 = vmatpush3.msra.mxu0 %v12659_v13  ;;  %14337 = vmatprep.mubr.msk.f32.mxu0 %vm247_vm1, %v15918_v50 }
0x3b88   :  { %14331 = vmatprep.subr.mxu0 %v12658_v28 }
0x3b89   :  { %14332 = vmatpush3.msra.mxu0 %v12658_v28 }
0x3b8a   :  { %14333 = vmatprep.subr.mxu0 %v12657_v29 }
0x3b8b   :  { %14334 = vmatpush3.msra.mxu0 %v12657_v29 }
0x3b8c   :  { %14335 = vmatprep.subr.mxu0 %v12656_v53 }
0x3b8d   :  { %14336 = vmatpush3.msra.mxu0 %v12656_v53 }
0x3b8e   :  { %14338 = vmatmul.mubr.msk.f32.vlgmr.msra.gmra.mxu0 %vm247_vm1, %v15924_v32  ;;  %14351 = vmatprep.subr.mxu0 %v12675_v34 }
0x3b8f   :  { %14352 = vmatpush3.msra.mxu0 %v12675_v34  ;;  %14359 = vmatprep.mubr.msk.f32.mxu0 %vm247_vm1, %v15918_v50 }
0x3b90   :  { %14353 = vmatprep.subr.mxu0 %v12674_v37 }
0x3b91   :  { %14354 = vmatpush3.msra.mxu0 %v12674_v37 }
0x3b92   :  { %14355 = vmatprep.subr.mxu0 %v12673_v41 }
0x3b93   :  { %14356 = vmatpush3.msra.mxu0 %v12673_v41 }
0x3b94   :  { %14357 = vmatprep.subr.mxu0 %v12672_v43 }
0x3b95   :  { %14358 = vmatpush3.msra.mxu0 %v12672_v43 }
0x3b96   :  { %14360 = vmatmul.mubr.msk.f32.vlgmr.msra.gmra.mxu0 %vm247_vm1, %v15924_v32 }
0x3c46   :  { %v14323_v24 = vpop.f32.mrf.mxu0 }
0x3c48   :  { %v8473_v45 = vpop.f32.mrf.mxu0 }
0x3c49   :  { %14326 = vmatprep.mubr.msk.f32.mxu1 %vm423_vm2, %v8473_v45 }
0x3c4a   :  { %14327 = vmatmul.mubr.msk.f32.vlgmr.msra.gmra.mxu1 %vm423_vm2, %v14323_v24 }
0x3c4b   :  { %14341 = vmatpush3.msra.mxu1 %v12667_v44  ;;  %14348 = vmatprep.mubr.msk.f32.mxu1 %vm247_vm1, %v15918_v50  ;;  %v12677_v50 = vld [vmem:[%s15226_s18 + $0x3] ss:$0 sm:$0xff] }
0x3c4c   :  { %14342 = vmatprep.subr.mxu1 %v12666_v49 }
0x3c4d   :  { %14343 = vmatpush3.msra.mxu1 %v12666_v49 }
0x3c4e   :  { %v14339_v17 = vpop.f32.mrf.mxu0  ;;  %14344 = vmatprep.subr.mxu1 %v12665_v7 }
0x3c4f   :  { %v8649_v31 = vadd.f32 %v14339_v17, %v12661_v3  ;;  %14345 = vmatpush3.msra.mxu1 %v12665_v7 }
0x3c50   :  { %v8643_v56 = vpop.f32.mrf.mxu0  ;;  %14346 = vmatprep.subr.mxu1 %v12664_v14 }
0x3c51   :  { %v8644_v57 = vadd.f32 %v12661_v3, %v8643_v56  ;;  %14347 = vmatpush3.msra.mxu1 %v12664_v14  ;;  %v12690_v3 = vld [vmem:[%s15402_s2] ss:$0 sm:$0xff] }
0x3c52   :  { %14349 = vmatmul.mubr.msk.f32.vlgmr.msra.gmra.mxu1 %vm247_vm1, %v15924_v32  ;;  %v8021_v32 = vadd.f32 %v16021_v40, %v16039_v0 }
0x3c53   :  { %14366 = vmatprep.mubr.msk.f32.mxu1 %vm423_vm2, %v8644_v57 }
0x3c56   :  { %v14361_v42 = vpop.f32.mrf.mxu0 }
0x3c57   :  { %v8821_v35 = vadd.f32 %v14361_v42, %v12677_v50 }
0x3c58   :  { %v8815_v58 = vpop.f32.mrf.mxu0 }
0x3c59   :  { %v8816_v59 = vadd.f32 %v12677_v50, %v8815_v58  ;;  %14369 = vmatprep.subr.msk.mxu0 %vm1283_vm5, %v8821_v35 }
0x3c5a   :  { %14370 = vmatpush3.msk.msra.mxu0 %vm1283_vm5, %v8821_v35 }
0x3c5b   :  { %14371 = vmatprep.subr.mxu0 %v8816_v59 }
0x3c5c   :  { %14372 = vmatpush3.msra.mxu0 %v8816_v59 }
0x3d0a   :  { %v14328_v60 = vpop.f32.mrf.mxu1 }
0x3d0b   :  { %v8565_v61 = vadd.f32 %v14328_v60, %v8026_v38 }
0x3d0c   :  { %v8555_v62 = vpop.f32.mrf.mxu1 }
0x3d0d   :  { %v8564_v1 = vadd.f32 %v8555_v62, %v8021_v32  ;;  %v9161_v32 = vld [vmem:[%s15422_s9 + $0x18] sm:$0xff]  ;;  %v9159_v62 = vld [vmem:[%s15422_s9 + $0x8] sm:$0xff] }
0x3d0e   :  { %14381 = vmatprep.subr.mxu0 %v9161_v32 }
0x3d12   :  { %v14350_v4 = vpop.f32.mrf.mxu1 }
0x3d13   :  { %v8735_v33 = vadd.f32 %v14350_v4, %v12669_v2 }
0x3d14   :  { %v8729_v36 = vpop.f32.mrf.mxu1 }
0x3d15   :  { %v8730_v47 = vadd.f32 %v12669_v2, %v8729_v36  ;;  %14362 = vmatprep.subr.msk.mxu1 %vm423_vm2, %v8735_v33 }
0x3d16   :  { %14363 = vmatpush3.xpose.msk.msra.mxu1 %vm423_vm2, %v8735_v33 }
0x3d17   :  { %14364 = vmatprep.subr.msk.mxu1 %vm423_vm2, %v8730_v47 }
0x3d1a   :  { %14365 = vmatpush3.xpose.msk.msra.mxu1 %vm423_vm2, %v8730_v47 }
0x3d1b   :  { %14376 = vmatprep.subr.mxu1 %v12687_v22 }
0x3d1d   :  { %14367 = vmatmul.mubr.msk.f32.vlgmr.msra.gmra.mxu1 %vm423_vm2, %v8649_v31 }
0x3d1e   :  { %14377 = vmatpush3.msra.mxu1 %v12687_v22  ;;  %v9270_v22 = vld [vmem:[%s15445_s7 + $0x10] sm:$0xff] }
0x3ddd   :  { %v14368_v23 = vpop.f32.mrf.mxu1 }
0x3dde   :  { %v8912_v0 = vmul.f32 0.35355338, %v14368_v23 }
0x3ddf   :  { %v8902_v40 = vpop.f32.mrf.mxu1 }
0x3de0   :  { %v8911_v39 = vmul.f32 0.35355338, %v8902_v40  ;;  %v8916_v5 = vsel %vm1257_vm7, %v8912_v0, -inf }
0x3de2   :  { %v8913_v48 = vsel %vm1253_vm6, %v8911_v39, -inf }
0x3de3   :  { %8914 = vmax.xlane.f32.xlu0 %v8913_v48  ;;  %v12692_v48 = vld [vmem:[%s15436_s28] ss:$0 sm:$0xff] }
0x3de7   :  { %8917 = vmax.xlane.f32.xlu0 %v8916_v5 }
0x3e6c   :  { %v8915_v6 = vpop.xlane.xlu0 %8914 }
0x3e6d   :  { %v8919_v9 = vsub.f32 %v8911_v39, %v8915_v6  ;;  %v12691_v39 = vld [vmem:[%s15431_s20] ss:$0 sm:$0xff] }
0x3e6f   :  { %v8921_v10 = vmul.f32 1.442695, %v8919_v9 }
0x3e70   :  { %v8918_v11 = vpop.xlane.xlu0 %8917 }
0x3e71   :  { %14899 = vpow2.f32 %v8921_v10  ;;  %v8920_v12 = vsub.f32 %v8912_v0, %v8918_v11 }
0x3e73   :  { %v8923_v13 = vmul.f32 1.442695, %v8920_v12 }
0x3e75   :  { %14901 = vpow2.f32 %v8923_v13  ;;  %v9275_v13 = vld [vmem:[%s15445_s7 + $0x38] sm:$0xff] }
0x3e76   :  { %14392 = vmatprep.subr.mxu1 %v9275_v13 }
0x3e7e   :  { %v14900_v15 = vpop.eup %14899 }
0x3e7f   :  { %v8925_v16 = vsel %vm1253_vm6, %v14900_v15, 0.0 }
0x3e80   :  { %8926 = vadd.xlane.f32.xlu0 %v8925_v16  ;;  %v9273_v16 = vld [vmem:[%s15445_s7 + $0x28] sm:$0xff] }
0x3e82   :  { %v14902_v18 = vpop.eup %14901 }
0x3e83   :  { %v8928_v19 = vsel %vm1257_vm7, %v14902_v18, 0.0 }
0x3e84   :  { %8929 = vadd.xlane.f32.xlu0 %v8928_v19  ;;  %v9271_v19 = vld [vmem:[%s15445_s7 + $0x18] sm:$0xff] }
0x3f09   :  { %v8927_v26 = vpop.xlane.xlu0 %8926 }
0x3f0a   :  { %14903 = vrcp.f32 %v8927_v26  ;;  %v9269_v26 = vld [vmem:[%s15445_s7 + $0x8] sm:$0xff] }
0x3f0d   :  { %v8930_v27 = vpop.xlane.xlu0 %8929 }
0x3f0e   :  { %14905 = vrcp.f32 %v8930_v27  ;;  %v9268_v27 = vld [vmem:[%s15445_s7] sm:$0xff] }
0x3f17   :  { %v14904_v28 = vpop.eup %14903 }
0x3f18   :  { %v8933_v29 = vmul.f32 %v14904_v28, %v14900_v15  ;;  %v9274_v15 = vld [vmem:[%s15445_s7 + $0x30] sm:$0xff]  ;;  %v12693_v28 = vld [vmem:[%s15458_s22] ss:$0 sm:$0xff] }
0x3f1a   :  { %14373 = vmatprep.mubr.msk.f32.mxu0 %vm1253_vm6, %v8933_v29 }
0x3f1b   :  { %v14906_v53 = vpop.eup %14905 }
0x3f1c   :  { %v8934_v34 = vmul.f32 %v14906_v53, %v14902_v18  ;;  %v9272_v18 = vld [vmem:[%s15445_s7 + $0x20] sm:$0xff] }
0x3f1e   :  { %14374 = vmatmul.mubr.msk.f32.vlgmr.msra.gmra.mxu0 %vm1253_vm6, %v8934_v34 }
0x3f1f   :  { %14382 = vmatpush3.msra.mxu0 %v9161_v32 }
0x3fde   :  { %v14375_v37 = vpop.f32.mrf.mxu0 }
0x3fe0   :  { %v9010_v41 = vpop.f32.mrf.mxu0 }
0x3fe1   :  { %14378 = vmatprep.mubr.msk.f32.mxu1 %vm423_vm2, %v9010_v41 }
0x3fe2   :  { %14379 = vmatmul.mubr.msk.f32.vlgmr.msra.gmra.mxu1 %vm423_vm2, %v14375_v37 }
0x3fe3   :  { %14393 = vmatpush3.msra.mxu1 %v9275_v13  ;;  %v12720_v13 = vld [vmem:[%s15171_s19 + $0x88] sm:$0xff] }
0x3fe4   :  { %14394 = vmatprep.subr.mxu1 %v9274_v15 }
0x3fe5   :  { %14395 = vmatpush3.msra.mxu1 %v9274_v15  ;;  %v12703_v15 = vld [vmem:[%s15158_s8 + $0x80] sm:$0xff] }
0x3fe6   :  { %14396 = vmatprep.subr.mxu1 %v9273_v16 }
0x3fe7   :  { %14397 = vmatpush3.msra.mxu1 %v9273_v16  ;;  %v12719_v16 = vld [vmem:[%s15171_s19 + $0x80] sm:$0xff] }
0x3fe8   :  { %14398 = vmatprep.subr.mxu1 %v9272_v18 }
0x3fe9   :  { %14399 = vmatpush3.msra.mxu1 %v9272_v18  ;;  %v12714_v18 = vld [vmem:[%s15163_s13 + $0x98] sm:$0xff] }
0x3fea   :  { %14400 = vmatprep.subr.mxu1 %v9271_v19 }
0x3feb   :  { %14401 = vmatpush3.msra.mxu1 %v9271_v19 }
0x3fec   :  { %14402 = vmatprep.subr.mxu1 %v9270_v22 }
0x3fed   :  { %14403 = vmatpush3.msra.mxu1 %v9270_v22 }
0x3fee   :  { %14404 = vmatprep.subr.mxu1 %v9269_v26 }
0x3fef   :  { %14405 = vmatpush3.msra.mxu1 %v9269_v26 }
0x3ff0   :  { %14406 = vmatprep.subr.mxu1 %v9268_v27 }
0x3ff1   :  { %14407 = vmatpush3.msra.mxu1 %v9268_v27 }
0x40a2   :  { %v14380_v43 = vpop.f32.mrf.mxu1 }
0x40a3   :  { %v9102_v44 = vadd.f32 %v14380_v43, %v8565_v61  ;;  %v9160_v61 = vld [vmem:[%s15422_s9 + $0x10] sm:$0xff] }
0x40a4   :  { %v9092_v24 = vpop.f32.mrf.mxu1  ;;  %14383 = vmatprep.subr.mxu0 %v9160_v61 }
0x40a5   :  { %v9101_v45 = vadd.f32 %v9092_v24, %v8564_v1  ;;  %v9104_v49 = vadd.f32 %v9102_v44, %v15897_v30  ;;  %14384 = vmatpush3.msra.mxu0 %v9160_v61  ;;  %v9158_v1 = vld [vmem:[%s15422_s9] sm:$0xff] }
0x40a6   :  { %14385 = vmatprep.subr.mxu0 %v9159_v62 }
0x40a7   :  { %v9103_v7 = vadd.f32 %v9101_v45, %v15893_v54  ;;  %v16109_v17 = vadd.f32 %v12690_v3, %v9104_v49  ;;  %14386 = vmatpush3.msra.mxu0 %v9159_v62 }
0x40a8   :  { %14387 = vmatprep.subr.mxu0 %v9158_v1 }
0x40a9   :  { %v16107_v14 = vadd.f32 %v12690_v3, %v9103_v7  ;;  %v9119_v56 = vsel %vm850_vm4, %v16109_v17, 0.0  ;;  %14388 = vmatpush3.msra.mxu0 %v9158_v1 }
0x40ab   :  { %v9116_v31 = vsel %vm247_vm1, %v16107_v14, 0.0 }
0x40ac   :  { %9117 = vadd.xlane.f32.xlu0 %v9116_v31 }
0x40b0   :  { %9120 = vadd.xlane.f32.xlu0 %v9119_v56 }
0x4135   :  { %v9118_v57 = vpop.xlane.xlu0 %9117 }
0x4136   :  { %v9122_v30 = vmul.f32 0.03125, %v9118_v57 }
0x4138   :  { %v9124_v54 = vsub.f32 %v16107_v14, %v9122_v30 }
0x4139   :  { %v9121_v50 = vpop.xlane.xlu0 %9120 }
0x413a   :  { %v9123_v42 = vmul.f32 0.03125, %v9121_v50  ;;  %v9126_v35 = vmul.f32 %v9124_v54, %v9124_v54 }
0x413c   :  { %v9125_v58 = vsub.f32 %v16109_v17, %v9123_v42  ;;  %v9128_v59 = vsel %vm247_vm1, %v9126_v35, 0.0 }
0x413d   :  { %9129 = vadd.xlane.f32.xlu0 %v9128_v59 }
0x413e   :  { %v9127_v38 = vmul.f32 %v9125_v58, %v9125_v58 }
0x4140   :  { %v9131_v60 = vsel %vm850_vm4, %v9127_v38, 0.0 }
0x4141   :  { %9132 = vadd.xlane.f32.xlu0 %v9131_v60  ;;  %v12698_v60 = vld [vmem:[%s15466_s3] ss:$0 sm:$0xff] }
0x41c6   :  { %v9130_v2 = vpop.xlane.xlu0 %9129 }
0x41c7   :  { %v9134_v4 = vmul.f32 0.03125, %v9130_v2 }
0x41c9   :  { %v9136_v33 = vadd.f32 1e-05, %v9134_v4 }
0x41ca   :  { %v9133_v36 = vpop.xlane.xlu0 %9132 }
0x41cb   :  { %14907 = vrsqrt.f32 %v9136_v33  ;;  %v9135_v47 = vmul.f32 0.03125, %v9133_v36 }
0x41cd   :  { %v9137_v23 = vadd.f32 1e-05, %v9135_v47 }
0x41cf   :  { %14909 = vrsqrt.f32 %v9137_v23 }
0x41d8   :  { %v14908_v40 = vpop.eup %14907 }
0x41d9   :  { %v9140_v0 = vmul.f32 %v14908_v40, %v9124_v54 }
0x41db   :  { %v9148_v5 = vmul.f32 %v12691_v39, %v9140_v0 }
0x41dc   :  { %v14910_v6 = vpop.eup %14909 }
0x41dd   :  { %v9141_v9 = vmul.f32 %v14910_v6, %v9125_v58  ;;  %v9156_v10 = vadd.f32 %v12692_v48, %v9148_v5  ;;  %v12706_v6 = vld [vmem:[%s15158_s8 + $0x98] sm:$0xff] }
0x41de   :  { %14411 = vmatprep.subr.mxu0 %v12706_v6 }
0x41df   :  { %v9149_v11 = vmul.f32 %v12691_v39, %v9141_v9  ;;  %14389 = vmatprep.mubr.msk.f32.mxu0 %vm247_vm1, %v9156_v10  ;;  %v12722_v9 = vld [vmem:[%s15171_s19 + $0x98] sm:$0xff]  ;;  %v12705_v10 = vld [vmem:[%s15158_s8 + $0x90] sm:$0xff] }
0x41e0   :  { %14433 = vmatprep.subr.mxu1 %v12722_v9 }
0x41e1   :  { %v9157_v12 = vadd.f32 %v12692_v48, %v9149_v11  ;;  %v12721_v11 = vld [vmem:[%s15171_s19 + $0x90] sm:$0xff] }
0x41e3   :  { %14390 = vmatmul.mubr.msk.f32.vlgmr.msra.gmra.mxu0 %vm247_vm1, %v9157_v12  ;;  %v12704_v12 = vld [vmem:[%s15158_s8 + $0x88] sm:$0xff] }
0x41e4   :  { %14412 = vmatpush3.msra.mxu0 %v12706_v6  ;;  %v12748_v6 = vld [vmem:[%s15215_s4 + $0x5] ss:$0 sm:$0xff] }
0x41e5   :  { %14413 = vmatprep.subr.mxu0 %v12705_v10 }
0x41e6   :  { %14414 = vmatpush3.msra.mxu0 %v12705_v10 }
0x41e7   :  { %14415 = vmatprep.subr.mxu0 %v12704_v12 }
0x41e8   :  { %14416 = vmatpush3.msra.mxu0 %v12704_v12 }
0x41e9   :  { %14417 = vmatprep.subr.mxu0 %v12703_v15 }
0x41ea   :  { %14418 = vmatpush3.msra.mxu0 %v12703_v15 }
0x41eb   :  { %14422 = vmatprep.subr.mxu0 %v12714_v18 }
0x42a3   :  { %v14391_v29 = vpop.f32.mrf.mxu0 }
0x42a4   :  { %v9247_v53 = vadd.f32 %v14391_v29, %v12693_v28 }
0x42a5   :  { %v9241_v34 = vpop.f32.mrf.mxu0 }
0x42a6   :  { %v9251_v37 = vmul.f32 %v9247_v53, %v9247_v53  ;;  %v9242_v41 = vadd.f32 %v12693_v28, %v9241_v34  ;;  %v12701_v34 = vld [vmem:[%s15184_s24 + $0x1] ss:$0 sm:$0xff] }
0x42a8   :  { %v9253_v43 = vmul.f32 %v9251_v37, %v9247_v53  ;;  %v9250_v44 = vmul.f32 %v9242_v41, %v9242_v41 }
0x42aa   :  { %v9255_v24 = vmul.f32 0.044715, %v9253_v43  ;;  %v9252_v45 = vmul.f32 %v9250_v44, %v9242_v41 }
0x42ac   :  { %v9257_v49 = vadd.f32 %v9255_v24, %v9247_v53  ;;  %v9254_v7 = vmul.f32 0.044715, %v9252_v45  ;;  %v12702_v24 = vld [vmem:[%s15189_s30 + $0x1] ss:$0 sm:$0xff] }
0x42ae   :  { %v9259_v3 = vmul.f32 0.7978846, %v9257_v49  ;;  %v9256_v31 = vadd.f32 %v9254_v7, %v9242_v41 }
0x42b0   :  { %14911 = vtanh.f32 %v9259_v3  ;;  %v9258_v56 = vmul.f32 0.7978846, %v9256_v31  ;;  %v12713_v3 = vld [vmem:[%s15163_s13 + $0x90] sm:$0xff]  ;;  %v12712_v31 = vld [vmem:[%s15163_s13 + $0x88] sm:$0xff] }
0x42b2   :  { %14913 = vtanh.f32 %v9258_v56  ;;  %v12711_v56 = vld [vmem:[%s15163_s13 + $0x80] sm:$0xff] }
0x42bd   :  { %v14912_v57 = vpop.eup %14911 }
0x42be   :  { %v9263_v30 = vadd.f32 1.0, %v14912_v57  ;;  %v12724_v57 = vld [vmem:[%s15226_s18 + $0x4] ss:$0 sm:$0xff] }
0x42bf   :  { %v14914_v54 = vpop.eup %14913 }
0x42c0   :  { %v9262_v50 = vadd.f32 1.0, %v14914_v54  ;;  %v9265_v42 = vmul.f32 0.5, %v9263_v30 }
0x42c2   :  { %v9264_v35 = vmul.f32 0.5, %v9262_v50  ;;  %v9267_v59 = vmul.f32 %v9265_v42, %v9247_v53  ;;  %v12708_v42 = vld [vmem:[%s15220_s11 + $0x4] ss:$0 sm:$0xff] }
0x42c4   :  { %v9266_v58 = vmul.f32 %v9264_v35, %v9242_v41 }
0x42c6   :  { %14408 = vmatprep.mubr.msk.f32.mxu1 %vm3247_vm8, %v9266_v58 }
0x42c7   :  { %14409 = vmatmul.mubr.msk.f32.vlgmr.msra.gmra.mxu1 %vm3247_vm8, %v9267_v59 }
0x42c8   :  { %14434 = vmatpush3.msra.mxu1 %v12722_v9 }
0x42c9   :  { %14435 = vmatprep.subr.mxu1 %v12721_v11 }
0x42ca   :  { %14436 = vmatpush3.msra.mxu1 %v12721_v11 }
0x42cb   :  { %14437 = vmatprep.subr.mxu1 %v12720_v13 }
0x42cc   :  { %14438 = vmatpush3.msra.mxu1 %v12720_v13 }
0x42cd   :  { %14439 = vmatprep.subr.mxu1 %v12719_v16 }
0x42ce   :  { %14440 = vmatpush3.msra.mxu1 %v12719_v16 }
0x4387   :  { %v14410_v38 = vpop.f32.mrf.mxu1 }
0x4388   :  { %v9358_v32 = vadd.f32 %v14410_v38, %v16109_v17 }
0x4389   :  { %v9348_v61 = vpop.f32.mrf.mxu1 }
0x438a   :  { %v16140_v62 = vadd.f32 %v12698_v60, %v9358_v32  ;;  %v9357_v1 = vadd.f32 %v9348_v61, %v16107_v14 }
0x438c   :  { %v16143_v2 = vadd.f32 %v12698_v60, %v9357_v1  ;;  %v9373_v4 = vsel %vm850_vm4, %v16140_v62, 0.0  ;;  %v12716_v60 = vld [vmem:[%s15215_s4 + $0x4] ss:$0 sm:$0xff] }
0x438d   :  { %9374 = vadd.xlane.f32.xlu1 %v9373_v4 }
0x438e   :  { %v9370_v33 = vsel %vm247_vm1, %v16143_v2, 0.0 }
0x438f   :  { %9371 = vadd.xlane.f32.xlu0 %v9370_v33  ;;  %v12746_v33 = vld [vmem:[%s15163_s13 + $0xb8] sm:$0xff] }
0x4416   :  { %v9375_v36 = vpop.xlane.xlu1 %9374 }
0x4417   :  { %v9377_v47 = vmul.f32 0.03125, %v9375_v36 }
0x4418   :  { %v9372_v17 = vpop.xlane.xlu0 %9371 }
0x4419   :  { %v9379_v23 = vsub.f32 %v16140_v62, %v9377_v47  ;;  %v9376_v40 = vmul.f32 0.03125, %v9372_v17  ;;  %v12745_v47 = vld [vmem:[%s15163_s13 + $0xb0] sm:$0xff]  ;;  %v12744_v17 = vld [vmem:[%s15163_s13 + $0xa8] sm:$0xff] }
0x441b   :  { %v9378_v14 = vsub.f32 %v16143_v2, %v9376_v40  ;;  %v9381_v39 = vmul.f32 %v9379_v23, %v9379_v23 }
0x441d   :  { %v9385_v0 = vsel %vm850_vm4, %v9381_v39, 0.0  ;;  %v9380_v48 = vmul.f32 %v9378_v14, %v9378_v14 }
0x441e   :  { %9386 = vadd.xlane.f32.xlu1 %v9385_v0 }
0x441f   :  { %v9382_v5 = vsel %vm247_vm1, %v9380_v48, 0.0 }
0x4420   :  { %9383 = vadd.xlane.f32.xlu0 %v9382_v5 }
0x44a7   :  { %v9387_v19 = vpop.xlane.xlu1 %9386 }
0x44a8   :  { %v9389_v22 = vmul.f32 0.03125, %v9387_v19 }
0x44a9   :  { %v9384_v26 = vpop.xlane.xlu0 %9383 }
0x44aa   :  { %v9391_v27 = vadd.f32 1e-05, %v9389_v22  ;;  %v9388_v28 = vmul.f32 0.03125, %v9384_v26 }
0x44ac   :  { %14915 = vrsqrt.f32 %v9391_v27  ;;  %v9390_v29 = vadd.f32 1e-05, %v9388_v28 }
0x44ae   :  { %14917 = vrsqrt.f32 %v9390_v29 }
0x44b9   :  { %v14916_v53 = vpop.eup %14915 }
0x44ba   :  { %v9395_v37 = vmul.f32 %v14916_v53, %v9379_v23  ;;  %v12743_v23 = vld [vmem:[%s15163_s13 + $0xa0] sm:$0xff]  ;;  %v12738_v53 = vld [vmem:[%s15158_s8 + $0xb8] sm:$0xff] }
0x44bb   :  { %v14918_v41 = vpop.eup %14917 }
0x44bc   :  { %v9394_v43 = vmul.f32 %v14918_v41, %v9378_v14  ;;  %v9403_v44 = vmul.f32 %v12701_v34, %v9395_v37 }
0x44be   :  { %v9402_v45 = vmul.f32 %v12701_v34, %v9394_v43  ;;  %v16166_v7 = vadd.f32 %v12702_v24, %v9403_v44 }
0x44c0   :  { %v16164_v49 = vadd.f32 %v12702_v24, %v9402_v45  ;;  %v12737_v45 = vld [vmem:[%s15158_s8 + $0xb0] sm:$0xff] }
0x44c2   :  { %14419 = vmatprep.mubr.msk.f32.mxu0 %vm247_vm1, %v16164_v49  ;;  %14441 = vmatprep.mubr.msk.f32.mxu1 %vm247_vm1, %v16164_v49 }
0x44c3   :  { %14420 = vmatmul.mubr.msk.f32.vlgmr.msra.gmra.mxu0 %vm247_vm1, %v16166_v7  ;;  %14442 = vmatmul.mubr.msk.f32.vlgmr.msra.gmra.mxu1 %vm247_vm1, %v16166_v7 }
0x44c4   :  { %14423 = vmatpush3.msra.mxu0 %v12714_v18  ;;  %14430 = vmatprep.mubr.msk.f32.mxu0 %vm247_vm1, %v16164_v49 }
0x44c5   :  { %14424 = vmatprep.subr.mxu0 %v12713_v3 }
0x44c6   :  { %14425 = vmatpush3.msra.mxu0 %v12713_v3  ;;  %v12736_v3 = vld [vmem:[%s15158_s8 + $0xa8] sm:$0xff] }
0x44c7   :  { %14426 = vmatprep.subr.mxu0 %v12712_v31 }
0x44c8   :  { %14427 = vmatpush3.msra.mxu0 %v12712_v31  ;;  %v12735_v31 = vld [vmem:[%s15158_s8 + $0xa0] sm:$0xff] }
0x44c9   :  { %14428 = vmatprep.subr.mxu0 %v12711_v56 }
0x44ca   :  { %14429 = vmatpush3.msra.mxu0 %v12711_v56  ;;  %v12754_v56 = vld [vmem:[%s15171_s19 + $0xb8] sm:$0xff] }
0x44cb   :  { %14431 = vmatmul.mubr.msk.f32.vlgmr.msra.gmra.mxu0 %vm247_vm1, %v16166_v7 }
0x4583   :  { %v14421_v30 = vpop.f32.mrf.mxu0  ;;  %v14443_v54 = vpop.f32.mrf.mxu1 }
0x4584   :  { %v9673_v50 = vadd.f32 %v14443_v54, %v12724_v57  ;;  %v9501_v36 = vadd.f32 %v14421_v30, %v12708_v42  ;;  %v12752_v30 = vld [vmem:[%s15171_s19 + $0xa8] sm:$0xff]  ;;  %v12751_v54 = vld [vmem:[%s15171_s19 + $0xa0] sm:$0xff] }
0x4585   :  { %v9495_v35 = vpop.f32.mrf.mxu0  ;;  %v9667_v58 = vpop.f32.mrf.mxu1 }
0x4586   :  { %v9496_v59 = vadd.f32 %v12708_v42, %v9495_v35  ;;  %v9668_v38 = vadd.f32 %v12724_v57, %v9667_v58  ;;  %14451 = vmatprep.subr.msk.mxu1 %vm1283_vm5, %v9673_v50  ;;  %v12753_v57 = vld [vmem:[%s15171_s19 + $0xb0] sm:$0xff]  ;;  %v12740_v58 = vld [vmem:[%s15220_s11 + $0x5] ss:$0 sm:$0xff] }
0x4587   :  { %14452 = vmatpush3.msk.msra.mxu1 %vm1283_vm5, %v9673_v50 }
0x4588   :  { %14448 = vmatprep.mubr.msk.f32.mxu0 %vm423_vm2, %v9496_v59  ;;  %14453 = vmatprep.subr.mxu1 %v9668_v38 }
0x4589   :  { %14454 = vmatpush3.msra.mxu1 %v9668_v38 }
0x458a   :  { %14458 = vmatprep.subr.mxu1 %v12738_v53 }
0x458b   :  { %v14432_v32 = vpop.f32.mrf.mxu0 }
0x458c   :  { %v9587_v61 = vadd.f32 %v14432_v32, %v12716_v60  ;;  %v12756_v32 = vld [vmem:[%s15226_s18 + $0x5] ss:$0 sm:$0xff] }
0x458d   :  { %v9581_v1 = vpop.f32.mrf.mxu0 }
0x458e   :  { %v9582_v4 = vadd.f32 %v12716_v60, %v9581_v1  ;;  %14444 = vmatprep.subr.msk.mxu0 %vm423_vm2, %v9587_v61 }
0x458f   :  { %14445 = vmatpush3.xpose.msk.msra.mxu0 %vm423_vm2, %v9587_v61 }
0x4590   :  { %14446 = vmatprep.subr.msk.mxu0 %vm423_vm2, %v9582_v4 }
0x4593   :  { %14447 = vmatpush3.xpose.msk.msra.mxu0 %vm423_vm2, %v9582_v4 }
0x4594   :  { %14469 = vmatprep.subr.mxu0 %v12746_v33 }
0x4596   :  { %14449 = vmatmul.mubr.msk.f32.vlgmr.msra.gmra.mxu0 %vm423_vm2, %v9501_v36 }
0x4597   :  { %14470 = vmatpush3.msra.mxu0 %v12746_v33  ;;  %14477 = vmatprep.mubr.msk.f32.mxu0 %vm247_vm1, %v16164_v49 }
0x4598   :  { %14471 = vmatprep.subr.mxu0 %v12745_v47 }
0x4599   :  { %14472 = vmatpush3.msra.mxu0 %v12745_v47 }
0x459a   :  { %14473 = vmatprep.subr.mxu0 %v12744_v17 }
0x459b   :  { %14474 = vmatpush3.msra.mxu0 %v12744_v17 }
0x459c   :  { %14475 = vmatprep.subr.mxu0 %v12743_v23 }
0x459d   :  { %14476 = vmatpush3.msra.mxu0 %v12743_v23 }
0x459e   :  { %14478 = vmatmul.mubr.msk.f32.vlgmr.msra.gmra.mxu0 %vm247_vm1, %v16166_v7 }
0x4656   :  { %v14450_v40 = vpop.f32.mrf.mxu0 }
0x4657   :  { %v9764_v14 = vmul.f32 0.35355338, %v14450_v40 }
0x4658   :  { %v9754_v39 = vpop.f32.mrf.mxu0 }
0x4659   :  { %v9763_v0 = vmul.f32 0.35355338, %v9754_v39  ;;  %v9768_v48 = vsel %vm1257_vm7, %v9764_v14, -inf }
0x465a   :  { %9769 = vmax.xlane.f32.xlu1 %v9768_v48 }
0x465b   :  { %v9765_v5 = vsel %vm1253_vm6, %v9763_v0, -inf }
0x465c   :  { %9766 = vmax.xlane.f32.xlu0 %v9765_v5 }
0x465e   :  { %v14479_v9 = vpop.f32.mrf.mxu0 }
0x465f   :  { %v10041_v10 = vadd.f32 %v14479_v9, %v12748_v6 }
0x4660   :  { %v10035_v11 = vpop.f32.mrf.mxu0 }
0x4661   :  { %v10036_v12 = vadd.f32 %v12748_v6, %v10035_v11  ;;  %14491 = vmatprep.subr.msk.mxu0 %vm423_vm2, %v10041_v10 }
0x4662   :  { %14492 = vmatpush3.xpose.msk.msra.mxu0 %vm423_vm2, %v10041_v10 }
0x4663   :  { %14493 = vmatprep.subr.msk.mxu0 %vm423_vm2, %v10036_v12 }
0x4666   :  { %14494 = vmatpush3.xpose.msk.msra.mxu0 %vm423_vm2, %v10036_v12 }
0x46e3   :  { %v9770_v13 = vpop.xlane.xlu1 %9769 }
0x46e4   :  { %v9772_v15 = vsub.f32 %v9764_v14, %v9770_v13 }
0x46e5   :  { %v9767_v16 = vpop.xlane.xlu0 %9766 }
0x46e6   :  { %v9775_v18 = vmul.f32 1.442695, %v9772_v15  ;;  %v9771_v19 = vsub.f32 %v9763_v0, %v9767_v16  ;;  %v12734_v15 = vld [vmem:[%s15289_s26 + $0x20] sm:$0xff]  ;;  %v12766_v16 = vld [vmem:[%s15289_s26 + $0x28] sm:$0xff] }
0x46e7   :  { %14505 = vmatprep.subr.mxu0 %v12766_v16 }
0x46e8   :  { %14919 = vpow2.f32 %v9775_v18  ;;  %v9773_v22 = vmul.f32 1.442695, %v9771_v19 }
0x46ea   :  { %14921 = vpow2.f32 %v9773_v22 }
0x46f5   :  { %v14920_v26 = vpop.eup %14919 }
0x46f6   :  { %v9780_v27 = vsel %vm1257_vm7, %v14920_v26, 0.0 }
0x46f7   :  { %v14922_v28 = vpop.eup %14921  ;;  %9781 = vadd.xlane.f32.xlu1 %v9780_v27 }
0x46f8   :  { %v9777_v29 = vsel %vm1253_vm6, %v14922_v28, 0.0 }
0x46f9   :  { %9778 = vadd.xlane.f32.xlu0 %v9777_v29  ;;  %v12782_v29 = vld [vmem:[%s15163_s13 + $0xd8] sm:$0xff] }
0x4780   :  { %v9782_v34 = vpop.xlane.xlu1 %9781 }
0x4781   :  { %14923 = vrcp.f32 %v9782_v34  ;;  %v12780_v34 = vld [vmem:[%s15163_s13 + $0xc8] sm:$0xff] }
0x4782   :  { %v9779_v37 = vpop.xlane.xlu0 %9778 }
0x4783   :  { %14925 = vrcp.f32 %v9779_v37  ;;  %v12779_v37 = vld [vmem:[%s15163_s13 + $0xc0] sm:$0xff] }
0x478e   :  { %v14924_v41 = vpop.eup %14923 }
0x478f   :  { %v9786_v24 = vmul.f32 %v14924_v41, %v14920_v26  ;;  %v12774_v41 = vld [vmem:[%s15158_s8 + $0xd8] sm:$0xff] }
0x4790   :  { %v14926_v43 = vpop.eup %14925 }
0x4791   :  { %v9785_v44 = vmul.f32 %v14926_v43, %v14922_v28 }
0x4793   :  { %14455 = vmatprep.mubr.msk.f32.mxu1 %vm1253_vm6, %v9785_v44 }
0x4794   :  { %14456 = vmatmul.mubr.msk.f32.vlgmr.msra.gmra.mxu1 %vm1253_vm6, %v9786_v24  ;;  %v12773_v24 = vld [vmem:[%s15158_s8 + $0xd0] sm:$0xff] }
0x4795   :  { %14459 = vmatpush3.msra.mxu1 %v12738_v53  ;;  %14466 = vmatprep.mubr.msk.f32.mxu1 %vm247_vm1, %v16164_v49  ;;  %v12781_v53 = vld [vmem:[%s15163_s13 + $0xd0] sm:$0xff] }
0x4796   :  { %14460 = vmatprep.subr.mxu1 %v12737_v45 }
0x4797   :  { %14461 = vmatpush3.msra.mxu1 %v12737_v45  ;;  %v12772_v45 = vld [vmem:[%s15158_s8 + $0xc8] sm:$0xff] }
0x4798   :  { %14462 = vmatprep.subr.mxu1 %v12736_v3 }
0x4799   :  { %14463 = vmatpush3.msra.mxu1 %v12736_v3 }
0x479a   :  { %14464 = vmatprep.subr.mxu1 %v12735_v31 }
0x479b   :  { %14465 = vmatpush3.msra.mxu1 %v12735_v31  ;;  %v12771_v31 = vld [vmem:[%s15158_s8 + $0xc0] sm:$0xff] }
0x479c   :  { %14467 = vmatmul.mubr.msk.f32.vlgmr.msra.gmra.mxu1 %vm247_vm1, %v16166_v7  ;;  %14480 = vmatprep.subr.mxu1 %v12754_v56 }
0x479d   :  { %14481 = vmatpush3.msra.mxu1 %v12754_v56  ;;  %14488 = vmatprep.mubr.msk.f32.mxu1 %vm247_vm1, %v16164_v49  ;;  %v12790_v56 = vld [vmem:[%s15171_s19 + $0xd8] sm:$0xff] }
0x479e   :  { %14482 = vmatprep.subr.mxu1 %v12753_v57 }
0x479f   :  { %14483 = vmatpush3.msra.mxu1 %v12753_v57 }
0x47a0   :  { %14484 = vmatprep.subr.mxu1 %v12752_v30 }
0x47a1   :  { %14485 = vmatpush3.msra.mxu1 %v12752_v30  ;;  %v12784_v30 = vld [vmem:[%s15215_s4 + $0x6] ss:$0 sm:$0xff] }
0x47a2   :  { %14486 = vmatprep.subr.mxu1 %v12751_v54 }
0x47a3   :  { %14487 = vmatpush3.msra.mxu1 %v12751_v54  ;;  %v12789_v54 = vld [vmem:[%s15171_s19 + $0xd0] sm:$0xff] }
0x47a4   :  { %14489 = vmatmul.mubr.msk.f32.vlgmr.msra.gmra.mxu1 %vm247_vm1, %v16166_v7 }
0x4854   :  { %v14457_v50 = vpop.f32.mrf.mxu1 }
0x4856   :  { %v9862_v42 = vpop.f32.mrf.mxu1 }
0x485c   :  { %v14468_v35 = vpop.f32.mrf.mxu1 }
0x485d   :  { %v9955_v60 = vadd.f32 %v14468_v35, %v12740_v58  ;;  %v12788_v35 = vld [vmem:[%s15171_s19 + $0xc8] sm:$0xff] }
0x485e   :  { %v9949_v59 = vpop.f32.mrf.mxu1 }
0x485f   :  { %v9950_v38 = vadd.f32 %v12740_v58, %v9949_v59 }
0x4861   :  { %14495 = vmatprep.mubr.msk.f32.mxu0 %vm423_vm2, %v9950_v38  ;;  %v12787_v38 = vld [vmem:[%s15171_s19 + $0xc0] sm:$0xff] }
0x4862   :  { %14496 = vmatmul.mubr.msk.f32.vlgmr.msra.gmra.mxu0 %vm423_vm2, %v9955_v60 }
0x4863   :  { %14506 = vmatpush3.msra.mxu0 %v12766_v16 }
0x4864   :  { %v14490_v61 = vpop.f32.mrf.mxu1  ;;  %14515 = vmatprep.subr.mxu0 %v12774_v41 }
0x4865   :  { %v10127_v1 = vadd.f32 %v14490_v61, %v12756_v32 }
0x4866   :  { %v10121_v4 = vpop.f32.mrf.mxu1 }
0x4867   :  { %v10122_v33 = vadd.f32 %v12756_v32, %v10121_v4  ;;  %14498 = vmatprep.subr.msk.mxu1 %vm1283_vm5, %v10127_v1 }
0x4868   :  { %14499 = vmatpush3.msk.msra.mxu1 %vm1283_vm5, %v10127_v1  ;;  %v12776_v1 = vld [vmem:[%s15220_s11 + $0x6] ss:$0 sm:$0xff] }
0x4869   :  { %14500 = vmatprep.subr.mxu1 %v10122_v33 }
0x486a   :  { %14501 = vmatpush3.msra.mxu1 %v10122_v33 }
0x486b   :  { %14510 = vmatprep.subr.mxu1 %v12734_v15 }
0x4922   :  { %v14497_v36 = vpop.f32.mrf.mxu0 }
0x4923   :  { %v10218_v47 = vmul.f32 0.35355338, %v14497_v36 }
0x4924   :  { %v10208_v17 = vpop.f32.mrf.mxu0 }
0x4925   :  { %v10217_v23 = vmul.f32 0.35355338, %v10208_v17  ;;  %v10222_v40 = vsel %vm1257_vm7, %v10218_v47, -inf }
0x4926   :  { %10223 = vmax.xlane.f32.xlu1 %v10222_v40 }
0x4927   :  { %v10219_v14 = vsel %vm1253_vm6, %v10217_v23, -inf }
0x4928   :  { %10220 = vmax.xlane.f32.xlu0 %v10219_v14 }
0x49af   :  { %v10224_v39 = vpop.xlane.xlu1 %10223 }
0x49b0   :  { %v10226_v0 = vsub.f32 %v10218_v47, %v10224_v39  ;;  %v12792_v47 = vld [vmem:[%s15226_s18 + $0x6] ss:$0 sm:$0xff] }
0x49b1   :  { %v10221_v48 = vpop.xlane.xlu0 %10220 }
0x49b2   :  { %v10229_v5 = vmul.f32 1.442695, %v10226_v0  ;;  %v10225_v6 = vsub.f32 %v10217_v23, %v10221_v48 }
0x49b4   :  { %14927 = vpow2.f32 %v10229_v5  ;;  %v10227_v9 = vmul.f32 1.442695, %v10225_v6 }
0x49b6   :  { %14929 = vpow2.f32 %v10227_v9 }
0x49c1   :  { %v14928_v10 = vpop.eup %14927 }
0x49c2   :  { %v10234_v11 = vsel %vm1257_vm7, %v14928_v10, 0.0 }
0x49c3   :  { %v14930_v12 = vpop.eup %14929  ;;  %10235 = vadd.xlane.f32.xlu1 %v10234_v11 }
0x49c4   :  { %v10231_v13 = vsel %vm1253_vm6, %v14930_v12, 0.0 }
0x49c5   :  { %10232 = vadd.xlane.f32.xlu0 %v10231_v13 }
0x4a4c   :  { %v10236_v18 = vpop.xlane.xlu1 %10235 }
0x4a4d   :  { %14931 = vrcp.f32 %v10236_v18 }
0x4a4e   :  { %v10233_v19 = vpop.xlane.xlu0 %10232 }
0x4a4f   :  { %14933 = vrcp.f32 %v10233_v19 }
0x4a5a   :  { %v14932_v22 = vpop.eup %14931 }
0x4a5b   :  { %v10240_v28 = vmul.f32 %v14932_v22, %v14928_v10 }
0x4a5c   :  { %v14934_v26 = vpop.eup %14933 }
0x4a5d   :  { %v10239_v27 = vmul.f32 %v14934_v26, %v14930_v12 }
0x4a5f   :  { %14502 = vmatprep.mubr.msk.f32.mxu1 %vm1253_vm6, %v10239_v27  ;;  %v12808_v27 = vld [vmem:[%s15158_s8 + $0xf8] sm:$0xff] }
0x4a60   :  { %14503 = vmatmul.mubr.msk.f32.vlgmr.msra.gmra.mxu1 %vm1253_vm6, %v10240_v28  ;;  %v12802_v28 = vld [vmem:[%s15289_s26 + $0x30] sm:$0xff] }
0x4a61   :  { %14512 = vmatprep.mubr.msk.f32.mxu1 %vm423_vm2, %v9862_v42  ;;  %14511 = vmatpush3.msra.mxu1 %v12734_v15 }
0x4a62   :  { %14526 = vmatprep.subr.mxu1 %v12782_v29 }
0x4a64   :  { %14513 = vmatmul.mubr.msk.f32.vlgmr.msra.gmra.mxu1 %vm423_vm2, %v14457_v50 }
0x4a65   :  { %14527 = vmatpush3.msra.mxu1 %v12782_v29  ;;  %14534 = vmatprep.mubr.msk.f32.mxu1 %vm247_vm1, %v16164_v49 }
0x4a66   :  { %14528 = vmatprep.subr.mxu1 %v12781_v53 }
0x4a67   :  { %14529 = vmatpush3.msra.mxu1 %v12781_v53 }
0x4a68   :  { %14530 = vmatprep.subr.mxu1 %v12780_v34 }
0x4a69   :  { %14531 = vmatpush3.msra.mxu1 %v12780_v34 }
0x4a6a   :  { %14532 = vmatprep.subr.mxu1 %v12779_v37 }
0x4a6b   :  { %14533 = vmatpush3.msra.mxu1 %v12779_v37 }
0x4a6c   :  { %14535 = vmatmul.mubr.msk.f32.vlgmr.msra.gmra.mxu1 %vm247_vm1, %v16166_v7 }
0x4b20   :  { %v14504_v43 = vpop.f32.mrf.mxu1 }
0x4b22   :  { %v10316_v44 = vpop.f32.mrf.mxu1 }
0x4b23   :  { %14507 = vmatprep.mubr.msk.f32.mxu0 %vm423_vm2, %v10316_v44  ;;  %v12807_v44 = vld [vmem:[%s15158_s8 + $0xf0] sm:$0xff] }
0x4b24   :  { %14508 = vmatmul.mubr.msk.f32.vlgmr.msra.gmra.mxu0 %vm423_vm2, %v14504_v43  ;;  %v16260_v3 = vpop.f32.mrf.mxu1 }
0x4b25   :  { %14516 = vmatpush3.msra.mxu0 %v12774_v41  ;;  %14523 = vmatprep.mubr.msk.f32.mxu0 %vm247_vm1, %v16164_v49 }
0x4b26   :  { %14517 = vmatprep.subr.mxu0 %v12773_v24  ;;  %v16264_v57 = vpop.f32.mrf.mxu1 }
0x4b27   :  { %14518 = vmatpush3.msra.mxu0 %v12773_v24  ;;  %v12806_v24 = vld [vmem:[%s15158_s8 + $0xe8] sm:$0xff] }
0x4b28   :  { %14519 = vmatprep.subr.mxu0 %v12772_v45 }
0x4b29   :  { %14520 = vmatpush3.msra.mxu0 %v12772_v45  ;;  %v12805_v45 = vld [vmem:[%s15158_s8 + $0xe0] sm:$0xff]  ;;  %s16532_s8 = sld [smem:[#allocation5_spill]] }
0x4b2a   :  { %14521 = vmatprep.subr.mxu0 %v12771_v31 }
0x4b2b   :  { %14522 = vmatpush3.msra.mxu0 %v12771_v31  ;;  %v12824_v31 = vld [vmem:[%s15171_s19 + $0xf8] sm:$0xff] }
0x4b2c   :  { %14524 = vmatmul.mubr.msk.f32.vlgmr.msra.gmra.mxu0 %vm247_vm1, %v16166_v7  ;;  %v14536_v50 = vpop.f32.mrf.mxu1  ;;  %14537 = vmatprep.subr.mxu0 %v12790_v56 }
0x4b2d   :  { %v10657_v42 = vadd.f32 %v14536_v50, %v12784_v30  ;;  %14538 = vmatpush3.msra.mxu0 %v12790_v56  ;;  %14545 = vmatprep.mubr.msk.f32.mxu0 %vm247_vm1, %v16164_v49  ;;  %v12823_v56 = vld [vmem:[%s15171_s19 + $0xf0] sm:$0xff]  ;;  %v12816_v50 = vld [vmem:[%s15163_s13 + $0xf8] sm:$0xff] }
0x4b2e   :  { %v10651_v58 = vpop.f32.mrf.mxu1  ;;  %14539 = vmatprep.subr.mxu0 %v12789_v54 }
0x4b2f   :  { %v10652_v59 = vadd.f32 %v12784_v30, %v10651_v58  ;;  %14540 = vmatpush3.msra.mxu0 %v12789_v54  ;;  %14548 = vmatprep.subr.msk.mxu1 %vm423_vm2, %v10657_v42  ;;  %v12822_v30 = vld [vmem:[%s15171_s19 + $0xe8] sm:$0xff]  ;;  %v12821_v54 = vld [vmem:[%s15171_s19 + $0xe0] sm:$0xff]  ;;  %v12815_v58 = vld [vmem:[%s15163_s13 + $0xf0] sm:$0xff] }
0x4b30   :  { %14541 = vmatprep.subr.mxu0 %v12788_v35  ;;  %14549 = vmatpush3.xpose.msk.msra.mxu1 %vm423_vm2, %v10657_v42 }
0x4b31   :  { %14542 = vmatpush3.msra.mxu0 %v12788_v35  ;;  %14550 = vmatprep.subr.msk.mxu1 %vm423_vm2, %v10652_v59 }
0x4b32   :  { %14543 = vmatprep.subr.mxu0 %v12787_v38 }
0x4b33   :  { %14544 = vmatpush3.msra.mxu0 %v12787_v38  ;;  %v12810_v38 = vld [vmem:[%s15220_s11 + $0x7] ss:$0 sm:$0xff]  ;;  %s15018_s11 = smov 31  }
0x4b34   :  { %14546 = vmatmul.mubr.msk.f32.vlgmr.msra.gmra.mxu0 %vm247_vm1, %v16166_v7  ;;  %14551 = vmatpush3.xpose.msk.msra.mxu1 %vm423_vm2, %v10652_v59  ;;  %v12814_v59 = vld [vmem:[%s15163_s13 + $0xe8] sm:$0xff] }
0x4b35   :  { %14562 = vmatprep.subr.mxu1 %v12802_v28 }
0x4be4   :  { %v16280_v60 = vpop.f32.mrf.mxu0 }
0x4be6   :  { %v16282_v32 = vpop.f32.mrf.mxu0 }
0x4bec   :  { %v14525_v61 = vpop.f32.mrf.mxu0 }
0x4bed   :  { %v10571_v36 = vadd.f32 %v14525_v61, %v12776_v1  ;;  %v12813_v61 = vld [vmem:[%s15163_s13 + $0xe0] sm:$0xff]  ;;  %s16533_s13 = sld [smem:[#allocation6_spill]] }
0x4bee   :  { %v10565_v4 = vpop.f32.mrf.mxu0 }
0x4bef   :  { %v10566_v33 = vadd.f32 %v12776_v1, %v10565_v4 }
0x4bf1   :  { %14552 = vmatprep.mubr.msk.f32.mxu1 %vm423_vm2, %v10566_v33 }
0x4bf2   :  { %14553 = vmatmul.mubr.msk.f32.vlgmr.msra.gmra.mxu1 %vm423_vm2, %v10571_v36 }
0x4bf3   :  { %14563 = vmatpush3.msra.mxu1 %v12802_v28 }
0x4bf4   :  { %v14547_v17 = vpop.f32.mrf.mxu0  ;;  %14578 = vmatprep.subr.mxu1 %v12816_v50 }
0x4bf5   :  { %v10743_v23 = vadd.f32 %v14547_v17, %v12792_v47 }
0x4bf6   :  { %v10737_v40 = vpop.f32.mrf.mxu0 }
0x4bf7   :  { %v10738_v14 = vadd.f32 %v12792_v47, %v10737_v40  ;;  %14555 = vmatprep.subr.msk.mxu0 %vm1283_vm5, %v10743_v23 }
0x4bf8   :  { %14556 = vmatpush3.msk.msra.mxu0 %vm1283_vm5, %v10743_v23 }
0x4bf9   :  { %14557 = vmatprep.subr.mxu0 %v10738_v14 }
0x4bfa   :  { %14558 = vmatpush3.msra.mxu0 %v10738_v14  ;;  %v10485_v14 = vadd.f32 %v16260_v3, %v16280_v60 }
0x4bfb   :  { %14567 = vmatprep.subr.mxu0 %v12808_v27 }
0x4cb2   :  { %v14554_v39 = vpop.f32.mrf.mxu1 }
0x4cb3   :  { %v10834_v0 = vmul.f32 0.35355338, %v14554_v39 }
0x4cb4   :  { %v10824_v48 = vpop.f32.mrf.mxu1 }
0x4cb5   :  { %v10833_v5 = vmul.f32 0.35355338, %v10824_v48  ;;  %v10838_v6 = vsel %vm1257_vm7, %v10834_v0, -inf }
0x4cb6   :  { %10839 = vmax.xlane.f32.xlu1 %v10838_v6  ;;  %v12818_v6 = vld [vmem:[%s15215_s4 + $0x7] ss:$0 sm:$0xff] }
0x4cb7   :  { %v10835_v9 = vsel %vm1253_vm6, %v10833_v5, -inf }
0x4cb8   :  { %10836 = vmax.xlane.f32.xlu0 %v10835_v9 }
0x4d3f   :  { %v10840_v10 = vpop.xlane.xlu1 %10839 }
0x4d40   :  { %v10842_v11 = vsub.f32 %v10834_v0, %v10840_v10 }
0x4d41   :  { %v10837_v12 = vpop.xlane.xlu0 %10836 }
0x4d42   :  { %v10845_v13 = vmul.f32 1.442695, %v10842_v11  ;;  %v10841_v15 = vsub.f32 %v10833_v5, %v10837_v12 }
0x4d44   :  { %14935 = vpow2.f32 %v10845_v13  ;;  %v10843_v16 = vmul.f32 1.442695, %v10841_v15 }
0x4d46   :  { %14937 = vpow2.f32 %v10843_v16 }
0x4d51   :  { %v14936_v18 = vpop.eup %14935 }
0x4d52   :  { %v10850_v19 = vsel %vm1257_vm7, %v14936_v18, 0.0 }
0x4d53   :  { %v14938_v22 = vpop.eup %14937  ;;  %10851 = vadd.xlane.f32.xlu1 %v10850_v19 }
0x4d54   :  { %v10847_v26 = vsel %vm1253_vm6, %v14938_v22, 0.0 }
0x4d55   :  { %10848 = vadd.xlane.f32.xlu0 %v10847_v26 }
0x4ddc   :  { %v10852_v29 = vpop.xlane.xlu1 %10851 }
0x4ddd   :  { %14939 = vrcp.f32 %v10852_v29 }
0x4dde   :  { %v10849_v53 = vpop.xlane.xlu0 %10848 }
0x4ddf   :  { %14941 = vrcp.f32 %v10849_v53 }
0x4dea   :  { %v14940_v34 = vpop.eup %14939 }
0x4deb   :  { %v10856_v43 = vmul.f32 %v14940_v34, %v14936_v18 }
0x4dec   :  { %v14942_v37 = vpop.eup %14941 }
0x4ded   :  { %v10855_v41 = vmul.f32 %v14942_v37, %v14938_v22  ;;  %v12836_v37 = vld [vmem:[%s15289_s26 + $0x38] sm:$0xff] }
0x4def   :  { %14559 = vmatprep.mubr.msk.f32.mxu0 %vm1253_vm6, %v10855_v41 }
0x4df0   :  { %14560 = vmatmul.mubr.msk.f32.vlgmr.msra.gmra.mxu0 %vm1253_vm6, %v10856_v43 }
0x4df1   :  { %14568 = vmatpush3.msra.mxu0 %v12808_v27  ;;  %14575 = vmatprep.mubr.msk.f32.mxu0 %vm247_vm1, %v16164_v49 }
0x4df2   :  { %14569 = vmatprep.subr.mxu0 %v12807_v44 }
0x4df3   :  { %14570 = vmatpush3.msra.mxu0 %v12807_v44 }
0x4df4   :  { %14571 = vmatprep.subr.mxu0 %v12806_v24 }
0x4df5   :  { %14572 = vmatpush3.msra.mxu0 %v12806_v24 }
0x4df6   :  { %14573 = vmatprep.subr.mxu0 %v12805_v45 }
0x4df7   :  { %14574 = vmatpush3.msra.mxu0 %v12805_v45 }
0x4df8   :  { %14576 = vmatmul.mubr.msk.f32.vlgmr.msra.gmra.mxu0 %vm247_vm1, %v16166_v7  ;;  %14589 = vmatprep.subr.mxu0 %v12824_v31 }
0x4df9   :  { %14590 = vmatpush3.msra.mxu0 %v12824_v31  ;;  %14597 = vmatprep.mubr.msk.f32.mxu0 %vm247_vm1, %v16164_v49 }
0x4dfa   :  { %14591 = vmatprep.subr.mxu0 %v12823_v56 }
0x4dfb   :  { %14592 = vmatpush3.msra.mxu0 %v12823_v56 }
0x4dfc   :  { %14593 = vmatprep.subr.mxu0 %v12822_v30 }
0x4dfd   :  { %14594 = vmatpush3.msra.mxu0 %v12822_v30 }
0x4dfe   :  { %14595 = vmatprep.subr.mxu0 %v12821_v54 }
0x4dff   :  { %14596 = vmatpush3.msra.mxu0 %v12821_v54 }
0x4e00   :  { %14598 = vmatmul.mubr.msk.f32.vlgmr.msra.gmra.mxu0 %vm247_vm1, %v16166_v7 }
0x4eb0   :  { %v14561_v42 = vpop.f32.mrf.mxu0 }
0x4eb2   :  { %v10932_v35 = vpop.f32.mrf.mxu0 }
0x4eb3   :  { %14564 = vmatprep.mubr.msk.f32.mxu1 %vm423_vm2, %v10932_v35  ;;  %v12840_v35 = vld [vmem:[%s15402_s2 + $0x1] ss:$0 sm:$0xff]  ;;  %s16502_s2 = sld [smem:[%s16518_s0 + %s15018_s11]]  }
0x4eb4   :  { %14565 = vmatmul.mubr.msk.f32.vlgmr.msra.gmra.mxu1 %vm423_vm2, %v14561_v42 }
0x4eb5   :  { %14579 = vmatpush3.msra.mxu1 %v12816_v50  ;;  %14586 = vmatprep.mubr.msk.f32.mxu1 %vm247_vm1, %v16164_v49  ;;  %v12826_v49 = vld [vmem:[%s15226_s18 + $0x7] ss:$0 sm:$0xff] }
0x4eb6   :  { %14580 = vmatprep.subr.mxu1 %v12815_v58 }
0x4eb7   :  { %14581 = vmatpush3.msra.mxu1 %v12815_v58 }
0x4eb8   :  { %v14577_v1 = vpop.f32.mrf.mxu0  ;;  %14582 = vmatprep.subr.mxu1 %v12814_v59 }
0x4eb9   :  { %v11108_v4 = vadd.f32 %v14577_v1, %v12810_v38  ;;  %14583 = vmatpush3.msra.mxu1 %v12814_v59 }
0x4eba   :  { %v11102_v33 = vpop.f32.mrf.mxu0  ;;  %14584 = vmatprep.subr.mxu1 %v12813_v61 }
0x4ebb   :  { %v11103_v36 = vadd.f32 %v12810_v38, %v11102_v33  ;;  %14585 = vmatpush3.msra.mxu1 %v12813_v61 }
0x4ebc   :  { %14587 = vmatmul.mubr.msk.f32.vlgmr.msra.gmra.mxu1 %vm247_vm1, %v16166_v7  ;;  %v10480_v7 = vadd.f32 %v16264_v57, %v16282_v32 }
0x4ebd   :  { %14604 = vmatprep.mubr.msk.f32.mxu1 %vm423_vm2, %v11103_v36 }
0x4ec0   :  { %v14599_v47 = vpop.f32.mrf.mxu0 }
0x4ec1   :  { %v11280_v17 = vadd.f32 %v14599_v47, %v12826_v49 }
0x4ec2   :  { %v11274_v23 = vpop.f32.mrf.mxu0 }
0x4ec3   :  { %v11275_v40 = vadd.f32 %v12826_v49, %v11274_v23  ;;  %14607 = vmatprep.subr.msk.mxu0 %vm1283_vm5, %v11280_v17 }
0x4ec4   :  { %14608 = vmatpush3.msk.msra.mxu0 %vm1283_vm5, %v11280_v17 }
0x4ec5   :  { %14609 = vmatprep.subr.mxu0 %v11275_v40 }
0x4ec6   :  { %14610 = vmatpush3.msra.mxu0 %v11275_v40 }
0x4f74   :  { %v14566_v39 = vpop.f32.mrf.mxu1 }
0x4f75   :  { %v11024_v0 = vadd.f32 %v14566_v39, %v10485_v14 }
0x4f76   :  { %v11014_v48 = vpop.f32.mrf.mxu1 }
0x4f77   :  { %v11023_v5 = vadd.f32 %v11014_v48, %v10480_v7  ;;  %v14981_v7 = vld [vmem:[%s15033_s10] sm:$0xff]  ;;  %v12848_v48 = vld [vmem:[%s15422_s9 + $0x38] sm:$0xff] }
0x4f78   :  { %14619 = vmatprep.subr.mxu0 %v12848_v48 }
0x4f7c   :  { %v14588_v9 = vpop.f32.mrf.mxu1 }
0x4f7d   :  { %v11194_v10 = vadd.f32 %v14588_v9, %v12818_v6  ;;  %v12845_v9 = vld [vmem:[%s15422_s9 + $0x20] sm:$0xff] }
0x4f7e   :  { %v11188_v11 = vpop.f32.mrf.mxu1 }
0x4f7f   :  { %v11189_v12 = vadd.f32 %v12818_v6, %v11188_v11  ;;  %14600 = vmatprep.subr.msk.mxu1 %vm423_vm2, %v11194_v10  ;;  %v12846_v6 = vld [vmem:[%s15422_s9 + $0x28] sm:$0xff] }
0x4f80   :  { %14601 = vmatpush3.xpose.msk.msra.mxu1 %vm423_vm2, %v11194_v10 }
0x4f81   :  { %14602 = vmatprep.subr.msk.mxu1 %vm423_vm2, %v11189_v12 }
0x4f84   :  { %14603 = vmatpush3.xpose.msk.msra.mxu1 %vm423_vm2, %v11189_v12 }
0x4f85   :  { %14614 = vmatprep.subr.mxu1 %v12836_v37 }
0x4f87   :  { %14605 = vmatmul.mubr.msk.f32.vlgmr.msra.gmra.mxu1 %vm423_vm2, %v11108_v4 }
0x4f88   :  { %14615 = vmatpush3.msra.mxu1 %v12836_v37  ;;  %v12857_v37 = vld [vmem:[%s15445_s7 + $0x60] sm:$0xff] }
0x5047   :  { %v14606_v3 = vpop.f32.mrf.mxu1 }
0x5048   :  { %v11371_v57 = vmul.f32 0.35355338, %v14606_v3 }
0x5049   :  { %v11361_v60 = vpop.f32.mrf.mxu1 }
0x504a   :  { %v11370_v32 = vmul.f32 0.35355338, %v11361_v60  ;;  %v11375_v13 = vsel %vm1257_vm7, %v11371_v57, -inf }
0x504b   :  { %11376 = vmax.xlane.f32.xlu1 %v11375_v13  ;;  %v12843_v13 = vld [vmem:[%s15431_s20 + $0x1] ss:$0 sm:$0xff] }
0x504c   :  { %v11372_v15 = vsel %vm1253_vm6, %v11370_v32, -inf }
0x504d   :  { %11373 = vmax.xlane.f32.xlu0 %v11372_v15 }
0x50d4   :  { %v11377_v16 = vpop.xlane.xlu1 %11376 }
0x50d5   :  { %v11379_v18 = vsub.f32 %v11371_v57, %v11377_v16 }
0x50d6   :  { %v11374_v19 = vpop.xlane.xlu0 %11373 }
0x50d7   :  { %v11382_v22 = vmul.f32 1.442695, %v11379_v18  ;;  %v11378_v26 = vsub.f32 %v11370_v32, %v11374_v19 }
0x50d9   :  { %14943 = vpow2.f32 %v11382_v22  ;;  %v11380_v27 = vmul.f32 1.442695, %v11378_v26  ;;  %v12844_v22 = vld [vmem:[%s15436_s28 + $0x1] ss:$0 sm:$0xff] }
0x50db   :  { %14945 = vpow2.f32 %v11380_v27 }
0x50e6   :  { %v14944_v28 = vpop.eup %14943 }
0x50e7   :  { %v11387_v29 = vsel %vm1257_vm7, %v14944_v28, 0.0 }
0x50e8   :  { %v14946_v53 = vpop.eup %14945  ;;  %11388 = vadd.xlane.f32.xlu1 %v11387_v29  ;;  %v12860_v29 = vld [vmem:[%s15445_s7 + $0x78] sm:$0xff] }
0x50e9   :  { %v11384_v34 = vsel %vm1253_vm6, %v14946_v53, 0.0  ;;  %14630 = vmatprep.subr.mxu1 %v12860_v29 }
0x50ea   :  { %11385 = vadd.xlane.f32.xlu0 %v11384_v34  ;;  %v12858_v34 = vld [vmem:[%s15445_s7 + $0x68] sm:$0xff] }
0x5171   :  { %v11389_v41 = vpop.xlane.xlu1 %11388 }
0x5172   :  { %14947 = vrcp.f32 %v11389_v41  ;;  %v12856_v41 = vld [vmem:[%s15445_s7 + $0x58] sm:$0xff] }
0x5173   :  { %v11386_v43 = vpop.xlane.xlu0 %11385 }
0x5174   :  { %14949 = vrcp.f32 %v11386_v43  ;;  %v12855_v43 = vld [vmem:[%s15445_s7 + $0x50] sm:$0xff] }
0x517f   :  { %v14948_v44 = vpop.eup %14947 }
0x5180   :  { %v11393_v31 = vmul.f32 %v14948_v44, %v14944_v28  ;;  %v12854_v44 = vld [vmem:[%s15445_s7 + $0x48] sm:$0xff] }
0x5181   :  { %v14950_v24 = vpop.eup %14949 }
0x5182   :  { %v11392_v45 = vmul.f32 %v14950_v24, %v14946_v53  ;;  %v12859_v53 = vld [vmem:[%s15445_s7 + $0x70] sm:$0xff]  ;;  %v12853_v24 = vld [vmem:[%s15445_s7 + $0x40] sm:$0xff] }
0x5184   :  { %14611 = vmatprep.mubr.msk.f32.mxu0 %vm1253_vm6, %v11392_v45  ;;  %v12850_v45 = vld [vmem:[%s15458_s22 + $0x1] ss:$0 sm:$0xff] }
0x5185   :  { %14612 = vmatmul.mubr.msk.f32.vlgmr.msra.gmra.mxu0 %vm1253_vm6, %v11393_v31 }
0x5186   :  { %14620 = vmatpush3.msra.mxu0 %v12848_v48 }
0x5245   :  { %v14613_v56 = vpop.f32.mrf.mxu0 }
0x5247   :  { %v11469_v30 = vpop.f32.mrf.mxu0 }
0x5248   :  { %14616 = vmatprep.mubr.msk.f32.mxu1 %vm423_vm2, %v11469_v30 }
0x5249   :  { %14617 = vmatmul.mubr.msk.f32.vlgmr.msra.gmra.mxu1 %vm423_vm2, %v14613_v56 }
0x524a   :  { %14631 = vmatpush3.msra.mxu1 %v12860_v29 }
0x524b   :  { %14632 = vmatprep.subr.mxu1 %v12859_v53 }
0x524c   :  { %14633 = vmatpush3.msra.mxu1 %v12859_v53 }
0x524d   :  { %14634 = vmatprep.subr.mxu1 %v12858_v34 }
0x524e   :  { %14635 = vmatpush3.msra.mxu1 %v12858_v34 }
0x524f   :  { %14636 = vmatprep.subr.mxu1 %v12857_v37 }
0x5250   :  { %14637 = vmatpush3.msra.mxu1 %v12857_v37 }
0x5251   :  { %14638 = vmatprep.subr.mxu1 %v12856_v41 }
0x5252   :  { %14639 = vmatpush3.msra.mxu1 %v12856_v41 }
0x5253   :  { %14640 = vmatprep.subr.mxu1 %v12855_v43 }
0x5254   :  { %14641 = vmatpush3.msra.mxu1 %v12855_v43 }
0x5255   :  { %14642 = vmatprep.subr.mxu1 %v12854_v44 }
0x5256   :  { %14643 = vmatpush3.msra.mxu1 %v12854_v44 }
0x5257   :  { %14644 = vmatprep.subr.mxu1 %v12853_v24 }
0x5258   :  { %14645 = vmatpush3.msra.mxu1 %v12853_v24 }
0x5259   :  { %14679 = vmatprep.subr.mxu1 %v14990_v21 }
0x5309   :  { %v14618_v54 = vpop.f32.mrf.mxu1 }
0x530a   :  { %v11561_v50 = vadd.f32 %v14618_v54, %v11024_v0  ;;  %v710_v0 = vsel %vm154_vm0, %v14981_v7, 0.0 }
0x530b   :  { %v11551_v42 = vpop.f32.mrf.mxu1 }
0x530c   :  { %v11563_v58 = vadd.f32 %v11561_v50, %v16140_v62  ;;  %v11560_v59 = vadd.f32 %v11551_v42, %v11023_v5  ;;  %v12847_v5 = vld [vmem:[%s15422_s9 + $0x30] sm:$0xff] }
0x530d   :  { %14621 = vmatprep.subr.mxu0 %v12847_v5 }
0x530e   :  { %v11562_v38 = vadd.f32 %v11560_v59, %v16143_v2  ;;  %v11572_v61 = vadd.f32 %v12840_v35, %v11563_v58  ;;  %14622 = vmatpush3.msra.mxu0 %v12847_v5 }
0x530f   :  { %14623 = vmatprep.subr.mxu0 %v12846_v6 }
0x5310   :  { %v11578_v1 = vsel %vm850_vm4, %v11572_v61, 0.0  ;;  %v16351_v4 = vadd.f32 %v12840_v35, %v11562_v38  ;;  %14624 = vmatpush3.msra.mxu0 %v12846_v6  ;;  %v12864_v6 = vld [vmem:[%s15466_s3 + $0x1] ss:$0 sm:$0xff] }
0x5311   :  { %11579 = vadd.xlane.f32.xlu1 %v11578_v1  ;;  %14625 = vmatprep.subr.mxu0 %v12845_v9 }
0x5312   :  { %v11575_v33 = vsel %vm247_vm1, %v16351_v4, 0.0  ;;  %14626 = vmatpush3.msra.mxu0 %v12845_v9 }
0x5313   :  { %11576 = vadd.xlane.f32.xlu0 %v11575_v33  ;;  %14649 = vmatprep.subr.mxu0 %v14990_v21 }
0x539a   :  { %v11580_v36 = vpop.xlane.xlu1 %11579 }
0x539b   :  { %v11582_v49 = vmul.f32 0.03125, %v11580_v36 }
0x539c   :  { %v11577_v47 = vpop.xlane.xlu0 %11576 }
0x539d   :  { %v11584_v62 = vsub.f32 %v11572_v61, %v11582_v49  ;;  %v11581_v17 = vmul.f32 0.03125, %v11577_v47 }
0x539f   :  { %v11583_v2 = vsub.f32 %v16351_v4, %v11581_v17  ;;  %v11586_v23 = vmul.f32 %v11584_v62, %v11584_v62 }
0x53a1   :  { %v11590_v40 = vsel %vm850_vm4, %v11586_v23, 0.0  ;;  %v11585_v14 = vmul.f32 %v11583_v2, %v11583_v2 }
0x53a2   :  { %11591 = vadd.xlane.f32.xlu1 %v11590_v40 }
0x53a3   :  { %v11587_v39 = vsel %vm247_vm1, %v11585_v14, 0.0 }
0x53a4   :  { %11588 = vadd.xlane.f32.xlu0 %v11587_v39  ;;  %v129_v39 = vlaneseq }
0x53a6   :  { %711 = vadd.xlane.f32.xlu1 %v710_v0  ;;  %v130_v0 = vshrl.u32 %v129_v39, 7  ;;  %v132_v48 = vand.u32 127, %v129_v39 }
0x53a8   :  { %vm133_vm10 = vcmp.eq.s32.totalorder %v130_v0, %v132_v48 }
0x542b   :  { %v11592_v10 = vpop.xlane.xlu1 %11591 }
0x542c   :  { %v11594_v11 = vmul.f32 0.03125, %v11592_v10 }
0x542d   :  { %v11589_v12 = vpop.xlane.xlu0 %11588 }
0x542e   :  { %v11596_v3 = vadd.f32 1e-05, %v11594_v11  ;;  %v11593_v57 = vmul.f32 0.03125, %v11589_v12  ;;  %v16389_v12 = vsel %vm133_vm10, 1.0, %v14990_v21 }
0x5430   :  { %14951 = vrsqrt.f32 %v11596_v3  ;;  %v11595_v60 = vadd.f32 1e-05, %v11593_v57  ;;  %v14982_v3 = vld [vmem:[%s15033_s10 + $0x8] sm:$0xff] }
0x5431   :  { %v713_v57 = vsel %vm154_vm0, %v14982_v3, 0.0 }
0x5432   :  { %14953 = vrsqrt.f32 %v11595_v60  ;;  %v698_v60 = vmul.f32 %v16389_v12, %v15179_v25  ;;  %v6862_v25 = vmul.f32 %v15891_v51, %v15891_v51 }
0x543d   :  { %v14952_v32 = vpop.eup %14951 }
0x543e   :  { %v11600_v15 = vmul.f32 %v14952_v32, %v11584_v62  ;;  %v806_v32 = vmul.f32 %v15140_v63, %v15140_v63 }
0x543f   :  { %v14954_v16 = vpop.eup %14953 }
0x5440   :  { %v11599_v18 = vmul.f32 %v14954_v16, %v11583_v2  ;;  %v11608_v19 = vmul.f32 %v12843_v13, %v11600_v15  ;;  %v14983_v15 = vld [vmem:[%s15033_s10 + $0x18] sm:$0xff] }
0x5441   :  { %v6769_v16 = vsel %vm154_vm0, %v14983_v15, 0.0 }
0x5442   :  { %v11607_v26 = vmul.f32 %v12843_v13, %v11599_v18  ;;  %v11616_v28 = vadd.f32 %v12844_v22, %v11608_v19  ;;  %v807_v13 = vsel %vm423_vm2, %v806_v32, 0.0  ;;  %v6754_v18 = vmul.f32 %v16389_v12, %v15914_v8  ;;  %v11824_v32 = vld [vmem:[%s15743_s5] sm:$0x1] }
0x5444   :  { %v11615_v27 = vadd.f32 %v12844_v22, %v11607_v26  ;;  %v6755_v19 = vsel %vm423_vm2, %v6754_v18, 0.0  ;;  %v6863_v22 = vsel %vm423_vm2, %v6862_v25, 0.0  ;;  %v712_v26 = vpop.xlane.xlu1 %711 }
0x5446   :  { %14627 = vmatprep.mubr.msk.f32.mxu0 %vm247_vm1, %v11615_v27 }
0x5447   :  { %14628 = vmatmul.mubr.msk.f32.vlgmr.msra.gmra.mxu0 %vm247_vm1, %v11616_v28  ;;  %v716_v28 = vmul.f32 %v712_v26, %v15109_v52 }
0x5448   :  { %14657 = vmatprep.mubr.msk.f32.mxu0 %vm14993_vm3, %v14990_v21 }
0x5449   :  { %v718_v8 = vmul.f32 %v716_v28, %v15109_v52 }
0x5507   :  { %v14629_v31 = vpop.f32.mrf.mxu0 }
0x5508   :  { %v11706_v56 = vadd.f32 %v14629_v31, %v12850_v45  ;;  %v720_v31 = vsel %vm423_vm2, %v718_v8, 0.0 }
0x5509   :  { %v11700_v30 = vpop.f32.mrf.mxu0 }
0x550a   :  { %v11710_v54 = vmul.f32 %v11706_v56, %v11706_v56  ;;  %v11701_v50 = vadd.f32 %v12850_v45, %v11700_v30 }
0x550c   :  { %v11712_v42 = vmul.f32 %v11710_v54, %v11706_v56  ;;  %v11709_v35 = vmul.f32 %v11701_v50, %v11701_v50 }
0x550e   :  { %v11714_v58 = vmul.f32 0.044715, %v11712_v42  ;;  %v11711_v59 = vmul.f32 %v11709_v35, %v11701_v50 }
0x5510   :  { %v11716_v38 = vadd.f32 %v11714_v58, %v11706_v56  ;;  %v11713_v61 = vmul.f32 0.044715, %v11711_v59  ;;  %v11844_v59 = vld [vmem:[%s16530_s14 + $0x18] sm:$0xff] }
0x5511   :  { %14650 = vmatpush3.msra.mxu0 %v11844_v59  ;;  %v11930_v59 = vld [vmem:[%s16532_s8 + $0x10] sm:$0xff] }
0x5512   :  { %v11718_v1 = vmul.f32 0.7978846, %v11716_v38  ;;  %v11715_v33 = vadd.f32 %v11713_v61, %v11701_v50  ;;  %v12870_v38 = vld [vmem:[%s16530_s14 + $0x38] sm:$0xff]  ;;  %14651 = vmatprep.subr.mxu0 %v14990_v21  ;;  %v11843_v61 = vld [vmem:[%s16530_s14 + $0x10] sm:$0xff] }
0x5513   :  { %14652 = vmatpush3.msra.mxu0 %v11843_v61  ;;  %v11929_v61 = vld [vmem:[%s16532_s8 + $0x8] sm:$0xff] }
0x5514   :  { %14955 = vtanh.f32 %v11718_v1  ;;  %v11717_v36 = vmul.f32 0.7978846, %v11715_v33  ;;  %v12869_v1 = vld [vmem:[%s16530_s14 + $0x30] sm:$0xff]  ;;  %v11842_v33 = vld [vmem:[%s16530_s14 + $0x8] sm:$0xff]  ;;  %14653 = vmatprep.subr.mxu0 %v14990_v21 }
0x5515   :  { %14654 = vmatpush3.msra.mxu0 %v11842_v33  ;;  %v11928_v33 = vld [vmem:[%s16532_s8] sm:$0xff] }
0x5516   :  { %14957 = vtanh.f32 %v11717_v36  ;;  %v12868_v36 = vld [vmem:[%s16530_s14 + $0x28] sm:$0xff]  ;;  %14655 = vmatprep.subr.mxu0 %v14990_v21 }
0x5521   :  { %v14956_v49 = vpop.eup %14955 }
0x5522   :  { %v11722_v47 = vadd.f32 1.0, %v14956_v49  ;;  %v11841_v49 = vld [vmem:[%s16530_s14] sm:$0xff] }
0x5523   :  { %v14958_v62 = vpop.eup %14957  ;;  %14656 = vmatpush3.msra.mxu0 %v11841_v49  ;;  %v11845_v49 = vld [vmem:[%s16533_s13] sm:$0x1] }
0x5524   :  { %v11721_v17 = vadd.f32 1.0, %v14958_v62  ;;  %v11724_v2 = vmul.f32 0.5, %v11722_v47  ;;  %v12867_v47 = vld [vmem:[%s16530_s14 + $0x20] sm:$0xff]  ;;  %14660 = vmatprep.subr.mxu0 %v14990_v21 }
0x5526   :  { %v11723_v23 = vmul.f32 0.5, %v11721_v17  ;;  %v11726_v14 = vmul.f32 %v11724_v2, %v11706_v56 }
0x5528   :  { %v11725_v40 = vmul.f32 %v11723_v23, %v11701_v50  ;;  %v14984_v50 = vld [vmem:[%s15033_s10 + $0x10] sm:$0xff]  ;;  %s16531_s10 = sld [smem:[#allocation4_spill]] }
0x552a   :  { %14646 = vmatprep.mubr.msk.f32.mxu1 %vm3247_vm8, %v11725_v40 }
0x552b   :  { %14647 = vmatmul.mubr.msk.f32.vlgmr.msra.gmra.mxu1 %vm3247_vm8, %v11726_v14 }
0x552c   :  { %14687 = vmatprep.mubr.msk.f32.mxu1 %vm14993_vm3, %v14990_v21  ;;  %14680 = vmatpush3.msra.mxu1 %v12870_v38  ;;  %v12875_v38 = vld [vmem:[%s16532_s8 + $0x50] sm:$0xff] }
0x552d   :  { %14681 = vmatprep.subr.mxu1 %v14990_v21 }
0x552e   :  { %14682 = vmatpush3.msra.mxu1 %v12869_v1  ;;  %v12874_v1 = vld [vmem:[%s16532_s8 + $0x48] sm:$0xff] }
0x552f   :  { %14683 = vmatprep.subr.mxu1 %v14990_v21 }
0x5530   :  { %14684 = vmatpush3.msra.mxu1 %v12868_v36  ;;  %v12873_v36 = vld [vmem:[%s16532_s8 + $0x40] sm:$0xff] }
0x5531   :  { %14685 = vmatprep.subr.mxu1 %v14990_v21 }
0x5532   :  { %14686 = vmatpush3.msra.mxu1 %v12867_v47  ;;  %v12871_v47 = vld [vmem:[%s16533_s13 + $0x1] sm:$0x1] }
0x5533   :  { %14690 = vmatprep.subr.mxu1 %v14990_v21 }
0x55eb   :  { %v14648_v7 = vpop.f32.mrf.mxu1 }
0x55ed   :  { %v11807_v5 = vpop.f32.mrf.mxu1 }
0x55ee   :  { %v11815_v9 = vadd.f32 %v11807_v5, %v16351_v4  ;;  %v699_v4 = vsel %vm423_vm2, %v698_v60, 0.0 }
0x55f0   :  { %v11823_v10 = vadd.f32 %v12864_v6, %v11815_v9 }
0x55f2   :  { %v11826_v11 = vsel %vm850_vm4, %v11823_v10, 0.0 }
0x55f3   :  { %11827 = vadd.xlane.f32.xlu0 %v11826_v11 }
0x55f7   :  { %714 = vadd.xlane.f32.xlu0 %v713_v57 }
0x55fb   :  { %700 = vadd.xlane.f32.xlu0 %v699_v4 }
0x55ff   :  { %808 = vadd.xlane.f32.xlu0 %v807_v13  ;;  %v11825_v13 = vld [vmem:[%s16531_s10] sm:$0x1] }
0x5603   :  { %6770 = vadd.xlane.f32.xlu0 %v6769_v16 }
0x5607   :  { %6756 = vadd.xlane.f32.xlu0 %v6755_v19 }
0x560b   :  { %6864 = vadd.xlane.f32.xlu0 %v6863_v22 }
0x567c   :  { %v11828_v27 = vpop.xlane.xlu0 %11827 }
0x567d   :  { %v11829_v29 = vmul.f32 0.03125, %v11828_v27 }
0x567f   :  { %v16408_v53 = vsub.f32 %v11823_v10, %v11829_v29 }
0x5680   :  { %v715_v34 = vpop.xlane.xlu0 %714 }
0x5681   :  { %v717_v37 = vmul.f32 %v715_v34, %v15113_v55  ;;  %v11831_v41 = vmul.f32 %v16408_v53, %v16408_v53  ;;  %v16451_v34 = vmul.f32 0.35355338, %v16389_v12 }
0x5683   :  { %v719_v43 = vmul.f32 %v717_v37, %v15113_v55  ;;  %v11832_v44 = vsel %vm850_vm4, %v11831_v41, 0.0  ;;  %v6766_v55 = vsel %vm154_vm0, %v14984_v50, 0.0  ;;  %v12878_v50 = vld [vmem:[%s16532_s8 + $0x68] sm:$0xff] }
0x5684   :  { %11833 = vadd.xlane.f32.xlu1 %v11832_v44  ;;  %v701_v24 = vpop.xlane.xlu0 %700 }
0x5685   :  { %v702_v45 = vrot.slane %v701_v24, 4  ;;  %v721_v56 = vsel %vm423_vm2, %v719_v43, 0.0 }
0x5686   :  { %v722_v30 = vadd.f32 %v721_v56, %v720_v31  ;;  %v11935_v56 = vld [vmem:[%s16532_s8 + $0x38] sm:$0xff] }
0x5687   :  { %v703_v52 = vadd.f32 %v702_v45, %v701_v24 }
0x5688   :  { %723 = vadd.xlane.f32.xlu1 %v722_v30  ;;  %v809_v62 = vpop.xlane.xlu0 %808  ;;  %v12880_v30 = vld [vmem:[%s16532_s8 + $0x78] sm:$0xff] }
0x5689   :  { %v704_v54 = vrot.slane %v703_v52, 2  ;;  %v810_v17 = vrot.slane %v809_v62, 4 }
0x568b   :  { %v705_v42 = vadd.f32 %v704_v54, %v703_v52  ;;  %v811_v2 = vadd.f32 %v810_v17, %v809_v62  ;;  %v11933_v54 = vld [vmem:[%s16532_s8 + $0x28] sm:$0xff] }
0x568c   :  { %6767 = vadd.xlane.f32.xlu1 %v6766_v55  ;;  %v6771_v29 = vpop.xlane.xlu0 %6770  ;;  %v11932_v55 = vld [vmem:[%s16532_s8 + $0x20] sm:$0xff] }
0x568d   :  { %v706_v35 = vrot.slane %v705_v42, 1  ;;  %v812_v39 = vrot.slane %v811_v2, 2  ;;  %v6773_v37 = vmul.f32 %v6771_v29, %v15865_v20 }
0x568f   :  { %v707_v58 = vadd.f32 %v706_v35, %v705_v42  ;;  %v813_v5 = vadd.f32 %v812_v39, %v811_v2  ;;  %v6775_v24 = vmul.f32 %v6773_v37, %v15865_v20  ;;  %v12879_v20 = vld [vmem:[%s16532_s8 + $0x70] sm:$0xff]  ;;  %v12877_v42 = vld [vmem:[%s16532_s8 + $0x60] sm:$0xff]  ;;  %v11931_v35 = vld [vmem:[%s16532_s8 + $0x18] sm:$0xff] }
0x5691   :  { %14709 = vpush %v707_v58  ;;  %v814_v10 = vrot.slane %v813_v5, 1  ;;  %v6777_v52 = vsel %vm423_vm2, %v6775_v24, 0.0  ;;  %v12876_v58 = vld [vmem:[%s16532_s8 + $0x58] sm:$0xff] }
0x5693   :  { %v815_v57 = vadd.f32 %v814_v10, %v813_v5 }
0x56c2   :  { %s16445_s21 = spop %14709 }
0x570d   :  { %v11834_v23 = vpop.xlane.xlu1 %11833 }
0x570e   :  { %v11835_v40 = vmul.f32 0.03125, %v11834_v23 }
0x5710   :  { %v11836_v14 = vadd.f32 1e-05, %v11835_v40 }
0x5711   :  { %v724_v7 = vpop.xlane.xlu1 %723 }
0x5712   :  { %14959 = vrsqrt.f32 %v11836_v14  ;;  %v725_v0 = vrot.slane %v724_v7, 4 }
0x5714   :  { %v726_v48 = vadd.f32 %v725_v0, %v724_v7 }
0x5715   :  { %v6768_v28 = vpop.xlane.xlu1 %6767 }
0x5716   :  { %v727_v6 = vrot.slane %v726_v48, 2 }
0x5718   :  { %v728_v9 = vadd.f32 %v727_v6, %v726_v48 }
0x571a   :  { %v729_v11 = vrot.slane %v728_v9, 1 }
0x571c   :  { %v730_v3 = vadd.f32 %v729_v11, %v728_v9 }
0x571e   :  { %14711 = vpush %v730_v3  ;;  %v6757_v3 = vpop.xlane.xlu0 %6756 }
0x571f   :  { %v14960_v60 = vpop.eup %14959  ;;  %14713 = vpush %v815_v57  ;;  %v6758_v57 = vrot.slane %v6757_v3, 4 }
0x5720   :  { %v11838_v4 = vmul.f32 %v14960_v60, %v16408_v53  ;;  %v6772_v53 = vmul.f32 %v6768_v28, %v15869_v46 }
0x5722   :  { %v11839_v15 = vmul.f32 %v11838_v4, %v11824_v32  ;;  %v6774_v43 = vmul.f32 %v6772_v53, %v15869_v46  ;;  %v6865_v60 = vpop.xlane.xlu0 %6864  ;;  %v6759_v32 = vadd.f32 %v6758_v57, %v6757_v3 }
0x5723   :  { %v6866_v4 = vrot.slane %v6865_v60, 4 }
0x5724   :  { %v11840_v16 = vadd.f32 %v11839_v15, %v11825_v13  ;;  %v6776_v12 = vsel %vm423_vm2, %v6774_v43, 0.0 }
0x5725   :  { %v6778_v46 = vadd.f32 %v6777_v52, %v6776_v12 }
0x5726   :  { %14658 = vmatmul.mubr.msk.f32.vlgmr.msra.gmra.mxu0 %vm247_vm1, %v11840_v16  ;;  %14688 = vmatmul.mubr.msk.f32.vlgmr.msra.gmra.mxu1 %vm247_vm1, %v11840_v16 }
0x5727   :  { %14676 = vmatprep.mubr.msk.f32.mxu0 %vm14993_vm3, %v14990_v21  ;;  %14706 = vmatprep.mubr.msk.f32.mxu1 %vm14993_vm3, %v14990_v21 }
0x5728   :  { %14661 = vmatpush3.msra.mxu0 %v11935_v56  ;;  %14691 = vmatpush3.msra.mxu1 %v12880_v30 }
0x5729   :  { %14662 = vmatprep.subr.mxu0 %v14990_v21  ;;  %14692 = vmatprep.subr.mxu1 %v14990_v21 }
0x572a   :  { %14693 = vmatpush3.msra.mxu1 %v12879_v20 }
0x572b   :  { %14694 = vmatprep.subr.mxu1 %v14990_v21 }
0x572c   :  { %14695 = vmatpush3.msra.mxu1 %v12878_v50 }
0x572d   :  { %14696 = vmatprep.subr.mxu1 %v14990_v21 }
0x572e   :  { %14697 = vmatpush3.msra.mxu1 %v12877_v42 }
0x572f   :  { %14698 = vmatprep.subr.mxu1 %v14990_v21 }
0x5730   :  { %14699 = vmatpush3.msra.mxu1 %v12876_v58 }
0x5731   :  { %14700 = vmatprep.subr.mxu1 %v14990_v21 }
0x5732   :  { %14701 = vmatpush3.msra.mxu1 %v12875_v38 }
0x5733   :  { %14702 = vmatprep.subr.mxu1 %v14990_v21 }
0x5734   :  { %14703 = vmatpush3.msra.mxu1 %v12874_v1 }
0x5735   :  { %14704 = vmatprep.subr.mxu1 %v14990_v21 }
0x5736   :  { %14705 = vmatpush3.msra.mxu1 %v12873_v36 }
0x574f   :  { %s16447_s25 = spop %14711 }
0x5750   :  { %s14714_s29 = spop %14713 }
0x5751   :  { %v817_v18 = vstv %s14714_s29 }
0x5752   :  { %14961 = vrsqrt.f32 %v817_v18  ;;  %vm820_vm11 = vcmp.eq.f32.partialorder %v817_v18, inf  ;;  %v823_v22 = vand.u32 2147483648, %v817_v18  ;;  %vm822_vm12 = vcmp.eq.f32.partialorder %v817_v18, 0.0 }
0x575f   :  { %v14962_v25 = vpop.eup %14961 }
0x5760   :  { %v819_v19 = vmul.f32 %v14962_v25, %v817_v18  ;;  %v6867_v25 = vadd.f32 %v6866_v4, %v6865_v60 }
0x5762   :  { %v821_v26 = vsel %vm820_vm11, %v817_v18, %v819_v19  ;;  %v6760_v18 = vrot.slane %v6759_v32, 2 }
0x5763   :  { %v824_v27 = vsel %vm822_vm12, %v823_v22, %v821_v26 }
0x5764   :  { %14963 = vrcp.f32 %v824_v27  ;;  %v6761_v43 = vadd.f32 %v6760_v18, %v6759_v32 }
0x5766   :  { %v6762_v56 = vrot.slane %v6761_v43, 1 }
0x5771   :  { %v14964_v8 = vpop.eup %14963 }
0x5772   :  { %v826_v41 = vmul.f32 %v14964_v8, %v15140_v63  ;;  %v11934_v63 = vld [vmem:[%s16532_s8 + $0x30] sm:$0xff]  ;;  %v6868_v8 = vrot.slane %v6867_v25, 2 }
0x5773   :  { %14663 = vmatpush3.msra.mxu0 %v11934_v63 }
0x5774   :  { %v828_v44 = vsub.f32 %v826_v41, %v16451_v34  ;;  %14664 = vmatprep.subr.mxu0 %v14990_v21  ;;  %v6869_v12 = vadd.f32 %v6868_v8, %v6867_v25 }
0x5775   :  { %14665 = vmatpush3.msra.mxu0 %v11933_v54 }
0x5776   :  { %v829_v45 = vmul.f32 %v828_v44, %v828_v44  ;;  %14666 = vmatprep.subr.mxu0 %v14990_v21  ;;  %v6870_v54 = vrot.slane %v6869_v12, 1 }
0x5777   :  { %14667 = vmatpush3.msra.mxu0 %v11932_v55 }
0x5778   :  { %v830_v31 = vsel %vm423_vm2, %v829_v45, 0.0  ;;  %14668 = vmatprep.subr.mxu0 %v14990_v21  ;;  %v6871_v42 = vadd.f32 %v6870_v54, %v6869_v12 }
0x5779   :  { %831 = vadd.xlane.f32.xlu1 %v830_v31  ;;  %14669 = vmatpush3.msra.mxu0 %v11931_v35  ;;  %v732_v35 = vstv %s16447_s25 }
0x577a   :  { %14670 = vmatprep.subr.mxu0 %v14990_v21 }
0x577b   :  { %14671 = vmatpush3.msra.mxu0 %v11930_v59 }
0x577c   :  { %14672 = vmatprep.subr.mxu0 %v14990_v21 }
0x577d   :  { %6779 = vadd.xlane.f32.xlu1 %v6778_v46  ;;  %14673 = vmatpush3.msra.mxu0 %v11929_v61  ;;  %v6763_v46 = vadd.f32 %v6762_v56, %v6761_v43  ;;  %v709_v61 = vstv %s16445_s21 }
0x577e   :  { %14674 = vmatprep.subr.mxu0 %v14990_v21 }
0x577f   :  { %14675 = vmatpush3.msra.mxu0 %v11928_v33 }
0x57e6   :  { %v11915_v62 = vpop.f32.mrf.mxu0  ;;  %v12082_v17 = vpop.f32.mrf.mxu1 }
0x57e7   :  { %v11916_v2 = vadd.f32 %v11915_v62, %v11845_v49  ;;  %v12083_v23 = vadd.f32 %v12871_v47, %v12082_v17 }
0x57e8   :  { %v14659_v40 = vpop.f32.mrf.mxu0  ;;  %v14689_v14 = vpop.f32.mrf.mxu1 }
0x57e9   :  { %v11919_v39 = vmul.f32 %v11916_v2, %v11916_v2  ;;  %v12086_v7 = vmul.f32 %v12083_v23, %v12083_v23 }
0x57eb   :  { %v11920_v0 = vmul.f32 %v11919_v39, %v11916_v2  ;;  %v12087_v48 = vmul.f32 %v12086_v7, %v12083_v23 }
0x57ed   :  { %v11921_v5 = vmul.f32 0.044715, %v11920_v0  ;;  %v12088_v6 = vmul.f32 0.044715, %v12087_v48 }
0x57ef   :  { %v11922_v9 = vadd.f32 %v11921_v5, %v11916_v2  ;;  %v12089_v10 = vadd.f32 %v12088_v6, %v12083_v23 }
0x57f1   :  { %v11923_v11 = vmul.f32 0.7978846, %v11922_v9  ;;  %v12090_v21 = vmul.f32 0.7978846, %v12089_v10  ;;  %v11936_v9 = vld [vmem:[%s15828_s15] sm:$0x1] }
0x57f2   :  { %v12881_v10 = vld [vmem:[%s15828_s15 + $0x1] sm:$0x1] }
0x57f3   :  { %14965 = vtanh.f32 %v11923_v11 }
0x57f4   :  { %14967 = vtanh.f32 %v12090_v21 }
0x57f5   :  { %14969 = vrcp.f32 %v732_v35 }
0x5800   :  { %v14966_v13 = vpop.eup %14965 }
0x5801   :  { %v14968_v15 = vpop.eup %14967  ;;  %v11925_v16 = vadd.f32 1.0, %v14966_v13 }
0x5802   :  { %v12092_v19 = vadd.f32 1.0, %v14968_v15  ;;  %v832_v22 = vpop.xlane.xlu1 %831  ;;  %v14970_v38 = vpop.eup %14969 }
0x5803   :  { %v11926_v26 = vmul.f32 0.5, %v11925_v16  ;;  %v833_v27 = vrot.slane %v832_v22, 4  ;;  %v734_v1 = vmul.f32 %v14970_v38, %v709_v61 }
0x5804   :  { %v12093_v28 = vmul.f32 0.5, %v12092_v19 }
0x5805   :  { %v11927_v29 = vmul.f32 %v11926_v26, %v11916_v2  ;;  %v834_v53 = vadd.f32 %v833_v27, %v832_v22  ;;  %v735_v47 = vsub.f32 0.0, %v734_v1 }
0x5806   :  { %v12094_v37 = vmul.f32 %v12093_v28, %v12083_v23  ;;  %v6780_v41 = vpop.xlane.xlu1 %6779 }
0x5807   :  { %v835_v44 = vrot.slane %v834_v53, 2  ;;  %v6781_v24 = vrot.slane %v6780_v41, 4  ;;  %14677 = vmatmul.mubr.msk.f32.vlgmr.msra.gmra.mxu0 %vm3247_vm8, %v11927_v29 }
0x5808   :  { %14707 = vmatmul.mubr.msk.f32.vlgmr.msra.gmra.mxu1 %vm3247_vm8, %v12094_v37 }
0x5809   :  { %v6782_v45 = vadd.f32 %v6781_v24, %v6780_v41  ;;  %v836_v31 = vadd.f32 %v835_v44, %v834_v53 }
0x580b   :  { %v6783_v30 = vrot.slane %v6782_v45, 2  ;;  %v837_v52 = vrot.slane %v836_v31, 1 }
0x580d   :  { %v838_v63 = vadd.f32 %v837_v52, %v836_v31  ;;  %v6784_v20 = vadd.f32 %v6783_v30, %v6782_v45 }
0x580f   :  { %14715 = vpush %v838_v63  ;;  %v6785_v50 = vrot.slane %v6784_v20, 1 }
0x5810   :  { %14717 = vpush %v6763_v46 }
0x5811   :  { %v6786_v55 = vadd.f32 %v6785_v50, %v6784_v20 }
0x5813   :  { %14719 = vpush %v6786_v55 }
0x5814   :  { %14721 = vpush %v6871_v42 }
0x5840   :  { %s16496_s19 = spop %14715 }
0x5841   :  { %s14718_s24 = spop %14717  ;;  %v840_v25 = vstv %s16496_s19 }
0x5842   :  { %v6765_v36 = vstv %s14718_s24  ;;  %vm843_vm0 = vcmp.eq.f32.partialorder %v840_v25, inf  ;;  %v846_v53 = vand.u32 2147483648, %v840_v25 }
0x5844   :  { %s14720_s30 = spop %14719 }
0x5845   :  { %v6788_v58 = vstv %s14720_s30  ;;  %s14722_s4 = spop %14721 }
0x5846   :  { %14971 = vrcp.f32 %v6788_v58  ;;  %v6873_v59 = vstv %s14722_s4 }
0x5847   :  { %14973 = vrsqrt.f32 %v6873_v59  ;;  %vm6876_vm13 = vcmp.eq.f32.partialorder %v6873_v59, inf  ;;  %v6879_v23 = vand.u32 2147483648, %v6873_v59  ;;  %vm6878_vm14 = vcmp.eq.f32.partialorder %v6873_v59, 0.0 }
0x5853   :  { %v14972_v33 = vpop.eup %14971 }
0x5854   :  { %v14974_v49 = vpop.eup %14973  ;;  %v6790_v62 = vmul.f32 %v14972_v33, %v6765_v36 }
0x5855   :  { %v6875_v17 = vmul.f32 %v14974_v49, %v6873_v59 }
0x5856   :  { %v6791_v2 = vsub.f32 %v735_v47, %v6790_v62 }
0x5857   :  { %v6877_v40 = vsel %vm6876_vm13, %v6873_v59, %v6875_v17 }
0x5858   :  { %v12178_v14 = vmul.f32 0.5, %v6791_v2  ;;  %v6880_v39 = vsel %vm6878_vm14, %v6879_v23, %v6877_v40 }
0x5859   :  { %14975 = vrcp.f32 %v6880_v39 }
0x585a   :  { %12180 = vst.msk [vmem:[%s16502_s2] sm:$0x1] %vm12179_vm15, %v12178_v14  ;;  %14977 = vrsqrt.f32 %v840_v25 }
0x5866   :  { %v14976_v7 = vpop.eup %14975 }
0x5867   :  { %v6882_v0 = vmul.f32 %v14976_v7, %v15891_v51  ;;  %v14978_v22 = vpop.eup %14977 }
0x5868   :  { %v842_v26 = vmul.f32 %v14978_v22, %v840_v25 }
0x5869   :  { %v6883_v48 = vsub.f32 %v6882_v0, %v16451_v34 }
0x586a   :  { %v844_v28 = vsel %vm843_vm0, %v840_v25, %v842_v26 }
0x586b   :  { %v6884_v5 = vmul.f32 %v6883_v48, %v6883_v48 }
0x586d   :  { %v6885_v6 = vsel %vm423_vm2, %v6884_v5, 0.0  ;;  %vm845_vm2 = vcmp.eq.f32.partialorder %v840_v25, 0.0 }
0x586e   :  { %6886 = vadd.xlane.f32.xlu1 %v6885_v6  ;;  %v847_v41 = vsel %vm845_vm2, %v846_v53, %v844_v28 }
0x58c7   :  { %v12006_v11 = vpop.f32.mrf.mxu0 }
0x58c8   :  { %v12007_v21 = vadd.f32 %v12006_v11, %v11936_v9  ;;  %v12173_v3 = vpop.f32.mrf.mxu1 }
0x58c9   :  { %v12174_v57 = vadd.f32 %v12881_v10, %v12173_v3  ;;  %v14678_v60 = vpop.f32.mrf.mxu0 }
0x58ca   :  { %12010 = vst.msk [vmem:[%s15833_s6 + $0x1] sm:$0x1] %vm6019_vm9, %v12007_v21  ;;  %v14708_v32 = vpop.f32.mrf.mxu1 }
0x58cb   :  { %12177 = vst.msk [vmem:[%s15833_s6 + $0x3] sm:$0x1] %vm6019_vm9, %v12174_v57 }
0x58f7   :  { %v6887_v51 = vpop.xlane.xlu1 %6886 }
0x58f8   :  { %v6888_v4 = vrot.slane %v6887_v51, 4 }
0x58fa   :  { %v6889_v34 = vadd.f32 %v6888_v4, %v6887_v51 }
0x58fc   :  { %v6890_v13 = vrot.slane %v6889_v34, 2 }
0x58fe   :  { %v6891_v15 = vadd.f32 %v6890_v13, %v6889_v34 }
0x5900   :  { %v6892_v16 = vrot.slane %v6891_v15, 1 }
0x5902   :  { %v6893_v18 = vadd.f32 %v6892_v16, %v6891_v15 }
0x5904   :  { %14723 = vpush %v6893_v18 }
0x5935   :  { %s14724_s0 = spop %14723 }
0x5936   :  { %v6895_v19 = vstv %s14724_s0 }
0x5937   :  { %14979 = vrsqrt.f32 %v6895_v19  ;;  %vm6898_vm1 = vcmp.eq.f32.partialorder %v6895_v19, inf  ;;  %v6901_v8 = vand.u32 2147483648, %v6895_v19  ;;  %vm6900_vm3 = vcmp.eq.f32.partialorder %v6895_v19, 0.0 }
0x5944   :  { %v14980_v27 = vpop.eup %14979 }
0x5945   :  { %v6897_v29 = vmul.f32 %v14980_v27, %v6895_v19 }
0x5947   :  { %v6899_v37 = vsel %vm6898_vm1, %v6895_v19, %v6897_v29 }
0x5948   :  { %v6902_v43 = vsel %vm6900_vm3, %v6901_v8, %v6899_v37 }
0x5949   :  { %v6903_v44 = vadd.f32 %v6902_v43, %v847_v41 }
0x594b   :  { %v12181_v24 = vmul.f32 0.5, %v6903_v44 }
0x594d   :  { %12182 = vst.msk [vmem:[%s16502_s2 + $0x1] sm:$0x1] %vm12179_vm15, %v12181_v24 }

</bundles_post_ra>
